<compile_context>
chip_gen: v7x
topology: tpu7x:2x2x1
jax: 0.10.0
libtpu: 0.0.40
codegen_flags: <defaults>
</compile_context>

<pallas_src>
import jax
import jax.numpy as jnp
from jax import lax
from jax.experimental import pallas as pl
from jax.experimental.pallas import tpu as pltpu


# ---------------------------------------------------------------------------
# Slab geometry (constants are tightly coupled -- see asserts).
#   pooled conv1 output (14x14x16) is stored zero-padded as an 18x24 grid,
#   flattened row-major:  slab_row(hp, wp) = hp*24 + wp, valid at hp,wp in
#   [2,16).  conv2 tap t = kh*5+kw for output anchor p = h*24 + w reads
#   slab_row p + kh*24 + kw.
# ---------------------------------------------------------------------------
SLAB_H = 18                 # 14 valid rows + 2 zero-pad rows top/bottom
SLAB_W = 24                 # 14 valid cols + 2 zero-pad left + 8 extra (8-align)
R = SLAB_H * SLAB_W         # 432 slab rows per image (multiple of 8)
MAX_SHIFT = 4 * SLAB_W + 4  # 104, largest conv2 tap shift
MAX_ANCHOR = 13 * SLAB_W + 13  # 325, largest conv2 output anchor row
ANCH_ROWS = 328             # anchors per image rounded up to a multiple of 8
assert R % 8 == 0 and ANCH_ROWS % 8 == 0
assert MAX_ANCHOR < ANCH_ROWS and ANCH_ROWS + MAX_SHIFT <= R


# ---------------------------------------------------------------------------
# Fused kernel: conv1 + relu + pool1 + conv2 + relu + pool2.
# One grid step processes G images.
# ---------------------------------------------------------------------------
def fused_cnn_kernel(p1_ref, w1_ref, b1_ref, mask_ref, w2c_ref, b2_ref,
                     o_ref, slab_ref, col_ref, c2_ref):
    f32 = jnp.float32
    G = p1_ref.shape[0]            # images per grid step
    Mv = col_ref.shape[0]          # (G-1)*R + ANCH_ROWS

    w1 = w1_ref[...]               # (25, 16)
    b1 = b1_ref[...]               # (1, 16)
    mask = mask_ref[...]           # (432, 16): 1.0 on valid slab rows, else 0.0

    # ---- conv1 + relu + 2x2 maxpool: one (1728,25)@(25,16) matmul per image.
    # Patch rows arrive from the wrapper already in padded-slab order with the
    # four pool parities stacked along M, so the pooled, zero-padded conv2
    # input is produced with a single aligned bulk store per image.
    for g in range(G):
        c1 = jnp.dot(p1_ref[g], w1, preferred_element_type=f32)   # (4*432, 16)
        m = jnp.maximum(jnp.maximum(c1[0:R], c1[R:2 * R]),
                        jnp.maximum(c1[2 * R:3 * R], c1[3 * R:4 * R]))
        # bias + relu commute with the pool max; the mask is mandatory because
        # relu(bias) can be > 0 on the pad rows.
        slab_ref[pl.ds(g * R, R), :] = jnp.maximum(m + b1, 0.0) * mask

    # ---- conv2 im2col: 25 shifted slab views -> 16-lane column blocks.
    # For anchor row p (= g*R + h*24 + w), tap t reads slab[p + kh*24 + kw];
    # rows between images' anchor ranges are never read back as anchors.
    for t in range(25):
        kh, kw = divmod(t, 5)
        col_ref[:, t * 16:(t + 1) * 16] = \
            slab_ref[pl.ds(kh * SLAB_W + kw, Mv), :]

    # ---- conv2 as a single (Mv, 400)@(400, 32) matmul, written to VMEM.
    c2_ref[...] = jnp.dot(col_ref[...], w2c_ref[...],
                          preferred_element_type=f32)

    # ---- bias + relu + 2x2 maxpool on the 49 pooled positions per image.
    b2 = b2_ref[...]               # (1, 32)
    for g in range(G):
        for r2 in range(7):
            base = g * R + 2 * r2 * SLAB_W
            a = c2_ref[pl.ds(base, 7, stride=2), :]                # (2r2, even w)
            b = c2_ref[pl.ds(base + 1, 7, stride=2), :]            # (2r2, odd  w)
            c = c2_ref[pl.ds(base + SLAB_W, 7, stride=2), :]       # (2r2+1, even)
            d = c2_ref[pl.ds(base + SLAB_W + 1, 7, stride=2), :]   # (2r2+1, odd)
            pooled = jnp.maximum(jnp.maximum(a, b), jnp.maximum(c, d))
            o_ref[g, pl.ds(r2 * 7, 7), :] = jnp.maximum(pooled + b2, 0.0)


# ---------------------------------------------------------------------------
# One-time parameter re-layout (outside the forward hot path).
# ---------------------------------------------------------------------------
def prepare_params(params):
    w1, b1, w2, b2, fw, fb = params
    # conv1 weight -> (kh*5+kw, cout)
    w1k = jnp.transpose(w1, (2, 3, 1, 0)).reshape(25, 16)
    # conv2 weight concatenated along K -> ((kh*5+kw)*16 + cin, cout)
    w2c = jnp.transpose(w2, (2, 3, 1, 0)).reshape(25 * 16, 32)
    # FC weight rows in (r2, wo2, c) order matching the kernel's pooled output
    wfck = jnp.transpose(fw.reshape(10, 32, 7, 7), (2, 3, 1, 0)).reshape(1568, 10)
    # 0/1 validity mask over the 432 slab rows
    hp = jnp.arange(SLAB_H)[:, None]
    wp = jnp.arange(SLAB_W)[None, :]
    valid = (hp >= 2) & (hp < 16) & (wp >= 2) & (wp < 16)
    mask = jnp.broadcast_to(valid.reshape(R, 1), (R, 16)).astype(jnp.float32)
    return (w1k, b1.reshape(1, 16), mask, w2c, b2.reshape(1, 32),
            wfck, fb.reshape(1, 10))


def _images_per_step(B):
    # keep the grid >= 2 whenever B >= 2 (v7x has 2 TensorCores), cap VMEM use.
    return min(8, max(1, B // 2))


# ---------------------------------------------------------------------------
# Forward pass (mirrors CNN_DigitClassifier.forward)
# ---------------------------------------------------------------------------
@jax.jit
def cnn_forward(x_nchw, prepped):
    w1k, b1k, mask, w2c, b2k, wfck, fbk = prepped
    B = x_nchw.shape[0]
    G = _images_per_step(B)
    Bp = pl.cdiv(B, G) * G
    Mv = (G - 1) * R + ANCH_ROWS

    # conv1 im2col patches, rows in padded-slab order, pool parities stacked.
    xpad = jnp.pad(x_nchw[:, 0], ((0, 0), (2, 2), (2, 2)))           # (B, 32, 32)
    taps = jnp.stack([xpad[:, kh:kh + 28, kw:kw + 28]
                      for kh in range(5) for kw in range(5)], axis=-1)  # (B,28,28,25)
    t2 = (taps.reshape(B, 14, 2, 14, 2, 25)
              .transpose(0, 2, 4, 1, 3, 5))                           # (B,a,b,h,w,25)
    t3 = jnp.pad(t2, ((0, 0), (0, 0), (0, 0), (2, 2), (2, 8), (0, 0)))  # (B,2,2,18,24,25)
    p1 = t3.reshape(B, 4 * R, 25)
    if Bp > B:
        p1 = jnp.pad(p1, ((0, Bp - B), (0, 0), (0, 0)))

    pooled = pl.pallas_call(
        fused_cnn_kernel,
        out_shape=jax.ShapeDtypeStruct((Bp, 49, 32), jnp.float32),
        grid=(Bp // G,),
        in_specs=[
            pl.BlockSpec((G, 4 * R, 25), lambda b: (b, 0, 0)),
            pl.BlockSpec((25, 16), lambda b: (0, 0)),
            pl.BlockSpec((1, 16), lambda b: (0, 0)),
            pl.BlockSpec((R, 16), lambda b: (0, 0)),
            pl.BlockSpec((400, 32), lambda b: (0, 0)),
            pl.BlockSpec((1, 32), lambda b: (0, 0)),
        ],
        out_specs=pl.BlockSpec((G, 49, 32), lambda b: (b, 0, 0)),
        scratch_shapes=[
            pltpu.VMEM((G * R, 16), jnp.float32),   # pooled conv1 "slab"
            pltpu.VMEM((Mv, 400), jnp.float32),     # conv2 im2col matrix
            pltpu.VMEM((Mv, 32), jnp.float32),      # raw conv2 output
        ],
        compiler_params=pltpu.CompilerParams(
            dimension_semantics=("parallel",),
            vmem_limit_bytes=40 * 1024 * 1024),
    )(p1, w1k, b1k, mask, w2c, b2k)

    pooled = pooled[:B].reshape(B, 49 * 32)
    # Final FC as one XLA GEMM (weight pre-permuted to the kernel's NHWC order).
    return jnp.dot(pooled, wfck, precision=lax.Precision.HIGHEST) + fbk


# ---------------------------------------------------------------------------
# Pure-JAX reference (for correctness check)
# ---------------------------------------------------------------------------
def cnn_forward_ref(x_nchw, params):
    w1, b1, w2, b2, fw, fb = params

    def block(x, w, b):
        y = lax.conv_general_dilated(
            x, w, window_strides=(1, 1), padding=((2, 2), (2, 2)),
            dimension_numbers=("NCHW", "OIHW", "NCHW"),
            precision=lax.Precision.HIGHEST) + b[None, :, None, None]
        y = jnp.maximum(y, 0.0)
        return lax.reduce_window(y, -jnp.inf, lax.max,
                                 (1, 1, 2, 2), (1, 1, 2, 2), "VALID")

    y = block(x_nchw, w1, b1)
    y = block(y, w2, b2)
    y = y.reshape(y.shape[0], -1)
    return jnp.dot(y, fw.T, precision=lax.Precision.HIGHEST) + fb


def init_params(key):
    k1, k2, k3, k4, k5, k6 = jax.random.split(key, 6)
    u = lambda k, s, bound: jax.random.uniform(k, s, jnp.float32, -bound, bound)
    w1 = u(k1, (16, 1, 5, 5), 1.0 / 5.0)        # fan_in = 1*5*5
    b1 = u(k2, (16,), 1.0 / 5.0)
    w2 = u(k3, (32, 16, 5, 5), 0.05)            # fan_in = 16*5*5
    b2 = u(k4, (32,), 0.05)
    fw = u(k5, (10, 32 * 7 * 7), 0.02525)       # fan_in = 1568
    fb = u(k6, (10,), 0.02525)
    return (w1, b1, w2, b2, fw, fb)


if __name__ == "__main__":
    key = jax.random.PRNGKey(0)
    kx, kp = jax.random.split(key)
    params = init_params(kp)
    prepped = prepare_params(params)
    x = jax.random.normal(kx, (2, 1, 28, 28), jnp.float32)   # NCHW, MNIST-sized

    out = jax.block_until_ready(cnn_forward(x, prepped))
    assert out.shape == (2, 10), out.shape

    ref = cnn_forward_ref(x, params)
    if not bool(jnp.allclose(out, ref, rtol=2e-2, atol=2e-2)):
        raise AssertionError(
            f"Pallas output mismatch vs reference: max abs err "
            f"{float(jnp.max(jnp.abs(out - ref)))}")

    print("KERNEL_OK")
</pallas_src>

<mosaic_0001>
module attributes {stable_mosaic.version = 11 : i64} {
  func.func @fused_cnn_kernel(%arg0: i32, %arg1: memref<1x1728x25xf32, #tpu.memory_space<vmem>>, %arg2: memref<25x16xf32, #tpu.memory_space<vmem>>, %arg3: memref<1x16xf32, #tpu.memory_space<vmem>>, %arg4: memref<432x16xf32, #tpu.memory_space<vmem>>, %arg5: memref<400x32xf32, #tpu.memory_space<vmem>>, %arg6: memref<1x32xf32, #tpu.memory_space<vmem>>, %arg7: memref<1x49x32xf32, #tpu.memory_space<vmem>>, %arg8: memref<432x16xf32, #tpu.memory_space<vmem>>, %arg9: memref<328x400xf32, #tpu.memory_space<vmem>>, %arg10: memref<328x32xf32, #tpu.memory_space<vmem>>) attributes {dimension_semantics = [#tpu.dimension_semantics<parallel>], iteration_bounds = array<i64: 2>, scalar_prefetch = 0 : i64, scratch_operands = 3 : i64, tpu.core_type = #tpu.core_type<tc>, window_params = [{transform_indices = @transform_0, window_bounds = array<i64: 1, 1728, 25>}, {pipeline_mode = #tpu.pipeline_mode<synchronous>, transform_indices = @transform_1, window_bounds = array<i64: 25, 16>}, {pipeline_mode = #tpu.pipeline_mode<synchronous>, transform_indices = @transform_2, window_bounds = array<i64: 1, 16>}, {pipeline_mode = #tpu.pipeline_mode<synchronous>, transform_indices = @transform_3, window_bounds = array<i64: 432, 16>}, {pipeline_mode = #tpu.pipeline_mode<synchronous>, transform_indices = @transform_4, window_bounds = array<i64: 400, 32>}, {pipeline_mode = #tpu.pipeline_mode<synchronous>, transform_indices = @transform_5, window_bounds = array<i64: 1, 32>}, {transform_indices = @transform_6, window_bounds = array<i64: 1, 49, 32>}]} {
    %c0 = arith.constant 0 : index
    %c0_0 = arith.constant 0 : index
    %0 = vector.load %arg2[%c0, %c0_0] : memref<25x16xf32, #tpu.memory_space<vmem>>, vector<25x16xf32>
    %c0_1 = arith.constant 0 : index
    %c0_2 = arith.constant 0 : index
    %1 = vector.load %arg3[%c0_1, %c0_2] : memref<1x16xf32, #tpu.memory_space<vmem>>, vector<1x16xf32>
    %c0_3 = arith.constant 0 : index
    %c0_4 = arith.constant 0 : index
    %2 = vector.load %arg4[%c0_3, %c0_4] : memref<432x16xf32, #tpu.memory_space<vmem>>, vector<432x16xf32>
    %c0_5 = arith.constant 0 : index
    %c0_6 = arith.constant 0 : index
    %c0_7 = arith.constant 0 : index
    %3 = vector.load %arg1[%c0_5, %c0_6, %c0_7] : memref<1x1728x25xf32, #tpu.memory_space<vmem>>, vector<1x1728x25xf32>
    %4 = vector.shape_cast %3 : vector<1x1728x25xf32> to vector<1728x25xf32>
    %cst = arith.constant dense<0.000000e+00> : vector<1728x16xf32>
    %5 = tpu.matmul %4, %0, %cst {dimension_numbers = #tpu.dot_dimension_numbers<[1], [0], [0], [1], [0, 0, 1, 1], [], []>} : vector<1728x25xf32>, vector<25x16xf32>, vector<1728x16xf32> -> vector<1728x16xf32>
    %6 = vector.extract_strided_slice %5 {offsets = [0, 0], sizes = [432, 16], strides = [1, 1]} : vector<1728x16xf32> to vector<432x16xf32>
    %7 = vector.extract_strided_slice %5 {offsets = [432, 0], sizes = [432, 16], strides = [1, 1]} : vector<1728x16xf32> to vector<432x16xf32>
    %8 = arith.maximumf %6, %7 : vector<432x16xf32>
    %9 = vector.extract_strided_slice %5 {offsets = [864, 0], sizes = [432, 16], strides = [1, 1]} : vector<1728x16xf32> to vector<432x16xf32>
    %10 = vector.extract_strided_slice %5 {offsets = [1296, 0], sizes = [432, 16], strides = [1, 1]} : vector<1728x16xf32> to vector<432x16xf32>
    %11 = arith.maximumf %9, %10 : vector<432x16xf32>
    %12 = arith.maximumf %8, %11 : vector<432x16xf32>
    %13 = vector.broadcast %1 : vector<1x16xf32> to vector<432x16xf32>
    %14 = arith.addf %12, %13 : vector<432x16xf32>
    %cst_8 = arith.constant 0.000000e+00 : f32
    %15 = vector.broadcast %cst_8 : f32 to vector<432x16xf32>
    %16 = arith.maximumf %14, %15 : vector<432x16xf32>
    %17 = arith.mulf %16, %2 : vector<432x16xf32>
    %c0_9 = arith.constant 0 : index
    %c0_10 = arith.constant 0 : index
    %18 = vector.load %arg8[%c0_9, %c0_10] : memref<432x16xf32, #tpu.memory_space<vmem>>, vector<432x16xf32>
    tpu.vector_store %arg8[%c0_9, %c0_10], %17 {strides = array<i32>} : memref<432x16xf32, #tpu.memory_space<vmem>>, vector<432x16xf32>,
    %c0_11 = arith.constant 0 : index
    %c0_12 = arith.constant 0 : index
    %19 = vector.load %arg8[%c0_11, %c0_12] : memref<432x16xf32, #tpu.memory_space<vmem>>, vector<328x16xf32>
    %c0_13 = arith.constant 0 : index
    %c0_14 = arith.constant 0 : index
    %20 = vector.load %arg9[%c0_13, %c0_14] : memref<328x400xf32, #tpu.memory_space<vmem>>, vector<328x16xf32>
    tpu.vector_store %arg9[%c0_13, %c0_14], %19 {strides = array<i32>} : memref<328x400xf32, #tpu.memory_space<vmem>>, vector<328x16xf32>,
    %c1 = arith.constant 1 : index
    %c0_15 = arith.constant 0 : index
    %21 = vector.load %arg8[%c1, %c0_15] : memref<432x16xf32, #tpu.memory_space<vmem>>, vector<328x16xf32>
    %c0_16 = arith.constant 0 : index
    %c16 = arith.constant 16 : index
    %22 = vector.load %arg9[%c0_16, %c16] : memref<328x400xf32, #tpu.memory_space<vmem>>, vector<328x16xf32>
    tpu.vector_store %arg9[%c0_16, %c16], %21 {strides = array<i32>} : memref<328x400xf32, #tpu.memory_space<vmem>>, vector<328x16xf32>,
    %c2 = arith.constant 2 : index
    %c0_17 = arith.constant 0 : index
    %23 = vector.load %arg8[%c2, %c0_17] : memref<432x16xf32, #tpu.memory_space<vmem>>, vector<328x16xf32>
    %c0_18 = arith.constant 0 : index
    %c32 = arith.constant 32 : index
    %24 = vector.load %arg9[%c0_18, %c32] : memref<328x400xf32, #tpu.memory_space<vmem>>, vector<328x16xf32>
    tpu.vector_store %arg9[%c0_18, %c32], %23 {strides = array<i32>} : memref<328x400xf32, #tpu.memory_space<vmem>>, vector<328x16xf32>,
    %c3 = arith.constant 3 : index
    %c0_19 = arith.constant 0 : index
    %25 = vector.load %arg8[%c3, %c0_19] : memref<432x16xf32, #tpu.memory_space<vmem>>, vector<328x16xf32>
    %c0_20 = arith.constant 0 : index
    %c48 = arith.constant 48 : index
    %26 = vector.load %arg9[%c0_20, %c48] : memref<328x400xf32, #tpu.memory_space<vmem>>, vector<328x16xf32>
    tpu.vector_store %arg9[%c0_20, %c48], %25 {strides = array<i32>} : memref<328x400xf32, #tpu.memory_space<vmem>>, vector<328x16xf32>,
    %c4 = arith.constant 4 : index
    %c0_21 = arith.constant 0 : index
    %27 = vector.load %arg8[%c4, %c0_21] : memref<432x16xf32, #tpu.memory_space<vmem>>, vector<328x16xf32>
    %c0_22 = arith.constant 0 : index
    %c64 = arith.constant 64 : index
    %28 = vector.load %arg9[%c0_22, %c64] : memref<328x400xf32, #tpu.memory_space<vmem>>, vector<328x16xf32>
    tpu.vector_store %arg9[%c0_22, %c64], %27 {strides = array<i32>} : memref<328x400xf32, #tpu.memory_space<vmem>>, vector<328x16xf32>,
    %c24 = arith.constant 24 : index
    %c0_23 = arith.constant 0 : index
    %29 = vector.load %arg8[%c24, %c0_23] : memref<432x16xf32, #tpu.memory_space<vmem>>, vector<328x16xf32>
    %c0_24 = arith.constant 0 : index
    %c80 = arith.constant 80 : index
    %30 = vector.load %arg9[%c0_24, %c80] : memref<328x400xf32, #tpu.memory_space<vmem>>, vector<328x16xf32>
    tpu.vector_store %arg9[%c0_24, %c80], %29 {strides = array<i32>} : memref<328x400xf32, #tpu.memory_space<vmem>>, vector<328x16xf32>,
    %c25 = arith.constant 25 : index
    %c0_25 = arith.constant 0 : index
    %31 = vector.load %arg8[%c25, %c0_25] : memref<432x16xf32, #tpu.memory_space<vmem>>, vector<328x16xf32>
    %c0_26 = arith.constant 0 : index
    %c96 = arith.constant 96 : index
    %32 = vector.load %arg9[%c0_26, %c96] : memref<328x400xf32, #tpu.memory_space<vmem>>, vector<328x16xf32>
    tpu.vector_store %arg9[%c0_26, %c96], %31 {strides = array<i32>} : memref<328x400xf32, #tpu.memory_space<vmem>>, vector<328x16xf32>,
    %c26 = arith.constant 26 : index
    %c0_27 = arith.constant 0 : index
    %33 = vector.load %arg8[%c26, %c0_27] : memref<432x16xf32, #tpu.memory_space<vmem>>, vector<328x16xf32>
    %c0_28 = arith.constant 0 : index
    %c112 = arith.constant 112 : index
    %34 = vector.load %arg9[%c0_28, %c112] : memref<328x400xf32, #tpu.memory_space<vmem>>, vector<328x16xf32>
    tpu.vector_store %arg9[%c0_28, %c112], %33 {strides = array<i32>} : memref<328x400xf32, #tpu.memory_space<vmem>>, vector<328x16xf32>,
    %c27 = arith.constant 27 : index
    %c0_29 = arith.constant 0 : index
    %35 = vector.load %arg8[%c27, %c0_29] : memref<432x16xf32, #tpu.memory_space<vmem>>, vector<328x16xf32>
    %c0_30 = arith.constant 0 : index
    %c128 = arith.constant 128 : index
    %36 = vector.load %arg9[%c0_30, %c128] : memref<328x400xf32, #tpu.memory_space<vmem>>, vector<328x16xf32>
    tpu.vector_store %arg9[%c0_30, %c128], %35 {strides = array<i32>} : memref<328x400xf32, #tpu.memory_space<vmem>>, vector<328x16xf32>,
    %c28 = arith.constant 28 : index
    %c0_31 = arith.constant 0 : index
    %37 = vector.load %arg8[%c28, %c0_31] : memref<432x16xf32, #tpu.memory_space<vmem>>, vector<328x16xf32>
    %c0_32 = arith.constant 0 : index
    %c144 = arith.constant 144 : index
    %38 = vector.load %arg9[%c0_32, %c144] : memref<328x400xf32, #tpu.memory_space<vmem>>, vector<328x16xf32>
    tpu.vector_store %arg9[%c0_32, %c144], %37 {strides = array<i32>} : memref<328x400xf32, #tpu.memory_space<vmem>>, vector<328x16xf32>,
    %c48_33 = arith.constant 48 : index
    %c0_34 = arith.constant 0 : index
    %39 = vector.load %arg8[%c48_33, %c0_34] : memref<432x16xf32, #tpu.memory_space<vmem>>, vector<328x16xf32>
    %c0_35 = arith.constant 0 : index
    %c160 = arith.constant 160 : index
    %40 = vector.load %arg9[%c0_35, %c160] : memref<328x400xf32, #tpu.memory_space<vmem>>, vector<328x16xf32>
    tpu.vector_store %arg9[%c0_35, %c160], %39 {strides = array<i32>} : memref<328x400xf32, #tpu.memory_space<vmem>>, vector<328x16xf32>,
    %c49 = arith.constant 49 : index
    %c0_36 = arith.constant 0 : index
    %41 = vector.load %arg8[%c49, %c0_36] : memref<432x16xf32, #tpu.memory_space<vmem>>, vector<328x16xf32>
    %c0_37 = arith.constant 0 : index
    %c176 = arith.constant 176 : index
    %42 = vector.load %arg9[%c0_37, %c176] : memref<328x400xf32, #tpu.memory_space<vmem>>, vector<328x16xf32>
    tpu.vector_store %arg9[%c0_37, %c176], %41 {strides = array<i32>} : memref<328x400xf32, #tpu.memory_space<vmem>>, vector<328x16xf32>,
    %c50 = arith.constant 50 : index
    %c0_38 = arith.constant 0 : index
    %43 = vector.load %arg8[%c50, %c0_38] : memref<432x16xf32, #tpu.memory_space<vmem>>, vector<328x16xf32>
    %c0_39 = arith.constant 0 : index
    %c192 = arith.constant 192 : index
    %44 = vector.load %arg9[%c0_39, %c192] : memref<328x400xf32, #tpu.memory_space<vmem>>, vector<328x16xf32>
    tpu.vector_store %arg9[%c0_39, %c192], %43 {strides = array<i32>} : memref<328x400xf32, #tpu.memory_space<vmem>>, vector<328x16xf32>,
    %c51 = arith.constant 51 : index
    %c0_40 = arith.constant 0 : index
    %45 = vector.load %arg8[%c51, %c0_40] : memref<432x16xf32, #tpu.memory_space<vmem>>, vector<328x16xf32>
    %c0_41 = arith.constant 0 : index
    %c208 = arith.constant 208 : index
    %46 = vector.load %arg9[%c0_41, %c208] : memref<328x400xf32, #tpu.memory_space<vmem>>, vector<328x16xf32>
    tpu.vector_store %arg9[%c0_41, %c208], %45 {strides = array<i32>} : memref<328x400xf32, #tpu.memory_space<vmem>>, vector<328x16xf32>,
    %c52 = arith.constant 52 : index
    %c0_42 = arith.constant 0 : index
    %47 = vector.load %arg8[%c52, %c0_42] : memref<432x16xf32, #tpu.memory_space<vmem>>, vector<328x16xf32>
    %c0_43 = arith.constant 0 : index
    %c224 = arith.constant 224 : index
    %48 = vector.load %arg9[%c0_43, %c224] : memref<328x400xf32, #tpu.memory_space<vmem>>, vector<328x16xf32>
    tpu.vector_store %arg9[%c0_43, %c224], %47 {strides = array<i32>} : memref<328x400xf32, #tpu.memory_space<vmem>>, vector<328x16xf32>,
    %c72 = arith.constant 72 : index
    %c0_44 = arith.constant 0 : index
    %49 = vector.load %arg8[%c72, %c0_44] : memref<432x16xf32, #tpu.memory_space<vmem>>, vector<328x16xf32>
    %c0_45 = arith.constant 0 : index
    %c240 = arith.constant 240 : index
    %50 = vector.load %arg9[%c0_45, %c240] : memref<328x400xf32, #tpu.memory_space<vmem>>, vector<328x16xf32>
    tpu.vector_store %arg9[%c0_45, %c240], %49 {strides = array<i32>} : memref<328x400xf32, #tpu.memory_space<vmem>>, vector<328x16xf32>,
    %c73 = arith.constant 73 : index
    %c0_46 = arith.constant 0 : index
    %51 = vector.load %arg8[%c73, %c0_46] : memref<432x16xf32, #tpu.memory_space<vmem>>, vector<328x16xf32>
    %c0_47 = arith.constant 0 : index
    %c256 = arith.constant 256 : index
    %52 = vector.load %arg9[%c0_47, %c256] : memref<328x400xf32, #tpu.memory_space<vmem>>, vector<328x16xf32>
    tpu.vector_store %arg9[%c0_47, %c256], %51 {strides = array<i32>} : memref<328x400xf32, #tpu.memory_space<vmem>>, vector<328x16xf32>,
    %c74 = arith.constant 74 : index
    %c0_48 = arith.constant 0 : index
    %53 = vector.load %arg8[%c74, %c0_48] : memref<432x16xf32, #tpu.memory_space<vmem>>, vector<328x16xf32>
    %c0_49 = arith.constant 0 : index
    %c272 = arith.constant 272 : index
    %54 = vector.load %arg9[%c0_49, %c272] : memref<328x400xf32, #tpu.memory_space<vmem>>, vector<328x16xf32>
    tpu.vector_store %arg9[%c0_49, %c272], %53 {strides = array<i32>} : memref<328x400xf32, #tpu.memory_space<vmem>>, vector<328x16xf32>,
    %c75 = arith.constant 75 : index
    %c0_50 = arith.constant 0 : index
    %55 = vector.load %arg8[%c75, %c0_50] : memref<432x16xf32, #tpu.memory_space<vmem>>, vector<328x16xf32>
    %c0_51 = arith.constant 0 : index
    %c288 = arith.constant 288 : index
    %56 = vector.load %arg9[%c0_51, %c288] : memref<328x400xf32, #tpu.memory_space<vmem>>, vector<328x16xf32>
    tpu.vector_store %arg9[%c0_51, %c288], %55 {strides = array<i32>} : memref<328x400xf32, #tpu.memory_space<vmem>>, vector<328x16xf32>,
    %c76 = arith.constant 76 : index
    %c0_52 = arith.constant 0 : index
    %57 = vector.load %arg8[%c76, %c0_52] : memref<432x16xf32, #tpu.memory_space<vmem>>, vector<328x16xf32>
    %c0_53 = arith.constant 0 : index
    %c304 = arith.constant 304 : index
    %58 = vector.load %arg9[%c0_53, %c304] : memref<328x400xf32, #tpu.memory_space<vmem>>, vector<328x16xf32>
    tpu.vector_store %arg9[%c0_53, %c304], %57 {strides = array<i32>} : memref<328x400xf32, #tpu.memory_space<vmem>>, vector<328x16xf32>,
    %c96_54 = arith.constant 96 : index
    %c0_55 = arith.constant 0 : index
    %59 = vector.load %arg8[%c96_54, %c0_55] : memref<432x16xf32, #tpu.memory_space<vmem>>, vector<328x16xf32>
    %c0_56 = arith.constant 0 : index
    %c320 = arith.constant 320 : index
    %60 = vector.load %arg9[%c0_56, %c320] : memref<328x400xf32, #tpu.memory_space<vmem>>, vector<328x16xf32>
    tpu.vector_store %arg9[%c0_56, %c320], %59 {strides = array<i32>} : memref<328x400xf32, #tpu.memory_space<vmem>>, vector<328x16xf32>,
    %c97 = arith.constant 97 : index
    %c0_57 = arith.constant 0 : index
    %61 = vector.load %arg8[%c97, %c0_57] : memref<432x16xf32, #tpu.memory_space<vmem>>, vector<328x16xf32>
    %c0_58 = arith.constant 0 : index
    %c336 = arith.constant 336 : index
    %62 = vector.load %arg9[%c0_58, %c336] : memref<328x400xf32, #tpu.memory_space<vmem>>, vector<328x16xf32>
    tpu.vector_store %arg9[%c0_58, %c336], %61 {strides = array<i32>} : memref<328x400xf32, #tpu.memory_space<vmem>>, vector<328x16xf32>,
    %c98 = arith.constant 98 : index
    %c0_59 = arith.constant 0 : index
    %63 = vector.load %arg8[%c98, %c0_59] : memref<432x16xf32, #tpu.memory_space<vmem>>, vector<328x16xf32>
    %c0_60 = arith.constant 0 : index
    %c352 = arith.constant 352 : index
    %64 = vector.load %arg9[%c0_60, %c352] : memref<328x400xf32, #tpu.memory_space<vmem>>, vector<328x16xf32>
    tpu.vector_store %arg9[%c0_60, %c352], %63 {strides = array<i32>} : memref<328x400xf32, #tpu.memory_space<vmem>>, vector<328x16xf32>,
    %c99 = arith.constant 99 : index
    %c0_61 = arith.constant 0 : index
    %65 = vector.load %arg8[%c99, %c0_61] : memref<432x16xf32, #tpu.memory_space<vmem>>, vector<328x16xf32>
    %c0_62 = arith.constant 0 : index
    %c368 = arith.constant 368 : index
    %66 = vector.load %arg9[%c0_62, %c368] : memref<328x400xf32, #tpu.memory_space<vmem>>, vector<328x16xf32>
    tpu.vector_store %arg9[%c0_62, %c368], %65 {strides = array<i32>} : memref<328x400xf32, #tpu.memory_space<vmem>>, vector<328x16xf32>,
    %c100 = arith.constant 100 : index
    %c0_63 = arith.constant 0 : index
    %67 = vector.load %arg8[%c100, %c0_63] : memref<432x16xf32, #tpu.memory_space<vmem>>, vector<328x16xf32>
    %c0_64 = arith.constant 0 : index
    %c384 = arith.constant 384 : index
    %68 = vector.load %arg9[%c0_64, %c384] : memref<328x400xf32, #tpu.memory_space<vmem>>, vector<328x16xf32>
    tpu.vector_store %arg9[%c0_64, %c384], %67 {strides = array<i32>} : memref<328x400xf32, #tpu.memory_space<vmem>>, vector<328x16xf32>,
    %c0_65 = arith.constant 0 : index
    %c0_66 = arith.constant 0 : index
    %69 = vector.load %arg9[%c0_65, %c0_66] : memref<328x400xf32, #tpu.memory_space<vmem>>, vector<328x400xf32>
    %c0_67 = arith.constant 0 : index
    %c0_68 = arith.constant 0 : index
    %70 = vector.load %arg5[%c0_67, %c0_68] : memref<400x32xf32, #tpu.memory_space<vmem>>, vector<400x32xf32>
    %cst_69 = arith.constant dense<0.000000e+00> : vector<328x32xf32>
    %71 = tpu.matmul %69, %70, %cst_69 {dimension_numbers = #tpu.dot_dimension_numbers<[1], [0], [0], [1], [0, 0, 1, 1], [], []>} : vector<328x400xf32>, vector<400x32xf32>, vector<328x32xf32> -> vector<328x32xf32>
    %c0_70 = arith.constant 0 : index
    %c0_71 = arith.constant 0 : index
    %72 = vector.load %arg10[%c0_70, %c0_71] : memref<328x32xf32, #tpu.memory_space<vmem>>, vector<328x32xf32>
    tpu.vector_store %arg10[%c0_70, %c0_71], %71 {strides = array<i32>} : memref<328x32xf32, #tpu.memory_space<vmem>>, vector<328x32xf32>,
    %c0_72 = arith.constant 0 : index
    %c0_73 = arith.constant 0 : index
    %73 = vector.load %arg6[%c0_72, %c0_73] : memref<1x32xf32, #tpu.memory_space<vmem>>, vector<1x32xf32>
    %c0_74 = arith.constant 0 : index
    %c0_75 = arith.constant 0 : index
    %74 = tpu.strided_load %arg10[%c0_74, %c0_75] {strides = array<i32: 2, 1>} : memref<328x32xf32, #tpu.memory_space<vmem>>, vector<7x32xf32>
    %c1_76 = arith.constant 1 : index
    %c0_77 = arith.constant 0 : index
    %75 = tpu.strided_load %arg10[%c1_76, %c0_77] {strides = array<i32: 2, 1>} : memref<328x32xf32, #tpu.memory_space<vmem>>, vector<7x32xf32>
    %c24_78 = arith.constant 24 : index
    %c0_79 = arith.constant 0 : index
    %76 = tpu.strided_load %arg10[%c24_78, %c0_79] {strides = array<i32: 2, 1>} : memref<328x32xf32, #tpu.memory_space<vmem>>, vector<7x32xf32>
    %c25_80 = arith.constant 25 : index
    %c0_81 = arith.constant 0 : index
    %77 = tpu.strided_load %arg10[%c25_80, %c0_81] {strides = array<i32: 2, 1>} : memref<328x32xf32, #tpu.memory_space<vmem>>, vector<7x32xf32>
    %78 = arith.maximumf %74, %75 : vector<7x32xf32>
    %79 = arith.maximumf %76, %77 : vector<7x32xf32>
    %80 = arith.maximumf %78, %79 : vector<7x32xf32>
    %81 = vector.broadcast %73 : vector<1x32xf32> to vector<7x32xf32>
    %82 = arith.addf %80, %81 : vector<7x32xf32>
    %cst_82 = arith.constant 0.000000e+00 : f32
    %83 = vector.broadcast %cst_82 : f32 to vector<7x32xf32>
    %84 = arith.maximumf %82, %83 : vector<7x32xf32>
    %c0_83 = arith.constant 0 : index
    %c0_84 = arith.constant 0 : index
    %c0_85 = arith.constant 0 : index
    %85 = vector.load %arg7[%c0_83, %c0_84, %c0_85] : memref<1x49x32xf32, #tpu.memory_space<vmem>>, vector<1x7x32xf32>
    %86 = vector.shape_cast %85 : vector<1x7x32xf32> to vector<7x32xf32>
    %87 = vector.shape_cast %84 : vector<7x32xf32> to vector<1x7x32xf32>
    tpu.vector_store %arg7[%c0_83, %c0_84, %c0_85], %87 {strides = array<i32>} : memref<1x49x32xf32, #tpu.memory_space<vmem>>, vector<1x7x32xf32>,
    %c48_86 = arith.constant 48 : index
    %c0_87 = arith.constant 0 : index
    %88 = tpu.strided_load %arg10[%c48_86, %c0_87] {strides = array<i32: 2, 1>} : memref<328x32xf32, #tpu.memory_space<vmem>>, vector<7x32xf32>
    %c49_88 = arith.constant 49 : index
    %c0_89 = arith.constant 0 : index
    %89 = tpu.strided_load %arg10[%c49_88, %c0_89] {strides = array<i32: 2, 1>} : memref<328x32xf32, #tpu.memory_space<vmem>>, vector<7x32xf32>
    %c72_90 = arith.constant 72 : index
    %c0_91 = arith.constant 0 : index
    %90 = tpu.strided_load %arg10[%c72_90, %c0_91] {strides = array<i32: 2, 1>} : memref<328x32xf32, #tpu.memory_space<vmem>>, vector<7x32xf32>
    %c73_92 = arith.constant 73 : index
    %c0_93 = arith.constant 0 : index
    %91 = tpu.strided_load %arg10[%c73_92, %c0_93] {strides = array<i32: 2, 1>} : memref<328x32xf32, #tpu.memory_space<vmem>>, vector<7x32xf32>
    %92 = arith.maximumf %88, %89 : vector<7x32xf32>
    %93 = arith.maximumf %90, %91 : vector<7x32xf32>
    %94 = arith.maximumf %92, %93 : vector<7x32xf32>
    %95 = vector.broadcast %73 : vector<1x32xf32> to vector<7x32xf32>
    %96 = arith.addf %94, %95 : vector<7x32xf32>
    %cst_94 = arith.constant 0.000000e+00 : f32
    %97 = vector.broadcast %cst_94 : f32 to vector<7x32xf32>
    %98 = arith.maximumf %96, %97 : vector<7x32xf32>
    %c0_95 = arith.constant 0 : index
    %c7 = arith.constant 7 : index
    %c0_96 = arith.constant 0 : index
    %99 = vector.load %arg7[%c0_95, %c7, %c0_96] : memref<1x49x32xf32, #tpu.memory_space<vmem>>, vector<1x7x32xf32>
    %100 = vector.shape_cast %99 : vector<1x7x32xf32> to vector<7x32xf32>
    %101 = vector.shape_cast %98 : vector<7x32xf32> to vector<1x7x32xf32>
    tpu.vector_store %arg7[%c0_95, %c7, %c0_96], %101 {strides = array<i32>} : memref<1x49x32xf32, #tpu.memory_space<vmem>>, vector<1x7x32xf32>,
    %c96_97 = arith.constant 96 : index
    %c0_98 = arith.constant 0 : index
    %102 = tpu.strided_load %arg10[%c96_97, %c0_98] {strides = array<i32: 2, 1>} : memref<328x32xf32, #tpu.memory_space<vmem>>, vector<7x32xf32>
    %c97_99 = arith.constant 97 : index
    %c0_100 = arith.constant 0 : index
    %103 = tpu.strided_load %arg10[%c97_99, %c0_100] {strides = array<i32: 2, 1>} : memref<328x32xf32, #tpu.memory_space<vmem>>, vector<7x32xf32>
    %c120 = arith.constant 120 : index
    %c0_101 = arith.constant 0 : index
    %104 = tpu.strided_load %arg10[%c120, %c0_101] {strides = array<i32: 2, 1>} : memref<328x32xf32, #tpu.memory_space<vmem>>, vector<7x32xf32>
    %c121 = arith.constant 121 : index
    %c0_102 = arith.constant 0 : index
    %105 = tpu.strided_load %arg10[%c121, %c0_102] {strides = array<i32: 2, 1>} : memref<328x32xf32, #tpu.memory_space<vmem>>, vector<7x32xf32>
    %106 = arith.maximumf %102, %103 : vector<7x32xf32>
    %107 = arith.maximumf %104, %105 : vector<7x32xf32>
    %108 = arith.maximumf %106, %107 : vector<7x32xf32>
    %109 = vector.broadcast %73 : vector<1x32xf32> to vector<7x32xf32>
    %110 = arith.addf %108, %109 : vector<7x32xf32>
    %cst_103 = arith.constant 0.000000e+00 : f32
    %111 = vector.broadcast %cst_103 : f32 to vector<7x32xf32>
    %112 = arith.maximumf %110, %111 : vector<7x32xf32>
    %c0_104 = arith.constant 0 : index
    %c14 = arith.constant 14 : index
    %c0_105 = arith.constant 0 : index
    %113 = vector.load %arg7[%c0_104, %c14, %c0_105] : memref<1x49x32xf32, #tpu.memory_space<vmem>>, vector<1x7x32xf32>
    %114 = vector.shape_cast %113 : vector<1x7x32xf32> to vector<7x32xf32>
    %115 = vector.shape_cast %112 : vector<7x32xf32> to vector<1x7x32xf32>
    tpu.vector_store %arg7[%c0_104, %c14, %c0_105], %115 {strides = array<i32>} : memref<1x49x32xf32, #tpu.memory_space<vmem>>, vector<1x7x32xf32>,
    %c144_106 = arith.constant 144 : index
    %c0_107 = arith.constant 0 : index
    %116 = tpu.strided_load %arg10[%c144_106, %c0_107] {strides = array<i32: 2, 1>} : memref<328x32xf32, #tpu.memory_space<vmem>>, vector<7x32xf32>
    %c145 = arith.constant 145 : index
    %c0_108 = arith.constant 0 : index
    %117 = tpu.strided_load %arg10[%c145, %c0_108] {strides = array<i32: 2, 1>} : memref<328x32xf32, #tpu.memory_space<vmem>>, vector<7x32xf32>
    %c168 = arith.constant 168 : index
    %c0_109 = arith.constant 0 : index
    %118 = tpu.strided_load %arg10[%c168, %c0_109] {strides = array<i32: 2, 1>} : memref<328x32xf32, #tpu.memory_space<vmem>>, vector<7x32xf32>
    %c169 = arith.constant 169 : index
    %c0_110 = arith.constant 0 : index
    %119 = tpu.strided_load %arg10[%c169, %c0_110] {strides = array<i32: 2, 1>} : memref<328x32xf32, #tpu.memory_space<vmem>>, vector<7x32xf32>
    %120 = arith.maximumf %116, %117 : vector<7x32xf32>
    %121 = arith.maximumf %118, %119 : vector<7x32xf32>
    %122 = arith.maximumf %120, %121 : vector<7x32xf32>
    %123 = vector.broadcast %73 : vector<1x32xf32> to vector<7x32xf32>
    %124 = arith.addf %122, %123 : vector<7x32xf32>
    %cst_111 = arith.constant 0.000000e+00 : f32
    %125 = vector.broadcast %cst_111 : f32 to vector<7x32xf32>
    %126 = arith.maximumf %124, %125 : vector<7x32xf32>
    %c0_112 = arith.constant 0 : index
    %c21 = arith.constant 21 : index
    %c0_113 = arith.constant 0 : index
    %127 = vector.load %arg7[%c0_112, %c21, %c0_113] : memref<1x49x32xf32, #tpu.memory_space<vmem>>, vector<1x7x32xf32>
    %128 = vector.shape_cast %127 : vector<1x7x32xf32> to vector<7x32xf32>
    %129 = vector.shape_cast %126 : vector<7x32xf32> to vector<1x7x32xf32>
    tpu.vector_store %arg7[%c0_112, %c21, %c0_113], %129 {strides = array<i32>} : memref<1x49x32xf32, #tpu.memory_space<vmem>>, vector<1x7x32xf32>,
    %c192_114 = arith.constant 192 : index
    %c0_115 = arith.constant 0 : index
    %130 = tpu.strided_load %arg10[%c192_114, %c0_115] {strides = array<i32: 2, 1>} : memref<328x32xf32, #tpu.memory_space<vmem>>, vector<7x32xf32>
    %c193 = arith.constant 193 : index
    %c0_116 = arith.constant 0 : index
    %131 = tpu.strided_load %arg10[%c193, %c0_116] {strides = array<i32: 2, 1>} : memref<328x32xf32, #tpu.memory_space<vmem>>, vector<7x32xf32>
    %c216 = arith.constant 216 : index
    %c0_117 = arith.constant 0 : index
    %132 = tpu.strided_load %arg10[%c216, %c0_117] {strides = array<i32: 2, 1>} : memref<328x32xf32, #tpu.memory_space<vmem>>, vector<7x32xf32>
    %c217 = arith.constant 217 : index
    %c0_118 = arith.constant 0 : index
    %133 = tpu.strided_load %arg10[%c217, %c0_118] {strides = array<i32: 2, 1>} : memref<328x32xf32, #tpu.memory_space<vmem>>, vector<7x32xf32>
    %134 = arith.maximumf %130, %131 : vector<7x32xf32>
    %135 = arith.maximumf %132, %133 : vector<7x32xf32>
    %136 = arith.maximumf %134, %135 : vector<7x32xf32>
    %137 = vector.broadcast %73 : vector<1x32xf32> to vector<7x32xf32>
    %138 = arith.addf %136, %137 : vector<7x32xf32>
    %cst_119 = arith.constant 0.000000e+00 : f32
    %139 = vector.broadcast %cst_119 : f32 to vector<7x32xf32>
    %140 = arith.maximumf %138, %139 : vector<7x32xf32>
    %c0_120 = arith.constant 0 : index
    %c28_121 = arith.constant 28 : index
    %c0_122 = arith.constant 0 : index
    %141 = vector.load %arg7[%c0_120, %c28_121, %c0_122] : memref<1x49x32xf32, #tpu.memory_space<vmem>>, vector<1x7x32xf32>
    %142 = vector.shape_cast %141 : vector<1x7x32xf32> to vector<7x32xf32>
    %143 = vector.shape_cast %140 : vector<7x32xf32> to vector<1x7x32xf32>
    tpu.vector_store %arg7[%c0_120, %c28_121, %c0_122], %143 {strides = array<i32>} : memref<1x49x32xf32, #tpu.memory_space<vmem>>, vector<1x7x32xf32>,
    %c240_123 = arith.constant 240 : index
    %c0_124 = arith.constant 0 : index
    %144 = tpu.strided_load %arg10[%c240_123, %c0_124] {strides = array<i32: 2, 1>} : memref<328x32xf32, #tpu.memory_space<vmem>>, vector<7x32xf32>
    %c241 = arith.constant 241 : index
    %c0_125 = arith.constant 0 : index
    %145 = tpu.strided_load %arg10[%c241, %c0_125] {strides = array<i32: 2, 1>} : memref<328x32xf32, #tpu.memory_space<vmem>>, vector<7x32xf32>
    %c264 = arith.constant 264 : index
    %c0_126 = arith.constant 0 : index
    %146 = tpu.strided_load %arg10[%c264, %c0_126] {strides = array<i32: 2, 1>} : memref<328x32xf32, #tpu.memory_space<vmem>>, vector<7x32xf32>
    %c265 = arith.constant 265 : index
    %c0_127 = arith.constant 0 : index
    %147 = tpu.strided_load %arg10[%c265, %c0_127] {strides = array<i32: 2, 1>} : memref<328x32xf32, #tpu.memory_space<vmem>>, vector<7x32xf32>
    %148 = arith.maximumf %144, %145 : vector<7x32xf32>
    %149 = arith.maximumf %146, %147 : vector<7x32xf32>
    %150 = arith.maximumf %148, %149 : vector<7x32xf32>
    %151 = vector.broadcast %73 : vector<1x32xf32> to vector<7x32xf32>
    %152 = arith.addf %150, %151 : vector<7x32xf32>
    %cst_128 = arith.constant 0.000000e+00 : f32
    %153 = vector.broadcast %cst_128 : f32 to vector<7x32xf32>
    %154 = arith.maximumf %152, %153 : vector<7x32xf32>
    %c0_129 = arith.constant 0 : index
    %c35 = arith.constant 35 : index
    %c0_130 = arith.constant 0 : index
    %155 = vector.load %arg7[%c0_129, %c35, %c0_130] : memref<1x49x32xf32, #tpu.memory_space<vmem>>, vector<1x7x32xf32>
    %156 = vector.shape_cast %155 : vector<1x7x32xf32> to vector<7x32xf32>
    %157 = vector.shape_cast %154 : vector<7x32xf32> to vector<1x7x32xf32>
    tpu.vector_store %arg7[%c0_129, %c35, %c0_130], %157 {strides = array<i32>} : memref<1x49x32xf32, #tpu.memory_space<vmem>>, vector<1x7x32xf32>,
    %c288_131 = arith.constant 288 : index
    %c0_132 = arith.constant 0 : index
    %158 = tpu.strided_load %arg10[%c288_131, %c0_132] {strides = array<i32: 2, 1>} : memref<328x32xf32, #tpu.memory_space<vmem>>, vector<7x32xf32>
    %c289 = arith.constant 289 : index
    %c0_133 = arith.constant 0 : index
    %159 = tpu.strided_load %arg10[%c289, %c0_133] {strides = array<i32: 2, 1>} : memref<328x32xf32, #tpu.memory_space<vmem>>, vector<7x32xf32>
    %c312 = arith.constant 312 : index
    %c0_134 = arith.constant 0 : index
    %160 = tpu.strided_load %arg10[%c312, %c0_134] {strides = array<i32: 2, 1>} : memref<328x32xf32, #tpu.memory_space<vmem>>, vector<7x32xf32>
    %c313 = arith.constant 313 : index
    %c0_135 = arith.constant 0 : index
    %161 = tpu.strided_load %arg10[%c313, %c0_135] {strides = array<i32: 2, 1>} : memref<328x32xf32, #tpu.memory_space<vmem>>, vector<7x32xf32>
    %162 = arith.maximumf %158, %159 : vector<7x32xf32>
    %163 = arith.maximumf %160, %161 : vector<7x32xf32>
    %164 = arith.maximumf %162, %163 : vector<7x32xf32>
    %165 = vector.broadcast %73 : vector<1x32xf32> to vector<7x32xf32>
    %166 = arith.addf %164, %165 : vector<7x32xf32>
    %cst_136 = arith.constant 0.000000e+00 : f32
    %167 = vector.broadcast %cst_136 : f32 to vector<7x32xf32>
    %168 = arith.maximumf %166, %167 : vector<7x32xf32>
    %c0_137 = arith.constant 0 : index
    %c42 = arith.constant 42 : index
    %c0_138 = arith.constant 0 : index
    %169 = vector.load %arg7[%c0_137, %c42, %c0_138] : memref<1x49x32xf32, #tpu.memory_space<vmem>>, vector<1x7x32xf32>
    %170 = vector.shape_cast %169 : vector<1x7x32xf32> to vector<7x32xf32>
    %171 = vector.shape_cast %168 : vector<7x32xf32> to vector<1x7x32xf32>
    tpu.vector_store %arg7[%c0_137, %c42, %c0_138], %171 {strides = array<i32>} : memref<1x49x32xf32, #tpu.memory_space<vmem>>, vector<1x7x32xf32>,
    return
  }
  func.func @transform_0(%arg0: i32) -> (i32, i32, i32) {
    %c0_i32 = arith.constant 0 : i32
    %c0_i32_0 = arith.constant 0 : i32
    %c0_i32_1 = arith.constant 0 : i32
    return %arg0, %c0_i32, %c0_i32_0 : i32, i32, i32
  }
  func.func @transform_1(%arg0: i32) -> (i32, i32) {
    %c0_i32 = arith.constant 0 : i32
    %c0_i32_0 = arith.constant 0 : i32
    %c0_i32_1 = arith.constant 0 : i32
    return %c0_i32, %c0_i32_0 : i32, i32
  }
  func.func @transform_2(%arg0: i32) -> (i32, i32) {
    %c0_i32 = arith.constant 0 : i32
    %c0_i32_0 = arith.constant 0 : i32
    %c0_i32_1 = arith.constant 0 : i32
    return %c0_i32, %c0_i32_0 : i32, i32
  }
  func.func @transform_3(%arg0: i32) -> (i32, i32) {
    %c0_i32 = arith.constant 0 : i32
    %c0_i32_0 = arith.constant 0 : i32
    %c0_i32_1 = arith.constant 0 : i32
    return %c0_i32, %c0_i32_0 : i32, i32
  }
  func.func @transform_4(%arg0: i32) -> (i32, i32) {
    %c0_i32 = arith.constant 0 : i32
    %c0_i32_0 = arith.constant 0 : i32
    %c0_i32_1 = arith.constant 0 : i32
    return %c0_i32, %c0_i32_0 : i32, i32
  }
  func.func @transform_5(%arg0: i32) -> (i32, i32) {
    %c0_i32 = arith.constant 0 : i32
    %c0_i32_0 = arith.constant 0 : i32
    %c0_i32_1 = arith.constant 0 : i32
    return %c0_i32, %c0_i32_0 : i32, i32
  }
  func.func @transform_6(%arg0: i32) -> (i32, i32, i32) {
    %c0_i32 = arith.constant 0 : i32
    %c0_i32_0 = arith.constant 0 : i32
    %c0_i32_1 = arith.constant 0 : i32
    return %arg0, %c0_i32, %c0_i32_0 : i32, i32, i32
  }
}

</mosaic_0001>

<bundles_post_ra>
// kernel: cnn_forward.1
= control target key start
LH: loop header
LB: loop body
LE: loop exit
PB: predicated region body
PF: predicated region fallthrough
CT: control target
= control target key end

     0   :  { %s10350_s21 = smov 0   ;;  %s14620_s0 = inlined_call_operand.vmem [shape: f32[2,1728,25], index: 0, kind: input, shape index: {}]   ;;  %s14621_s1 = inlined_call_operand.vmem [shape: f32[25,16], index: 1, kind: input, shape index: {}]   ;;  %s14622_s2 = inlined_call_operand.vmem [shape: f32[1,16], index: 2, kind: input, shape index: {}]   ;;  %s14623_s3 = inlined_call_operand.vmem [shape: f32[432,16], index: 3, kind: input, shape index: {}]   ;;  %s14624_s4 = inlined_call_operand.vmem [shape: f32[400,32], index: 4, kind: input, shape index: {}]   ;;  %s14625_s5 = inlined_call_operand.vmem [shape: f32[1,32], index: 5, kind: input, shape index: {}]   ;;  %s14626_s6 = inlined_call_operand.vmem [shape: f32[2,49,32], index: 6, kind: output, shape index: {}]  }
   0x1 LB: > { %s9290_s22 = sadd.s32 4294967295, %s10304_s21   ;;  %p9294_p0 = scmp.ge.s32.totalorder %s10304_s21, 1  ;;  %s10304_s21 = sphi %s10350_s21, %s16_s21  }
   0x2   : > { %p212_p1 = scmp.lt.s32.totalorder %s10304_s21, 3 }
   0x4   : > { %p213_p2 = pnand %p9294_p0, %p212_p1 }
   0x6   : > { %216 = sbr.rel (%p213_p2) target bundleno = 2671 (0xa6f), region = 44 }
   0xd   : > { %v252_v0 = vld [vmem:[%s14621_s1] sm:$0xff]  ;;  %v253_v1 = vld [vmem:[%s14621_s1 + $0x8] sm:$0xff]  ;;  %v254_v2 = vld [vmem:[%s14621_s1 + $0x10] sm:$0xff]  ;;  %vm1176_vm0 = vcmask 1040384   ;;  %p242_p3 = scmp.lt.s32.totalorder %s9290_s22, 1  ;;  %vm10306_vm1 = vmmov 1  }
   0xe   : > { %v10111_v3 = vpack.c.bf16 %v253_v1, %v252_v0  ;;  %v255_v4 = vld [vmem:[%s14621_s1 + $0x18] sm:$0x1]  ;;  %vm10116_vm2 = vmpackc.low %vm1176_vm0, %vm10306_vm1  ;;  %vm527_vm3 = vcmask 203776   ;;  %vm2655_vm4 = vcmask 130048   ;;  %s10308_s8 = smov 16   ;;  %s10309_s13 = smov 64  }
   0xf   : > { %v10115_v5 = vpack.c.bf16 %v255_v4, %v254_v2  ;;  %s15163_s22 = smov (!%p242_p3, %s9290_s22), 1  ;;  %s10310_s14 = smov 48   ;;  %vm2997_vm5 = vcmask 261248   ;;  %vm3244_vm6 = vcmask 392448   ;;  %vm3491_vm7 = vcmask 523648  }
  0x10   : > { %10112 = vmatprep.subr.bf16.mxu0 %v10111_v3  ;;  %s10278_s7 = smul.u32 1728, %s15163_s22  ;;  %s10311_s19 = smov 80   ;;  %vm3738_vm8 = vcmask 654848   ;;  %vm3985_vm9 = vcmask 786048   ;;  %vm4232_vm10 = vcmask 917248   ;;  %vm4479_vm11 = vcmask 1048448  }
  0x11   : > { %10114 = vmatpush3.bf16.msra.mxu0 %v10111_v3  ;;  %s10312_s24 = smov 96   ;;  %s10313_s29 = smov 112   ;;  %vm9088_vm12 = vcmask 261120   ;;  %vm9149_vm13 = vcmask 260096  }
  0x12   : > { %10117 = vmatprep.subr.msk.bf16.mxu0 %vm10116_vm2, %v10115_v5  ;;  %s10376_s10 = scalar_lea.vmem %s14620_s0, %s10278_s7  ;;  %s10307_s7 = smov 32  }
  0x13   : > { %v311_v6 = vld [vmem:[%s10376_s10] sm:$0xff]  ;;  %v312_v7 = vld [vmem:[%s10376_s10 + $0x8] sm:$0xff]  ;;  %v313_v8 = vld [vmem:[%s10376_s10 + $0x10] sm:$0xff]  ;;  %s10279_s18 = smul.u32 56, %s15163_s22 }
  0x14   : > { %9787 = vmatprep.mubr.msk.f32.mxu0 %vm527_vm3, %v311_v6  ;;  %v314_v9 = vld [vmem:[%s10376_s10 + $0x18] sm:$0xff]  ;;  %v315_v10 = vld [vmem:[%s10376_s10 + $0x20] sm:$0xff]  ;;  %v316_v11 = vld [vmem:[%s10376_s10 + $0x28] sm:$0xff] }
  0x15   : > { %10120 = vmatpush3.bf16.msk.msra.mxu0 %vm10116_vm2, %v10115_v5  ;;  %v317_v12 = vld [vmem:[%s10376_s10 + $0x30] sm:$0xff]  ;;  %v318_v13 = vld [vmem:[%s10376_s10 + $0x38] sm:$0xff]  ;;  %v319_v14 = vld [vmem:[%s10376_s10 + $0x40] sm:$0xff]  ;;  %s14432_s26 = scalar_lea.vmem %s14626_s6, %s10279_s18 }
  0x16   : > { %v320_v15 = vld [vmem:[%s10376_s10 + $0x48] sm:$0xff]  ;;  %v321_v16 = vld [vmem:[%s10376_s10 + $0x50] sm:$0xff]  ;;  %v322_v17 = vld [vmem:[%s10376_s10 + $0x58] sm:$0xff] }
  0x17   : > { %v323_v18 = vld [vmem:[%s10376_s10 + $0x60] sm:$0xff]  ;;  %v324_v19 = vld [vmem:[%s10376_s10 + $0x68] sm:$0xff]  ;;  %v325_v20 = vld [vmem:[%s10376_s10 + $0x70] sm:$0xff] }
  0x18   : > { %9788 = vmatmul.mubr.msk.f32.vlgmr.msra.gmra.mrb[0].mxu0 %vm527_vm3, %v312_v7  ;;  %v326_v21 = vld [vmem:[%s10376_s10 + $0x78] sm:$0xff]  ;;  %v327_v22 = vld [vmem:[%s10376_s10 + $0x80] sm:$0xff]  ;;  %v328_v23 = vld [vmem:[%s10376_s10 + $0x88] sm:$0xff] }
  0x19   : > { %9790 = vmatprep.mubr.msk.f32.mxu0 %vm527_vm3, %v313_v8  ;;  %v329_v24 = vld [vmem:[%s10376_s10 + $0x90] sm:$0xff]  ;;  %v330_v25 = vld [vmem:[%s10376_s10 + $0x98] sm:$0xff]  ;;  %v331_v26 = vld [vmem:[%s10376_s10 + $0xa0] sm:$0xff] }
  0x1a   : > { %v332_v27 = vld [vmem:[%s10376_s10 + $0xa8] sm:$0xff]  ;;  %v333_v28 = vld [vmem:[%s10376_s10 + $0xb0] sm:$0xff]  ;;  %v334_v29 = vld [vmem:[%s10376_s10 + $0xb8] sm:$0xff] }
  0x1b   : > { %v335_v30 = vld [vmem:[%s10376_s10 + $0xc0] sm:$0xff]  ;;  %v336_v31 = vld [vmem:[%s10376_s10 + $0xc8] sm:$0xff]  ;;  %v337_v32 = vld [vmem:[%s10376_s10 + $0xd0] sm:$0xff] }
  0x1c   : > { %9791 = vmatmul.mubr.msk.f32.gmra.mrb[2].mxu0 %vm527_vm3, %v314_v9  ;;  %v338_v33 = vld [vmem:[%s10376_s10 + $0xd8] sm:$0xff]  ;;  %v339_v34 = vld [vmem:[%s10376_s10 + $0xe0] sm:$0xff]  ;;  %v340_v35 = vld [vmem:[%s10376_s10 + $0xe8] sm:$0xff] }
  0x1d   : > { %9793 = vmatprep.mubr.msk.f32.mxu0 %vm527_vm3, %v315_v10  ;;  %v341_v36 = vld [vmem:[%s10376_s10 + $0xf0] sm:$0xff]  ;;  %v342_v37 = vld [vmem:[%s10376_s10 + $0xf8] sm:$0xff]  ;;  %v343_v38 = vld [vmem:[%s10376_s10 + $0x100] sm:$0xff] }
  0x1e   : > { %v344_v39 = vld [vmem:[%s10376_s10 + $0x108] sm:$0xff]  ;;  %v345_v40 = vld [vmem:[%s10376_s10 + $0x110] sm:$0xff]  ;;  %v346_v41 = vld [vmem:[%s10376_s10 + $0x118] sm:$0xff] }
  0x1f   : > { %v347_v42 = vld [vmem:[%s10376_s10 + $0x120] sm:$0xff]  ;;  %v348_v43 = vld [vmem:[%s10376_s10 + $0x128] sm:$0xff]  ;;  %v349_v44 = vld [vmem:[%s10376_s10 + $0x130] sm:$0xff] }
  0x20   : > { %9794 = vmatmul.mubr.msk.f32.gmra.mrb[4].mxu0 %vm527_vm3, %v316_v11  ;;  %v350_v45 = vld [vmem:[%s10376_s10 + $0x138] sm:$0xff]  ;;  %v351_v46 = vld [vmem:[%s10376_s10 + $0x140] sm:$0xff]  ;;  %v352_v47 = vld [vmem:[%s10376_s10 + $0x148] sm:$0xff] }
  0x21   : > { %9796 = vmatprep.mubr.msk.f32.mxu0 %vm527_vm3, %v317_v12  ;;  %v353_v48 = vld [vmem:[%s10376_s10 + $0x150] sm:$0xff]  ;;  %v354_v49 = vld [vmem:[%s10376_s10 + $0x158] sm:$0xff]  ;;  %v355_v50 = vld [vmem:[%s10376_s10 + $0x160] sm:$0xff] }
  0x22   : > { %v356_v51 = vld [vmem:[%s10376_s10 + $0x168] sm:$0xff]  ;;  %v357_v52 = vld [vmem:[%s10376_s10 + $0x170] sm:$0xff]  ;;  %v358_v53 = vld [vmem:[%s10376_s10 + $0x178] sm:$0xff] }
  0x23   : > { %v359_v54 = vld [vmem:[%s10376_s10 + $0x180] sm:$0xff]  ;;  %v360_v55 = vld [vmem:[%s10376_s10 + $0x188] sm:$0xff]  ;;  %v361_v56 = vld [vmem:[%s10376_s10 + $0x190] sm:$0xff] }
  0x24   : > { %9797 = vmatmul.mubr.msk.f32.gmra.mrb[6].mxu0 %vm527_vm3, %v318_v13  ;;  %v362_v57 = vld [vmem:[%s10376_s10 + $0x198] sm:$0xff]  ;;  %v363_v58 = vld [vmem:[%s10376_s10 + $0x1a0] sm:$0xff]  ;;  %v364_v59 = vld [vmem:[%s10376_s10 + $0x1a8] sm:$0xff] }
  0x25   : > { %9799 = vmatprep.mubr.msk.f32.mxu0 %vm527_vm3, %v319_v14  ;;  %v365_v60 = vld [vmem:[%s10376_s10 + $0x1b0] sm:$0xff]  ;;  %v366_v61 = vld [vmem:[%s10376_s10 + $0x1b8] sm:$0xff]  ;;  %v367_v62 = vld [vmem:[%s10376_s10 + $0x1c0] sm:$0xff] }
  0x26   : > { %v368_v63 = vld [vmem:[%s10376_s10 + $0x1c8] sm:$0xff]  ;;  %v369_v0 = vld [vmem:[%s10376_s10 + $0x1d0] sm:$0xff]  ;;  %v370_v1 = vld [vmem:[%s10376_s10 + $0x1d8] sm:$0xff] }
  0x27   : > { %v371_v2 = vld [vmem:[%s10376_s10 + $0x1e0] sm:$0xff]  ;;  %v372_v3 = vld [vmem:[%s10376_s10 + $0x1e8] sm:$0xff]  ;;  %v373_v4 = vld [vmem:[%s10376_s10 + $0x1f0] sm:$0xff] }
  0x28   : > { %9800 = vmatmul.mubr.msk.f32.gmra.mrb[8].mxu0 %vm527_vm3, %v320_v15  ;;  %v374_v5 = vld [vmem:[%s10376_s10 + $0x1f8] sm:$0xff]  ;;  %v375_v6 = vld [vmem:[%s10376_s10 + $0x200] sm:$0xff]  ;;  %v376_v7 = vld [vmem:[%s10376_s10 + $0x208] sm:$0xff] }
  0x29   : > { %9802 = vmatprep.mubr.msk.f32.mxu0 %vm527_vm3, %v321_v16  ;;  %v377_v8 = vld [vmem:[%s10376_s10 + $0x210] sm:$0xff]  ;;  %v378_v9 = vld [vmem:[%s10376_s10 + $0x218] sm:$0xff]  ;;  %v379_v10 = vld [vmem:[%s10376_s10 + $0x220] sm:$0xff] }
  0x2a   : > { %v380_v11 = vld [vmem:[%s10376_s10 + $0x228] sm:$0xff]  ;;  %v381_v12 = vld [vmem:[%s10376_s10 + $0x230] sm:$0xff]  ;;  %v382_v13 = vld [vmem:[%s10376_s10 + $0x238] sm:$0xff] }
  0x2b   : > { %v383_v14 = vld [vmem:[%s10376_s10 + $0x240] sm:$0xff]  ;;  %v384_v15 = vld [vmem:[%s10376_s10 + $0x248] sm:$0xff]  ;;  %v385_v16 = vld [vmem:[%s10376_s10 + $0x250] sm:$0xff] }
  0x2c   : > { %9803 = vmatmul.mubr.msk.f32.gmra.mrb[10].mxu0 %vm527_vm3, %v322_v17  ;;  %v386_v17 = vld [vmem:[%s10376_s10 + $0x258] sm:$0xff] }
  0x2d   : > { %9805 = vmatprep.mubr.msk.f32.mxu0 %vm527_vm3, %v323_v18  ;;  %v387_v18 = vld [vmem:[%s10376_s10 + $0x260] sm:$0xff] }
  0x30   : > { %9806 = vmatmul.mubr.msk.f32.gmra.mrb[12].mxu0 %vm527_vm3, %v324_v19  ;;  %v388_v19 = vld [vmem:[%s10376_s10 + $0x268] sm:$0xff] }
  0x31   : > { %9808 = vmatprep.mubr.msk.f32.mxu0 %vm527_vm3, %v325_v20  ;;  %v389_v20 = vld [vmem:[%s10376_s10 + $0x270] sm:$0xff] }
  0x34   : > { %9809 = vmatmul.mubr.msk.f32.gmra.mrb[14].mxu0 %vm527_vm3, %v326_v21  ;;  %v390_v21 = vld [vmem:[%s10376_s10 + $0x278] sm:$0xff] }
  0x35   : > { %9811 = vmatprep.mubr.msk.f32.mxu0 %vm527_vm3, %v327_v22  ;;  %v391_v22 = vld [vmem:[%s10376_s10 + $0x280] sm:$0xff] }
  0x38   : > { %9812 = vmatmul.mubr.msk.f32.gmra.mrb[16].mxu0 %vm527_vm3, %v328_v23  ;;  %v392_v23 = vld [vmem:[%s10376_s10 + $0x288] sm:$0xff] }
  0x39   : > { %9814 = vmatprep.mubr.msk.f32.mxu0 %vm527_vm3, %v329_v24  ;;  %v393_v24 = vld [vmem:[%s10376_s10 + $0x290] sm:$0xff] }
  0x3c   : > { %9815 = vmatmul.mubr.msk.f32.gmra.mrb[18].mxu0 %vm527_vm3, %v330_v25  ;;  %v394_v25 = vld [vmem:[%s10376_s10 + $0x298] sm:$0xff] }
  0x3d   : > { %9817 = vmatprep.mubr.msk.f32.mxu0 %vm527_vm3, %v331_v26  ;;  %v395_v26 = vld [vmem:[%s10376_s10 + $0x2a0] sm:$0xff] }
  0x40   : > { %9818 = vmatmul.mubr.msk.f32.gmra.mrb[20].mxu0 %vm527_vm3, %v332_v27  ;;  %v396_v27 = vld [vmem:[%s10376_s10 + $0x2a8] sm:$0xff] }
  0x41   : > { %9820 = vmatprep.mubr.msk.f32.mxu0 %vm527_vm3, %v333_v28  ;;  %v397_v28 = vld [vmem:[%s10376_s10 + $0x2b0] sm:$0xff] }
  0x44   : > { %9821 = vmatmul.mubr.msk.f32.gmra.mrb[22].mxu0 %vm527_vm3, %v334_v29  ;;  %v398_v29 = vld [vmem:[%s10376_s10 + $0x2b8] sm:$0xff] }
  0x45   : > { %9823 = vmatprep.mubr.msk.f32.mxu0 %vm527_vm3, %v335_v30  ;;  %v399_v30 = vld [vmem:[%s10376_s10 + $0x2c0] sm:$0xff] }
  0x48   : > { %9824 = vmatmul.mubr.msk.f32.gmra.mrb[24].mxu0 %vm527_vm3, %v336_v31  ;;  %v400_v31 = vld [vmem:[%s10376_s10 + $0x2c8] sm:$0xff] }
  0x49   : > { %9826 = vmatprep.mubr.msk.f32.mxu0 %vm527_vm3, %v337_v32  ;;  %v401_v32 = vld [vmem:[%s10376_s10 + $0x2d0] sm:$0xff] }
  0x4c   : > { %9827 = vmatmul.mubr.msk.f32.gmra.mrb[26].mxu0 %vm527_vm3, %v338_v33  ;;  %v402_v33 = vld [vmem:[%s10376_s10 + $0x2d8] sm:$0xff] }
  0x4d   : > { %9829 = vmatprep.mubr.msk.f32.mxu0 %vm527_vm3, %v339_v34  ;;  %v403_v34 = vld [vmem:[%s10376_s10 + $0x2e0] sm:$0xff] }
  0x50   : > { %9830 = vmatmul.mubr.msk.f32.gmra.mrb[28].mxu0 %vm527_vm3, %v340_v35  ;;  %v404_v35 = vld [vmem:[%s10376_s10 + $0x2e8] sm:$0xff] }
  0x51   : > { %9832 = vmatprep.mubr.msk.f32.mxu0 %vm527_vm3, %v341_v36  ;;  %v405_v36 = vld [vmem:[%s10376_s10 + $0x2f0] sm:$0xff] }
  0x54   : > { %9833 = vmatmul.mubr.msk.f32.gmra.mrb[30].mxu0 %vm527_vm3, %v342_v37  ;;  %v406_v37 = vld [vmem:[%s10376_s10 + $0x2f8] sm:$0xff] }
  0x55   : > { %9835 = vmatprep.mubr.msk.f32.mxu0 %vm527_vm3, %v343_v38  ;;  %v407_v38 = vld [vmem:[%s10376_s10 + $0x300] sm:$0xff] }
  0x58   : > { %9836 = vmatmul.mubr.msk.f32.gmra.mrb[32].mxu0 %vm527_vm3, %v344_v39  ;;  %v408_v39 = vld [vmem:[%s10376_s10 + $0x308] sm:$0xff] }
  0x59   : > { %9838 = vmatprep.mubr.msk.f32.mxu0 %vm527_vm3, %v345_v40  ;;  %v409_v40 = vld [vmem:[%s10376_s10 + $0x310] sm:$0xff] }
  0x5c   : > { %9839 = vmatmul.mubr.msk.f32.gmra.mrb[34].mxu0 %vm527_vm3, %v346_v41  ;;  %v410_v41 = vld [vmem:[%s10376_s10 + $0x318] sm:$0xff] }
  0x5d   : > { %9841 = vmatprep.mubr.msk.f32.mxu0 %vm527_vm3, %v347_v42  ;;  %v411_v42 = vld [vmem:[%s10376_s10 + $0x320] sm:$0xff] }
  0x60   : > { %9842 = vmatmul.mubr.msk.f32.gmra.mrb[36].mxu0 %vm527_vm3, %v348_v43  ;;  %v412_v43 = vld [vmem:[%s10376_s10 + $0x328] sm:$0xff] }
  0x61   : > { %9844 = vmatprep.mubr.msk.f32.mxu0 %vm527_vm3, %v349_v44  ;;  %v413_v44 = vld [vmem:[%s10376_s10 + $0x330] sm:$0xff] }
  0x64   : > { %9845 = vmatmul.mubr.msk.f32.gmra.mrb[38].mxu0 %vm527_vm3, %v350_v45  ;;  %v414_v45 = vld [vmem:[%s10376_s10 + $0x338] sm:$0xff] }
  0x65   : > { %9847 = vmatprep.mubr.msk.f32.mxu0 %vm527_vm3, %v351_v46  ;;  %v415_v46 = vld [vmem:[%s10376_s10 + $0x340] sm:$0xff] }
  0x68   : > { %9848 = vmatmul.mubr.msk.f32.gmra.mrb[40].mxu0 %vm527_vm3, %v352_v47  ;;  %v416_v47 = vld [vmem:[%s10376_s10 + $0x348] sm:$0xff] }
  0x69   : > { %9850 = vmatprep.mubr.msk.f32.mxu0 %vm527_vm3, %v353_v48  ;;  %v417_v48 = vld [vmem:[%s10376_s10 + $0x350] sm:$0xff] }
  0x6c   : > { %9851 = vmatmul.mubr.msk.f32.gmra.mrb[42].mxu0 %vm527_vm3, %v354_v49  ;;  %v418_v49 = vld [vmem:[%s10376_s10 + $0x358] sm:$0xff] }
  0x6d   : > { %9853 = vmatprep.mubr.msk.f32.mxu0 %vm527_vm3, %v355_v50  ;;  %v419_v50 = vld [vmem:[%s10376_s10 + $0x360] sm:$0xff] }
  0x70   : > { %9854 = vmatmul.mubr.msk.f32.gmra.mrb[44].mxu0 %vm527_vm3, %v356_v51 }
  0x71   : > { %9856 = vmatprep.mubr.msk.f32.mxu0 %vm527_vm3, %v357_v52 }
  0x74   : > { %9857 = vmatmul.mubr.msk.f32.gmra.mrb[46].mxu0 %vm527_vm3, %v358_v53  ;;  %v420_v53 = vld [vmem:[%s10376_s10 + $0x368] sm:$0xff] }
  0x75   : > { %9859 = vmatprep.mubr.msk.f32.mxu0 %vm527_vm3, %v359_v54  ;;  %v421_v54 = vld [vmem:[%s10376_s10 + $0x370] sm:$0xff] }
  0x78   : > { %9860 = vmatmul.mubr.msk.f32.gmra.mrb[48].mxu0 %vm527_vm3, %v360_v55 }
  0x79   : > { %9862 = vmatprep.mubr.msk.f32.mxu0 %vm527_vm3, %v361_v56 }
  0x7c   : > { %9863 = vmatmul.mubr.msk.f32.gmra.mrb[50].mxu0 %vm527_vm3, %v362_v57  ;;  %v422_v57 = vld [vmem:[%s10376_s10 + $0x378] sm:$0xff] }
  0x7d   : > { %9865 = vmatprep.mubr.msk.f32.mxu0 %vm527_vm3, %v363_v58  ;;  %v423_v58 = vld [vmem:[%s10376_s10 + $0x380] sm:$0xff] }
  0x80   : > { %9866 = vmatmul.mubr.msk.f32.gmra.mrb[52].mxu0 %vm527_vm3, %v364_v59 }
  0x81   : > { %9868 = vmatprep.mubr.msk.f32.mxu0 %vm527_vm3, %v365_v60 }
  0x84   : > { %9869 = vmatmul.mubr.msk.f32.gmra.mrb[54].mxu0 %vm527_vm3, %v366_v61  ;;  %v424_v61 = vld [vmem:[%s10376_s10 + $0x388] sm:$0xff] }
  0x85   : > { %9871 = vmatprep.mubr.msk.f32.mxu0 %vm527_vm3, %v367_v62  ;;  %v425_v62 = vld [vmem:[%s10376_s10 + $0x390] sm:$0xff] }
  0x88   : > { %9872 = vmatmul.mubr.msk.f32.gmra.mrb[56].mxu0 %vm527_vm3, %v368_v63 }
  0x89   : > { %9874 = vmatprep.mubr.msk.f32.mxu0 %vm527_vm3, %v369_v0 }
  0x8c   : > { %9875 = vmatmul.mubr.msk.f32.gmra.mrb[58].mxu0 %vm527_vm3, %v370_v1  ;;  %v426_v1 = vld [vmem:[%s10376_s10 + $0x398] sm:$0xff] }
  0x8d   : > { %9877 = vmatprep.mubr.msk.f32.mxu0 %vm527_vm3, %v371_v2  ;;  %v427_v2 = vld [vmem:[%s10376_s10 + $0x3a0] sm:$0xff] }
  0x90   : > { %9878 = vmatmul.mubr.msk.f32.gmra.mrb[60].mxu0 %vm527_vm3, %v372_v3 }
  0x91   : > { %9880 = vmatprep.mubr.msk.f32.mxu0 %vm527_vm3, %v373_v4 }
  0x94   : > { %9881 = vmatmul.mubr.msk.f32.gmra.mrb[62].mxu0 %vm527_vm3, %v374_v5  ;;  %v428_v5 = vld [vmem:[%s10376_s10 + $0x3a8] sm:$0xff] }
  0x95   : > { %9883 = vmatprep.mubr.msk.f32.mxu0 %vm527_vm3, %v375_v6  ;;  %v429_v6 = vld [vmem:[%s10376_s10 + $0x3b0] sm:$0xff] }
  0x98   : > { %9884 = vmatmul.mubr.msk.f32.gmra.mrb[64].mxu0 %vm527_vm3, %v376_v7 }
  0x99   : > { %9886 = vmatprep.mubr.msk.f32.mxu0 %vm527_vm3, %v377_v8 }
  0x9c   : > { %9887 = vmatmul.mubr.msk.f32.gmra.mrb[66].mxu0 %vm527_vm3, %v378_v9  ;;  %v430_v9 = vld [vmem:[%s10376_s10 + $0x3b8] sm:$0xff] }
  0x9d   : > { %9889 = vmatprep.mubr.msk.f32.mxu0 %vm527_vm3, %v379_v10  ;;  %v431_v10 = vld [vmem:[%s10376_s10 + $0x3c0] sm:$0xff] }
  0xa0   : > { %9890 = vmatmul.mubr.msk.f32.gmra.mrb[68].mxu0 %vm527_vm3, %v380_v11 }
  0xa1   : > { %9892 = vmatprep.mubr.msk.f32.mxu0 %vm527_vm3, %v381_v12 }
  0xa4   : > { %9893 = vmatmul.mubr.msk.f32.gmra.mrb[70].mxu0 %vm527_vm3, %v382_v13  ;;  %v432_v13 = vld [vmem:[%s10376_s10 + $0x3c8] sm:$0xff] }
  0xa5   : > { %9895 = vmatprep.mubr.msk.f32.mxu0 %vm527_vm3, %v383_v14  ;;  %v433_v14 = vld [vmem:[%s10376_s10 + $0x3d0] sm:$0xff] }
  0xa8   : > { %9896 = vmatmul.mubr.msk.f32.gmra.mrb[72].mxu0 %vm527_vm3, %v384_v15 }
  0xa9   : > { %9898 = vmatprep.mubr.msk.f32.mxu0 %vm527_vm3, %v385_v16 }
  0xac   : > { %9899 = vmatmul.mubr.msk.f32.gmra.mrb[74].mxu0 %vm527_vm3, %v386_v17  ;;  %v434_v17 = vld [vmem:[%s10376_s10 + $0x3d8] sm:$0xff] }
  0xad   : > { %9901 = vmatprep.mubr.msk.f32.mxu0 %vm527_vm3, %v387_v18  ;;  %v435_v18 = vld [vmem:[%s10376_s10 + $0x3e0] sm:$0xff] }
  0xb0   : > { %9902 = vmatmul.mubr.msk.f32.gmra.mrb[76].mxu0 %vm527_vm3, %v388_v19 }
  0xb1   : > { %9904 = vmatprep.mubr.msk.f32.mxu0 %vm527_vm3, %v389_v20 }
  0xb4   : > { %9905 = vmatmul.mubr.msk.f32.gmra.mrb[78].mxu0 %vm527_vm3, %v390_v21  ;;  %v436_v21 = vld [vmem:[%s10376_s10 + $0x3e8] sm:$0xff] }
  0xb5   : > { %9907 = vmatprep.mubr.msk.f32.mxu0 %vm527_vm3, %v391_v22  ;;  %v437_v22 = vld [vmem:[%s10376_s10 + $0x3f0] sm:$0xff] }
  0xb8   : > { %9908 = vmatmul.mubr.msk.f32.gmra.mrb[80].mxu0 %vm527_vm3, %v392_v23 }
  0xb9   : > { %9910 = vmatprep.mubr.msk.f32.mxu0 %vm527_vm3, %v393_v24 }
  0xbc   : > { %9911 = vmatmul.mubr.msk.f32.gmra.mrb[82].mxu0 %vm527_vm3, %v394_v25  ;;  %v438_v25 = vld [vmem:[%s10376_s10 + $0x3f8] sm:$0xff] }
  0xbd   : > { %9913 = vmatprep.mubr.msk.f32.mxu0 %vm527_vm3, %v395_v26  ;;  %v439_v26 = vld [vmem:[%s10376_s10 + $0x400] sm:$0xff] }
  0xc0   : > { %9914 = vmatmul.mubr.msk.f32.gmra.mrb[84].mxu0 %vm527_vm3, %v396_v27 }
  0xc1   : > { %9916 = vmatprep.mubr.msk.f32.mxu0 %vm527_vm3, %v397_v28 }
  0xc4   : > { %9917 = vmatmul.mubr.msk.f32.gmra.mrb[86].mxu0 %vm527_vm3, %v398_v29  ;;  %v440_v29 = vld [vmem:[%s10376_s10 + $0x408] sm:$0xff] }
  0xc5   : > { %9919 = vmatprep.mubr.msk.f32.mxu0 %vm527_vm3, %v399_v30  ;;  %v441_v30 = vld [vmem:[%s10376_s10 + $0x410] sm:$0xff] }
  0xc8   : > { %9920 = vmatmul.mubr.msk.f32.gmra.mrb[88].mxu0 %vm527_vm3, %v400_v31 }
  0xc9   : > { %9922 = vmatprep.mubr.msk.f32.mxu0 %vm527_vm3, %v401_v32 }
  0xcc   : > { %9923 = vmatmul.mubr.msk.f32.gmra.mrb[90].mxu0 %vm527_vm3, %v402_v33  ;;  %v442_v33 = vld [vmem:[%s10376_s10 + $0x418] sm:$0xff] }
  0xcd   : > { %9925 = vmatprep.mubr.msk.f32.mxu0 %vm527_vm3, %v403_v34  ;;  %v443_v34 = vld [vmem:[%s10376_s10 + $0x420] sm:$0xff] }
  0xd0   : > { %9926 = vmatmul.mubr.msk.f32.gmra.mrb[92].mxu0 %vm527_vm3, %v404_v35 }
  0xd1   : > { %9928 = vmatprep.mubr.msk.f32.mxu0 %vm527_vm3, %v405_v36 }
  0xd4   : > { %9929 = vmatmul.mubr.msk.f32.gmra.mrb[94].mxu0 %vm527_vm3, %v406_v37  ;;  %v444_v37 = vld [vmem:[%s10376_s10 + $0x428] sm:$0xff] }
  0xd5   : > { %9931 = vmatprep.mubr.msk.f32.mxu0 %vm527_vm3, %v407_v38  ;;  %v445_v38 = vld [vmem:[%s10376_s10 + $0x430] sm:$0xff] }
  0xd8   : > { %9932 = vmatmul.mubr.msk.f32.gmra.mrb[96].mxu0 %vm527_vm3, %v408_v39 }
  0xd9   : > { %9934 = vmatprep.mubr.msk.f32.mxu0 %vm527_vm3, %v409_v40 }
  0xdc   : > { %9935 = vmatmul.mubr.msk.f32.gmra.mrb[98].mxu0 %vm527_vm3, %v410_v41  ;;  %v446_v41 = vld [vmem:[%s10376_s10 + $0x438] sm:$0xff] }
  0xdd   : > { %9937 = vmatprep.mubr.msk.f32.mxu0 %vm527_vm3, %v411_v42  ;;  %v447_v42 = vld [vmem:[%s10376_s10 + $0x440] sm:$0xff] }
  0xe0   : > { %9938 = vmatmul.mubr.msk.f32.gmra.mrb[100].mxu0 %vm527_vm3, %v412_v43 }
  0xe1   : > { %9940 = vmatprep.mubr.msk.f32.mxu0 %vm527_vm3, %v413_v44 }
  0xe4   : > { %9941 = vmatmul.mubr.msk.f32.gmra.mrb[102].mxu0 %vm527_vm3, %v414_v45  ;;  %v448_v45 = vld [vmem:[%s10376_s10 + $0x448] sm:$0xff] }
  0xe5   : > { %9943 = vmatprep.mubr.msk.f32.mxu0 %vm527_vm3, %v415_v46  ;;  %v449_v46 = vld [vmem:[%s10376_s10 + $0x450] sm:$0xff] }
  0xe8   : > { %9944 = vmatmul.mubr.msk.f32.gmra.mrb[104].mxu0 %vm527_vm3, %v416_v47 }
  0xe9   : > { %9946 = vmatprep.mubr.msk.f32.mxu0 %vm527_vm3, %v417_v48 }
  0xeb   : > { %v10594_v51 = vpop.f32.mrb[0].mxu0 }
  0xec   : > { %v10596_v52 = vpop.f32.mrb[1].mxu0  ;;  %9947 = vmatmul.mubr.msk.f32.gmra.mrb[106].mxu0 %vm527_vm3, %v418_v49  ;;  %v450_v49 = vld [vmem:[%s10376_s10 + $0x458] sm:$0xff] }
  0xed   : > { %14773 = vst [vmem:[#allocation5_spill] sm:$0xff] %v10596_v52  ;;  %9949 = vmatprep.mubr.msk.f32.mxu0 %vm527_vm3, %v419_v50  ;;  %v451_v50 = vld [vmem:[%s10376_s10 + $0x460] sm:$0xff] }
  0xef   : > { %v10602_v55 = vpop.f32.mrb[2].mxu0 }
  0xf0   : > { %v10604_v56 = vpop.f32.mrb[3].mxu0  ;;  %9950 = vmatmul.mubr.msk.f32.gmra.mrb[108].mxu0 %vm527_vm3, %v420_v53 }
  0xf1   : > { %14774 = vst [vmem:[#allocation6_spill] sm:$0xff] %v10604_v56  ;;  %9952 = vmatprep.mubr.msk.f32.mxu0 %vm527_vm3, %v421_v54 }
  0xf3   : > { %v10610_v59 = vpop.f32.mrb[4].mxu0 }
  0xf4   : > { %v10612_v60 = vpop.f32.mrb[5].mxu0  ;;  %9953 = vmatmul.mubr.msk.f32.gmra.mrb[110].mxu0 %vm527_vm3, %v422_v57  ;;  %v452_v57 = vld [vmem:[%s10376_s10 + $0x468] sm:$0xff] }
  0xf5   : > { %14775 = vst [vmem:[#allocation7_spill] sm:$0xff] %v10612_v60  ;;  %9955 = vmatprep.mubr.msk.f32.mxu0 %vm527_vm3, %v423_v58  ;;  %v453_v58 = vld [vmem:[%s10376_s10 + $0x470] sm:$0xff] }
  0xf7   : > { %v10618_v63 = vpop.f32.mrb[6].mxu0 }
  0xf8   : > { %v10620_v0 = vpop.f32.mrb[7].mxu0  ;;  %9956 = vmatmul.mubr.msk.f32.gmra.mrb[112].mxu0 %vm527_vm3, %v424_v61 }
  0xf9   : > { %14776 = vst [vmem:[#allocation8_spill] sm:$0xff] %v10620_v0  ;;  %9958 = vmatprep.mubr.msk.f32.mxu0 %vm527_vm3, %v425_v62 }
  0xfb   : > { %v10626_v3 = vpop.f32.mrb[8].mxu0 }
  0xfc   : > { %v10628_v4 = vpop.f32.mrb[9].mxu0  ;;  %9959 = vmatmul.mubr.msk.f32.gmra.mrb[114].mxu0 %vm527_vm3, %v426_v1  ;;  %v454_v1 = vld [vmem:[%s10376_s10 + $0x478] sm:$0xff] }
  0xfd   : > { %14777 = vst [vmem:[#allocation9_spill] sm:$0xff] %v10628_v4  ;;  %9961 = vmatprep.mubr.msk.f32.mxu0 %vm527_vm3, %v427_v2  ;;  %v455_v2 = vld [vmem:[%s10376_s10 + $0x480] sm:$0xff] }
  0xff   : > { %v10634_v7 = vpop.f32.mrb[10].mxu0 }
 0x100   : > { %v10636_v8 = vpop.f32.mrb[11].mxu0  ;;  %9962 = vmatmul.mubr.msk.f32.gmra.mrb[116].mxu0 %vm527_vm3, %v428_v5 }
 0x101   : > { %14778 = vst [vmem:[#allocation10_spill] sm:$0xff] %v10636_v8  ;;  %9964 = vmatprep.mubr.msk.f32.mxu0 %vm527_vm3, %v429_v6 }
 0x103   : > { %v10642_v11 = vpop.f32.mrb[12].mxu0 }
 0x104   : > { %v10644_v12 = vpop.f32.mrb[13].mxu0  ;;  %9965 = vmatmul.mubr.msk.f32.gmra.mrb[118].mxu0 %vm527_vm3, %v430_v9  ;;  %v456_v9 = vld [vmem:[%s10376_s10 + $0x488] sm:$0xff] }
 0x105   : > { %14779 = vst [vmem:[#allocation11_spill] sm:$0xff] %v10644_v12  ;;  %9967 = vmatprep.mubr.msk.f32.mxu0 %vm527_vm3, %v431_v10  ;;  %v457_v10 = vld [vmem:[%s10376_s10 + $0x490] sm:$0xff] }
 0x107   : > { %v10650_v15 = vpop.f32.mrb[14].mxu0 }
 0x108   : > { %v10652_v16 = vpop.f32.mrb[15].mxu0  ;;  %9968 = vmatmul.mubr.msk.f32.gmra.mrb[120].mxu0 %vm527_vm3, %v432_v13 }
 0x109   : > { %14780 = vst [vmem:[#allocation12_spill] sm:$0xff] %v10652_v16  ;;  %9970 = vmatprep.mubr.msk.f32.mxu0 %vm527_vm3, %v433_v14 }
 0x10b   : > { %v10658_v19 = vpop.f32.mrb[16].mxu0 }
 0x10c   : > { %v10660_v20 = vpop.f32.mrb[17].mxu0  ;;  %9971 = vmatmul.mubr.msk.f32.gmra.mrb[122].mxu0 %vm527_vm3, %v434_v17  ;;  %v458_v17 = vld [vmem:[%s10376_s10 + $0x498] sm:$0xff] }
 0x10d   : > { %14781 = vst [vmem:[#allocation13_spill] sm:$0xff] %v10660_v20  ;;  %9973 = vmatprep.mubr.msk.f32.mxu0 %vm527_vm3, %v435_v18  ;;  %v459_v18 = vld [vmem:[%s10376_s10 + $0x4a0] sm:$0xff] }
 0x10f   : > { %v10666_v23 = vpop.f32.mrb[18].mxu0 }
 0x110   : > { %v10668_v24 = vpop.f32.mrb[19].mxu0  ;;  %9974 = vmatmul.mubr.msk.f32.gmra.mrb[124].mxu0 %vm527_vm3, %v436_v21 }
 0x111   : > { %14782 = vst [vmem:[#allocation14_spill] sm:$0xff] %v10668_v24  ;;  %9976 = vmatprep.mubr.msk.f32.mxu0 %vm527_vm3, %v437_v22 }
 0x113   : > { %v10674_v27 = vpop.f32.mrb[20].mxu0 }
 0x114   : > { %v10676_v28 = vpop.f32.mrb[21].mxu0  ;;  %9977 = vmatmul.mubr.msk.f32.gmra.mrb[126].mxu0 %vm527_vm3, %v438_v25  ;;  %v460_v25 = vld [vmem:[%s10376_s10 + $0x4a8] sm:$0xff] }
 0x115   : > { %14783 = vst [vmem:[#allocation15_spill] sm:$0xff] %v10676_v28  ;;  %9979 = vmatprep.mubr.msk.f32.mxu0 %vm527_vm3, %v439_v26  ;;  %v461_v26 = vld [vmem:[%s10376_s10 + $0x4b0] sm:$0xff] }
 0x117   : > { %v10682_v31 = vpop.f32.mrb[22].mxu0 }
 0x118   : > { %v10684_v32 = vpop.f32.mrb[23].mxu0  ;;  %9980 = vmatmul.mubr.msk.f32.gmra.mrb[128].mxu0 %vm527_vm3, %v440_v29 }
 0x119   : > { %14784 = vst [vmem:[#allocation16_spill] sm:$0xff] %v10684_v32  ;;  %9982 = vmatprep.mubr.msk.f32.mxu0 %vm527_vm3, %v441_v30 }
 0x11b   : > { %v10690_v35 = vpop.f32.mrb[24].mxu0 }
 0x11c   : > { %14785 = vst [vmem:[#allocation17_spill] sm:$0xff] %v10690_v35  ;;  %v10692_v36 = vpop.f32.mrb[25].mxu0  ;;  %9983 = vmatmul.mubr.msk.f32.gmra.mrb[130].mxu0 %vm527_vm3, %v442_v33  ;;  %v462_v33 = vld [vmem:[%s10376_s10 + $0x4b8] sm:$0xff]  ;;  %v258_v35 = vld [vmem:[%s14623_s3 + $0x8] sm:$0xff] }
 0x11d   : > { %14786 = vst [vmem:[#allocation18_spill] sm:$0xff] %v10692_v36  ;;  %9985 = vmatprep.mubr.msk.f32.mxu0 %vm527_vm3, %v443_v34  ;;  %v463_v34 = vld [vmem:[%s10376_s10 + $0x4c0] sm:$0xff] }
 0x11f   : > { %v10698_v39 = vpop.f32.mrb[26].mxu0 }
 0x120   : > { %14787 = vst [vmem:[#allocation19_spill] sm:$0xff] %v10698_v39  ;;  %v10700_v40 = vpop.f32.mrb[27].mxu0  ;;  %9986 = vmatmul.mubr.msk.f32.gmra.mrb[132].mxu0 %vm527_vm3, %v444_v37 }
 0x121   : > { %14788 = vst [vmem:[#allocation20_spill] sm:$0xff] %v10700_v40  ;;  %9988 = vmatprep.mubr.msk.f32.mxu0 %vm527_vm3, %v445_v38 }
 0x123   : > { %v10706_v43 = vpop.f32.mrb[28].mxu0 }
 0x124   : > { %14789 = vst [vmem:[#allocation21_spill] sm:$0xff] %v10706_v43  ;;  %v10708_v44 = vpop.f32.mrb[29].mxu0  ;;  %9989 = vmatmul.mubr.msk.f32.gmra.mrb[134].mxu0 %vm527_vm3, %v446_v41  ;;  %v464_v41 = vld [vmem:[%s10376_s10 + $0x4c8] sm:$0xff] }
 0x125   : > { %14790 = vst [vmem:[#allocation22_spill] sm:$0xff] %v10708_v44  ;;  %9991 = vmatprep.mubr.msk.f32.mxu0 %vm527_vm3, %v447_v42  ;;  %v465_v42 = vld [vmem:[%s10376_s10 + $0x4d0] sm:$0xff] }
 0x127   : > { %v10714_v47 = vpop.f32.mrb[30].mxu0 }
 0x128   : > { %14791 = vst [vmem:[#allocation23_spill] sm:$0xff] %v10714_v47  ;;  %v10716_v48 = vpop.f32.mrb[31].mxu0  ;;  %9992 = vmatmul.mubr.msk.f32.gmra.mrb[136].mxu0 %vm527_vm3, %v448_v45 }
 0x129   : > { %14792 = vst [vmem:[#allocation24_spill] sm:$0xff] %v10716_v48  ;;  %9994 = vmatprep.mubr.msk.f32.mxu0 %vm527_vm3, %v449_v46 }
 0x12b   : > { %v10722_v53 = vpop.f32.mrb[32].mxu0 }
 0x12c   : > { %14793 = vst [vmem:[#allocation25_spill] sm:$0xff] %v10722_v53  ;;  %v10724_v54 = vpop.f32.mrb[33].mxu0  ;;  %9995 = vmatmul.mubr.msk.f32.gmra.mrb[138].mxu0 %vm527_vm3, %v450_v49  ;;  %v466_v49 = vld [vmem:[%s10376_s10 + $0x4d8] sm:$0xff] }
 0x12d   : > { %14794 = vst [vmem:[#allocation26_spill] sm:$0xff] %v10724_v54  ;;  %9997 = vmatprep.mubr.msk.f32.mxu0 %vm527_vm3, %v451_v50  ;;  %v467_v50 = vld [vmem:[%s10376_s10 + $0x4e0] sm:$0xff] }
 0x12f   : > { %v10730_v61 = vpop.f32.mrb[34].mxu0 }
 0x130   : > { %14795 = vst [vmem:[#allocation27_spill] sm:$0xff] %v10730_v61  ;;  %v10732_v62 = vpop.f32.mrb[35].mxu0  ;;  %9998 = vmatmul.mubr.msk.f32.gmra.mrb[140].mxu0 %vm527_vm3, %v452_v57 }
 0x131   : > { %14796 = vst [vmem:[#allocation28_spill] sm:$0xff] %v10732_v62  ;;  %10000 = vmatprep.mubr.msk.f32.mxu0 %vm527_vm3, %v453_v58 }
 0x133   : > { %v10738_v5 = vpop.f32.mrb[36].mxu0 }
 0x134   : > { %14797 = vst [vmem:[#allocation29_spill] sm:$0xff] %v10738_v5  ;;  %v10740_v6 = vpop.f32.mrb[37].mxu0  ;;  %10001 = vmatmul.mubr.msk.f32.gmra.mrb[142].mxu0 %vm527_vm3, %v454_v1  ;;  %v468_v1 = vld [vmem:[%s10376_s10 + $0x4e8] sm:$0xff] }
 0x135   : > { %14798 = vst [vmem:[#allocation30_spill] sm:$0xff] %v10740_v6  ;;  %10003 = vmatprep.mubr.msk.f32.mxu0 %vm527_vm3, %v455_v2  ;;  %v469_v2 = vld [vmem:[%s10376_s10 + $0x4f0] sm:$0xff] }
 0x137   : > { %v10746_v13 = vpop.f32.mrb[38].mxu0 }
 0x138   : > { %14799 = vst [vmem:[#allocation31_spill] sm:$0xff] %v10746_v13  ;;  %v10748_v14 = vpop.f32.mrb[39].mxu0  ;;  %10004 = vmatmul.mubr.msk.f32.gmra.mrb[144].mxu0 %vm527_vm3, %v456_v9 }
 0x139   : > { %14800 = vst [vmem:[#allocation32_spill] sm:$0xff] %v10748_v14  ;;  %10006 = vmatprep.mubr.msk.f32.mxu0 %vm527_vm3, %v457_v10 }
 0x13b   : > { %v10754_v21 = vpop.f32.mrb[40].mxu0 }
 0x13c   : > { %14801 = vst [vmem:[#allocation33_spill] sm:$0xff] %v10754_v21  ;;  %v10756_v22 = vpop.f32.mrb[41].mxu0  ;;  %10007 = vmatmul.mubr.msk.f32.gmra.mrb[146].mxu0 %vm527_vm3, %v458_v17  ;;  %v470_v17 = vld [vmem:[%s10376_s10 + $0x4f8] sm:$0xff] }
 0x13d   : > { %14802 = vst [vmem:[#allocation34_spill] sm:$0xff] %v10756_v22  ;;  %10009 = vmatprep.mubr.msk.f32.mxu0 %vm527_vm3, %v459_v18  ;;  %v471_v18 = vld [vmem:[%s10376_s10 + $0x500] sm:$0xff] }
 0x13f   : > { %v10762_v29 = vpop.f32.mrb[42].mxu0 }
 0x140   : > { %14803 = vst [vmem:[#allocation35_spill] sm:$0xff] %v10762_v29  ;;  %v10764_v30 = vpop.f32.mrb[43].mxu0  ;;  %10010 = vmatmul.mubr.msk.f32.gmra.mrb[148].mxu0 %vm527_vm3, %v460_v25 }
 0x141   : > { %14804 = vst [vmem:[#allocation36_spill] sm:$0xff] %v10764_v30  ;;  %10012 = vmatprep.mubr.msk.f32.mxu0 %vm527_vm3, %v461_v26 }
 0x143   : > { %v10770_v37 = vpop.f32.mrb[44].mxu0 }
 0x144   : > { %14805 = vst [vmem:[#allocation37_spill] sm:$0xff] %v10770_v37  ;;  %v10772_v38 = vpop.f32.mrb[45].mxu0  ;;  %10013 = vmatmul.mubr.msk.f32.gmra.mrb[150].mxu0 %vm527_vm3, %v462_v33  ;;  %v472_v33 = vld [vmem:[%s10376_s10 + $0x508] sm:$0xff] }
 0x145   : > { %14806 = vst [vmem:[#allocation38_spill] sm:$0xff] %v10772_v38  ;;  %10015 = vmatprep.mubr.msk.f32.mxu0 %vm527_vm3, %v463_v34  ;;  %v473_v34 = vld [vmem:[%s10376_s10 + $0x510] sm:$0xff] }
 0x147   : > { %v10778_v45 = vpop.f32.mrb[46].mxu0 }
 0x148   : > { %14807 = vst [vmem:[#allocation39_spill] sm:$0xff] %v10778_v45  ;;  %v10780_v46 = vpop.f32.mrb[47].mxu0  ;;  %10016 = vmatmul.mubr.msk.f32.gmra.mrb[152].mxu0 %vm527_vm3, %v464_v41 }
 0x149   : > { %14808 = vst [vmem:[#allocation40_spill] sm:$0xff] %v10780_v46  ;;  %10018 = vmatprep.mubr.msk.f32.mxu0 %vm527_vm3, %v465_v42 }
 0x14b   : > { %v10786_v57 = vpop.f32.mrb[48].mxu0 }
 0x14c   : > { %14809 = vst [vmem:[#allocation41_spill] sm:$0xff] %v10786_v57  ;;  %v10788_v58 = vpop.f32.mrb[49].mxu0  ;;  %10019 = vmatmul.mubr.msk.f32.gmra.mrb[154].mxu0 %vm527_vm3, %v466_v49 }
 0x14d   : > { %14810 = vst [vmem:[#allocation42_spill] sm:$0xff] %v10788_v58  ;;  %10021 = vmatprep.mubr.msk.f32.mxu0 %vm527_vm3, %v467_v50  ;;  %v476_v50 = vld [vmem:[%s10376_s10 + $0x528] sm:$0xff] }
 0x14f   : > { %v10794_v9 = vpop.f32.mrb[50].mxu0 }
 0x150   : > { %14811 = vst [vmem:[#allocation43_spill] sm:$0xff] %v10794_v9  ;;  %v10796_v10 = vpop.f32.mrb[51].mxu0  ;;  %10022 = vmatmul.mubr.msk.f32.gmra.mrb[156].mxu0 %vm527_vm3, %v468_v1  ;;  %v474_v1 = vld [vmem:[%s10376_s10 + $0x518] sm:$0xff] }
 0x151   : > { %14812 = vst [vmem:[#allocation44_spill] sm:$0xff] %v10796_v10  ;;  %10024 = vmatprep.mubr.msk.f32.mxu0 %vm527_vm3, %v469_v2  ;;  %v475_v2 = vld [vmem:[%s10376_s10 + $0x520] sm:$0xff] }
 0x153   : > { %v10802_v25 = vpop.f32.mrb[52].mxu0 }
 0x154   : > { %14813 = vst [vmem:[#allocation45_spill] sm:$0xff] %v10802_v25  ;;  %v10804_v26 = vpop.f32.mrb[53].mxu0  ;;  %10025 = vmatmul.mubr.msk.f32.gmra.mrb[158].mxu0 %vm527_vm3, %v470_v17 }
 0x155   : > { %14814 = vst [vmem:[#allocation46_spill] sm:$0xff] %v10804_v26  ;;  %10027 = vmatprep.mubr.msk.f32.mxu0 %vm527_vm3, %v471_v18 }
 0x157   : > { %v10810_v41 = vpop.f32.mrb[54].mxu0 }
 0x158   : > { %v10814_v49 = vpop.f32.mrb[55].mxu0  ;;  %10028 = vmatmul.mubr.msk.f32.gmra.mrb[160].mxu0 %vm527_vm3, %v472_v33  ;;  %v478_v33 = vld [vmem:[%s10376_s10 + $0x538] sm:$0xff] }
 0x159   : > { %14815 = vst [vmem:[#allocation47_spill] sm:$0xff] %v10814_v49  ;;  %10030 = vmatprep.mubr.msk.f32.mxu0 %vm527_vm3, %v473_v34  ;;  %v477_v34 = vld [vmem:[%s10376_s10 + $0x530] sm:$0xff] }
 0x15b   : > { %v10822_v17 = vpop.f32.mrb[56].mxu0 }
 0x15c   : > { %v10826_v26 = vpop.f32.mrb[57].mxu0  ;;  %10031 = vmatmul.mubr.msk.f32.gmra.mrb[162].mxu0 %vm527_vm3, %v474_v1  ;;  %v480_v1 = vld [vmem:[%s10376_s10 + $0x548] sm:$0xff] }
 0x15d   : > { %14816 = vst [vmem:[#allocation48_spill] sm:$0xff] %v10826_v26  ;;  %10033 = vmatprep.mubr.msk.f32.mxu0 %vm527_vm3, %v475_v2  ;;  %v479_v2 = vld [vmem:[%s10376_s10 + $0x540] sm:$0xff] }
 0x15f   : > { %v10834_v42 = vpop.f32.mrb[58].mxu0 }
 0x160   : > { %v10838_v52 = vpop.f32.mrb[59].mxu0  ;;  %10034 = vmatmul.mubr.msk.f32.gmra.mrb[164].mxu0 %vm527_vm3, %v476_v50  ;;  %v482_v50 = vld [vmem:[%s10376_s10 + $0x558] sm:$0xff] }
 0x161   : > { %14817 = vst [vmem:[#allocation49_spill] sm:$0xff] %v10838_v52  ;;  %10036 = vmatprep.mubr.msk.f32.mxu0 %vm527_vm3, %v477_v34  ;;  %v481_v34 = vld [vmem:[%s10376_s10 + $0x550] sm:$0xff] }
 0x163   : > { %v10846_v18 = vpop.f32.mrb[60].mxu0 }
 0x164   : > { %v10850_v56 = vpop.f32.mrb[61].mxu0  ;;  %10037 = vmatmul.mubr.msk.f32.gmra.mrb[166].mxu0 %vm527_vm3, %v478_v33  ;;  %v484_v33 = vld [vmem:[%s10376_s10 + $0x568] sm:$0xff] }
 0x165   : > { %14818 = vst [vmem:[#allocation50_spill] sm:$0xff] %v10850_v56  ;;  %10039 = vmatprep.mubr.msk.f32.mxu0 %vm527_vm3, %v479_v2  ;;  %v483_v2 = vld [vmem:[%s10376_s10 + $0x560] sm:$0xff] }
 0x167   : > { %v10858_v49 = vpop.f32.mrb[62].mxu0 }
 0x168   : > { %v10862_v60 = vpop.f32.mrb[63].mxu0  ;;  %10040 = vmatmul.mubr.msk.f32.gmra.mrb[168].mxu0 %vm527_vm3, %v480_v1  ;;  %v486_v1 = vld [vmem:[%s10376_s10 + $0x578] sm:$0xff] }
 0x169   : > { %14819 = vst [vmem:[#allocation51_spill] sm:$0xff] %v10862_v60  ;;  %10042 = vmatprep.mubr.msk.f32.mxu0 %vm527_vm3, %v481_v34  ;;  %v485_v34 = vld [vmem:[%s10376_s10 + $0x570] sm:$0xff] }
 0x16b   : > { %v10870_v26 = vpop.f32.mrb[64].mxu0 }
 0x16c   : > { %v10874_v0 = vpop.f32.mrb[65].mxu0  ;;  %10043 = vmatmul.mubr.msk.f32.gmra.mrb[170].mxu0 %vm527_vm3, %v482_v50  ;;  %v488_v50 = vld [vmem:[%s10376_s10 + $0x588] sm:$0xff] }
 0x16d   : > { %14820 = vst [vmem:[#allocation52_spill] sm:$0xff] %v10874_v0  ;;  %10045 = vmatprep.mubr.msk.f32.mxu0 %vm527_vm3, %v483_v2  ;;  %v487_v2 = vld [vmem:[%s10376_s10 + $0x580] sm:$0xff] }
 0x16f   : > { %v10882_v52 = vpop.f32.mrb[66].mxu0 }
 0x170   : > { %v10886_v4 = vpop.f32.mrb[67].mxu0  ;;  %10046 = vmatmul.mubr.msk.f32.gmra.mrb[172].mxu0 %vm527_vm3, %v484_v33  ;;  %v490_v33 = vld [vmem:[%s10376_s10 + $0x598] sm:$0xff] }
 0x171   : > { %14821 = vst [vmem:[#allocation53_spill] sm:$0xff] %v10886_v4  ;;  %10048 = vmatprep.mubr.msk.f32.mxu0 %vm527_vm3, %v485_v34  ;;  %v489_v34 = vld [vmem:[%s10376_s10 + $0x590] sm:$0xff] }
 0x173   : > { %v10894_v56 = vpop.f32.mrb[68].mxu0 }
 0x174   : > { %v10898_v8 = vpop.f32.mrb[69].mxu0  ;;  %10049 = vmatmul.mubr.msk.f32.gmra.mrb[174].mxu0 %vm527_vm3, %v486_v1  ;;  %v492_v1 = vld [vmem:[%s10376_s10 + $0x5a8] sm:$0xff] }
 0x175   : > { %14822 = vst [vmem:[#allocation54_spill] sm:$0xff] %v10898_v8  ;;  %10051 = vmatprep.mubr.msk.f32.mxu0 %vm527_vm3, %v487_v2  ;;  %v491_v2 = vld [vmem:[%s10376_s10 + $0x5a0] sm:$0xff] }
 0x177   : > { %v10906_v60 = vpop.f32.mrb[70].mxu0 }
 0x178   : > { %v10910_v12 = vpop.f32.mrb[71].mxu0  ;;  %10052 = vmatmul.mubr.msk.f32.gmra.mrb[176].mxu0 %vm527_vm3, %v488_v50  ;;  %v494_v50 = vld [vmem:[%s10376_s10 + $0x5b8] sm:$0xff] }
 0x179   : > { %14823 = vst [vmem:[#allocation55_spill] sm:$0xff] %v10910_v12  ;;  %10054 = vmatprep.mubr.msk.f32.mxu0 %vm527_vm3, %v489_v34  ;;  %v493_v34 = vld [vmem:[%s10376_s10 + $0x5b0] sm:$0xff] }
 0x17b   : > { %v10918_v0 = vpop.f32.mrb[72].mxu0 }
 0x17c   : > { %v10922_v16 = vpop.f32.mrb[73].mxu0  ;;  %10055 = vmatmul.mubr.msk.f32.gmra.mrb[178].mxu0 %vm527_vm3, %v490_v33  ;;  %v496_v33 = vld [vmem:[%s10376_s10 + $0x5c8] sm:$0xff] }
 0x17d   : > { %14824 = vst [vmem:[#allocation56_spill] sm:$0xff] %v10922_v16  ;;  %10057 = vmatprep.mubr.msk.f32.mxu0 %vm527_vm3, %v491_v2  ;;  %v495_v2 = vld [vmem:[%s10376_s10 + $0x5c0] sm:$0xff] }
 0x17f   : > { %v10930_v4 = vpop.f32.mrb[74].mxu0 }
 0x180   : > { %v10934_v20 = vpop.f32.mrb[75].mxu0  ;;  %10058 = vmatmul.mubr.msk.f32.gmra.mrb[180].mxu0 %vm527_vm3, %v492_v1  ;;  %v498_v1 = vld [vmem:[%s10376_s10 + $0x5d8] sm:$0xff] }
 0x181   : > { %14825 = vst [vmem:[#allocation57_spill] sm:$0xff] %v10934_v20  ;;  %10060 = vmatprep.mubr.msk.f32.mxu0 %vm527_vm3, %v493_v34  ;;  %v497_v34 = vld [vmem:[%s10376_s10 + $0x5d0] sm:$0xff] }
 0x183   : > { %v10942_v8 = vpop.f32.mrb[76].mxu0 }
 0x184   : > { %v10946_v24 = vpop.f32.mrb[77].mxu0  ;;  %10061 = vmatmul.mubr.msk.f32.gmra.mrb[182].mxu0 %vm527_vm3, %v494_v50  ;;  %v500_v50 = vld [vmem:[%s10376_s10 + $0x5e8] sm:$0xff] }
 0x185   : > { %14826 = vst [vmem:[#allocation58_spill] sm:$0xff] %v10946_v24  ;;  %10063 = vmatprep.mubr.msk.f32.mxu0 %vm527_vm3, %v495_v2  ;;  %v499_v2 = vld [vmem:[%s10376_s10 + $0x5e0] sm:$0xff] }
 0x187   : > { %v10954_v12 = vpop.f32.mrb[78].mxu0 }
 0x188   : > { %14827 = vst [vmem:[#allocation59_spill] sm:$0xff] %v10954_v12  ;;  %v10958_v28 = vpop.f32.mrb[79].mxu0  ;;  %10064 = vmatmul.mubr.msk.f32.gmra.mrb[184].mxu0 %vm527_vm3, %v496_v33  ;;  %v502_v33 = vld [vmem:[%s10376_s10 + $0x5f8] sm:$0xff] }
 0x189   : > { %14828 = vst [vmem:[#allocation60_spill] sm:$0xff] %v10958_v28  ;;  %10066 = vmatprep.mubr.msk.f32.mxu0 %vm527_vm3, %v497_v34  ;;  %v501_v34 = vld [vmem:[%s10376_s10 + $0x5f0] sm:$0xff] }
 0x18b   : > { %v10966_v16 = vpop.f32.mrb[80].mxu0 }
 0x18c   : > { %14829 = vst [vmem:[#allocation61_spill] sm:$0xff] %v10966_v16  ;;  %v10970_v32 = vpop.f32.mrb[81].mxu0  ;;  %10067 = vmatmul.mubr.msk.f32.gmra.mrb[186].mxu0 %vm527_vm3, %v498_v1  ;;  %v504_v1 = vld [vmem:[%s10376_s10 + $0x608] sm:$0xff] }
 0x18d   : > { %14830 = vst [vmem:[#allocation62_spill] sm:$0xff] %v10970_v32  ;;  %10069 = vmatprep.mubr.msk.f32.mxu0 %vm527_vm3, %v499_v2  ;;  %v503_v2 = vld [vmem:[%s10376_s10 + $0x600] sm:$0xff] }
 0x18f   : > { %v10978_v20 = vpop.f32.mrb[82].mxu0 }
 0x190   : > { %14831 = vst [vmem:[#allocation63_spill] sm:$0xff] %v10978_v20  ;;  %v10982_v36 = vpop.f32.mrb[83].mxu0  ;;  %10070 = vmatmul.mubr.msk.f32.gmra.mrb[188].mxu0 %vm527_vm3, %v500_v50  ;;  %v506_v50 = vld [vmem:[%s10376_s10 + $0x618] sm:$0xff] }
 0x191   : > { %14832 = vst [vmem:[#allocation64_spill] sm:$0xff] %v10982_v36  ;;  %10072 = vmatprep.mubr.msk.f32.mxu0 %vm527_vm3, %v501_v34  ;;  %v505_v34 = vld [vmem:[%s10376_s10 + $0x610] sm:$0xff] }
 0x193   : > { %v10990_v24 = vpop.f32.mrb[84].mxu0 }
 0x194   : > { %14833 = vst [vmem:[#allocation65_spill] sm:$0xff] %v10990_v24  ;;  %v10994_v40 = vpop.f32.mrb[85].mxu0  ;;  %10073 = vmatmul.mubr.msk.f32.gmra.mrb[190].mxu0 %vm527_vm3, %v502_v33  ;;  %v508_v33 = vld [vmem:[%s10376_s10 + $0x628] sm:$0xff] }
 0x195   : > { %14834 = vst [vmem:[#allocation66_spill] sm:$0xff] %v10994_v40  ;;  %10075 = vmatprep.mubr.msk.f32.mxu0 %vm527_vm3, %v503_v2  ;;  %v507_v2 = vld [vmem:[%s10376_s10 + $0x620] sm:$0xff] }
 0x197   : > { %v11002_v28 = vpop.f32.mrb[86].mxu0 }
 0x198   : > { %14835 = vst [vmem:[#allocation67_spill] sm:$0xff] %v11002_v28  ;;  %v11006_v44 = vpop.f32.mrb[87].mxu0  ;;  %10076 = vmatmul.mubr.msk.f32.gmra.mrb[192].mxu0 %vm527_vm3, %v504_v1  ;;  %v510_v1 = vld [vmem:[%s10376_s10 + $0x638] sm:$0xff] }
 0x199   : > { %14836 = vst [vmem:[#allocation68_spill] sm:$0xff] %v11006_v44  ;;  %10078 = vmatprep.mubr.msk.f32.mxu0 %vm527_vm3, %v505_v34  ;;  %v509_v34 = vld [vmem:[%s10376_s10 + $0x630] sm:$0xff] }
 0x19b   : > { %v11014_v32 = vpop.f32.mrb[88].mxu0 }
 0x19c   : > { %14837 = vst [vmem:[#allocation69_spill] sm:$0xff] %v11014_v32  ;;  %v11018_v48 = vpop.f32.mrb[89].mxu0  ;;  %10079 = vmatmul.mubr.msk.f32.gmra.mrb[194].mxu0 %vm527_vm3, %v506_v50  ;;  %v512_v50 = vld [vmem:[%s10376_s10 + $0x648] sm:$0xff] }
 0x19d   : > { %14838 = vst [vmem:[#allocation70_spill] sm:$0xff] %v11018_v48  ;;  %10081 = vmatprep.mubr.msk.f32.mxu0 %vm527_vm3, %v507_v2  ;;  %v511_v2 = vld [vmem:[%s10376_s10 + $0x640] sm:$0xff] }
 0x19f   : > { %v11026_v36 = vpop.f32.mrb[90].mxu0 }
 0x1a0   : > { %14839 = vst [vmem:[#allocation71_spill] sm:$0xff] %v11026_v36  ;;  %v11030_v54 = vpop.f32.mrb[91].mxu0  ;;  %10082 = vmatmul.mubr.msk.f32.gmra.mrb[196].mxu0 %vm527_vm3, %v508_v33  ;;  %v514_v33 = vld [vmem:[%s10376_s10 + $0x658] sm:$0xff] }
 0x1a1   : > { %14840 = vst [vmem:[#allocation72_spill] sm:$0xff] %v11030_v54  ;;  %10084 = vmatprep.mubr.msk.f32.mxu0 %vm527_vm3, %v509_v34  ;;  %v513_v34 = vld [vmem:[%s10376_s10 + $0x650] sm:$0xff] }
 0x1a3   : > { %v11038_v40 = vpop.f32.mrb[92].mxu0 }
 0x1a4   : > { %14841 = vst [vmem:[#allocation73_spill] sm:$0xff] %v11038_v40  ;;  %v11042_v62 = vpop.f32.mrb[93].mxu0  ;;  %10085 = vmatmul.mubr.msk.f32.gmra.mrb[198].mxu0 %vm527_vm3, %v510_v1  ;;  %v516_v1 = vld [vmem:[%s10376_s10 + $0x668] sm:$0xff] }
 0x1a5   : > { %14842 = vst [vmem:[#allocation74_spill] sm:$0xff] %v11042_v62  ;;  %10087 = vmatprep.mubr.msk.f32.mxu0 %vm527_vm3, %v511_v2  ;;  %v515_v2 = vld [vmem:[%s10376_s10 + $0x660] sm:$0xff] }
 0x1a7   : > { %v11050_v44 = vpop.f32.mrb[94].mxu0 }
 0x1a8   : > { %14843 = vst [vmem:[#allocation75_spill] sm:$0xff] %v11050_v44  ;;  %v11054_v6 = vpop.f32.mrb[95].mxu0  ;;  %10088 = vmatmul.mubr.msk.f32.gmra.mrb[200].mxu0 %vm527_vm3, %v512_v50  ;;  %v518_v50 = vld [vmem:[%s10376_s10 + $0x678] sm:$0xff] }
 0x1a9   : > { %14844 = vst [vmem:[#allocation76_spill] sm:$0xff] %v11054_v6  ;;  %10090 = vmatprep.mubr.msk.f32.mxu0 %vm527_vm3, %v513_v34  ;;  %v517_v34 = vld [vmem:[%s10376_s10 + $0x670] sm:$0xff] }
 0x1ab   : > { %v11062_v48 = vpop.f32.mrb[96].mxu0 }
 0x1ac   : > { %14845 = vst [vmem:[#allocation77_spill] sm:$0xff] %v11062_v48  ;;  %v11066_v14 = vpop.f32.mrb[97].mxu0  ;;  %10091 = vmatmul.mubr.msk.f32.gmra.mrb[202].mxu0 %vm527_vm3, %v514_v33  ;;  %v520_v33 = vld [vmem:[%s10376_s10 + $0x688] sm:$0xff] }
 0x1ad   : > { %14846 = vst [vmem:[#allocation78_spill] sm:$0xff] %v11066_v14  ;;  %10093 = vmatprep.mubr.msk.f32.mxu0 %vm527_vm3, %v515_v2  ;;  %v519_v2 = vld [vmem:[%s10376_s10 + $0x680] sm:$0xff] }
 0x1af   : > { %v11074_v54 = vpop.f32.mrb[98].mxu0 }
 0x1b0   : > { %14847 = vst [vmem:[#allocation79_spill] sm:$0xff] %v11074_v54  ;;  %v11078_v22 = vpop.f32.mrb[99].mxu0  ;;  %10094 = vmatmul.mubr.msk.f32.gmra.mrb[204].mxu0 %vm527_vm3, %v516_v1  ;;  %v522_v1 = vld [vmem:[%s10376_s10 + $0x698] sm:$0xff] }
 0x1b1   : > { %14848 = vst [vmem:[#allocation80_spill] sm:$0xff] %v11078_v22  ;;  %10096 = vmatprep.mubr.msk.f32.mxu0 %vm527_vm3, %v517_v34  ;;  %v521_v34 = vld [vmem:[%s10376_s10 + $0x690] sm:$0xff] }
 0x1b2   : > { %v525_v22 = vld [vmem:[%s10376_s10 + $0x6b0] sm:$0xff] }
 0x1b3   : > { %v11086_v62 = vpop.f32.mrb[100].mxu0 }
 0x1b4   : > { %14849 = vst [vmem:[#allocation81_spill] sm:$0xff] %v11086_v62  ;;  %v11090_v30 = vpop.f32.mrb[101].mxu0  ;;  %10097 = vmatmul.mubr.msk.f32.gmra.mrb[206].mxu0 %vm527_vm3, %v518_v50  ;;  %v524_v50 = vld [vmem:[%s10376_s10 + $0x6a8] sm:$0xff] }
 0x1b5   : > { %14850 = vst [vmem:[#allocation82_spill] sm:$0xff] %v11090_v30  ;;  %10099 = vmatprep.mubr.msk.f32.mxu0 %vm527_vm3, %v519_v2  ;;  %v523_v2 = vld [vmem:[%s10376_s10 + $0x6a0] sm:$0xff] }
 0x1b7   : > { %v11098_v6 = vpop.f32.mrb[102].mxu0 }
 0x1b8   : > { %14851 = vst [vmem:[#allocation83_spill] sm:$0xff] %v11098_v6  ;;  %v11102_v38 = vpop.f32.mrb[103].mxu0  ;;  %10100 = vmatmul.mubr.msk.f32.gmra.mrb[208].mxu0 %vm527_vm3, %v520_v33 }
 0x1b9   : > { %14852 = vst [vmem:[#allocation84_spill] sm:$0xff] %v11102_v38  ;;  %10102 = vmatprep.mubr.msk.f32.mxu0 %vm527_vm3, %v521_v34 }
 0x1bb   : > { %v11110_v14 = vpop.f32.mrb[104].mxu0 }
 0x1bc   : > { %14853 = vst [vmem:[#allocation85_spill] sm:$0xff] %v11110_v14  ;;  %v11114_v46 = vpop.f32.mrb[105].mxu0  ;;  %10103 = vmatmul.mubr.msk.f32.gmra.mrb[210].mxu0 %vm527_vm3, %v522_v1  ;;  %v526_v1 = vld [vmem:[%s10376_s10 + $0x6b8] sm:$0xff] }
 0x1bd   : > { %14854 = vst [vmem:[#allocation86_spill] sm:$0xff] %v11114_v46  ;;  %10105 = vmatprep.mubr.msk.f32.mxu0 %vm527_vm3, %v523_v2 }
 0x1bf   : > { %v11122_v34 = vpop.f32.mrb[106].mxu0 }
 0x1c0   : > { %14855 = vst [vmem:[#allocation87_spill] sm:$0xff] %v11122_v34  ;;  %v11126_v58 = vpop.f32.mrb[107].mxu0  ;;  %10106 = vmatmul.mubr.msk.f32.gmra.mrb[212].mxu0 %vm527_vm3, %v524_v50 }
 0x1c1   : > { %14856 = vst [vmem:[#allocation88_spill] sm:$0xff] %v11126_v58  ;;  %10108 = vmatprep.mubr.msk.f32.mxu0 %vm527_vm3, %v525_v22 }
 0x1c3   : > { %v9951_v33 = vpop.f32.mrb[108].mxu0 }
 0x1c4   : > { %v1786_v46 = vpop.f32.mrb[109].mxu0  ;;  %10109 = vmatmul.mubr.msk.f32.gmra.mrb[214].mxu0 %vm527_vm3, %v526_v1 }
 0x1c7   : > { %v11134_v2 = vpop.f32.mrb[110].mxu0 }
 0x1c8   : > { %v11136_v10 = vpop.f32.mrb[111].mxu0 }
 0x1cb   : > { %v11138_v9 = vpop.f32.mrb[112].mxu0 }
 0x1cc   : > { %v11140_v38 = vpop.f32.mrb[113].mxu0 }
 0x1cf   : > { %v11142_v34 = vpop.f32.mrb[114].mxu0 }
 0x1d0   : > { %v11144_v50 = vpop.f32.mrb[115].mxu0 }
 0x1d3   : > { %v11146_v14 = vpop.f32.mrb[116].mxu0 }
 0x1d4   : > { %v11148_v22 = vpop.f32.mrb[117].mxu0 }
 0x1d7   : > { %v11150_v58 = vpop.f32.mrb[118].mxu0 }
 0x1d8   : > { %v11152_v30 = vpop.f32.mrb[119].mxu0 }
 0x1db   : > { %v11154_v1 = vpop.f32.mrb[120].mxu0 }
 0x1dc   : > { %v11156_v25 = vpop.f32.mrb[121].mxu0 }
 0x1df   : > { %v11158_v6 = vpop.f32.mrb[122].mxu0 }
 0x1e0   : > { %v11160_v57 = vpop.f32.mrb[123].mxu0 }
 0x1e3   : > { %v11162_v62 = vpop.f32.mrb[124].mxu0 }
 0x1e4   : > { %v11164_v45 = vpop.f32.mrb[125].mxu0 }
 0x1e7   : > { %v11166_v54 = vpop.f32.mrb[126].mxu0 }
 0x1e8   : > { %v11168_v37 = vpop.f32.mrb[127].mxu0 }
 0x1eb   : > { %v11170_v48 = vpop.f32.mrb[128].mxu0 }
 0x1ec   : > { %v11172_v29 = vpop.f32.mrb[129].mxu0 }
 0x1ef   : > { %v11174_v44 = vpop.f32.mrb[130].mxu0 }
 0x1f0   : > { %v11176_v21 = vpop.f32.mrb[131].mxu0 }
 0x1f3   : > { %v11178_v40 = vpop.f32.mrb[132].mxu0 }
 0x1f4   : > { %v11180_v13 = vpop.f32.mrb[133].mxu0 }
 0x1f5   : > { %14858 = vst [vmem:[#allocation89_spill] sm:$0xff] %v11180_v13  ;;  %v260_v13 = vld [vmem:[%s14623_s3 + $0x18] sm:$0xff] }
 0x1f7   : > { %v11182_v36 = vpop.f32.mrb[134].mxu0 }
 0x1f8   : > { %14859 = vst [vmem:[#allocation90_spill] sm:$0xff] %v11182_v36  ;;  %v11184_v5 = vpop.f32.mrb[135].mxu0 }
 0x1f9   : > { %14860 = vst [vmem:[#allocation91_spill] sm:$0xff] %v11184_v5 }
 0x1fb   : > { %v11186_v32 = vpop.f32.mrb[136].mxu0 }
 0x1fc   : > { %14861 = vst [vmem:[#allocation92_spill] sm:$0xff] %v11186_v32  ;;  %v11188_v61 = vpop.f32.mrb[137].mxu0 }
 0x1fd   : > { %14862 = vst [vmem:[#allocation93_spill] sm:$0xff] %v11188_v61 }
 0x1ff   : > { %v11190_v28 = vpop.f32.mrb[138].mxu0 }
 0x200   : > { %14863 = vst [vmem:[#allocation94_spill] sm:$0xff] %v11190_v28  ;;  %v11192_v53 = vpop.f32.mrb[139].mxu0 }
 0x201   : > { %14864 = vst [vmem:[#allocation95_spill] sm:$0xff] %v11192_v53 }
 0x203   : > { %v11194_v24 = vpop.f32.mrb[140].mxu0 }
 0x204   : > { %14865 = vst [vmem:[#allocation96_spill] sm:$0xff] %v11194_v24  ;;  %v11196_v47 = vpop.f32.mrb[141].mxu0 }
 0x205   : > { %14866 = vst [vmem:[#allocation97_spill] sm:$0xff] %v11196_v47 }
 0x207   : > { %v11198_v20 = vpop.f32.mrb[142].mxu0 }
 0x208   : > { %14867 = vst [vmem:[#allocation98_spill] sm:$0xff] %v11198_v20  ;;  %v11200_v43 = vpop.f32.mrb[143].mxu0 }
 0x209   : > { %14868 = vst [vmem:[#allocation99_spill] sm:$0xff] %v11200_v43 }
 0x20b   : > { %v11202_v16 = vpop.f32.mrb[144].mxu0 }
 0x20c   : > { %14869 = vst [vmem:[#allocation100_spill] sm:$0xff] %v11202_v16  ;;  %v11204_v39 = vpop.f32.mrb[145].mxu0 }
 0x20d   : > { %14870 = vst [vmem:[#allocation101_spill] sm:$0xff] %v11204_v39 }
 0x20f   : > { %v11206_v5 = vpop.f32.mrb[146].mxu0 }
 0x210   : > { %14871 = vst [vmem:[#allocation102_spill] sm:$0xff] %v11206_v5  ;;  %v11208_v32 = vpop.f32.mrb[147].mxu0 }
 0x211   : > { %14872 = vst [vmem:[#allocation103_spill] sm:$0xff] %v11208_v32 }
 0x213   : > { %v11210_v61 = vpop.f32.mrb[148].mxu0 }
 0x214   : > { %14873 = vst [vmem:[#allocation104_spill] sm:$0xff] %v11210_v61  ;;  %v11212_v28 = vpop.f32.mrb[149].mxu0 }
 0x215   : > { %14874 = vst [vmem:[#allocation105_spill] sm:$0xff] %v11212_v28 }
 0x217   : > { %v11214_v53 = vpop.f32.mrb[150].mxu0 }
 0x218   : > { %14875 = vst [vmem:[#allocation106_spill] sm:$0xff] %v11214_v53  ;;  %v11216_v24 = vpop.f32.mrb[151].mxu0 }
 0x219   : > { %14876 = vst [vmem:[#allocation107_spill] sm:$0xff] %v11216_v24 }
 0x21b   : > { %v11218_v47 = vpop.f32.mrb[152].mxu0 }
 0x21c   : > { %14877 = vst [vmem:[#allocation108_spill] sm:$0xff] %v11218_v47  ;;  %v11220_v20 = vpop.f32.mrb[153].mxu0 }
 0x21d   : > { %14878 = vst [vmem:[#allocation109_spill] sm:$0xff] %v11220_v20  ;;  %v14889_v20 = vld [vmem:[#allocation47_spill] sm:$0xff] }
 0x21f   : > { %v11222_v43 = vpop.f32.mrb[154].mxu0 }
 0x220   : > { %14879 = vst [vmem:[#allocation110_spill] sm:$0xff] %v11222_v43  ;;  %v11224_v16 = vpop.f32.mrb[155].mxu0  ;;  %v11241_v43 = vld [vmem:[%s14622_s2] ss:$0 sm:$0xff] }
 0x221   : > { %14880 = vst [vmem:[#allocation111_spill] sm:$0xff] %v11224_v16 }
 0x223   : > { %v11226_v39 = vpop.f32.mrb[156].mxu0 }
 0x224   : > { %14881 = vst [vmem:[#allocation112_spill] sm:$0xff] %v11226_v39  ;;  %v11228_v5 = vpop.f32.mrb[157].mxu0 }
 0x225   : > { %14882 = vst [vmem:[#allocation113_spill] sm:$0xff] %v11228_v5  ;;  %v14887_v5 = vmax.f32 %v10594_v51, %v10810_v41 }
 0x227   : > { %v11230_v32 = vpop.f32.mrb[158].mxu0 }
 0x228   : > { %14883 = vst [vmem:[#allocation114_spill] sm:$0xff] %v11230_v32  ;;  %v11232_v61 = vpop.f32.mrb[159].mxu0  ;;  %v14888_v32 = vld [vmem:[#allocation5_spill] sm:$0xff] }
 0x229   : > { %14884 = vst [vmem:[#allocation115_spill] sm:$0xff] %v11232_v61  ;;  %v14890_v61 = vmax.f32 %v14888_v32, %v14889_v20  ;;  %v257_v20 = vld [vmem:[%s14623_s3] sm:$0xff] }
 0x22b   : > { %v11234_v28 = vpop.f32.mrb[160].mxu0 }
 0x22c   : > { %14885 = vst [vmem:[#allocation116_spill] sm:$0xff] %v11234_v28  ;;  %v11236_v53 = vpop.f32.mrb[161].mxu0 }
 0x22d   : > { %14886 = vst [vmem:[#allocation117_spill] sm:$0xff] %v11236_v53 }
 0x22f   : > { %v10032_v24 = vpop.f32.mrb[162].mxu0 }
 0x230   : > { %v2380_v47 = vmax.f32 %v9951_v33, %v10032_v24  ;;  %v2056_v36 = vpop.f32.mrb[163].mxu0 }
 0x231   : > { %v2379_v16 = vmax.f32 %v1786_v46, %v2056_v36 }
 0x232   : > { %v2434_v39 = vmax.f32 %v14887_v5, %v2380_v47  ;;  %v14893_v47 = vld [vmem:[#allocation48_spill] sm:$0xff] }
 0x233   : > { %v2433_v12 = vmax.f32 %v14890_v61, %v2379_v16  ;;  %v10035_v28 = vpop.f32.mrb[164].mxu0  ;;  %v14891_v16 = vmax.f32 %v10602_v55, %v10822_v17 }
 0x234   : > { %v2494_v53 = vadd.f32 %v11241_v43, %v2434_v39  ;;  %v2382_v24 = vmax.f32 %v11134_v2, %v10035_v28  ;;  %v2066_v33 = vpop.f32.mrb[165].mxu0  ;;  %v14892_v39 = vld [vmem:[#allocation6_spill] sm:$0xff] }
 0x235   : > { %v2493_v36 = vadd.f32 %v11241_v43, %v2433_v12  ;;  %v2381_v46 = vmax.f32 %v11136_v10, %v2066_v33  ;;  %v14894_v61 = vmax.f32 %v14892_v39, %v14893_v47 }
 0x236   : > { %v2548_v51 = vmax.f32 %v2494_v53, 0.0  ;;  %v2436_v32 = vmax.f32 %v14891_v16, %v2382_v24 }
 0x237   : > { %v2547_v28 = vmax.f32 %v2493_v36, 0.0  ;;  %v2435_v5 = vmax.f32 %v14894_v61, %v2381_v46  ;;  %v10038_v41 = vpop.f32.mrb[166].mxu0 }
 0x238   : > { %v2602_v2 = vmul.f32 %v2548_v51, %v258_v35  ;;  %v2496_v12 = vadd.f32 %v11241_v43, %v2436_v32  ;;  %v2384_v53 = vmax.f32 %v11138_v9, %v10038_v41  ;;  %v2076_v10 = vpop.f32.mrb[167].mxu0  ;;  %v259_v35 = vld [vmem:[%s14623_s3 + $0x10] sm:$0xff]  ;;  %v14895_v9 = vmax.f32 %v10610_v59, %v10834_v42  ;;  %v14896_v51 = vld [vmem:[#allocation7_spill] sm:$0xff] }
 0x239   : > { %v2601_v33 = vmul.f32 %v2547_v28, %v257_v20  ;;  %v2495_v55 = vadd.f32 %v11241_v43, %v2435_v5  ;;  %v2383_v17 = vmax.f32 %v11140_v38, %v2076_v10  ;;  %v14897_v20 = vld [vmem:[#allocation49_spill] sm:$0xff]  ;;  %v262_v59 = vld [vmem:[%s14623_s3 + $0x28] sm:$0xff]  ;;  %v14900_v10 = vld [vmem:[#allocation8_spill] sm:$0xff] }
 0x23a   : > { %2657 = vst.msk [vmem:[#allocation2 + $0x8] sm:$0xff] %vm2655_vm4, %v2602_v2  ;;  %v2550_v24 = vmax.f32 %v2496_v12, 0.0  ;;  %v2438_v36 = vmax.f32 %v14895_v9, %v2384_v53  ;;  %v14898_v16 = vmax.f32 %v14896_v51, %v14897_v20 }
 0x23b   : > { %2656 = vst.msk [vmem:[#allocation2] sm:$0xff] %vm2655_vm4, %v2601_v33  ;;  %v2549_v46 = vmax.f32 %v2495_v55, 0.0  ;;  %v10041_v28 = vpop.f32.mrb[168].mxu0  ;;  %v14901_v33 = vld [vmem:[#allocation50_spill] sm:$0xff] }
 0x23c   : > { %v2437_v32 = vmax.f32 %v14898_v16, %v2383_v17  ;;  %v2604_v38 = vmul.f32 %v2550_v24, %v260_v13  ;;  %v2498_v39 = vadd.f32 %v11241_v43, %v2438_v36  ;;  %v2386_v47 = vmax.f32 %v11142_v34, %v10041_v28  ;;  %v2086_v61 = vpop.f32.mrb[169].mxu0  ;;  %v261_v13 = vld [vmem:[%s14623_s3 + $0x20] sm:$0xff] }
 0x23d   : > { %v2603_v5 = vmul.f32 %v2549_v46, %v259_v35  ;;  %v2385_v41 = vmax.f32 %v11144_v50, %v2086_v61  ;;  %v14899_v34 = vmax.f32 %v10618_v63, %v10846_v18  ;;  %v14902_v55 = vmax.f32 %v14900_v10, %v14901_v33  ;;  %v264_v63 = vld [vmem:[%s14623_s3 + $0x38] sm:$0xff]  ;;  %v14905_v61 = vld [vmem:[#allocation51_spill] sm:$0xff] }
 0x23e   : > { %v2497_v42 = vadd.f32 %v11241_v43, %v2437_v32  ;;  %2659 = vst.msk [vmem:[#allocation2 + $0x18] sm:$0xff] %vm2655_vm4, %v2604_v38  ;;  %v2552_v2 = vmax.f32 %v2498_v39, 0.0  ;;  %v263_v32 = vld [vmem:[%s14623_s3 + $0x30] sm:$0xff] }
 0x23f   : > { %v2440_v12 = vmax.f32 %v14899_v34, %v2386_v47  ;;  %2658 = vst.msk [vmem:[#allocation2 + $0x10] sm:$0xff] %vm2655_vm4, %v2603_v5  ;;  %v2439_v17 = vmax.f32 %v14902_v55, %v2385_v41  ;;  %v10044_v24 = vpop.f32.mrb[170].mxu0 }
 0x240   : > { %v2551_v53 = vmax.f32 %v2497_v42, 0.0  ;;  %v2606_v50 = vmul.f32 %v2552_v2, %v262_v59  ;;  %v2388_v9 = vmax.f32 %v11146_v14, %v10044_v24  ;;  %v2096_v36 = vpop.f32.mrb[171].mxu0  ;;  %v14903_v14 = vmax.f32 %v10626_v3, %v10858_v49 }
 0x241   : > { %v2500_v35 = vadd.f32 %v11241_v43, %v2440_v12  ;;  %v2499_v18 = vadd.f32 %v11241_v43, %v2439_v17  ;;  %v2387_v51 = vmax.f32 %v11148_v22, %v2096_v36  ;;  %v2711_v20 = vld [vmem:[#allocation2 + $0x8] sm:$0xff]  ;;  %v14904_v22 = vld [vmem:[#allocation9_spill] sm:$0xff]  ;;  %v14907_v17 = vmax.f32 %v10634_v7, %v10870_v26  ;;  %v14909_v36 = vld [vmem:[#allocation52_spill] sm:$0xff] }
 0x242   : > { %v2605_v46 = vmul.f32 %v2551_v53, %v261_v13  ;;  %2661 = vst.msk [vmem:[#allocation2 + $0x28] sm:$0xff] %vm2655_vm4, %v2606_v50  ;;  %v2442_v28 = vmax.f32 %v14903_v14, %v2388_v9  ;;  %v3039_v38 = vld [vmem:[#allocation2 + $0x2] sm:$0xff]  ;;  %2752 = vst.msk [vmem:[#allocation3 + $0x20] sm:$0xff] %vm2655_vm4, %v2711_v20  ;;  %v14906_v5 = vmax.f32 %v14904_v22, %v14905_v61  ;;  %v268_v14 = vld [vmem:[%s14623_s3 + $0x58] sm:$0xff] }
 0x243   : > { %v2554_v16 = vmax.f32 %v2500_v35, 0.0  ;;  %v2792_v39 = vld [vmem:[#allocation2 + $0x1] sm:$0xff]  ;;  %v2553_v47 = vmax.f32 %v2499_v18, 0.0  ;;  %3121 = vrot.lane.b32.xlu1 %v3039_v38, %s10307_s7  ;;  %v10047_v42 = vpop.f32.mrb[172].mxu0  ;;  %v14911_v22 = vmax.f32 %v10642_v11, %v10882_v52 }
 0x244   : > { %2660 = vst.msk [vmem:[#allocation2 + $0x20] sm:$0xff] %vm2655_vm4, %v2605_v46  ;;  %v2441_v59 = vmax.f32 %v14906_v5, %v2387_v51  ;;  %2874 = vrot.lane.b32.xlu0 %v2792_v39, %s10308_s8  ;;  %v2710_v3 = vld [vmem:[#allocation2] sm:$0xff]  ;;  %v2502_v41 = vadd.f32 %v11241_v43, %v2442_v28  ;;  %v2390_v2 = vmax.f32 %v11150_v58, %v10047_v42  ;;  %v2106_v13 = vpop.f32.mrb[173].mxu0  ;;  %v266_v12 = vld [vmem:[%s14623_s3 + $0x48] sm:$0xff]  ;;  %v14913_v42 = vld [vmem:[#allocation53_spill] sm:$0xff] }
 0x245   : > { %v2608_v49 = vmul.f32 %v2554_v16, %v264_v63  ;;  %2751 = vst.msk [vmem:[#allocation3] sm:$0xff] %vm2655_vm4, %v2710_v3  ;;  %v2607_v34 = vmul.f32 %v2553_v47, %v263_v32  ;;  %v2389_v10 = vmax.f32 %v11152_v30, %v2106_v13  ;;  %v3780_v33 = vld [vmem:[#allocation2 + $0x18] sm:$0xff]  ;;  %v265_v58 = vld [vmem:[%s14623_s3 + $0x40] sm:$0xff] }
 0x246   : > { %v2501_v53 = vadd.f32 %v11241_v43, %v2441_v59  ;;  %v2556_v55 = vmax.f32 %v2502_v41, 0.0  ;;  %v2444_v24 = vmax.f32 %v14907_v17, %v2390_v2  ;;  %v3533_v50 = vld [vmem:[#allocation2 + $0x4] sm:$0xff]  ;;  %2754 = vst.msk [vmem:[#allocation3 + $0x60] sm:$0xff] %vm2655_vm4, %v3780_v33  ;;  %v2712_v16 = vld [vmem:[#allocation2 + $0x10] sm:$0xff] }
 0x247   : > { %2663 = vst.msk [vmem:[#allocation2 + $0x38] sm:$0xff] %vm2655_vm4, %v2608_v49  ;;  %v3286_v35 = vld [vmem:[#allocation2 + $0x3] sm:$0xff]  ;;  %2662 = vst.msk [vmem:[#allocation2 + $0x30] sm:$0xff] %vm2655_vm4, %v2607_v34  ;;  %3615 = vrot.lane.b32.xlu1 %v3533_v50, %s10309_s13  ;;  %v10050_v18 = vpop.f32.mrb[174].mxu0  ;;  %v2794_v5 = vld [vmem:[#allocation2 + $0x11] sm:$0xff]  ;;  %v14915_v50 = vmax.f32 %v10650_v15, %v10894_v56 }
 0x248   : > { %v2555_v9 = vmax.f32 %v2501_v53, 0.0  ;;  %v14908_v30 = vld [vmem:[#allocation10_spill] sm:$0xff]  ;;  %3368 = vrot.lane.b32.xlu0 %v3286_v35, %s10310_s14  ;;  %v2610_v7 = vmul.f32 %v2556_v55, %v266_v12  ;;  %v2504_v26 = vadd.f32 %v11241_v43, %v2444_v24  ;;  %v2392_v51 = vmax.f32 %v11154_v1, %v10050_v18  ;;  %v2116_v20 = vpop.f32.mrb[175].mxu0  ;;  %2753 = vst.msk [vmem:[#allocation3 + $0x40] sm:$0xff] %vm2655_vm4, %v2712_v16  ;;  %v267_v1 = vld [vmem:[%s14623_s3 + $0x50] sm:$0xff]  ;;  %v14912_v59 = vld [vmem:[#allocation11_spill] sm:$0xff] }
 0x249   : > { %v14910_v46 = vmax.f32 %v14908_v30, %v14909_v36  ;;  %v2391_v38 = vmax.f32 %v11156_v25, %v2116_v20  ;;  %v11351_v39 = vld [vmem:[#allocation2 + $0x28] sm:$0xff]  ;;  %v14914_v3 = vmax.f32 %v14912_v59, %v14913_v42  ;;  %v269_v24 = vld [vmem:[%s14623_s3 + $0x60] sm:$0xff]  ;;  %v14916_v36 = vld [vmem:[#allocation12_spill] sm:$0xff] }
 0x24a   : > { %v2609_v32 = vmul.f32 %v2555_v9, %v265_v58  ;;  %2665 = vst.msk [vmem:[#allocation2 + $0x48] sm:$0xff] %vm2655_vm4, %v2610_v7  ;;  %v2558_v47 = vmax.f32 %v2504_v26, 0.0  ;;  %v2446_v61 = vmax.f32 %v14911_v22, %v2392_v51  ;;  %2756 = vst.msk [vmem:[#allocation3 + $0xa0] sm:$0xff] %vm2655_vm4, %v11351_v39  ;;  %v2793_v9 = vld [vmem:[#allocation2 + $0x9] sm:$0xff]  ;;  %v14920_v42 = vld [vmem:[#allocation13_spill] sm:$0xff] }
 0x24b   : > { %v2443_v63 = vmax.f32 %v14910_v46, %v2389_v10  ;;  %v2445_v49 = vmax.f32 %v14914_v3, %v2391_v38  ;;  %2878 = vrot.lane.b32.xlu1 %v2794_v5, %s10308_s8  ;;  %v10053_v41 = vpop.f32.mrb[176].mxu0  ;;  %v11369_v2 = vld [vmem:[#allocation2 + $0x1b] sm:$0xff]  ;;  %v11373_v12 = vld [vmem:[#allocation2 + $0x23] sm:$0xff]  ;;  %v271_v22 = vld [vmem:[%s14623_s3 + $0x70] sm:$0xff] }
 0x24c   : > { %2664 = vst.msk [vmem:[#allocation2 + $0x40] sm:$0xff] %vm2655_vm4, %v2609_v32  ;;  %3862 = vrot.lane.b32.xlu0 %v3780_v33, %s10311_s19  ;;  %v2612_v52 = vmul.f32 %v2558_v47, %v268_v14  ;;  %v2506_v11 = vadd.f32 %v11241_v43, %v2446_v61  ;;  %v2394_v13 = vmax.f32 %v11158_v6, %v10053_v41  ;;  %v2126_v34 = vpop.f32.mrb[177].mxu0  ;;  %v11375_v53 = vld [vmem:[#allocation2 + $0x20] sm:$0xff]  ;;  %4562 = vst.msk [vmem:[#allocation3 + $0x8] sm:$0xff] %vm2655_vm4, %v11369_v2  ;;  %v270_v33 = vld [vmem:[%s14623_s3 + $0x68] sm:$0xff] }
 0x24d   : > { %v2503_v28 = vadd.f32 %v11241_v43, %v2443_v63  ;;  %v2505_v55 = vadd.f32 %v11241_v43, %v2445_v49  ;;  %v2393_v58 = vmax.f32 %v11160_v57, %v2126_v34  ;;  %2755 = vst.msk [vmem:[#allocation3 + $0x80] sm:$0xff] %vm2655_vm4, %v11375_v53  ;;  %4563 = vst.msk [vmem:[#allocation3 + $0x28] sm:$0xff] %vm2655_vm4, %v11373_v12  ;;  %v3041_v57 = vld [vmem:[#allocation2 + $0x12] sm:$0xff]  ;;  %v14917_v46 = vld [vmem:[#allocation54_spill] sm:$0xff] }
 0x24e   : > { %v11384_v17 = vld [vmem:[#allocation2 + $0x38] sm:$0xff]  ;;  %2667 = vst.msk [vmem:[#allocation2 + $0x58] sm:$0xff] %vm2655_vm4, %v2612_v52  ;;  %v2560_v6 = vmax.f32 %v2506_v11, 0.0  ;;  %v2448_v35 = vmax.f32 %v14915_v50, %v2394_v13  ;;  %v14918_v63 = vmax.f32 %v14916_v36, %v14917_v46  ;;  %v11405_v26 = vld [vmem:[#allocation2 + $0x2b] sm:$0xff]  ;;  %v14919_v61 = vmax.f32 %v10658_v19, %v10906_v60  ;;  %v14924_v46 = vld [vmem:[#allocation14_spill] sm:$0xff] }
 0x24f   : > { %v2557_v25 = vmax.f32 %v2503_v28, 0.0  ;;  %2758 = vst.msk [vmem:[#allocation3 + $0xe0] sm:$0xff] %vm2655_vm4, %v11384_v17  ;;  %v2559_v30 = vmax.f32 %v2505_v55, 0.0  ;;  %3125 = vrot.lane.b32.xlu1 %v3041_v57, %s10307_s7  ;;  %v10056_v7 = vpop.f32.mrb[178].mxu0  ;;  %v11409_v16 = vld [vmem:[#allocation2 + $0x33] sm:$0xff]  ;;  %4564 = vst.msk [vmem:[#allocation3 + $0x48] sm:$0xff] %vm2655_vm4, %v11405_v26  ;;  %v14923_v57 = vmax.f32 %v10666_v23, %v10918_v0 }
 0x250   : > { %v2447_v18 = vmax.f32 %v14918_v63, %v2393_v58  ;;  %2876 = vrot.lane.b32.xlu0 %v2793_v9, %s10308_s8  ;;  %v2614_v56 = vmul.f32 %v2560_v6, %v270_v33  ;;  %v2508_v15 = vadd.f32 %v11241_v43, %v2448_v35  ;;  %v2396_v51 = vmax.f32 %v11162_v62, %v10056_v7  ;;  %v2136_v20 = vpop.f32.mrb[179].mxu0  ;;  %v11411_v32 = vld [vmem:[#allocation2 + $0x30] sm:$0xff]  ;;  %v272_v28 = vld [vmem:[%s14623_s3 + $0x78] sm:$0xff]  ;;  %v14921_v3 = vld [vmem:[#allocation55_spill] sm:$0xff] }
 0x251   : > { %v2611_v10 = vmul.f32 %v2557_v25, %v267_v1  ;;  %v2613_v14 = vmul.f32 %v2559_v30, %v269_v24  ;;  %v2395_v47 = vmax.f32 %v11164_v45, %v2136_v20  ;;  %v11420_v1 = vld [vmem:[#allocation2 + $0x48] sm:$0xff]  ;;  %2757 = vst.msk [vmem:[#allocation3 + $0xc0] sm:$0xff] %vm2655_vm4, %v11411_v32  ;;  %4565 = vst.msk [vmem:[#allocation3 + $0x68] sm:$0xff] %vm2655_vm4, %v11409_v16  ;;  %v273_v35 = vld [vmem:[%s14623_s3 + $0x80] sm:$0xff] }
 0x252   : > { %v2507_v38 = vadd.f32 %v11241_v43, %v2447_v18  ;;  %2669 = vst.msk [vmem:[#allocation2 + $0x68] sm:$0xff] %vm2655_vm4, %v2614_v56  ;;  %v2562_v62 = vmax.f32 %v2508_v15, 0.0  ;;  %v2450_v5 = vmax.f32 %v14919_v61, %v2396_v51  ;;  %v3287_v45 = vld [vmem:[#allocation2 + $0xb] sm:$0xff]  ;;  %2760 = vst.msk [vmem:[#allocation3 + $0x120] sm:$0xff] %vm2655_vm4, %v11420_v1  ;;  %v14922_v49 = vmax.f32 %v14920_v42, %v14921_v3  ;;  %v3288_v30 = vld [vmem:[#allocation2 + $0x13] sm:$0xff] }
 0x253   : > { %2666 = vst.msk [vmem:[#allocation2 + $0x50] sm:$0xff] %vm2655_vm4, %v2611_v10  ;;  %v3040_v25 = vld [vmem:[#allocation2 + $0xa] sm:$0xff]  ;;  %2668 = vst.msk [vmem:[#allocation2 + $0x60] sm:$0xff] %vm2655_vm4, %v2613_v14  ;;  %3370 = vrot.lane.b32.xlu1 %v3287_v45, %s10310_s14  ;;  %v10059_v52 = vpop.f32.mrb[180].mxu0  ;;  %v11441_v11 = vld [vmem:[#allocation2 + $0x3b] sm:$0xff]  ;;  %v14927_v45 = vmax.f32 %v10674_v27, %v10930_v4 }
 0x254   : > { %v2561_v59 = vmax.f32 %v2507_v38, 0.0  ;;  %v2449_v41 = vmax.f32 %v14922_v49, %v2395_v47  ;;  %3123 = vrot.lane.b32.xlu0 %v3040_v25, %s10307_s7  ;;  %v2616_v60 = vmul.f32 %v2562_v62, %v272_v28  ;;  %v2510_v19 = vadd.f32 %v11241_v43, %v2450_v5  ;;  %v2146_v34 = vpop.f32.mrb[181].mxu0  ;;  %v11445_v10 = vld [vmem:[#allocation2 + $0x43] sm:$0xff]  ;;  %4566 = vst.msk [vmem:[#allocation3 + $0x88] sm:$0xff] %vm2655_vm4, %v11441_v11  ;;  %v14925_v63 = vld [vmem:[#allocation56_spill] sm:$0xff]  ;;  %v276_v47 = vld [vmem:[%s14623_s3 + $0x98] sm:$0xff] }
 0x255   : > { %v2398_v13 = vmax.f32 %v11166_v54, %v10059_v52  ;;  %v11447_v33 = vld [vmem:[#allocation2 + $0x40] sm:$0xff]  ;;  %v274_v58 = vld [vmem:[%s14623_s3 + $0x88] sm:$0xff]  ;;  %v2397_v24 = vmax.f32 %v11168_v37, %v2146_v34  ;;  %v11456_v50 = vld [vmem:[#allocation2 + $0x58] sm:$0xff]  ;;  %4567 = vst.msk [vmem:[#allocation3 + $0xa8] sm:$0xff] %vm2655_vm4, %v11445_v10  ;;  %v14926_v18 = vmax.f32 %v14924_v46, %v14925_v63 }
 0x256   : > { %v2615_v55 = vmul.f32 %v2561_v59, %v271_v22  ;;  %v2509_v6 = vadd.f32 %v11241_v43, %v2449_v41  ;;  %2759 = vst.msk [vmem:[#allocation3 + $0x100] sm:$0xff] %vm2655_vm4, %v11447_v33  ;;  %2671 = vst.msk [vmem:[#allocation2 + $0x78] sm:$0xff] %vm2655_vm4, %v2616_v60  ;;  %v2564_v54 = vmax.f32 %v2510_v19, 0.0  ;;  %v3535_v37 = vld [vmem:[#allocation2 + $0x14] sm:$0xff]  ;;  %v14928_v3 = vld [vmem:[#allocation15_spill] sm:$0xff] }
 0x257   : > { %v2452_v9 = vmax.f32 %v14923_v57, %v2398_v13  ;;  %2762 = vst.msk [vmem:[#allocation3 + $0x160] sm:$0xff] %vm2655_vm4, %v11456_v50  ;;  %v2451_v7 = vmax.f32 %v14926_v18, %v2397_v24  ;;  %3619 = vrot.lane.b32.xlu1 %v3535_v37, %s10309_s13  ;;  %v10062_v56 = vpop.f32.mrb[182].mxu0  ;;  %v275_v5 = vld [vmem:[%s14623_s3 + $0x90] sm:$0xff]  ;;  %v11505_v59 = vld [vmem:[#allocation2 + $0x19] sm:$0xff]  ;;  %v278_v24 = vld [vmem:[%s14623_s3 + $0xa8] sm:$0xff]  ;;  %v14931_v37 = vmax.f32 %v10682_v31, %v10942_v8 }
 0x258   : > { %2670 = vst.msk [vmem:[#allocation2 + $0x70] sm:$0xff] %vm2655_vm4, %v2615_v55  ;;  %v2563_v36 = vmax.f32 %v2509_v6, 0.0  ;;  %3372 = vrot.lane.b32.xlu0 %v3288_v30, %s10310_s14  ;;  %v2618_v0 = vmul.f32 %v2564_v54, %v274_v58  ;;  %v2400_v51 = vmax.f32 %v11170_v48, %v10062_v56  ;;  %v2156_v20 = vpop.f32.mrb[183].mxu0  ;;  %v14929_v49 = vld [vmem:[#allocation57_spill] sm:$0xff]  ;;  %v14932_v46 = vld [vmem:[#allocation16_spill] sm:$0xff]  ;;  %v14933_v63 = vld [vmem:[#allocation58_spill] sm:$0xff] }
 0x259   : > { %v2512_v23 = vadd.f32 %v11241_v43, %v2452_v9  ;;  %v2511_v62 = vadd.f32 %v11241_v43, %v2451_v7  ;;  %v2399_v22 = vmax.f32 %v11172_v29, %v2156_v20  ;;  %v11492_v61 = vld [vmem:[#allocation2 + $0x68] sm:$0xff]  ;;  %v14930_v41 = vmax.f32 %v14928_v3, %v14929_v49  ;;  %v277_v9 = vld [vmem:[%s14623_s3 + $0xa0] sm:$0xff] }
 0x25a   : > { %v11477_v15 = vld [vmem:[#allocation2 + $0x4b] sm:$0xff]  ;;  %v11481_v14 = vld [vmem:[#allocation2 + $0x53] sm:$0xff]  ;;  %v2617_v38 = vmul.f32 %v2563_v36, %v273_v35  ;;  %2673 = vst.msk [vmem:[#allocation2 + $0x88] sm:$0xff] %vm2655_vm4, %v2618_v0  ;;  %v2454_v25 = vmax.f32 %v14927_v45, %v2400_v51  ;;  %2764 = vst.msk [vmem:[#allocation3 + $0x1a0] sm:$0xff] %vm2655_vm4, %v11492_v61  ;;  %v14934_v18 = vmax.f32 %v14932_v46, %v14933_v63 }
 0x25b   : > { %v11483_v28 = vld [vmem:[#allocation2 + $0x50] sm:$0xff]  ;;  %4568 = vst.msk [vmem:[#allocation3 + $0xc8] sm:$0xff] %vm2655_vm4, %v11477_v15  ;;  %4569 = vst.msk [vmem:[#allocation3 + $0xe8] sm:$0xff] %vm2655_vm4, %v11481_v14  ;;  %v2566_v48 = vmax.f32 %v2512_v23, 0.0  ;;  %v2565_v42 = vmax.f32 %v2511_v62, 0.0  ;;  %v2453_v52 = vmax.f32 %v14930_v41, %v2399_v22  ;;  %2880 = vrot.lane.b32.xlu1 %v11505_v59, %s10308_s8  ;;  %v10065_v4 = vpop.f32.mrb[184].mxu0 }
 0x25c   : > { %2761 = vst.msk [vmem:[#allocation3 + $0x140] sm:$0xff] %vm2655_vm4, %v11483_v28  ;;  %v3534_v29 = vld [vmem:[#allocation2 + $0xc] sm:$0xff]  ;;  %2672 = vst.msk [vmem:[#allocation2 + $0x80] sm:$0xff] %vm2655_vm4, %v2617_v38  ;;  %v11516_v27 = vld [vmem:[#allocation2 + $0x5b] sm:$0xff]  ;;  %v2514_v19 = vadd.f32 %v11241_v43, %v2454_v25  ;;  %v2402_v13 = vmax.f32 %v11174_v44, %v10065_v4  ;;  %v2166_v34 = vpop.f32.mrb[185].mxu0 }
 0x25d   : > { %3617 = vrot.lane.b32.xlu0 %v3534_v29, %s10309_s13  ;;  %v2620_v60 = vmul.f32 %v2566_v48, %v276_v47  ;;  %v11520_v55 = vld [vmem:[#allocation2 + $0x63] sm:$0xff]  ;;  %4570 = vst.msk [vmem:[#allocation3 + $0x108] sm:$0xff] %vm2655_vm4, %v11516_v27  ;;  %v2619_v6 = vmul.f32 %v2565_v42, %v275_v5  ;;  %v2513_v54 = vadd.f32 %v11241_v43, %v2453_v52  ;;  %v11531_v57 = vld [vmem:[#allocation2 + $0x78] sm:$0xff]  ;;  %v279_v45 = vld [vmem:[%s14623_s3 + $0xb0] sm:$0xff] }
 0x25e   : > { %v11522_v58 = vld [vmem:[#allocation2 + $0x60] sm:$0xff]  ;;  %v2401_v35 = vmax.f32 %v11176_v21, %v2166_v34  ;;  %4571 = vst.msk [vmem:[#allocation3 + $0x128] sm:$0xff] %vm2655_vm4, %v11520_v55  ;;  %v2568_v44 = vmax.f32 %v2514_v19, 0.0  ;;  %v2456_v30 = vmax.f32 %v14931_v37, %v2402_v13  ;;  %2766 = vst.msk [vmem:[#allocation3 + $0x1e0] sm:$0xff] %vm2655_vm4, %v11531_v57  ;;  %v280_v47 = vld [vmem:[%s14623_s3 + $0xb8] sm:$0xff] }
 0x25f   : > { %2763 = vst.msk [vmem:[#allocation3 + $0x180] sm:$0xff] %vm2655_vm4, %v11522_v58  ;;  %2675 = vst.msk [vmem:[#allocation2 + $0x98] sm:$0xff] %vm2655_vm4, %v2620_v60  ;;  %v11544_v21 = vld [vmem:[#allocation2 + $0x22] sm:$0xff]  ;;  %v2567_v36 = vmax.f32 %v2513_v54, 0.0  ;;  %v10068_v8 = vpop.f32.mrb[186].mxu0  ;;  %v11556_v31 = vld [vmem:[#allocation2 + $0x6b] sm:$0xff] }
 0x260   : > { %2674 = vst.msk [vmem:[#allocation2 + $0x90] sm:$0xff] %vm2655_vm4, %v2619_v6  ;;  %v2455_v7 = vmax.f32 %v14934_v18, %v2401_v35  ;;  %3129 = vrot.lane.b32.xlu1 %v11544_v21, %s10307_s7  ;;  %v2622_v56 = vmul.f32 %v2568_v44, %v278_v24  ;;  %v2516_v0 = vadd.f32 %v11241_v43, %v2456_v30  ;;  %v2176_v51 = vpop.f32.mrb[187].mxu0  ;;  %v11560_v20 = vld [vmem:[#allocation2 + $0x73] sm:$0xff]  ;;  %4572 = vst.msk [vmem:[#allocation3 + $0x148] sm:$0xff] %vm2655_vm4, %v11556_v31  ;;  %v14937_v29 = vld [vmem:[#allocation59_spill] sm:$0xff] }
 0x261   : > { %3866 = vrot.lane.b32.xlu0 %v11351_v39, %s10311_s19  ;;  %v2404_v23 = vmax.f32 %v11178_v40, %v10068_v8  ;;  %v11562_v38 = vld [vmem:[#allocation2 + $0x70] sm:$0xff]  ;;  %v2621_v39 = vmul.f32 %v2567_v36, %v277_v9  ;;  %v14935_v22 = vld [vmem:[#allocation89_spill] sm:$0xff]  ;;  %v11571_v5 = vld [vmem:[#allocation2 + $0x88] sm:$0xff]  ;;  %4573 = vst.msk [vmem:[#allocation3 + $0x168] sm:$0xff] %vm2655_vm4, %v11560_v20 }
 0x262   : > { %v2515_v62 = vadd.f32 %v11241_v43, %v2455_v7  ;;  %v2403_v48 = vmax.f32 %v14935_v22, %v2176_v51  ;;  %2765 = vst.msk [vmem:[#allocation3 + $0x1c0] sm:$0xff] %vm2655_vm4, %v11562_v38  ;;  %2677 = vst.msk [vmem:[#allocation2 + $0xa8] sm:$0xff] %vm2655_vm4, %v2622_v56  ;;  %v2570_v40 = vmax.f32 %v2516_v0, 0.0  ;;  %v14936_v25 = vld [vmem:[#allocation17_spill] sm:$0xff]  ;;  %v11584_v49 = vld [vmem:[#allocation2 + $0x21] sm:$0xff] }
 0x263   : > { %v14938_v42 = vmax.f32 %v14936_v25, %v14937_v29  ;;  %2768 = vst.msk [vmem:[#allocation3 + $0x220] sm:$0xff] %vm2655_vm4, %v11571_v5  ;;  %2676 = vst.msk [vmem:[#allocation2 + $0xa0] sm:$0xff] %vm2655_vm4, %v2621_v39  ;;  %v14939_v52 = vld [vmem:[#allocation18_spill] sm:$0xff]  ;;  %v14940_v4 = vld [vmem:[#allocation60_spill] sm:$0xff]  ;;  %v10071_v13 = vpop.f32.mrb[188].mxu0 }
 0x264   : > { %v2569_v41 = vmax.f32 %v2515_v62, 0.0  ;;  %v14941_v60 = vmax.f32 %v14939_v52, %v14940_v4  ;;  %3374 = vrot.lane.b32.xlu1 %v11369_v2, %s10310_s14  ;;  %v11596_v34 = vld [vmem:[#allocation2 + $0x7b] sm:$0xff]  ;;  %v2624_v6 = vmul.f32 %v2570_v40, %v280_v47  ;;  %v2186_v44 = vpop.f32.mrb[189].mxu0  ;;  %v11600_v9 = vld [vmem:[#allocation2 + $0x83] sm:$0xff]  ;;  %v14947_v22 = vld [vmem:[#allocation20_spill] sm:$0xff] }
 0x265   : > { %v2458_v3 = vmax.f32 %v14938_v42, %v2404_v23  ;;  %2882 = vrot.lane.b32.xlu0 %v11584_v49, %s10308_s8  ;;  %v14942_v54 = vld [vmem:[#allocation90_spill] sm:$0xff]  ;;  %4574 = vst.msk [vmem:[#allocation3 + $0x188] sm:$0xff] %vm2655_vm4, %v11596_v34  ;;  %v282_v2 = vld [vmem:[%s14623_s3 + $0xc8] sm:$0xff]  ;;  %4575 = vst.msk [vmem:[#allocation3 + $0x1a8] sm:$0xff] %vm2655_vm4, %v11600_v9 }
 0x266   : > { %v2457_v19 = vmax.f32 %v14941_v60, %v2403_v48  ;;  %v2406_v35 = vmax.f32 %v14942_v54, %v10071_v13  ;;  %v11602_v37 = vld [vmem:[#allocation2 + $0x80] sm:$0xff]  ;;  %v2623_v30 = vmul.f32 %v2569_v41, %v279_v45  ;;  %v14943_v46 = vld [vmem:[#allocation91_spill] sm:$0xff]  ;;  %v11611_v18 = vld [vmem:[#allocation2 + $0x98] sm:$0xff]  ;;  %2679 = vst.msk [vmem:[#allocation2 + $0xb8] sm:$0xff] %vm2655_vm4, %v2624_v6 }
 0x267   : > { %v2518_v24 = vadd.f32 %v11241_v43, %v2458_v3  ;;  %v2405_v63 = vmax.f32 %v14943_v46, %v2186_v44  ;;  %2767 = vst.msk [vmem:[#allocation3 + $0x200] sm:$0xff] %vm2655_vm4, %v11602_v37  ;;  %v281_v8 = vld [vmem:[%s14623_s3 + $0xc0] sm:$0xff]  ;;  %v14944_v56 = vld [vmem:[#allocation19_spill] sm:$0xff]  ;;  %v14945_v0 = vld [vmem:[#allocation61_spill] sm:$0xff]  ;;  %v10074_v25 = vpop.f32.mrb[190].mxu0 }
 0x268   : > { %v2517_v36 = vadd.f32 %v11241_v43, %v2457_v19  ;;  %v14946_v23 = vmax.f32 %v14944_v56, %v14945_v0  ;;  %v11624_v39 = vld [vmem:[#allocation2 + $0x1a] sm:$0xff]  ;;  %v11626_v47 = vld [vmem:[#allocation2 + $0x24] sm:$0xff]  ;;  %2770 = vst.msk [vmem:[#allocation3 + $0x260] sm:$0xff] %vm2655_vm4, %v11611_v18  ;;  %2678 = vst.msk [vmem:[#allocation2 + $0xb0] sm:$0xff] %vm2655_vm4, %v2623_v30  ;;  %v2196_v4 = vpop.f32.mrb[191].mxu0 }
 0x269   : > { %v2572_v7 = vmax.f32 %v2518_v24, 0.0  ;;  %v14948_v48 = vld [vmem:[#allocation62_spill] sm:$0xff]  ;;  %3127 = vrot.lane.b32.xlu0 %v11624_v39, %s10307_s7  ;;  %3623 = vrot.lane.b32.xlu1 %v11626_v47, %s10309_s13  ;;  %v11638_v29 = vld [vmem:[#allocation2 + $0x8b] sm:$0xff]  ;;  %v11642_v60 = vld [vmem:[#allocation2 + $0x93] sm:$0xff] }
 0x26a   : > { %v2460_v51 = vmax.f32 %v14946_v23, %v2406_v35  ;;  %v2571_v62 = vmax.f32 %v2517_v36, 0.0  ;;  %v14949_v40 = vmax.f32 %v14947_v22, %v14948_v48  ;;  %v14950_v41 = vld [vmem:[#allocation92_spill] sm:$0xff]  ;;  %4576 = vst.msk [vmem:[#allocation3 + $0x1c8] sm:$0xff] %vm2655_vm4, %v11638_v29  ;;  %v284_v6 = vld [vmem:[%s14623_s3 + $0xd8] sm:$0xff]  ;;  %v11653_v44 = vld [vmem:[#allocation2 + $0xa8] sm:$0xff] }
 0x26b   : > { %v2626_v42 = vmul.f32 %v2572_v7, %v282_v2  ;;  %v2408_v52 = vmax.f32 %v14950_v41, %v10074_v25  ;;  %v11644_v19 = vld [vmem:[#allocation2 + $0x90] sm:$0xff]  ;;  %v14951_v54 = vld [vmem:[#allocation93_spill] sm:$0xff]  ;;  %4577 = vst.msk [vmem:[#allocation3 + $0x1e8] sm:$0xff] %vm2655_vm4, %v11642_v60  ;;  %v14953_v46 = vld [vmem:[#allocation63_spill] sm:$0xff] }
 0x26c   : > { %v2459_v45 = vmax.f32 %v14949_v40, %v2405_v63  ;;  %v2520_v3 = vadd.f32 %v11241_v43, %v2460_v51  ;;  %v2625_v13 = vmul.f32 %v2571_v62, %v281_v8  ;;  %v2407_v35 = vmax.f32 %v14951_v54, %v2196_v4  ;;  %2769 = vst.msk [vmem:[#allocation3 + $0x240] sm:$0xff] %vm2655_vm4, %v11644_v19  ;;  %v283_v2 = vld [vmem:[%s14623_s3 + $0xd0] sm:$0xff]  ;;  %v14952_v36 = vld [vmem:[#allocation21_spill] sm:$0xff]  ;;  %v14955_v56 = vld [vmem:[#allocation22_spill] sm:$0xff]  ;;  %v10077_v62 = vpop.f32.mrb[192].mxu0 }
 0x26d   : > { %2681 = vst.msk [vmem:[#allocation2 + $0xc8] sm:$0xff] %vm2655_vm4, %v2626_v42  ;;  %v14954_v63 = vmax.f32 %v14952_v36, %v14953_v46  ;;  %2772 = vst.msk [vmem:[#allocation3 + $0x2a0] sm:$0xff] %vm2655_vm4, %v11653_v44  ;;  %v14956_v0 = vld [vmem:[#allocation64_spill] sm:$0xff]  ;;  %3376 = vrot.lane.b32.xlu0 %v11373_v12, %s10310_s14  ;;  %3864 = vrot.lane.b32.xlu1 %v11375_v53, %s10311_s19  ;;  %v11676_v22 = vld [vmem:[#allocation2 + $0x9b] sm:$0xff]  ;;  %v2206_v42 = vpop.f32.mrb[193].mxu0 }
 0x26e   : > { %v2519_v24 = vadd.f32 %v11241_v43, %v2459_v45  ;;  %v2574_v30 = vmax.f32 %v2520_v3, 0.0  ;;  %2680 = vst.msk [vmem:[#allocation2 + $0xc0] sm:$0xff] %vm2655_vm4, %v2625_v13  ;;  %v14957_v23 = vmax.f32 %v14955_v56, %v14956_v0  ;;  %v14958_v45 = vld [vmem:[#allocation94_spill] sm:$0xff]  ;;  %4578 = vst.msk [vmem:[#allocation3 + $0x208] sm:$0xff] %vm2655_vm4, %v11676_v22  ;;  %v286_v53 = vld [vmem:[%s14623_s3 + $0xe8] sm:$0xff] }
 0x26f   : > { %v2462_v7 = vmax.f32 %v14954_v63, %v2408_v52  ;;  %v2410_v25 = vmax.f32 %v14958_v45, %v10077_v62  ;;  %v11680_v3 = vld [vmem:[#allocation2 + $0xa3] sm:$0xff] }
 0x270   : > { %v2573_v8 = vmax.f32 %v2519_v24, 0.0  ;;  %v2461_v51 = vmax.f32 %v14957_v23, %v2407_v35  ;;  %v2628_v48 = vmul.f32 %v2574_v30, %v284_v6  ;;  %v11682_v41 = vld [vmem:[#allocation2 + $0xa0] sm:$0xff]  ;;  %v14959_v4 = vld [vmem:[#allocation95_spill] sm:$0xff]  ;;  %v11691_v6 = vld [vmem:[#allocation2 + $0xb8] sm:$0xff]  ;;  %4579 = vst.msk [vmem:[#allocation3 + $0x228] sm:$0xff] %vm2655_vm4, %v11680_v3  ;;  %v10080_v23 = vpop.f32.mrb[194].mxu0 }
 0x271   : > { %v2522_v40 = vadd.f32 %v11241_v43, %v2462_v7  ;;  %v2409_v13 = vmax.f32 %v14959_v4, %v2206_v42  ;;  %2771 = vst.msk [vmem:[#allocation3 + $0x280] sm:$0xff] %vm2655_vm4, %v11682_v41  ;;  %v285_v54 = vld [vmem:[%s14623_s3 + $0xe0] sm:$0xff]  ;;  %v14960_v35 = vld [vmem:[#allocation23_spill] sm:$0xff]  ;;  %v14961_v30 = vld [vmem:[#allocation65_spill] sm:$0xff]  ;;  %4109 = vrot.lane.b32.xlu1 %v11505_v59, %s10312_s24 }
 0x272   : > { %v2627_v12 = vmul.f32 %v2573_v8, %v283_v2  ;;  %v2521_v52 = vadd.f32 %v11241_v43, %v2461_v51  ;;  %2683 = vst.msk [vmem:[#allocation2 + $0xd8] sm:$0xff] %vm2655_vm4, %v2628_v48  ;;  %v14962_v2 = vmax.f32 %v14960_v35, %v14961_v30  ;;  %v3536_v46 = vld [vmem:[#allocation2 + $0x1c] sm:$0xff]  ;;  %2774 = vst.msk [vmem:[#allocation3 + $0x2e0] sm:$0xff] %vm2655_vm4, %v11691_v6  ;;  %v14963_v7 = vld [vmem:[#allocation24_spill] sm:$0xff] }
 0x273   : > { %v2576_v24 = vmax.f32 %v2522_v40, 0.0  ;;  %v14964_v8 = vld [vmem:[#allocation66_spill] sm:$0xff]  ;;  %3621 = vrot.lane.b32.xlu0 %v3536_v46, %s10309_s13  ;;  %v11713_v51 = vld [vmem:[#allocation2 + $0xab] sm:$0xff]  ;;  %v11717_v42 = vld [vmem:[#allocation2 + $0xb3] sm:$0xff] }
 0x274   : > { %v2464_v36 = vmax.f32 %v14962_v2, %v2410_v25  ;;  %2682 = vst.msk [vmem:[#allocation2 + $0xd0] sm:$0xff] %vm2655_vm4, %v2627_v12  ;;  %v2575_v63 = vmax.f32 %v2521_v52, 0.0  ;;  %v14965_v56 = vmax.f32 %v14963_v7, %v14964_v8  ;;  %v14966_v40 = vld [vmem:[#allocation96_spill] sm:$0xff]  ;;  %v2216_v25 = vpop.f32.mrb[195].mxu0  ;;  %4580 = vst.msk [vmem:[#allocation3 + $0x248] sm:$0xff] %vm2655_vm4, %v11713_v51  ;;  %v288_v59 = vld [vmem:[%s14623_s3 + $0xf8] sm:$0xff] }
 0x275   : > { %v2630_v62 = vmul.f32 %v2576_v24, %v286_v53  ;;  %v2412_v45 = vmax.f32 %v14966_v40, %v10080_v23  ;;  %v11719_v12 = vld [vmem:[#allocation2 + $0xb0] sm:$0xff]  ;;  %v14967_v53 = vld [vmem:[#allocation97_spill] sm:$0xff]  ;;  %v11728_v24 = vld [vmem:[#allocation2 + $0xc8] sm:$0xff]  ;;  %4581 = vst.msk [vmem:[#allocation3 + $0x268] sm:$0xff] %vm2655_vm4, %v11717_v42  ;;  %4358 = vrot.lane.b32.xlu1 %v11544_v21, %s10313_s29 }
 0x276   : > { %v2463_v0 = vmax.f32 %v14965_v56, %v2409_v13  ;;  %v2524_v48 = vadd.f32 %v11241_v43, %v2464_v36  ;;  %v2629_v52 = vmul.f32 %v2575_v63, %v285_v54  ;;  %v2411_v13 = vmax.f32 %v14967_v53, %v2216_v25  ;;  %2773 = vst.msk [vmem:[#allocation3 + $0x2c0] sm:$0xff] %vm2655_vm4, %v11719_v12  ;;  %v287_v54 = vld [vmem:[%s14623_s3 + $0xf0] sm:$0xff]  ;;  %v14968_v30 = vld [vmem:[#allocation25_spill] sm:$0xff]  ;;  %v14969_v2 = vld [vmem:[#allocation67_spill] sm:$0xff] }
 0x277   : > { %2685 = vst.msk [vmem:[#allocation2 + $0xe8] sm:$0xff] %vm2655_vm4, %v2630_v62  ;;  %v14970_v36 = vmax.f32 %v14968_v30, %v14969_v2  ;;  %2776 = vst.msk [vmem:[#allocation3 + $0x320] sm:$0xff] %vm2655_vm4, %v11728_v24  ;;  %v14971_v8 = vld [vmem:[#allocation26_spill] sm:$0xff]  ;;  %v14972_v56 = vld [vmem:[#allocation68_spill] sm:$0xff]  ;;  %4111 = vrot.lane.b32.xlu0 %v11584_v49, %s10312_s24  ;;  %v10083_v62 = vpop.f32.mrb[196].mxu0 }
 0x278   : > { %v2523_v4 = vadd.f32 %v11241_v43, %v2463_v0  ;;  %v2578_v35 = vmax.f32 %v2524_v48, 0.0  ;;  %2684 = vst.msk [vmem:[#allocation2 + $0xe0] sm:$0xff] %vm2655_vm4, %v2629_v52  ;;  %v14973_v0 = vmax.f32 %v14971_v8, %v14972_v56  ;;  %v11751_v48 = vld [vmem:[#allocation2 + $0xbb] sm:$0xff]  ;;  %v11755_v53 = vld [vmem:[#allocation2 + $0xc3] sm:$0xff] }
 0x279   : > { %v2466_v63 = vmax.f32 %v14970_v36, %v2412_v45  ;;  %v14974_v25 = vld [vmem:[#allocation98_spill] sm:$0xff]  ;;  %4582 = vst.msk [vmem:[#allocation3 + $0x288] sm:$0xff] %vm2655_vm4, %v11751_v48  ;;  %v290_v21 = vld [vmem:[%s14623_s3 + $0x108] sm:$0xff]  ;;  %v11766_v2 = vld [vmem:[#allocation2 + $0xd8] sm:$0xff]  ;;  %4685 = vrot.lane.b32.xlu1 %v3536_v46, %s10308_s8 }
 0x27a   : > { %v2577_v7 = vmax.f32 %v2523_v4, 0.0  ;;  %v2465_v23 = vmax.f32 %v14973_v0, %v2411_v13  ;;  %v2632_v40 = vmul.f32 %v2578_v35, %v288_v59  ;;  %v2414_v52 = vmax.f32 %v14974_v25, %v10083_v62  ;;  %v2226_v4 = vpop.f32.mrb[197].mxu0  ;;  %v11757_v30 = vld [vmem:[#allocation2 + $0xc0] sm:$0xff]  ;;  %v14975_v59 = vld [vmem:[#allocation99_spill] sm:$0xff]  ;;  %4583 = vst.msk [vmem:[#allocation3 + $0x2a8] sm:$0xff] %vm2655_vm4, %v11755_v53  ;;  %2778 = vst.msk [vmem:[#allocation3 + $0x360] sm:$0xff] %vm2655_vm4, %v11766_v2 }
 0x27b   : > { %v2526_v45 = vadd.f32 %v11241_v43, %v2466_v63  ;;  %v2413_v35 = vmax.f32 %v14975_v59, %v2226_v4  ;;  %2775 = vst.msk [vmem:[#allocation3 + $0x300] sm:$0xff] %vm2655_vm4, %v11757_v30  ;;  %v14976_v63 = vld [vmem:[#allocation27_spill] sm:$0xff]  ;;  %v14980_v62 = vld [vmem:[#allocation70_spill] sm:$0xff]  ;;  %4356 = vrot.lane.b32.xlu0 %v11624_v39, %s10313_s29  ;;  %v292_v39 = vld [vmem:[%s14623_s3 + $0x118] sm:$0xff] }
 0x27c   : > { %v2631_v49 = vmul.f32 %v2577_v7, %v287_v54  ;;  %v2525_v13 = vadd.f32 %v11241_v43, %v2465_v23  ;;  %2687 = vst.msk [vmem:[#allocation2 + $0xf8] sm:$0xff] %vm2655_vm4, %v2632_v40  ;;  %v289_v54 = vld [vmem:[%s14623_s3 + $0x100] sm:$0xff]  ;;  %v14977_v7 = vld [vmem:[#allocation69_spill] sm:$0xff]  ;;  %v14979_v23 = vld [vmem:[#allocation28_spill] sm:$0xff]  ;;  %v10086_v40 = vpop.f32.mrb[198].mxu0 }
 0x27d   : > { %v2580_v36 = vmax.f32 %v2526_v45, 0.0  ;;  %v14978_v8 = vmax.f32 %v14976_v63, %v14977_v7  ;;  %v14981_v25 = vmax.f32 %v14979_v23, %v14980_v62  ;;  %v11788_v45 = vld [vmem:[#allocation2 + $0xcb] sm:$0xff] }
 0x27e   : > { %2686 = vst.msk [vmem:[#allocation2 + $0xf0] sm:$0xff] %vm2655_vm4, %v2631_v49  ;;  %v2579_v0 = vmax.f32 %v2525_v13, 0.0  ;;  %14982 = vst [vmem:[#allocation5_spill] sm:$0xff] %v11788_v45  ;;  %v14983_v63 = vld [vmem:[#allocation100_spill] sm:$0xff]  ;;  %v14989_v62 = vld [vmem:[#allocation71_spill] sm:$0xff] }
 0x27f   : > { %v2468_v56 = vmax.f32 %v14978_v8, %v2414_v52  ;;  %v2467_v4 = vmax.f32 %v14981_v25, %v2413_v35  ;;  %v2634_v59 = vmul.f32 %v2580_v36, %v290_v21  ;;  %v2416_v7 = vmax.f32 %v14983_v63, %v10086_v40  ;;  %v2236_v8 = vpop.f32.mrb[199].mxu0  ;;  %v11792_v49 = vld [vmem:[#allocation2 + $0xd3] sm:$0xff]  ;;  %4584 = vst.msk [vmem:[#allocation3 + $0x2c8] sm:$0xff] %vm2655_vm4, %v11788_v45  ;;  %v11816_v40 = vld [vmem:[#allocation2 + $0x29] sm:$0xff] }
 0x280   : > { %14984 = vst [vmem:[#allocation47_spill] sm:$0xff] %v11792_v49  ;;  %v11794_v13 = vld [vmem:[#allocation2 + $0xd0] sm:$0xff]  ;;  %v2633_v35 = vmul.f32 %v2579_v0, %v289_v54  ;;  %v14986_v21 = vld [vmem:[#allocation101_spill] sm:$0xff]  ;;  %4585 = vst.msk [vmem:[#allocation3 + $0x2e8] sm:$0xff] %vm2655_vm4, %v11792_v49  ;;  %4687 = vrot.lane.b32.xlu0 %v11626_v47, %s10308_s8  ;;  %2884 = vrot.lane.b32.xlu1 %v11816_v40, %s10308_s8 }
 0x281   : > { %v2528_v52 = vadd.f32 %v11241_v43, %v2468_v56  ;;  %14985 = vst [vmem:[#allocation6_spill] sm:$0xff] %v11794_v13  ;;  %v2527_v46 = vadd.f32 %v11241_v43, %v2467_v4  ;;  %v2415_v36 = vmax.f32 %v14986_v21, %v2236_v8  ;;  %v11803_v56 = vld [vmem:[#allocation2 + $0xe8] sm:$0xff]  ;;  %2777 = vst.msk [vmem:[#allocation3 + $0x340] sm:$0xff] %vm2655_vm4, %v11794_v13  ;;  %v291_v54 = vld [vmem:[%s14623_s3 + $0x110] sm:$0xff] }
 0x282   : > { %14987 = vst [vmem:[#allocation48_spill] sm:$0xff] %v11803_v56  ;;  %2689 = vst.msk [vmem:[#allocation2 + $0x108] sm:$0xff] %vm2655_vm4, %v2634_v59  ;;  %v14988_v0 = vld [vmem:[#allocation29_spill] sm:$0xff]  ;;  %v14991_v8 = vld [vmem:[#allocation30_spill] sm:$0xff] }
 0x283   : > { %v2582_v23 = vmax.f32 %v2528_v52, 0.0  ;;  %v14990_v25 = vmax.f32 %v14988_v0, %v14989_v62  ;;  %2780 = vst.msk [vmem:[#allocation3 + $0x3a0] sm:$0xff] %vm2655_vm4, %v11803_v56  ;;  %2688 = vst.msk [vmem:[#allocation2 + $0x100] sm:$0xff] %vm2655_vm4, %v2633_v35  ;;  %v2581_v63 = vmax.f32 %v2527_v46, 0.0  ;;  %v14992_v21 = vld [vmem:[#allocation72_spill] sm:$0xff]  ;;  %v10089_v0 = vpop.f32.mrb[200].mxu0 }
 0x284   : > { %v14993_v59 = vmax.f32 %v14991_v8, %v14992_v21  ;;  %v14995_v56 = vld [vmem:[#allocation102_spill] sm:$0xff]  ;;  %v2246_v35 = vpop.f32.mrb[201].mxu0  ;;  %v15001_v21 = vld [vmem:[#allocation73_spill] sm:$0xff]  ;;  %3870 = vrot.lane.b32.xlu0 %v11384_v17, %s10311_s19 }
 0x285   : > { %v2470_v4 = vmax.f32 %v14990_v25, %v2416_v7  ;;  %v11828_v7 = vld [vmem:[#allocation2 + $0xdb] sm:$0xff]  ;;  %v2636_v62 = vmul.f32 %v2582_v23, %v292_v39  ;;  %v2418_v13 = vmax.f32 %v14995_v56, %v10089_v0  ;;  %v11832_v46 = vld [vmem:[#allocation2 + $0xe3] sm:$0xff]  ;;  %v2635_v47 = vmul.f32 %v2581_v63, %v291_v54  ;;  %v11856_v0 = vld [vmem:[#allocation2 + $0x32] sm:$0xff] }
 0x286   : > { %v2469_v52 = vmax.f32 %v14993_v59, %v2415_v36  ;;  %14994 = vst [vmem:[#allocation7_spill] sm:$0xff] %v11828_v7  ;;  %14996 = vst [vmem:[#allocation49_spill] sm:$0xff] %v11832_v46  ;;  %v11834_v49 = vld [vmem:[#allocation2 + $0xe0] sm:$0xff]  ;;  %v294_v36 = vld [vmem:[%s14623_s3 + $0x128] sm:$0xff]  ;;  %3133 = vrot.lane.b32.xlu1 %v11856_v0, %s10307_s7 }
 0x287   : > { %v2530_v25 = vadd.f32 %v11241_v43, %v2470_v4  ;;  %14997 = vst [vmem:[#allocation8_spill] sm:$0xff] %v11834_v49  ;;  %4586 = vst.msk [vmem:[#allocation3 + $0x308] sm:$0xff] %vm2655_vm4, %v11828_v7  ;;  %v14998_v39 = vld [vmem:[#allocation103_spill] sm:$0xff]  ;;  %v11843_v4 = vld [vmem:[#allocation2 + $0xf8] sm:$0xff] }
 0x288   : > { %v2529_v8 = vadd.f32 %v11241_v43, %v2469_v52  ;;  %v2417_v23 = vmax.f32 %v14998_v39, %v2246_v35  ;;  %14999 = vst [vmem:[#allocation50_spill] sm:$0xff] %v11843_v4  ;;  %2779 = vst.msk [vmem:[#allocation3 + $0x380] sm:$0xff] %vm2655_vm4, %v11834_v49  ;;  %v293_v54 = vld [vmem:[%s14623_s3 + $0x120] sm:$0xff]  ;;  %v15000_v63 = vld [vmem:[#allocation31_spill] sm:$0xff] }
 0x289   : > { %4587 = vst.msk [vmem:[#allocation3 + $0x328] sm:$0xff] %vm2655_vm4, %v11832_v46  ;;  %2691 = vst.msk [vmem:[#allocation2 + $0x118] sm:$0xff] %vm2655_vm4, %v2636_v62  ;;  %v2584_v56 = vmax.f32 %v2530_v25, 0.0  ;;  %v15002_v59 = vmax.f32 %v15000_v63, %v15001_v21  ;;  %v15003_v39 = vld [vmem:[#allocation32_spill] sm:$0xff]  ;;  %v15004_v49 = vld [vmem:[#allocation74_spill] sm:$0xff]  ;;  %v10092_v63 = vpop.f32.mrb[202].mxu0 }
 0x28a   : > { %2782 = vst.msk [vmem:[#allocation3 + $0x3e0] sm:$0xff] %vm2655_vm4, %v11843_v4  ;;  %2690 = vst.msk [vmem:[#allocation2 + $0x110] sm:$0xff] %vm2655_vm4, %v2635_v47  ;;  %v2583_v35 = vmax.f32 %v2529_v8, 0.0  ;;  %v15005_v62 = vmax.f32 %v15003_v39, %v15004_v49  ;;  %v15007_v4 = vld [vmem:[#allocation104_spill] sm:$0xff]  ;;  %v2256_v47 = vpop.f32.mrb[203].mxu0  ;;  %v296_v49 = vld [vmem:[%s14623_s3 + $0x138] sm:$0xff]  ;;  %3378 = vrot.lane.b32.xlu1 %v11405_v26, %s10310_s14 }
 0x28b   : > { %v2472_v52 = vmax.f32 %v15002_v59, %v2418_v13  ;;  %v11868_v13 = vld [vmem:[#allocation2 + $0xeb] sm:$0xff]  ;;  %v2638_v21 = vmul.f32 %v2584_v56, %v294_v36  ;;  %v2420_v46 = vmax.f32 %v15007_v4, %v10092_v63  ;;  %v11872_v8 = vld [vmem:[#allocation2 + $0xf3] sm:$0xff] }
 0x28c   : > { %v2471_v25 = vmax.f32 %v15005_v62, %v2417_v23  ;;  %15006 = vst [vmem:[#allocation9_spill] sm:$0xff] %v11868_v13  ;;  %15008 = vst [vmem:[#allocation51_spill] sm:$0xff] %v11872_v8  ;;  %v11874_v7 = vld [vmem:[#allocation2 + $0xf0] sm:$0xff]  ;;  %v2637_v17 = vmul.f32 %v2583_v35, %v293_v54  ;;  %v15010_v36 = vld [vmem:[#allocation105_spill] sm:$0xff] }
 0x28d   : > { %v2532_v59 = vadd.f32 %v11241_v43, %v2472_v52  ;;  %15009 = vst [vmem:[#allocation10_spill] sm:$0xff] %v11874_v7  ;;  %4588 = vst.msk [vmem:[#allocation3 + $0x348] sm:$0xff] %vm2655_vm4, %v11868_v13  ;;  %v2419_v56 = vmax.f32 %v15010_v36, %v2256_v47  ;;  %v11883_v52 = vld [vmem:[#allocation2 + $0x108] sm:$0xff]  ;;  %v295_v54 = vld [vmem:[%s14623_s3 + $0x130] sm:$0xff] }
 0x28e   : > { %v2531_v23 = vadd.f32 %v11241_v43, %v2471_v25  ;;  %15011 = vst [vmem:[#allocation52_spill] sm:$0xff] %v11883_v52  ;;  %2781 = vst.msk [vmem:[#allocation3 + $0x3c0] sm:$0xff] %vm2655_vm4, %v11874_v7  ;;  %v15012_v35 = vld [vmem:[#allocation33_spill] sm:$0xff]  ;;  %v15013_v39 = vld [vmem:[#allocation75_spill] sm:$0xff] }
 0x28f   : > { %4589 = vst.msk [vmem:[#allocation3 + $0x368] sm:$0xff] %vm2655_vm4, %v11872_v8  ;;  %2693 = vst.msk [vmem:[#allocation2 + $0x128] sm:$0xff] %vm2655_vm4, %v2638_v21  ;;  %v2586_v4 = vmax.f32 %v2532_v59, 0.0  ;;  %v15014_v62 = vmax.f32 %v15012_v35, %v15013_v39  ;;  %v11896_v63 = vld [vmem:[#allocation2 + $0x31] sm:$0xff]  ;;  %v15015_v36 = vld [vmem:[#allocation34_spill] sm:$0xff]  ;;  %v10095_v35 = vpop.f32.mrb[204].mxu0 }
 0x290   : > { %2784 = vst.msk [vmem:[#allocation3 + $0x420] sm:$0xff] %vm2655_vm4, %v11883_v52  ;;  %2692 = vst.msk [vmem:[#allocation2 + $0x120] sm:$0xff] %vm2655_vm4, %v2637_v17  ;;  %v2585_v47 = vmax.f32 %v2531_v23, 0.0  ;;  %v15016_v7 = vld [vmem:[#allocation76_spill] sm:$0xff]  ;;  %2886 = vrot.lane.b32.xlu0 %v11896_v63, %s10308_s8  ;;  %v15019_v52 = vld [vmem:[#allocation106_spill] sm:$0xff]  ;;  %v2266_v17 = vpop.f32.mrb[205].mxu0 }
 0x291   : > { %v2474_v25 = vmax.f32 %v15014_v62, %v2420_v46  ;;  %v15017_v21 = vmax.f32 %v15015_v36, %v15016_v7  ;;  %v11908_v46 = vld [vmem:[#allocation2 + $0xfb] sm:$0xff]  ;;  %v2640_v39 = vmul.f32 %v2586_v4, %v296_v49  ;;  %v2422_v8 = vmax.f32 %v15019_v52, %v10095_v35  ;;  %v11912_v23 = vld [vmem:[#allocation2 + $0x103] sm:$0xff]  ;;  %v11961_v45 = vld [vmem:[#allocation2 + $0x110] sm:$0xff] }
 0x292   : > { %15018 = vst [vmem:[#allocation11_spill] sm:$0xff] %v11908_v46  ;;  %15020 = vst [vmem:[#allocation53_spill] sm:$0xff] %v11912_v23  ;;  %v11914_v13 = vld [vmem:[#allocation2 + $0x100] sm:$0xff]  ;;  %v2639_v7 = vmul.f32 %v2585_v47, %v295_v54  ;;  %v298_v26 = vld [vmem:[%s14623_s3 + $0x148] sm:$0xff] }
 0x293   : > { %v2473_v59 = vmax.f32 %v15017_v21, %v2419_v56  ;;  %v2534_v62 = vadd.f32 %v11241_v43, %v2474_v25  ;;  %15021 = vst [vmem:[#allocation12_spill] sm:$0xff] %v11914_v13  ;;  %4590 = vst.msk [vmem:[#allocation3 + $0x388] sm:$0xff] %vm2655_vm4, %v11908_v46  ;;  %v11924_v49 = vld [vmem:[%s14622_s2] ss:$0 sm:$0xff]  ;;  %v15022_v56 = vld [vmem:[#allocation107_spill] sm:$0xff] }
 0x294   : > { %v2421_v52 = vmax.f32 %v15022_v56, %v2266_v17  ;;  %v11928_v4 = vld [vmem:[#allocation2 + $0x118] sm:$0xff]  ;;  %2783 = vst.msk [vmem:[#allocation3 + $0x400] sm:$0xff] %vm2655_vm4, %v11914_v13  ;;  %4591 = vst.msk [vmem:[#allocation3 + $0x3a8] sm:$0xff] %vm2655_vm4, %v11912_v23  ;;  %v297_v25 = vld [vmem:[%s14623_s3 + $0x140] sm:$0xff] }
 0x295   : > { %v2533_v43 = vadd.f32 %v11924_v49, %v2473_v59  ;;  %15023 = vst [vmem:[#allocation54_spill] sm:$0xff] %v11928_v4  ;;  %2695 = vst.msk [vmem:[#allocation2 + $0x138] sm:$0xff] %vm2655_vm4, %v2640_v39  ;;  %v2588_v54 = vmax.f32 %v2534_v62, 0.0  ;;  %v15024_v47 = vld [vmem:[#allocation35_spill] sm:$0xff]  ;;  %v15025_v36 = vld [vmem:[#allocation77_spill] sm:$0xff] }
 0x296   : > { %v15026_v21 = vmax.f32 %v15024_v47, %v15025_v36  ;;  %v11941_v35 = vld [vmem:[#allocation2 + $0x2a] sm:$0xff]  ;;  %v11943_v17 = vld [vmem:[#allocation2 + $0x34] sm:$0xff]  ;;  %2786 = vst.msk [vmem:[#allocation3 + $0x460] sm:$0xff] %vm2655_vm4, %v11928_v4  ;;  %2694 = vst.msk [vmem:[#allocation2 + $0x130] sm:$0xff] %vm2655_vm4, %v2639_v7 }
 0x297   : > { %v2587_v56 = vmax.f32 %v2533_v43, 0.0  ;;  %v15027_v39 = vld [vmem:[#allocation36_spill] sm:$0xff]  ;;  %v15028_v62 = vld [vmem:[#allocation78_spill] sm:$0xff]  ;;  %3131 = vrot.lane.b32.xlu0 %v11941_v35, %s10307_s7  ;;  %3627 = vrot.lane.b32.xlu1 %v11943_v17, %s10309_s13  ;;  %v2642_v36 = vmul.f32 %v2588_v54, %v298_v26  ;;  %15033 = vst [vmem:[#allocation14_spill] sm:$0xff] %v11961_v45  ;;  %v15034_v26 = vld [vmem:[#allocation109_spill] sm:$0xff] }
 0x298   : > { %v2476_v59 = vmax.f32 %v15026_v21, %v2422_v8  ;;  %v15029_v13 = vmax.f32 %v15027_v39, %v15028_v62  ;;  %v10098_v8 = vpop.f32.mrb[206].mxu0  ;;  %v11955_v47 = vld [vmem:[#allocation2 + $0x10b] sm:$0xff]  ;;  %v11959_v43 = vld [vmem:[#allocation2 + $0x113] sm:$0xff]  ;;  %2785 = vst.msk [vmem:[#allocation3 + $0x440] sm:$0xff] %vm2655_vm4, %v11961_v45 }
 0x299   : > { %15030 = vst [vmem:[#allocation13_spill] sm:$0xff] %v11955_v47  ;;  %v15031_v4 = vld [vmem:[#allocation108_spill] sm:$0xff]  ;;  %v2276_v7 = vpop.f32.mrb[207].mxu0  ;;  %15032 = vst [vmem:[#allocation55_spill] sm:$0xff] %v11959_v43  ;;  %v15037_v62 = vld [vmem:[#allocation79_spill] sm:$0xff] }
 0x29a   : > { %v2475_v23 = vmax.f32 %v15029_v13, %v2421_v52  ;;  %v2536_v21 = vadd.f32 %v11924_v49, %v2476_v59  ;;  %v2424_v46 = vmax.f32 %v15031_v4, %v10098_v8  ;;  %4592 = vst.msk [vmem:[#allocation3 + $0x3c8] sm:$0xff] %vm2655_vm4, %v11955_v47  ;;  %v2641_v13 = vmul.f32 %v2587_v56, %v297_v25  ;;  %v300_v52 = vld [vmem:[%s14623_s3 + $0x158] sm:$0xff]  ;;  %v11970_v59 = vld [vmem:[#allocation2 + $0x128] sm:$0xff]  ;;  %v299_v25 = vld [vmem:[%s14623_s3 + $0x150] sm:$0xff] }
 0x29b   : > { %v2423_v54 = vmax.f32 %v15034_v26, %v2276_v7  ;;  %15035 = vst [vmem:[#allocation56_spill] sm:$0xff] %v11970_v59  ;;  %4593 = vst.msk [vmem:[#allocation3 + $0x3e8] sm:$0xff] %vm2655_vm4, %v11959_v43  ;;  %v15036_v56 = vld [vmem:[#allocation37_spill] sm:$0xff]  ;;  %v15039_v26 = vld [vmem:[#allocation38_spill] sm:$0xff]  ;;  %3380 = vrot.lane.b32.xlu0 %v11409_v16, %s10310_s14  ;;  %3868 = vrot.lane.b32.xlu1 %v11411_v32, %s10311_s19 }
 0x29c   : > { %v2535_v39 = vadd.f32 %v11924_v49, %v2475_v23  ;;  %2697 = vst.msk [vmem:[#allocation2 + $0x148] sm:$0xff] %vm2655_vm4, %v2642_v36  ;;  %v2590_v4 = vmax.f32 %v2536_v21, 0.0  ;;  %v15038_v23 = vmax.f32 %v15036_v56, %v15037_v62  ;;  %2788 = vst.msk [vmem:[#allocation3 + $0x4a0] sm:$0xff] %vm2655_vm4, %v11970_v59  ;;  %v15040_v45 = vld [vmem:[#allocation80_spill] sm:$0xff]  ;;  %v10101_v36 = vpop.f32.mrb[208].mxu0  ;;  %v11993_v21 = vld [vmem:[#allocation2 + $0x11b] sm:$0xff] }
 0x29d   : > { %2696 = vst.msk [vmem:[#allocation2 + $0x140] sm:$0xff] %vm2655_vm4, %v2641_v13  ;;  %v15041_v43 = vmax.f32 %v15039_v26, %v15040_v45  ;;  %v15042_v62 = vld [vmem:[#allocation110_spill] sm:$0xff]  ;;  %v2286_v13 = vpop.f32.mrb[209].mxu0  ;;  %4594 = vst.msk [vmem:[#allocation3 + $0x408] sm:$0xff] %vm2655_vm4, %v11993_v21  ;;  %v302_v32 = vld [vmem:[%s14623_s3 + $0x168] sm:$0xff] }
 0x29e   : > { %v2478_v8 = vmax.f32 %v15038_v23, %v2424_v46  ;;  %v2589_v7 = vmax.f32 %v2535_v39, 0.0  ;;  %v2644_v46 = vmul.f32 %v2590_v4, %v300_v52  ;;  %v2426_v23 = vmax.f32 %v15042_v62, %v10101_v36  ;;  %v11997_v39 = vld [vmem:[#allocation2 + $0x123] sm:$0xff]  ;;  %v3538_v36 = vld [vmem:[#allocation2 + $0x2c] sm:$0xff] }
 0x29f   : > { %v2477_v47 = vmax.f32 %v15041_v43, %v2423_v54  ;;  %15043 = vst [vmem:[#allocation15_spill] sm:$0xff] %v11997_v39  ;;  %v11999_v59 = vld [vmem:[#allocation2 + $0x120] sm:$0xff]  ;;  %v15045_v43 = vld [vmem:[#allocation111_spill] sm:$0xff]  ;;  %v12008_v54 = vld [vmem:[#allocation2 + $0x138] sm:$0xff]  ;;  %3625 = vrot.lane.b32.xlu0 %v3538_v36, %s10309_s13  ;;  %4113 = vrot.lane.b32.xlu1 %v11816_v40, %s10312_s24 }
 0x2a0   : > { %v2538_v56 = vadd.f32 %v11924_v49, %v2478_v8  ;;  %15044 = vst [vmem:[#allocation57_spill] sm:$0xff] %v11999_v59  ;;  %v2643_v16 = vmul.f32 %v2589_v7, %v299_v25  ;;  %v2425_v52 = vmax.f32 %v15045_v43, %v2286_v13  ;;  %15046 = vst [vmem:[#allocation16_spill] sm:$0xff] %v12008_v54  ;;  %v301_v25 = vld [vmem:[%s14623_s3 + $0x160] sm:$0xff]  ;;  %v15047_v8 = vld [vmem:[#allocation39_spill] sm:$0xff] }
 0x2a1   : > { %v2537_v45 = vadd.f32 %v11924_v49, %v2477_v47  ;;  %2787 = vst.msk [vmem:[#allocation3 + $0x480] sm:$0xff] %vm2655_vm4, %v11999_v59  ;;  %4595 = vst.msk [vmem:[#allocation3 + $0x428] sm:$0xff] %vm2655_vm4, %v11997_v39  ;;  %v15048_v7 = vld [vmem:[#allocation81_spill] sm:$0xff]  ;;  %v15050_v13 = vld [vmem:[#allocation40_spill] sm:$0xff] }
 0x2a2   : > { %2699 = vst.msk [vmem:[#allocation2 + $0x158] sm:$0xff] %vm2655_vm4, %v2644_v46  ;;  %v2592_v4 = vmax.f32 %v2538_v56, 0.0  ;;  %v15049_v47 = vmax.f32 %v15047_v8, %v15048_v7  ;;  %2790 = vst.msk [vmem:[#allocation3 + $0x4e0] sm:$0xff] %vm2655_vm4, %v12008_v54  ;;  %v15051_v43 = vld [vmem:[#allocation82_spill] sm:$0xff]  ;;  %v10104_v56 = vpop.f32.mrb[210].mxu0  ;;  %v12030_v39 = vld [vmem:[#allocation2 + $0x12b] sm:$0xff] }
 0x2a3   : > { %2698 = vst.msk [vmem:[#allocation2 + $0x150] sm:$0xff] %vm2655_vm4, %v2643_v16  ;;  %v2591_v62 = vmax.f32 %v2537_v45, 0.0  ;;  %v15052_v59 = vmax.f32 %v15050_v13, %v15051_v43  ;;  %v15053_v7 = vld [vmem:[#allocation112_spill] sm:$0xff]  ;;  %v2296_v54 = vpop.f32.mrb[211].mxu0  ;;  %4596 = vst.msk [vmem:[#allocation3 + $0x448] sm:$0xff] %vm2655_vm4, %v12030_v39  ;;  %v304_v40 = vld [vmem:[%s14623_s3 + $0x178] sm:$0xff]  ;;  %4115 = vrot.lane.b32.xlu0 %v11896_v63, %s10312_s24  ;;  %4362 = vrot.lane.b32.xlu1 %v11856_v0, %s10313_s29 }
 0x2a4   : > { %v2480_v26 = vmax.f32 %v15049_v47, %v2426_v23  ;;  %v2646_v23 = vmul.f32 %v2592_v4, %v302_v32  ;;  %v2428_v47 = vmax.f32 %v15053_v7, %v10104_v56  ;;  %v12034_v16 = vld [vmem:[#allocation2 + $0x133] sm:$0xff]  ;;  %v15058_v13 = vld [vmem:[#allocation83_spill] sm:$0xff] }
 0x2a5   : > { %v2479_v46 = vmax.f32 %v15052_v59, %v2425_v52  ;;  %15054 = vst [vmem:[#allocation58_spill] sm:$0xff] %v12034_v16  ;;  %v12036_v45 = vld [vmem:[#allocation2 + $0x130] sm:$0xff]  ;;  %v2645_v59 = vmul.f32 %v2591_v62, %v301_v25  ;;  %v15056_v32 = vld [vmem:[#allocation113_spill] sm:$0xff]  ;;  %4597 = vst.msk [vmem:[#allocation3 + $0x468] sm:$0xff] %vm2655_vm4, %v12034_v16 }
 0x2a6   : > { %v2540_v8 = vadd.f32 %v11924_v49, %v2480_v26  ;;  %15055 = vst [vmem:[#allocation89_spill] sm:$0xff] %v12036_v45  ;;  %v2427_v4 = vmax.f32 %v15056_v32, %v2296_v54  ;;  %2789 = vst.msk [vmem:[#allocation3 + $0x4c0] sm:$0xff] %vm2655_vm4, %v12036_v45  ;;  %v303_v25 = vld [vmem:[%s14623_s3 + $0x170] sm:$0xff]  ;;  %v15057_v62 = vld [vmem:[#allocation41_spill] sm:$0xff] }
 0x2a7   : > { %v2539_v52 = vadd.f32 %v11924_v49, %v2479_v46  ;;  %2701 = vst.msk [vmem:[#allocation2 + $0x168] sm:$0xff] %vm2655_vm4, %v2646_v23  ;;  %v15059_v43 = vmax.f32 %v15057_v62, %v15058_v13  ;;  %2700 = vst.msk [vmem:[#allocation2 + $0x160] sm:$0xff] %vm2655_vm4, %v2645_v59  ;;  %v15060_v46 = vld [vmem:[#allocation42_spill] sm:$0xff]  ;;  %v15061_v7 = vld [vmem:[#allocation84_spill] sm:$0xff]  ;;  %v10107_v23 = vpop.f32.mrb[212].mxu0  ;;  %4360 = vrot.lane.b32.xlu0 %v11941_v35, %s10313_s29  ;;  %4689 = vrot.lane.b32.xlu1 %v3538_v36, %s10308_s8 }
 0x2a8   : > { %v2594_v26 = vmax.f32 %v2540_v8, 0.0  ;;  %v15062_v32 = vmax.f32 %v15060_v46, %v15061_v7  ;;  %v12064_v8 = vld [vmem:[#allocation2 + $0x13b] sm:$0xff]  ;;  %v2306_v59 = vpop.f32.mrb[213].mxu0  ;;  %v306_v0 = vld [vmem:[%s14623_s3 + $0x188] sm:$0xff] }
 0x2a9   : > { %v2482_v56 = vmax.f32 %v15059_v43, %v2428_v47  ;;  %v2593_v54 = vmax.f32 %v2539_v52, 0.0  ;;  %15063 = vst [vmem:[#allocation17_spill] sm:$0xff] %v12064_v8  ;;  %v15064_v47 = vld [vmem:[#allocation114_spill] sm:$0xff]  ;;  %4598 = vst.msk [vmem:[#allocation3 + $0x488] sm:$0xff] %vm2655_vm4, %v12064_v8  ;;  %v15069_v46 = vld [vmem:[#allocation85_spill] sm:$0xff] }
 0x2aa   : > { %v2481_v45 = vmax.f32 %v15062_v32, %v2427_v4  ;;  %v2648_v16 = vmul.f32 %v2594_v26, %v304_v40  ;;  %v2430_v13 = vmax.f32 %v15064_v47, %v10107_v23  ;;  %v12068_v52 = vld [vmem:[#allocation2 + $0x143] sm:$0xff]  ;;  %v15071_v23 = vld [vmem:[#allocation44_spill] sm:$0xff] }
 0x2ab   : > { %v2542_v62 = vadd.f32 %v11924_v49, %v2482_v56  ;;  %15065 = vst [vmem:[#allocation59_spill] sm:$0xff] %v12068_v52  ;;  %v12070_v43 = vld [vmem:[#allocation2 + $0x140] sm:$0xff]  ;;  %v2647_v63 = vmul.f32 %v2593_v54, %v303_v25  ;;  %v15067_v40 = vld [vmem:[#allocation115_spill] sm:$0xff]  ;;  %4599 = vst.msk [vmem:[#allocation3 + $0x4a8] sm:$0xff] %vm2655_vm4, %v12068_v52  ;;  %4691 = vrot.lane.b32.xlu0 %v11943_v17, %s10308_s8 }
 0x2ac   : > { %15066 = vst [vmem:[#allocation18_spill] sm:$0xff] %v12070_v43  ;;  %v2541_v4 = vadd.f32 %v11924_v49, %v2481_v45  ;;  %v2429_v26 = vmax.f32 %v15067_v40, %v2306_v59  ;;  %2791 = vst.msk [vmem:[#allocation3 + $0x500] sm:$0xff] %vm2655_vm4, %v12070_v43  ;;  %v305_v25 = vld [vmem:[%s14623_s3 + $0x180] sm:$0xff]  ;;  %v15068_v54 = vld [vmem:[#allocation43_spill] sm:$0xff] }
 0x2ad   : > { %2703 = vst.msk [vmem:[#allocation2 + $0x178] sm:$0xff] %vm2655_vm4, %v2648_v16  ;;  %v2596_v56 = vmax.f32 %v2542_v62, 0.0  ;;  %v15070_v7 = vmax.f32 %v15068_v54, %v15069_v46  ;;  %2702 = vst.msk [vmem:[#allocation2 + $0x170] sm:$0xff] %vm2655_vm4, %v2647_v63  ;;  %v15072_v47 = vld [vmem:[#allocation86_spill] sm:$0xff]  ;;  %v10110_v16 = vpop.f32.mrb[214].mxu0  ;;  %v15074_v52 = vld [vmem:[#allocation116_spill] sm:$0xff] }
 0x2ae   : > { %v2595_v45 = vmax.f32 %v2541_v4, 0.0  ;;  %v15073_v59 = vmax.f32 %v15071_v23, %v15072_v47  ;;  %v2432_v8 = vmax.f32 %v15074_v52, %v10110_v16  ;;  %v2316_v54 = vpop.f32.mrb[215].mxu0  ;;  %v308_v4 = vld [vmem:[%s14623_s3 + $0x198] sm:$0xff]  ;;  %v307_v52 = vld [vmem:[%s14623_s3 + $0x190] sm:$0xff]  ;;  %v15079_v23 = vld [vmem:[#allocation46_spill] sm:$0xff] }
 0x2af   : > { %v2484_v32 = vmax.f32 %v15070_v7, %v2430_v13  ;;  %v2650_v62 = vmul.f32 %v2596_v56, %v306_v0  ;;  %v12099_v13 = vld [vmem:[#allocation2 + $0x14b] sm:$0xff]  ;;  %v15075_v46 = vld [vmem:[#allocation117_spill] sm:$0xff]  ;;  %3874 = vrot.lane.b32.xlu0 %v11420_v1, %s10311_s19 }
 0x2b0   : > { %v2483_v40 = vmax.f32 %v15073_v59, %v2429_v26  ;;  %v2649_v63 = vmul.f32 %v2595_v45, %v305_v25  ;;  %v2431_v35 = vmax.f32 %v15075_v46, %v2316_v54  ;;  %4600 = vst.msk [vmem:[#allocation3 + $0x4c8] sm:$0xff] %vm2655_vm4, %v12099_v13  ;;  %v15076_v0 = vld [vmem:[#allocation45_spill] sm:$0xff]  ;;  %v15077_v56 = vld [vmem:[#allocation87_spill] sm:$0xff]  ;;  %v15080_v47 = vld [vmem:[#allocation88_spill] sm:$0xff] }
 0x2b1   : > { %v2544_v43 = vadd.f32 %v11924_v49, %v2484_v32  ;;  %2705 = vst.msk [vmem:[#allocation2 + $0x188] sm:$0xff] %vm2655_vm4, %v2650_v62  ;;  %v15078_v25 = vmax.f32 %v15076_v0, %v15077_v56  ;;  %v2799_v32 = vld [vmem:[#allocation2 + $0x39] sm:$0xff]  ;;  %v15081_v59 = vmax.f32 %v15079_v23, %v15080_v47  ;;  %v3047_v46 = vld [vmem:[#allocation2 + $0x42] sm:$0xff] }
 0x2b2   : > { %v2543_v26 = vadd.f32 %v11924_v49, %v2483_v40  ;;  %2704 = vst.msk [vmem:[#allocation2 + $0x180] sm:$0xff] %vm2655_vm4, %v2649_v63  ;;  %2888 = vrot.lane.b32.xlu1 %v2799_v32, %s10308_s8  ;;  %v310_v63 = vld [vmem:[%s14623_s3 + $0x1a8] sm:$0xff]  ;;  %v3046_v0 = vld [vmem:[#allocation2 + $0x3a] sm:$0xff]  ;;  %v3049_v23 = vld [vmem:[#allocation2 + $0x52] sm:$0xff] }
 0x2b3   : > { %v2598_v36 = vmax.f32 %v2544_v43, 0.0  ;;  %v2486_v7 = vmax.f32 %v15078_v25, %v2432_v8  ;;  %v2485_v40 = vmax.f32 %v15081_v59, %v2431_v35  ;;  %v12122_v43 = vld [vmem:[#allocation2 + $0x153] sm:$0xff]  ;;  %v12127_v8 = vld [vmem:[#allocation2 + $0x15b] sm:$0xff]  ;;  %v3541_v56 = vld [vmem:[#allocation2 + $0x44] sm:$0xff] }
 0x2b4   : > { %v2597_v45 = vmax.f32 %v2543_v26, 0.0  ;;  %4601 = vst.msk [vmem:[#allocation3 + $0x4e8] sm:$0xff] %vm2655_vm4, %v12122_v43  ;;  %4602 = vst.msk [vmem:[#allocation3 + $0x508] sm:$0xff] %vm2655_vm4, %v12127_v8  ;;  %v3540_v1 = vld [vmem:[#allocation2 + $0x3c] sm:$0xff] }
 0x2b5   : > { %v2652_v16 = vmul.f32 %v2598_v36, %v308_v4  ;;  %v2546_v62 = vadd.f32 %v11924_v49, %v2486_v7  ;;  %v2545_v26 = vadd.f32 %v11924_v49, %v2485_v40  ;;  %v309_v4 = vld [vmem:[%s14623_s3 + $0x1a0] sm:$0xff]  ;;  %v2801_v7 = vld [vmem:[#allocation2 + $0x49] sm:$0xff]  ;;  %v2802_v40 = vld [vmem:[#allocation2 + $0x51] sm:$0xff] }
 0x2b6   : > { %v2651_v54 = vmul.f32 %v2597_v45, %v307_v52  ;;  %3137 = vrot.lane.b32.xlu1 %v3047_v46, %s10307_s7  ;;  %v2800_v52 = vld [vmem:[#allocation2 + $0x41] sm:$0xff]  ;;  %v2875_v25 = vpop.permute.xlu0 %2874 }
 0x2b7   : > { %2707 = vst.msk [vmem:[#allocation2 + $0x198] sm:$0xff] %vm2655_vm4, %v2652_v16  ;;  %v2600_v17 = vmax.f32 %v2546_v62, 0.0  ;;  %v2599_v35 = vmax.f32 %v2545_v26, 0.0  ;;  %2890 = vrot.lane.b32.xlu0 %v2800_v52, %s10308_s8 }
 0x2b8   : > { %2706 = vst.msk [vmem:[#allocation2 + $0x190] sm:$0xff] %vm2655_vm4, %v2651_v54  ;;  %v3048_v54 = vld [vmem:[#allocation2 + $0x4a] sm:$0xff] }
 0x2b9   : > { %v2654_v49 = vmul.f32 %v2600_v17, %v310_v63  ;;  %v2653_v36 = vmul.f32 %v2599_v35, %v309_v4  ;;  %2998 = vst.msk [vmem:[#allocation3] sm:$0xff] %vm2997_vm5, %v2875_v25  ;;  %v3542_v4 = vld [vmem:[#allocation2 + $0x4c] sm:$0xff] }
 0x2ba   : > { %3382 = vrot.lane.b32.xlu1 %v11441_v11, %s10310_s14  ;;  %v3122_v11 = vpop.permute.xlu1 %3121 }
 0x2bb   : > { %2709 = vst.msk [vmem:[#allocation2 + $0x1a8] sm:$0xff] %vm2655_vm4, %v2654_v49  ;;  %2708 = vst.msk [vmem:[#allocation2 + $0x1a0] sm:$0xff] %vm2655_vm4, %v2653_v36  ;;  %3135 = vrot.lane.b32.xlu0 %v3046_v0, %s10307_s7 }
 0x2bc   : > { %3245 = vst.msk [vmem:[#allocation3] sm:$0xff] %vm3244_vm6, %v3122_v11 }
 0x2be   : > { %3631 = vrot.lane.b32.xlu1 %v3541_v56, %s10309_s13 }
 0x2bf   : > { %3384 = vrot.lane.b32.xlu0 %v11445_v10, %s10310_s14  ;;  %v3616_v10 = vpop.permute.xlu1 %3615 }
 0x2c2   : > { %3872 = vrot.lane.b32.xlu1 %v11447_v33, %s10311_s19  ;;  %v3369_v33 = vpop.permute.xlu0 %3368 }
 0x2c3   : > { %3629 = vrot.lane.b32.xlu0 %v3540_v1, %s10309_s13  ;;  %3492 = vst.msk [vmem:[#allocation3] sm:$0xff] %vm3491_vm7, %v3369_v33  ;;  %v2879_v45 = vpop.permute.xlu1 %2878 }
 0x2c4   : > { %3739 = vst.msk [vmem:[#allocation3] sm:$0xff] %vm3738_vm8, %v3616_v10  ;;  %v2804_v10 = vld [vmem:[#allocation2 + $0x61] sm:$0xff] }
 0x2c5   : > { %3000 = vst.msk [vmem:[#allocation3 + $0x40] sm:$0xff] %vm2997_vm5, %v2879_v45 }
 0x2c6   : > { %4117 = vrot.lane.b32.xlu1 %v2799_v32, %s10312_s24  ;;  %v3863_v32 = vpop.permute.xlu0 %3862 }
 0x2c7   : > { %4119 = vrot.lane.b32.xlu0 %v2800_v52, %s10312_s24  ;;  %3986 = vst.msk [vmem:[#allocation3] sm:$0xff] %vm3985_vm9, %v3863_v32  ;;  %v3126_v47 = vpop.permute.xlu1 %3125  ;;  %v2803_v52 = vld [vmem:[#allocation2 + $0x59] sm:$0xff]  ;;  %v12215_v32 = vld [vmem:[#allocation2 + $0x64] sm:$0xff] }
 0x2c8   : > { %3247 = vst.msk [vmem:[#allocation3 + $0x40] sm:$0xff] %vm3244_vm6, %v3126_v47  ;;  %v6325_v47 = vld [vmem:[#allocation2 + $0x49] sm:$0xff] }
 0x2c9   : > { %6366 = vst.msk [vmem:[#allocation3 + $0x10] sm:$0xff] %vm2655_vm4, %v6325_v47  ;;  %v6349_v47 = vld [vmem:[#allocation2 + $0x109] sm:$0xff] }
 0x2ca   : > { %4366 = vrot.lane.b32.xlu1 %v3047_v46, %s10313_s29  ;;  %v2877_v59 = vpop.permute.xlu0 %2876  ;;  %6390 = vst.msk [vmem:[#allocation3 + $0x310] sm:$0xff] %vm2655_vm4, %v6349_v47  ;;  %v6356_v47 = vld [vmem:[#allocation2 + $0x141] sm:$0xff] }
 0x2cb   : > { %4364 = vrot.lane.b32.xlu0 %v3046_v0, %s10313_s29  ;;  %2999 = vst.msk [vmem:[#allocation3 + $0x20] sm:$0xff] %vm2997_vm5, %v2877_v59  ;;  %v3371_v16 = vpop.permute.xlu1 %3370 }
 0x2cc   : > { %6397 = vst.msk [vmem:[#allocation3 + $0x3f0] sm:$0xff] %vm2655_vm4, %v6356_v47  ;;  %v6359_v47 = vld [vmem:[#allocation2 + $0x159] sm:$0xff] }
 0x2cd   : > { %6400 = vst.msk [vmem:[#allocation3 + $0x450] sm:$0xff] %vm2655_vm4, %v6359_v47  ;;  %v12389_v47 = vld [vmem:[#allocation2 + $0x9c] sm:$0xff] }
 0x2ce   : > { %4693 = vrot.lane.b32.xlu1 %v3540_v1, %s10308_s8  ;;  %v3124_v62 = vpop.permute.xlu0 %3123  ;;  %v3051_v1 = vld [vmem:[#allocation2 + $0x62] sm:$0xff]  ;;  %8177 = vst.msk [vmem:[#allocation3 + $0xf8] sm:$0xff] %vm2655_vm4, %v12389_v47 }
 0x2cf   : > { %4695 = vrot.lane.b32.xlu0 %v3541_v56, %s10308_s8  ;;  %3246 = vst.msk [vmem:[#allocation3 + $0x20] sm:$0xff] %vm3244_vm6, %v3124_v62  ;;  %v3620_v63 = vpop.permute.xlu1 %3619  ;;  %v12230_v62 = vld [vmem:[#allocation2 + $0x61] sm:$0xff] }
 0x2d0   : > { %3493 = vst.msk [vmem:[#allocation3 + $0x20] sm:$0xff] %vm3491_vm7, %v3371_v16  ;;  %v3544_v16 = vld [vmem:[#allocation2 + $0x5c] sm:$0xff] }
 0x2d1   : > { %6369 = vst.msk [vmem:[#allocation3 + $0x70] sm:$0xff] %vm2655_vm4, %v12230_v62 }
 0x2d2   : > { %2892 = vrot.lane.b32.xlu1 %v2801_v7, %s10308_s8  ;;  %v3373_v26 = vpop.permute.xlu0 %3372 }
 0x2d3   : > { %3878 = vrot.lane.b32.xlu0 %v11456_v50, %s10311_s19  ;;  %v3543_v50 = vld [vmem:[#allocation2 + $0x54] sm:$0xff]  ;;  %3494 = vst.msk [vmem:[#allocation3 + $0x40] sm:$0xff] %vm3491_vm7, %v3373_v26  ;;  %v2881_v17 = vpop.permute.xlu1 %2880 }
 0x2d4   : > { %3741 = vst.msk [vmem:[#allocation3 + $0x40] sm:$0xff] %vm3738_vm8, %v3620_v63  ;;  %v12249_v63 = vld [vmem:[#allocation2 + $0x79] sm:$0xff]  ;;  %v12255_v26 = vld [vmem:[#allocation2 + $0x91] sm:$0xff] }
 0x2d5   : > { %3001 = vst.msk [vmem:[#allocation3 + $0x60] sm:$0xff] %vm2997_vm5, %v2881_v17 }
 0x2d6   : > { %3141 = vrot.lane.b32.xlu1 %v3049_v23, %s10307_s7  ;;  %6372 = vst.msk [vmem:[#allocation3 + $0xd0] sm:$0xff] %vm2655_vm4, %v12249_v63  ;;  %6375 = vst.msk [vmem:[#allocation3 + $0x130] sm:$0xff] %vm2655_vm4, %v12255_v26 }
 0x2d7   : > { %2894 = vrot.lane.b32.xlu0 %v2802_v40, %s10308_s8  ;;  %v3130_v35 = vpop.permute.xlu1 %3129 }
 0x2da   : > { %3386 = vrot.lane.b32.xlu1 %v11477_v15, %s10310_s14  ;;  %v3618_v15 = vpop.permute.xlu0 %3617 }
 0x2db   : > { %3139 = vrot.lane.b32.xlu0 %v3048_v54, %s10307_s7  ;;  %3740 = vst.msk [vmem:[#allocation3 + $0x20] sm:$0xff] %vm3738_vm8, %v3618_v15  ;;  %v12257_v15 = vld [vmem:[#allocation2 + $0x89] sm:$0xff] }
 0x2dc   : > { %6374 = vst.msk [vmem:[#allocation3 + $0x110] sm:$0xff] %vm2655_vm4, %v12257_v15 }
 0x2de   : > { %3635 = vrot.lane.b32.xlu1 %v3543_v50, %s10309_s13  ;;  %v3867_v46 = vpop.permute.xlu0 %3866 }
 0x2df   : > { %3388 = vrot.lane.b32.xlu0 %v11481_v14, %s10310_s14  ;;  %3988 = vst.msk [vmem:[#allocation3 + $0x40] sm:$0xff] %vm3985_vm9, %v3867_v46  ;;  %v12263_v46 = vld [vmem:[#allocation2 + $0xa1] sm:$0xff] }
 0x2e0   : > { %6377 = vst.msk [vmem:[#allocation3 + $0x170] sm:$0xff] %vm2655_vm4, %v12263_v46 }
 0x2e2   : > { %3876 = vrot.lane.b32.xlu1 %v11483_v28, %s10311_s19  ;;  %v2883_v14 = vpop.permute.xlu0 %2882  ;;  %v3375_v28 = vpop.permute.xlu1 %3374 }
 0x2e3   : > { %3633 = vrot.lane.b32.xlu0 %v3542_v4, %s10309_s13  ;;  %3002 = vst.msk [vmem:[#allocation3 + $0x80] sm:$0xff] %vm2997_vm5, %v2883_v14  ;;  %v12270_v14 = vld [vmem:[#allocation2 + $0xb1] sm:$0xff] }
 0x2e4   : > { %3249 = vst.msk [vmem:[#allocation3 + $0x80] sm:$0xff] %vm3244_vm6, %v3130_v35  ;;  %v12268_v35 = vld [vmem:[#allocation2 + $0x99] sm:$0xff] }
 0x2e5   : > { %6376 = vst.msk [vmem:[#allocation3 + $0x150] sm:$0xff] %vm2655_vm4, %v12268_v35  ;;  %6379 = vst.msk [vmem:[#allocation3 + $0x1b0] sm:$0xff] %vm2655_vm4, %v12270_v14 }
 0x2e6   : > { %4121 = vrot.lane.b32.xlu1 %v2801_v7, %s10312_s24  ;;  %v3128_v49 = vpop.permute.xlu0 %3127  ;;  %v3624_v36 = vpop.permute.xlu1 %3623 }
 0x2e7   : > { %4123 = vrot.lane.b32.xlu0 %v2802_v40, %s10312_s24  ;;  %3248 = vst.msk [vmem:[#allocation3 + $0x60] sm:$0xff] %vm3244_vm6, %v3128_v49  ;;  %v12280_v49 = vld [vmem:[#allocation2 + $0xc1] sm:$0xff] }
 0x2e8   : > { %3495 = vst.msk [vmem:[#allocation3 + $0x60] sm:$0xff] %vm3491_vm7, %v3375_v28  ;;  %v12278_v28 = vld [vmem:[#allocation2 + $0xa9] sm:$0xff] }
 0x2e9   : > { %6378 = vst.msk [vmem:[#allocation3 + $0x190] sm:$0xff] %vm2655_vm4, %v12278_v28  ;;  %6381 = vst.msk [vmem:[#allocation3 + $0x1f0] sm:$0xff] %vm2655_vm4, %v12280_v49 }
 0x2ea   : > { %4370 = vrot.lane.b32.xlu1 %v3049_v23, %s10313_s29  ;;  %v3377_v0 = vpop.permute.xlu0 %3376  ;;  %v3865_v56 = vpop.permute.xlu1 %3864 }
 0x2eb   : > { %4368 = vrot.lane.b32.xlu0 %v3048_v54, %s10313_s29  ;;  %3496 = vst.msk [vmem:[#allocation3 + $0x80] sm:$0xff] %vm3491_vm7, %v3377_v0  ;;  %v12238_v54 = vld [vmem:[#allocation2 + $0x69] sm:$0xff]  ;;  %v12292_v0 = vld [vmem:[#allocation2 + $0xd1] sm:$0xff] }
 0x2ec   : > { %3987 = vst.msk [vmem:[#allocation3 + $0x20] sm:$0xff] %vm3985_vm9, %v3865_v56  ;;  %15082 = vst [vmem:[#allocation60_spill] sm:$0xff] %v12292_v0 }
 0x2ed   : > { %3743 = vst.msk [vmem:[#allocation3 + $0x80] sm:$0xff] %vm3738_vm8, %v3624_v36  ;;  %v12282_v36 = vld [vmem:[#allocation2 + $0xb9] sm:$0xff] }
 0x2ee   : > { %4697 = vrot.lane.b32.xlu1 %v3542_v4, %s10308_s8  ;;  %v3622_v11 = vpop.permute.xlu0 %3621  ;;  %v4110_v25 = vpop.permute.xlu1 %4109  ;;  %6370 = vst.msk [vmem:[#allocation3 + $0x90] sm:$0xff] %vm2655_vm4, %v12238_v54  ;;  %6380 = vst.msk [vmem:[#allocation3 + $0x1d0] sm:$0xff] %vm2655_vm4, %v12282_v36 }
 0x2ef   : > { %4699 = vrot.lane.b32.xlu0 %v3543_v50, %s10308_s8  ;;  %3742 = vst.msk [vmem:[#allocation3 + $0x60] sm:$0xff] %vm3738_vm8, %v3622_v11  ;;  %v12247_v50 = vld [vmem:[#allocation2 + $0x81] sm:$0xff]  ;;  %v12296_v11 = vld [vmem:[#allocation2 + $0xc9] sm:$0xff] }
 0x2f0   : > { %4233 = vst.msk [vmem:[#allocation3] sm:$0xff] %vm4232_vm10, %v4110_v25  ;;  %v12298_v25 = vld [vmem:[#allocation2 + $0xe1] sm:$0xff] }
 0x2f1   : > { %6373 = vst.msk [vmem:[#allocation3 + $0xf0] sm:$0xff] %vm2655_vm4, %v12247_v50  ;;  %6383 = vst.msk [vmem:[#allocation3 + $0x230] sm:$0xff] %vm2655_vm4, %v12292_v0  ;;  %v12429_v0 = vld [vmem:[#allocation2 + $0xd4] sm:$0xff] }
 0x2f2   : > { %2896 = vrot.lane.b32.xlu1 %v2803_v52, %s10308_s8  ;;  %v4112_v33 = vpop.permute.xlu0 %4111  ;;  %v4359_v7 = vpop.permute.xlu1 %4358  ;;  %15083 = vst [vmem:[#allocation90_spill] sm:$0xff] %v12298_v25  ;;  %6382 = vst.msk [vmem:[#allocation3 + $0x210] sm:$0xff] %vm2655_vm4, %v12296_v11 }
 0x2f3   : > { %3882 = vrot.lane.b32.xlu0 %v11492_v61, %s10311_s19  ;;  %4234 = vst.msk [vmem:[#allocation3 + $0x20] sm:$0xff] %vm4232_vm10, %v4112_v33  ;;  %v12213_v61 = vld [vmem:[#allocation2 + $0x5a] sm:$0xff]  ;;  %v12309_v33 = vld [vmem:[#allocation2 + $0x6c] sm:$0xff]  ;;  %15090 = vst [vmem:[#allocation93_spill] sm:$0xff] %v12429_v0 }
 0x2f4   : > { %4481 = vst.msk [vmem:[#allocation3 + $0x20] sm:$0xff] %vm4479_vm11, %v4359_v7  ;;  %v12311_v7 = vld [vmem:[#allocation2 + $0xf1] sm:$0xff] }
 0x2f5   : > { %6385 = vst.msk [vmem:[#allocation3 + $0x270] sm:$0xff] %vm2655_vm4, %v12298_v25  ;;  %15085 = vst [vmem:[#allocation19_spill] sm:$0xff] %v12311_v7 }
 0x2f6   : > { %3145 = vrot.lane.b32.xlu1 %v3051_v1, %s10307_s7  ;;  %v4357_v45 = vpop.permute.xlu0 %4356  ;;  %v4686_v23 = vpop.permute.xlu1 %4685  ;;  %6387 = vst.msk [vmem:[#allocation3 + $0x2b0] sm:$0xff] %vm2655_vm4, %v12311_v7  ;;  %8171 = vst.msk [vmem:[#allocation3 + $0x38] sm:$0xff] %vm2655_vm4, %v12309_v33  ;;  %v6362_v7 = vld [vmem:[#allocation2 + $0x171] sm:$0xff] }
 0x2f7   : > { %2898 = vrot.lane.b32.xlu0 %v2804_v10, %s10308_s8  ;;  %4480 = vst.msk [vmem:[#allocation3] sm:$0xff] %vm4479_vm11, %v4357_v45  ;;  %v12321_v45 = vld [vmem:[#allocation2 + $0xe9] sm:$0xff] }
 0x2f8   : > { %4808 = vst.msk [vmem:[#allocation3 + $0x8] sm:$0xff] %vm2997_vm5, %v4686_v23  ;;  %15086 = vst [vmem:[#allocation61_spill] sm:$0xff] %v12321_v45  ;;  %v6348_v23 = vld [vmem:[#allocation2 + $0x101] sm:$0xff] }
 0x2f9   : > { %6386 = vst.msk [vmem:[#allocation3 + $0x290] sm:$0xff] %vm2655_vm4, %v12321_v45  ;;  %6389 = vst.msk [vmem:[#allocation3 + $0x2f0] sm:$0xff] %vm2655_vm4, %v6348_v23  ;;  %v6353_v23 = vld [vmem:[#allocation2 + $0x129] sm:$0xff]  ;;  %v12409_v45 = vld [vmem:[#allocation2 + $0xbc] sm:$0xff] }
 0x2fa   : > { %3390 = vrot.lane.b32.xlu1 %v11516_v27, %s10310_s14  ;;  %v6326_v27 = vld [vmem:[#allocation2 + $0x51] sm:$0xff]  ;;  %v4688_v59 = vpop.permute.xlu0 %4687  ;;  %v2885_v40 = vpop.permute.xlu1 %2884  ;;  %6394 = vst.msk [vmem:[#allocation3 + $0x390] sm:$0xff] %vm2655_vm4, %v6353_v23  ;;  %v6360_v23 = vld [vmem:[#allocation2 + $0x161] sm:$0xff]  ;;  %6403 = vst.msk [vmem:[#allocation3 + $0x4b0] sm:$0xff] %vm2655_vm4, %v6362_v7 }
 0x2fb   : > { %3143 = vrot.lane.b32.xlu0 %v12213_v61, %s10307_s7  ;;  %6367 = vst.msk [vmem:[#allocation3 + $0x30] sm:$0xff] %vm2655_vm4, %v6326_v27  ;;  %v6350_v27 = vld [vmem:[#allocation2 + $0x111] sm:$0xff]  ;;  %6401 = vst.msk [vmem:[#allocation3 + $0x470] sm:$0xff] %vm2655_vm4, %v6360_v23 }
 0x2fc   : > { %4809 = vst.msk [vmem:[#allocation3 + $0x28] sm:$0xff] %vm2997_vm5, %v4688_v59  ;;  %3003 = vst.msk [vmem:[#allocation3 + $0xa0] sm:$0xff] %vm2997_vm5, %v2885_v40  ;;  %v2806_v7 = vld [vmem:[#allocation2 + $0x71] sm:$0xff] }
 0x2fd   : > { %6391 = vst.msk [vmem:[#allocation3 + $0x330] sm:$0xff] %vm2655_vm4, %v6350_v27  ;;  %v12350_v27 = vld [vmem:[#allocation2 + $0x7c] sm:$0xff]  ;;  %v12384_v23 = vld [vmem:[#allocation2 + $0x94] sm:$0xff]  ;;  %15088 = vst [vmem:[#allocation62_spill] sm:$0xff] %v12409_v45 }
 0x2fe   : > { %3639 = vrot.lane.b32.xlu1 %v12215_v32, %s10309_s13  ;;  %v3871_v17 = vpop.permute.xlu0 %3870  ;;  %v3134_v4 = vpop.permute.xlu1 %3133  ;;  %8173 = vst.msk [vmem:[#allocation3 + $0x78] sm:$0xff] %vm2655_vm4, %v12350_v27  ;;  %8176 = vst.msk [vmem:[#allocation3 + $0xd8] sm:$0xff] %vm2655_vm4, %v12384_v23 }
 0x2ff   : > { %3392 = vrot.lane.b32.xlu0 %v11520_v55, %s10310_s14  ;;  %v6327_v55 = vld [vmem:[#allocation2 + $0x59] sm:$0xff]  ;;  %3990 = vst.msk [vmem:[#allocation3 + $0x80] sm:$0xff] %vm3985_vm9, %v3871_v17 }
 0x300   : > { %6368 = vst.msk [vmem:[#allocation3 + $0x50] sm:$0xff] %vm2655_vm4, %v6327_v55  ;;  %v6352_v55 = vld [vmem:[#allocation2 + $0x121] sm:$0xff]  ;;  %v6351_v17 = vld [vmem:[#allocation2 + $0x119] sm:$0xff]  ;;  %8181 = vst.msk [vmem:[#allocation3 + $0x178] sm:$0xff] %vm2655_vm4, %v12409_v45 }
 0x301   : > { %6393 = vst.msk [vmem:[#allocation3 + $0x370] sm:$0xff] %vm2655_vm4, %v6352_v55  ;;  %6392 = vst.msk [vmem:[#allocation3 + $0x350] sm:$0xff] %vm2655_vm4, %v6351_v17  ;;  %v6358_v55 = vld [vmem:[#allocation2 + $0x151] sm:$0xff] }
 0x302   : > { %3880 = vrot.lane.b32.xlu1 %v11522_v58, %s10311_s19  ;;  %v12236_v58 = vld [vmem:[#allocation2 + $0x71] sm:$0xff]  ;;  %v2887_v56 = vpop.permute.xlu0 %2886  ;;  %6399 = vst.msk [vmem:[#allocation3 + $0x430] sm:$0xff] %vm2655_vm4, %v6358_v55  ;;  %v6364_v55 = vld [vmem:[#allocation2 + $0x181] sm:$0xff]  ;;  %8184 = vst.msk [vmem:[#allocation3 + $0x1d8] sm:$0xff] %vm2655_vm4, %v12429_v0 }
 0x303   : > { %3637 = vrot.lane.b32.xlu0 %v3544_v16, %s10309_s13  ;;  %6371 = vst.msk [vmem:[#allocation3 + $0xb0] sm:$0xff] %vm2655_vm4, %v12236_v58  ;;  %6405 = vst.msk [vmem:[#allocation3 + $0x4f0] sm:$0xff] %vm2655_vm4, %v6364_v55  ;;  %v12446_v0 = vld [vmem:[#allocation2 + $0xec] sm:$0xff] }
 0x304   : > { %3004 = vst.msk [vmem:[#allocation3 + $0xc0] sm:$0xff] %vm2997_vm5, %v2887_v56  ;;  %v6354_v56 = vld [vmem:[#allocation2 + $0x131] sm:$0xff] }
 0x305   : > { %3251 = vst.msk [vmem:[#allocation3 + $0xc0] sm:$0xff] %vm3244_vm6, %v3134_v4  ;;  %v12337_v4 = vld [vmem:[#allocation2 + $0x69] sm:$0xff] }
 0x306   : > { %4125 = vrot.lane.b32.xlu1 %v2803_v52, %s10312_s24  ;;  %v12290_v52 = vld [vmem:[#allocation2 + $0x64] sm:$0xff]  ;;  %6395 = vst.msk [vmem:[#allocation3 + $0x3b0] sm:$0xff] %vm2655_vm4, %v6354_v56  ;;  %8187 = vst.msk [vmem:[#allocation3 + $0x238] sm:$0xff] %vm2655_vm4, %v12446_v0 }
 0x307   : > { %4127 = vrot.lane.b32.xlu0 %v2804_v10, %s10312_s24  ;;  %8170 = vst.msk [vmem:[#allocation3 + $0x18] sm:$0xff] %vm2655_vm4, %v12290_v52  ;;  %v12307_v10 = vld [vmem:[#allocation2 + $0xd9] sm:$0xff]  ;;  %v6357_v56 = vld [vmem:[#allocation2 + $0x149] sm:$0xff] }
 0x308   : > { %15084 = vst [vmem:[#allocation91_spill] sm:$0xff] %v12307_v10  ;;  %6384 = vst.msk [vmem:[#allocation3 + $0x250] sm:$0xff] %vm2655_vm4, %v12307_v10  ;;  %v12415_v10 = vld [vmem:[#allocation2 + $0xc4] sm:$0xff] }
 0x309   : > { %v3132_v59 = vpop.permute.xlu0 %3131  ;;  %6398 = vst.msk [vmem:[#allocation3 + $0x410] sm:$0xff] %vm2655_vm4, %v6357_v56  ;;  %v6365_v56 = vld [vmem:[#allocation2 + $0x189] sm:$0xff]  ;;  %15089 = vst [vmem:[#allocation92_spill] sm:$0xff] %v12415_v10 }
 0x30a   : > { %4374 = vrot.lane.b32.xlu1 %v3051_v1, %s10313_s29  ;;  %v3379_v1 = vpop.permute.xlu1 %3378  ;;  %3250 = vst.msk [vmem:[#allocation3 + $0xa0] sm:$0xff] %vm3244_vm6, %v3132_v59  ;;  %v6355_v59 = vld [vmem:[#allocation2 + $0x139] sm:$0xff] }
 0x30b   : > { %4372 = vrot.lane.b32.xlu0 %v12213_v61, %s10313_s29  ;;  %v12328_v61 = vld [vmem:[#allocation2 + $0xf9] sm:$0xff]  ;;  %3497 = vst.msk [vmem:[#allocation3 + $0xa0] sm:$0xff] %vm3491_vm7, %v3379_v1 }
 0x30c   : > { %15087 = vst [vmem:[#allocation20_spill] sm:$0xff] %v12328_v61  ;;  %6388 = vst.msk [vmem:[#allocation3 + $0x2d0] sm:$0xff] %vm2655_vm4, %v12328_v61  ;;  %v12363_v61 = vld [vmem:[#allocation2 + $0x84] sm:$0xff] }
 0x30d   : > { %v3381_v1 = vpop.permute.xlu0 %3380  ;;  %6396 = vst.msk [vmem:[#allocation3 + $0x3d0] sm:$0xff] %vm2655_vm4, %v6355_v59  ;;  %v6361_v59 = vld [vmem:[#allocation2 + $0x169] sm:$0xff]  ;;  %8174 = vst.msk [vmem:[#allocation3 + $0x98] sm:$0xff] %vm2655_vm4, %v12363_v61 }
 0x30e   : > { %4701 = vrot.lane.b32.xlu1 %v3544_v16, %s10308_s8  ;;  %v3628_v40 = vpop.permute.xlu1 %3627  ;;  %v12334_v16 = vld [vmem:[#allocation2 + $0x74] sm:$0xff]  ;;  %3498 = vst.msk [vmem:[#allocation3 + $0xc0] sm:$0xff] %vm3491_vm7, %v3381_v1  ;;  %v12376_v1 = vld [vmem:[#allocation2 + $0x8c] sm:$0xff] }
 0x30f   : > { %8172 = vst.msk [vmem:[#allocation3 + $0x58] sm:$0xff] %vm2655_vm4, %v12334_v16  ;;  %4703 = vrot.lane.b32.xlu0 %v12215_v32, %s10308_s8  ;;  %v12355_v32 = vld [vmem:[#allocation2 + $0x72] sm:$0xff]  ;;  %6402 = vst.msk [vmem:[#allocation3 + $0x490] sm:$0xff] %vm2655_vm4, %v6361_v59  ;;  %v12393_v59 = vld [vmem:[#allocation2 + $0xa4] sm:$0xff] }
 0x310   : > { %3745 = vst.msk [vmem:[#allocation3 + $0xc0] sm:$0xff] %vm3738_vm8, %v3628_v40  ;;  %v6363_v40 = vld [vmem:[#allocation2 + $0x179] sm:$0xff] }
 0x311   : > { %6404 = vst.msk [vmem:[#allocation3 + $0x4d0] sm:$0xff] %vm2655_vm4, %v6363_v40  ;;  %8175 = vst.msk [vmem:[#allocation3 + $0xb8] sm:$0xff] %vm2655_vm4, %v12376_v1 }
 0x312   : > { %2900 = vrot.lane.b32.xlu1 %v12337_v4, %s10308_s8  ;;  %v3869_v17 = vpop.permute.xlu1 %3868  ;;  %6406 = vst.msk [vmem:[#allocation3 + $0x510] sm:$0xff] %vm2655_vm4, %v6365_v56  ;;  %8178 = vst.msk [vmem:[#allocation3 + $0x118] sm:$0xff] %vm2655_vm4, %v12393_v59  ;;  %v12402_v56 = vld [vmem:[#allocation2 + $0xb4] sm:$0xff] }
 0x313   : > { %3989 = vst.msk [vmem:[#allocation3 + $0x60] sm:$0xff] %vm3985_vm9, %v3869_v17  ;;  %3886 = vrot.lane.b32.xlu0 %v11531_v57, %s10311_s19  ;;  %v3626_v57 = vpop.permute.xlu0 %3625 }
 0x314   : > { %3744 = vst.msk [vmem:[#allocation3 + $0xa0] sm:$0xff] %vm3738_vm8, %v3626_v57  ;;  %v12397_v57 = vld [vmem:[#allocation2 + $0xac] sm:$0xff] }
 0x315   : > { %8179 = vst.msk [vmem:[#allocation3 + $0x138] sm:$0xff] %vm2655_vm4, %v12397_v57  ;;  %8180 = vst.msk [vmem:[#allocation3 + $0x158] sm:$0xff] %vm2655_vm4, %v12402_v56 }
 0x316   : > { %3149 = vrot.lane.b32.xlu1 %v12355_v32, %s10307_s7  ;;  %v4114_v17 = vpop.permute.xlu1 %4113  ;;  %8182 = vst.msk [vmem:[#allocation3 + $0x198] sm:$0xff] %vm2655_vm4, %v12415_v10  ;;  %v12435_v10 = vld [vmem:[#allocation2 + $0xdc] sm:$0xff] }
 0x317   : > { %4235 = vst.msk [vmem:[#allocation3 + $0x40] sm:$0xff] %vm4232_vm10, %v4114_v17  ;;  %2902 = vrot.lane.b32.xlu0 %v2806_v7, %s10308_s8  ;;  %v4116_v55 = vpop.permute.xlu0 %4115  ;;  %v3547_v17 = vld [vmem:[#allocation2 + $0x74] sm:$0xff]  ;;  %15091 = vst [vmem:[#allocation21_spill] sm:$0xff] %v12435_v10 }
 0x318   : > { %4236 = vst.msk [vmem:[#allocation3 + $0x60] sm:$0xff] %vm4232_vm10, %v4116_v55 }
 0x319   : > { %8185 = vst.msk [vmem:[#allocation3 + $0x1f8] sm:$0xff] %vm2655_vm4, %v12435_v10 }
 0x31a   : > { %3394 = vrot.lane.b32.xlu1 %v11556_v31, %s10310_s14  ;;  %v4363_v40 = vpop.permute.xlu1 %4362  ;;  %v3052_v31 = vld [vmem:[#allocation2 + $0x6a] sm:$0xff] }
 0x31b   : > { %4483 = vst.msk [vmem:[#allocation3 + $0x60] sm:$0xff] %vm4479_vm11, %v4363_v40  ;;  %3147 = vrot.lane.b32.xlu0 %v3052_v31, %s10307_s7  ;;  %v4361_v55 = vpop.permute.xlu0 %4360  ;;  %v12419_v40 = vld [vmem:[#allocation2 + $0xcc] sm:$0xff] }
 0x31c   : > { %4482 = vst.msk [vmem:[#allocation3 + $0x40] sm:$0xff] %vm4479_vm11, %v4361_v55 }
 0x31d   : > { %8183 = vst.msk [vmem:[#allocation3 + $0x1b8] sm:$0xff] %vm2655_vm4, %v12419_v40 }
 0x31e   : > { %3643 = vrot.lane.b32.xlu1 %v3547_v17, %s10309_s13  ;;  %v4690_v25 = vpop.permute.xlu1 %4689 }
 0x31f   : > { %4810 = vst.msk [vmem:[#allocation3 + $0x48] sm:$0xff] %vm2997_vm5, %v4690_v25  ;;  %3396 = vrot.lane.b32.xlu0 %v11560_v20, %s10310_s14  ;;  %v4692_v45 = vpop.permute.xlu0 %4691  ;;  %v3546_v25 = vld [vmem:[#allocation2 + $0x6c] sm:$0xff]  ;;  %v12440_v20 = vld [vmem:[#allocation2 + $0xe4] sm:$0xff] }
 0x320   : > { %4811 = vst.msk [vmem:[#allocation3 + $0x68] sm:$0xff] %vm2997_vm5, %v4692_v45  ;;  %15092 = vst [vmem:[#allocation63_spill] sm:$0xff] %v12440_v20 }
 0x321   : > { %8186 = vst.msk [vmem:[#allocation3 + $0x218] sm:$0xff] %vm2655_vm4, %v12440_v20  ;;  %v12459_v20 = vld [vmem:[#allocation2 + $0xfc] sm:$0xff] }
 0x322   : > { %3884 = vrot.lane.b32.xlu1 %v11562_v38, %s10311_s19  ;;  %8189 = vst.msk [vmem:[#allocation3 + $0x278] sm:$0xff] %vm2655_vm4, %v12459_v20 }
 0x323   : > { %3641 = vrot.lane.b32.xlu0 %v3546_v25, %s10309_s13  ;;  %v3875_v38 = vpop.permute.xlu0 %3874 }
 0x324   : > { %v2889_v55 = vpop.permute.xlu1 %2888  ;;  %3992 = vst.msk [vmem:[#allocation3 + $0xc0] sm:$0xff] %vm3985_vm9, %v3875_v38 }
 0x325   : > { %3005 = vst.msk [vmem:[#allocation3 + $0xe0] sm:$0xff] %vm2997_vm5, %v2889_v55 }
 0x326   : > { %4129 = vrot.lane.b32.xlu1 %v12337_v4, %s10312_s24  ;;  %v12454_v4 = vld [vmem:[#allocation2 + $0xf4] sm:$0xff] }
 0x327   : > { %4131 = vrot.lane.b32.xlu0 %v2806_v7, %s10312_s24  ;;  %15093 = vst [vmem:[#allocation22_spill] sm:$0xff] %v12454_v4  ;;  %8188 = vst.msk [vmem:[#allocation3 + $0x258] sm:$0xff] %vm2655_vm4, %v12454_v4  ;;  %v12471_v4 = vld [vmem:[#allocation2 + $0x10c] sm:$0xff] }
 0x328   : > { %v3138_v45 = vpop.permute.xlu1 %3137  ;;  %15095 = vst [vmem:[#allocation94_spill] sm:$0xff] %v12471_v4  ;;  %8191 = vst.msk [vmem:[#allocation3 + $0x2b8] sm:$0xff] %vm2655_vm4, %v12471_v4 }
 0x329   : > { %v2891_v55 = vpop.permute.xlu0 %2890 }
 0x32a   : > { %4378 = vrot.lane.b32.xlu1 %v12355_v32, %s10313_s29  ;;  %3006 = vst.msk [vmem:[#allocation3 + $0x100] sm:$0xff] %vm2997_vm5, %v2891_v55  ;;  %v12466_v32 = vld [vmem:[#allocation2 + $0x104] sm:$0xff]  ;;  %v2807_v55 = vld [vmem:[#allocation2 + $0x79] sm:$0xff] }
 0x32b   : > { %3253 = vst.msk [vmem:[#allocation3 + $0x100] sm:$0xff] %vm3244_vm6, %v3138_v45  ;;  %4376 = vrot.lane.b32.xlu0 %v3052_v31, %s10313_s29  ;;  %15094 = vst [vmem:[#allocation64_spill] sm:$0xff] %v12466_v32  ;;  %v12478_v31 = vld [vmem:[#allocation2 + $0x114] sm:$0xff] }
 0x32c   : > { %v3383_v10 = vpop.permute.xlu1 %3382  ;;  %8190 = vst.msk [vmem:[#allocation3 + $0x298] sm:$0xff] %vm2655_vm4, %v12466_v32  ;;  %15096 = vst [vmem:[#allocation95_spill] sm:$0xff] %v12478_v31 }
 0x32d   : > { %v3136_v7 = vpop.permute.xlu0 %3135  ;;  %8192 = vst.msk [vmem:[#allocation3 + $0x2d8] sm:$0xff] %vm2655_vm4, %v12478_v31 }
 0x32e   : > { %4705 = vrot.lane.b32.xlu1 %v3546_v25, %s10308_s8  ;;  %3252 = vst.msk [vmem:[#allocation3 + $0xe0] sm:$0xff] %vm3244_vm6, %v3136_v7  ;;  %v3055_v7 = vld [vmem:[#allocation2 + $0x82] sm:$0xff] }
 0x32f   : > { %3499 = vst.msk [vmem:[#allocation3 + $0xe0] sm:$0xff] %vm3491_vm7, %v3383_v10  ;;  %4707 = vrot.lane.b32.xlu0 %v3547_v17, %s10308_s8  ;;  %v12484_v10 = vld [vmem:[#allocation2 + $0x11c] sm:$0xff]  ;;  %v12492_v17 = vld [vmem:[#allocation2 + $0x124] sm:$0xff] }
 0x330   : > { %v3632_v38 = vpop.permute.xlu1 %3631  ;;  %15097 = vst [vmem:[#allocation23_spill] sm:$0xff] %v12484_v10  ;;  %8193 = vst.msk [vmem:[#allocation3 + $0x2f8] sm:$0xff] %vm2655_vm4, %v12484_v10 }
 0x331   : > { %v3385_v25 = vpop.permute.xlu0 %3384  ;;  %15098 = vst [vmem:[#allocation65_spill] sm:$0xff] %v12492_v17  ;;  %8194 = vst.msk [vmem:[#allocation3 + $0x318] sm:$0xff] %vm2655_vm4, %v12492_v17  ;;  %v12510_v17 = vld [vmem:[#allocation2 + $0x13c] sm:$0xff] }
 0x332   : > { %2904 = vrot.lane.b32.xlu1 %v2807_v55, %s10308_s8  ;;  %3500 = vst.msk [vmem:[#allocation3 + $0x100] sm:$0xff] %vm3491_vm7, %v3385_v25  ;;  %v12498_v25 = vld [vmem:[#allocation2 + $0x12c] sm:$0xff]  ;;  %15101 = vst [vmem:[#allocation96_spill] sm:$0xff] %v12510_v17 }
 0x333   : > { %3747 = vst.msk [vmem:[#allocation3 + $0x100] sm:$0xff] %vm3738_vm8, %v3632_v38  ;;  %3890 = vrot.lane.b32.xlu0 %v11571_v5, %s10311_s19  ;;  %v2808_v38 = vld [vmem:[#allocation2 + $0x81] sm:$0xff]  ;;  %15099 = vst [vmem:[#allocation24_spill] sm:$0xff] %v12498_v25  ;;  %v12505_v5 = vld [vmem:[#allocation2 + $0x134] sm:$0xff] }
 0x334   : > { %v3873_v45 = vpop.permute.xlu1 %3872  ;;  %8195 = vst.msk [vmem:[#allocation3 + $0x338] sm:$0xff] %vm2655_vm4, %v12498_v25  ;;  %15100 = vst [vmem:[#allocation66_spill] sm:$0xff] %v12505_v5 }
 0x335   : > { %3991 = vst.msk [vmem:[#allocation3 + $0xa0] sm:$0xff] %vm3985_vm9, %v3873_v45  ;;  %v3630_v31 = vpop.permute.xlu0 %3629 }
 0x336   : > { %3153 = vrot.lane.b32.xlu1 %v3055_v7, %s10307_s7  ;;  %3746 = vst.msk [vmem:[#allocation3 + $0xe0] sm:$0xff] %vm3738_vm8, %v3630_v31  ;;  %v3549_v31 = vld [vmem:[#allocation2 + $0x84] sm:$0xff] }
 0x337   : > { %2906 = vrot.lane.b32.xlu0 %v2808_v38, %s10308_s8  ;;  %8196 = vst.msk [vmem:[#allocation3 + $0x358] sm:$0xff] %vm2655_vm4, %v12505_v5  ;;  %8197 = vst.msk [vmem:[#allocation3 + $0x378] sm:$0xff] %vm2655_vm4, %v12510_v17 }
 0x338   : > { %v4118_v4 = vpop.permute.xlu1 %4117 }
 0x339   : > { %4237 = vst.msk [vmem:[#allocation3 + $0x80] sm:$0xff] %vm4232_vm10, %v4118_v4  ;;  %v4120_v45 = vpop.permute.xlu0 %4119  ;;  %v3054_v4 = vld [vmem:[#allocation2 + $0x7a] sm:$0xff] }
 0x33a   : > { %3398 = vrot.lane.b32.xlu1 %v11596_v34, %s10310_s14  ;;  %4238 = vst.msk [vmem:[#allocation3 + $0xa0] sm:$0xff] %vm4232_vm10, %v4120_v45  ;;  %v12517_v34 = vld [vmem:[#allocation2 + $0x144] sm:$0xff]  ;;  %v12523_v45 = vld [vmem:[#allocation2 + $0x14c] sm:$0xff] }
 0x33b   : > { %3151 = vrot.lane.b32.xlu0 %v3054_v4, %s10307_s7  ;;  %8198 = vst.msk [vmem:[#allocation3 + $0x398] sm:$0xff] %vm2655_vm4, %v12517_v34  ;;  %15102 = vst [vmem:[#allocation97_spill] sm:$0xff] %v12523_v45 }
 0x33c   : > { %v4367_v10 = vpop.permute.xlu1 %4366  ;;  %8199 = vst.msk [vmem:[#allocation3 + $0x3b8] sm:$0xff] %vm2655_vm4, %v12523_v45 }
 0x33d   : > { %4485 = vst.msk [vmem:[#allocation3 + $0xa0] sm:$0xff] %vm4479_vm11, %v4367_v10  ;;  %v4365_v25 = vpop.permute.xlu0 %4364  ;;  %v12531_v10 = vld [vmem:[#allocation2 + $0x154] sm:$0xff] }
 0x33e   : > { %3647 = vrot.lane.b32.xlu1 %v3549_v31, %s10309_s13  ;;  %4484 = vst.msk [vmem:[#allocation3 + $0x80] sm:$0xff] %vm4479_vm11, %v4365_v25  ;;  %v12537_v25 = vld [vmem:[#allocation2 + $0x15c] sm:$0xff] }
 0x33f   : > { %3400 = vrot.lane.b32.xlu0 %v11600_v9, %s10310_s14  ;;  %8200 = vst.msk [vmem:[#allocation3 + $0x3d8] sm:$0xff] %vm2655_vm4, %v12531_v10  ;;  %15103 = vst [vmem:[#allocation25_spill] sm:$0xff] %v12537_v25  ;;  %v12543_v9 = vld [vmem:[#allocation2 + $0x164] sm:$0xff] }
 0x340   : > { %v4694_v32 = vpop.permute.xlu1 %4693  ;;  %8201 = vst.msk [vmem:[#allocation3 + $0x3f8] sm:$0xff] %vm2655_vm4, %v12537_v25  ;;  %8202 = vst.msk [vmem:[#allocation3 + $0x418] sm:$0xff] %vm2655_vm4, %v12543_v9  ;;  %v12554_v25 = vld [vmem:[#allocation2 + $0x174] sm:$0xff] }
 0x341   : > { %4812 = vst.msk [vmem:[#allocation3 + $0x88] sm:$0xff] %vm2997_vm5, %v4694_v32  ;;  %v4696_v17 = vpop.permute.xlu0 %4695  ;;  %v3548_v32 = vld [vmem:[#allocation2 + $0x7c] sm:$0xff] }
 0x342   : > { %3888 = vrot.lane.b32.xlu1 %v11602_v37, %s10311_s19  ;;  %4813 = vst.msk [vmem:[#allocation3 + $0xa8] sm:$0xff] %vm2997_vm5, %v4696_v17  ;;  %v12550_v17 = vld [vmem:[#allocation2 + $0x16c] sm:$0xff] }
 0x343   : > { %3645 = vrot.lane.b32.xlu0 %v3548_v32, %s10309_s13  ;;  %15104 = vst [vmem:[#allocation67_spill] sm:$0xff] %v12550_v17  ;;  %8203 = vst.msk [vmem:[#allocation3 + $0x438] sm:$0xff] %vm2655_vm4, %v12550_v17  ;;  %v12566_v17 = vld [vmem:[#allocation2 + $0x184] sm:$0xff] }
 0x344   : > { %v2893_v5 = vpop.permute.xlu1 %2892  ;;  %8204 = vst.msk [vmem:[#allocation3 + $0x458] sm:$0xff] %vm2655_vm4, %v12554_v25  ;;  %15106 = vst [vmem:[#allocation68_spill] sm:$0xff] %v12566_v17 }
 0x345   : > { %3007 = vst.msk [vmem:[#allocation3 + $0x120] sm:$0xff] %vm2997_vm5, %v2893_v5  ;;  %v3879_v37 = vpop.permute.xlu0 %3878 }
 0x346   : > { %4133 = vrot.lane.b32.xlu1 %v2807_v55, %s10312_s24  ;;  %3994 = vst.msk [vmem:[#allocation3 + $0x100] sm:$0xff] %vm3985_vm9, %v3879_v37 }
 0x347   : > { %4135 = vrot.lane.b32.xlu0 %v2808_v38, %s10312_s24  ;;  %8206 = vst.msk [vmem:[#allocation3 + $0x498] sm:$0xff] %vm2655_vm4, %v12566_v17  ;;  %v8169_v17 = vld [vmem:[#allocation2 + $0x1a4] sm:$0xff] }
 0x348   : > { %v3142_v45 = vpop.permute.xlu1 %3141  ;;  %8210 = vst.msk [vmem:[#allocation3 + $0x518] sm:$0xff] %vm2655_vm4, %v8169_v17 }
 0x349   : > { %v2895_v55 = vpop.permute.xlu0 %2894 }
 0x34a   : > { %4382 = vrot.lane.b32.xlu1 %v3055_v7, %s10313_s29  ;;  %3008 = vst.msk [vmem:[#allocation3 + $0x140] sm:$0xff] %vm2997_vm5, %v2895_v55  ;;  %v12562_v7 = vld [vmem:[#allocation2 + $0x17c] sm:$0xff]  ;;  %v2809_v55 = vld [vmem:[#allocation2 + $0x89] sm:$0xff] }
 0x34b   : > { %3255 = vst.msk [vmem:[#allocation3 + $0x140] sm:$0xff] %vm3244_vm6, %v3142_v45  ;;  %4380 = vrot.lane.b32.xlu0 %v3054_v4, %s10313_s29  ;;  %15105 = vst [vmem:[#allocation26_spill] sm:$0xff] %v12562_v7  ;;  %v12574_v4 = vld [vmem:[#allocation2 + $0x18c] sm:$0xff] }
 0x34c   : > { %v3387_v5 = vpop.permute.xlu1 %3386  ;;  %8205 = vst.msk [vmem:[#allocation3 + $0x478] sm:$0xff] %vm2655_vm4, %v12562_v7  ;;  %15107 = vst [vmem:[#allocation98_spill] sm:$0xff] %v12574_v4 }
 0x34d   : > { %v3140_v38 = vpop.permute.xlu0 %3139  ;;  %8207 = vst.msk [vmem:[#allocation3 + $0x4b8] sm:$0xff] %vm2655_vm4, %v12574_v4 }
 0x34e   : > { %4709 = vrot.lane.b32.xlu1 %v3548_v32, %s10308_s8  ;;  %3254 = vst.msk [vmem:[#allocation3 + $0x120] sm:$0xff] %vm3244_vm6, %v3140_v38  ;;  %v3057_v38 = vld [vmem:[#allocation2 + $0x92] sm:$0xff] }
 0x34f   : > { %3501 = vst.msk [vmem:[#allocation3 + $0x120] sm:$0xff] %vm3491_vm7, %v3387_v5  ;;  %4711 = vrot.lane.b32.xlu0 %v3549_v31, %s10308_s8  ;;  %v8167_v31 = vld [vmem:[#allocation2 + $0x194] sm:$0xff]  ;;  %v8168_v5 = vld [vmem:[#allocation2 + $0x19c] sm:$0xff] }
 0x350   : > { %v3636_v37 = vpop.permute.xlu1 %3635  ;;  %8208 = vst.msk [vmem:[#allocation3 + $0x4d8] sm:$0xff] %vm2655_vm4, %v8167_v31  ;;  %8209 = vst.msk [vmem:[#allocation3 + $0x4f8] sm:$0xff] %vm2655_vm4, %v8168_v5  ;;  %v3551_v31 = vld [vmem:[#allocation2 + $0x94] sm:$0xff]  ;;  %v3550_v5 = vld [vmem:[#allocation2 + $0x8c] sm:$0xff] }
 0x351   : > { %v3389_v45 = vpop.permute.xlu0 %3388 }
 0x352   : > { %2908 = vrot.lane.b32.xlu1 %v2809_v55, %s10308_s8  ;;  %3502 = vst.msk [vmem:[#allocation3 + $0x140] sm:$0xff] %vm3491_vm7, %v3389_v45 }
 0x353   : > { %3749 = vst.msk [vmem:[#allocation3 + $0x140] sm:$0xff] %vm3738_vm8, %v3636_v37  ;;  %3894 = vrot.lane.b32.xlu0 %v11611_v18, %s10311_s19  ;;  %v2810_v37 = vld [vmem:[#allocation2 + $0x91] sm:$0xff] }
 0x354   : > { %v3877_v32 = vpop.permute.xlu1 %3876 }
 0x355   : > { %3993 = vst.msk [vmem:[#allocation3 + $0xe0] sm:$0xff] %vm3985_vm9, %v3877_v32  ;;  %v3634_v4 = vpop.permute.xlu0 %3633  ;;  %v3056_v32 = vld [vmem:[#allocation2 + $0x8a] sm:$0xff] }
 0x356   : > { %3157 = vrot.lane.b32.xlu1 %v3057_v38, %s10307_s7  ;;  %3748 = vst.msk [vmem:[#allocation3 + $0x120] sm:$0xff] %vm3738_vm8, %v3634_v4 }
 0x357   : > { %2910 = vrot.lane.b32.xlu0 %v2810_v37, %s10308_s8 }
 0x358   : > { %v4122_v7 = vpop.permute.xlu1 %4121 }
 0x359   : > { %4239 = vst.msk [vmem:[#allocation3 + $0xc0] sm:$0xff] %vm4232_vm10, %v4122_v7  ;;  %v4124_v18 = vpop.permute.xlu0 %4123 }
 0x35a   : > { %3402 = vrot.lane.b32.xlu1 %v11638_v29, %s10310_s14  ;;  %4240 = vst.msk [vmem:[#allocation3 + $0xe0] sm:$0xff] %vm4232_vm10, %v4124_v18 }
 0x35b   : > { %3155 = vrot.lane.b32.xlu0 %v3056_v32, %s10307_s7 }
 0x35c   : > { %v4371_v45 = vpop.permute.xlu1 %4370 }
 0x35d   : > { %4487 = vst.msk [vmem:[#allocation3 + $0xe0] sm:$0xff] %vm4479_vm11, %v4371_v45  ;;  %v4369_v17 = vpop.permute.xlu0 %4368 }
 0x35e   : > { %3651 = vrot.lane.b32.xlu1 %v3551_v31, %s10309_s13  ;;  %4486 = vst.msk [vmem:[#allocation3 + $0xc0] sm:$0xff] %vm4479_vm11, %v4369_v17 }
 0x35f   : > { %3404 = vrot.lane.b32.xlu0 %v11642_v60, %s10310_s14 }
 0x360   : > { %v4698_v7 = vpop.permute.xlu1 %4697 }
 0x361   : > { %4814 = vst.msk [vmem:[#allocation3 + $0xc8] sm:$0xff] %vm2997_vm5, %v4698_v7  ;;  %v4700_v29 = vpop.permute.xlu0 %4699  ;;  %v2811_v7 = vld [vmem:[#allocation2 + $0x99] sm:$0xff] }
 0x362   : > { %3892 = vrot.lane.b32.xlu1 %v11644_v19, %s10311_s19  ;;  %4815 = vst.msk [vmem:[#allocation3 + $0xe8] sm:$0xff] %vm2997_vm5, %v4700_v29 }
 0x363   : > { %3649 = vrot.lane.b32.xlu0 %v3550_v5, %s10309_s13 }
 0x364   : > { %v2897_v4 = vpop.permute.xlu1 %2896 }
 0x365   : > { %3009 = vst.msk [vmem:[#allocation3 + $0x160] sm:$0xff] %vm2997_vm5, %v2897_v4  ;;  %v3883_v18 = vpop.permute.xlu0 %3882 }
 0x366   : > { %4137 = vrot.lane.b32.xlu1 %v2809_v55, %s10312_s24  ;;  %3996 = vst.msk [vmem:[#allocation3 + $0x140] sm:$0xff] %vm3985_vm9, %v3883_v18 }
 0x367   : > { %4139 = vrot.lane.b32.xlu0 %v2810_v37, %s10312_s24 }
 0x368   : > { %v3146_v45 = vpop.permute.xlu1 %3145 }
 0x369   : > { %v2899_v60 = vpop.permute.xlu0 %2898 }
 0x36a   : > { %4386 = vrot.lane.b32.xlu1 %v3057_v38, %s10313_s29  ;;  %3010 = vst.msk [vmem:[#allocation3 + $0x180] sm:$0xff] %vm2997_vm5, %v2899_v60 }
 0x36b   : > { %3257 = vst.msk [vmem:[#allocation3 + $0x180] sm:$0xff] %vm3244_vm6, %v3146_v45  ;;  %4384 = vrot.lane.b32.xlu0 %v3056_v32, %s10313_s29  ;;  %v3059_v32 = vld [vmem:[#allocation2 + $0xa2] sm:$0xff]  ;;  %v3058_v45 = vld [vmem:[#allocation2 + $0x9a] sm:$0xff] }
 0x36c   : > { %v3391_v19 = vpop.permute.xlu1 %3390 }
 0x36d   : > { %v3144_v17 = vpop.permute.xlu0 %3143 }
 0x36e   : > { %4713 = vrot.lane.b32.xlu1 %v3550_v5, %s10308_s8  ;;  %3256 = vst.msk [vmem:[#allocation3 + $0x160] sm:$0xff] %vm3244_vm6, %v3144_v17 }
 0x36f   : > { %3503 = vst.msk [vmem:[#allocation3 + $0x160] sm:$0xff] %vm3491_vm7, %v3391_v19  ;;  %4715 = vrot.lane.b32.xlu0 %v3551_v31, %s10308_s8  ;;  %v2812_v31 = vld [vmem:[#allocation2 + $0xa1] sm:$0xff] }
 0x370   : > { %v3640_v55 = vpop.permute.xlu1 %3639 }
 0x371   : > { %v3393_v38 = vpop.permute.xlu0 %3392 }
 0x372   : > { %2912 = vrot.lane.b32.xlu1 %v2811_v7, %s10308_s8  ;;  %3504 = vst.msk [vmem:[#allocation3 + $0x180] sm:$0xff] %vm3491_vm7, %v3393_v38 }
 0x373   : > { %3751 = vst.msk [vmem:[#allocation3 + $0x180] sm:$0xff] %vm3738_vm8, %v3640_v55  ;;  %3898 = vrot.lane.b32.xlu0 %v11653_v44, %s10311_s19  ;;  %v3553_v44 = vld [vmem:[#allocation2 + $0xa4] sm:$0xff]  ;;  %v3552_v55 = vld [vmem:[#allocation2 + $0x9c] sm:$0xff] }
 0x374   : > { %v3881_v37 = vpop.permute.xlu1 %3880 }
 0x375   : > { %3995 = vst.msk [vmem:[#allocation3 + $0x120] sm:$0xff] %vm3985_vm9, %v3881_v37  ;;  %v3638_v29 = vpop.permute.xlu0 %3637 }
 0x376   : > { %3161 = vrot.lane.b32.xlu1 %v3059_v32, %s10307_s7  ;;  %3750 = vst.msk [vmem:[#allocation3 + $0x160] sm:$0xff] %vm3738_vm8, %v3638_v29 }
 0x377   : > { %2914 = vrot.lane.b32.xlu0 %v2812_v31, %s10308_s8 }
 0x378   : > { %v4126_v4 = vpop.permute.xlu1 %4125 }
 0x379   : > { %4241 = vst.msk [vmem:[#allocation3 + $0x100] sm:$0xff] %vm4232_vm10, %v4126_v4  ;;  %v4128_v5 = vpop.permute.xlu0 %4127  ;;  %v2813_v4 = vld [vmem:[#allocation2 + $0xa9] sm:$0xff] }
 0x37a   : > { %3406 = vrot.lane.b32.xlu1 %v11676_v22, %s10310_s14  ;;  %4242 = vst.msk [vmem:[#allocation3 + $0x120] sm:$0xff] %vm4232_vm10, %v4128_v5  ;;  %v3061_v5 = vld [vmem:[#allocation2 + $0xb2] sm:$0xff] }
 0x37b   : > { %3159 = vrot.lane.b32.xlu0 %v3058_v45, %s10307_s7 }
 0x37c   : > { %v4375_v18 = vpop.permute.xlu1 %4374 }
 0x37d   : > { %4489 = vst.msk [vmem:[#allocation3 + $0x120] sm:$0xff] %vm4479_vm11, %v4375_v18  ;;  %v4373_v60 = vpop.permute.xlu0 %4372 }
 0x37e   : > { %3655 = vrot.lane.b32.xlu1 %v3553_v44, %s10309_s13  ;;  %4488 = vst.msk [vmem:[#allocation3 + $0x100] sm:$0xff] %vm4479_vm11, %v4373_v60 }
 0x37f   : > { %3408 = vrot.lane.b32.xlu0 %v11680_v3, %s10310_s14 }
 0x380   : > { %v4702_v19 = vpop.permute.xlu1 %4701 }
 0x381   : > { %4816 = vst.msk [vmem:[#allocation3 + $0x108] sm:$0xff] %vm2997_vm5, %v4702_v19  ;;  %v4704_v22 = vpop.permute.xlu0 %4703 }
 0x382   : > { %3896 = vrot.lane.b32.xlu1 %v11682_v41, %s10311_s19  ;;  %4817 = vst.msk [vmem:[#allocation3 + $0x128] sm:$0xff] %vm2997_vm5, %v4704_v22  ;;  %v3060_v22 = vld [vmem:[#allocation2 + $0xaa] sm:$0xff] }
 0x383   : > { %3653 = vrot.lane.b32.xlu0 %v3552_v55, %s10309_s13 }
 0x384   : > { %v2901_v17 = vpop.permute.xlu1 %2900 }
 0x385   : > { %3011 = vst.msk [vmem:[#allocation3 + $0x1a0] sm:$0xff] %vm2997_vm5, %v2901_v17  ;;  %v3887_v38 = vpop.permute.xlu0 %3886 }
 0x386   : > { %4141 = vrot.lane.b32.xlu1 %v2811_v7, %s10312_s24  ;;  %3998 = vst.msk [vmem:[#allocation3 + $0x180] sm:$0xff] %vm3985_vm9, %v3887_v38 }
 0x387   : > { %4143 = vrot.lane.b32.xlu0 %v2812_v31, %s10312_s24 }
 0x388   : > { %v3150_v37 = vpop.permute.xlu1 %3149 }
 0x389   : > { %v2903_v3 = vpop.permute.xlu0 %2902 }
 0x38a   : > { %4390 = vrot.lane.b32.xlu1 %v3059_v32, %s10313_s29  ;;  %3012 = vst.msk [vmem:[#allocation3 + $0x1c0] sm:$0xff] %vm2997_vm5, %v2903_v3 }
 0x38b   : > { %3259 = vst.msk [vmem:[#allocation3 + $0x1c0] sm:$0xff] %vm3244_vm6, %v3150_v37  ;;  %4388 = vrot.lane.b32.xlu0 %v3058_v45, %s10313_s29  ;;  %v3554_v37 = vld [vmem:[#allocation2 + $0xac] sm:$0xff] }
 0x38c   : > { %v3395_v41 = vpop.permute.xlu1 %3394 }
 0x38d   : > { %v3148_v29 = vpop.permute.xlu0 %3147 }
 0x38e   : > { %4717 = vrot.lane.b32.xlu1 %v3552_v55, %s10308_s8  ;;  %3258 = vst.msk [vmem:[#allocation3 + $0x1a0] sm:$0xff] %vm3244_vm6, %v3148_v29 }
 0x38f   : > { %3505 = vst.msk [vmem:[#allocation3 + $0x1a0] sm:$0xff] %vm3491_vm7, %v3395_v41  ;;  %4719 = vrot.lane.b32.xlu0 %v3553_v44, %s10308_s8  ;;  %v2814_v44 = vld [vmem:[#allocation2 + $0xb1] sm:$0xff] }
 0x390   : > { %v3644_v7 = vpop.permute.xlu1 %3643 }
 0x391   : > { %v3397_v32 = vpop.permute.xlu0 %3396 }
 0x392   : > { %2916 = vrot.lane.b32.xlu1 %v2813_v4, %s10308_s8  ;;  %3506 = vst.msk [vmem:[#allocation3 + $0x1c0] sm:$0xff] %vm3491_vm7, %v3397_v32 }
 0x393   : > { %3753 = vst.msk [vmem:[#allocation3 + $0x1c0] sm:$0xff] %vm3738_vm8, %v3644_v7  ;;  %3902 = vrot.lane.b32.xlu0 %v11691_v6, %s10311_s19  ;;  %v3555_v6 = vld [vmem:[#allocation2 + $0xb4] sm:$0xff] }
 0x394   : > { %v3885_v31 = vpop.permute.xlu1 %3884 }
 0x395   : > { %3997 = vst.msk [vmem:[#allocation3 + $0x160] sm:$0xff] %vm3985_vm9, %v3885_v31  ;;  %v3642_v18 = vpop.permute.xlu0 %3641 }
 0x396   : > { %3165 = vrot.lane.b32.xlu1 %v3061_v5, %s10307_s7  ;;  %3752 = vst.msk [vmem:[#allocation3 + $0x1a0] sm:$0xff] %vm3738_vm8, %v3642_v18 }
 0x397   : > { %2918 = vrot.lane.b32.xlu0 %v2814_v44, %s10308_s8 }
 0x398   : > { %v4130_v45 = vpop.permute.xlu1 %4129 }
 0x399   : > { %4243 = vst.msk [vmem:[#allocation3 + $0x140] sm:$0xff] %vm4232_vm10, %v4130_v45  ;;  %v4132_v60 = vpop.permute.xlu0 %4131 }
 0x39a   : > { %3410 = vrot.lane.b32.xlu1 %v11713_v51, %s10310_s14  ;;  %4244 = vst.msk [vmem:[#allocation3 + $0x160] sm:$0xff] %vm4232_vm10, %v4132_v60 }
 0x39b   : > { %3163 = vrot.lane.b32.xlu0 %v3060_v22, %s10307_s7 }
 0x39c   : > { %v4379_v19 = vpop.permute.xlu1 %4378 }
 0x39d   : > { %4491 = vst.msk [vmem:[#allocation3 + $0x160] sm:$0xff] %vm4479_vm11, %v4379_v19  ;;  %v4377_v17 = vpop.permute.xlu0 %4376 }
 0x39e   : > { %3659 = vrot.lane.b32.xlu1 %v3555_v6, %s10309_s13  ;;  %4490 = vst.msk [vmem:[#allocation3 + $0x140] sm:$0xff] %vm4479_vm11, %v4377_v17 }
 0x39f   : > { %3412 = vrot.lane.b32.xlu0 %v11717_v42, %s10310_s14 }
 0x3a0   : > { %v4706_v55 = vpop.permute.xlu1 %4705 }
 0x3a1   : > { %4818 = vst.msk [vmem:[#allocation3 + $0x148] sm:$0xff] %vm2997_vm5, %v4706_v55  ;;  %v4708_v51 = vpop.permute.xlu0 %4707 }
 0x3a2   : > { %3900 = vrot.lane.b32.xlu1 %v11719_v12, %s10311_s19  ;;  %4819 = vst.msk [vmem:[#allocation3 + $0x168] sm:$0xff] %vm2997_vm5, %v4708_v51  ;;  %v3556_v51 = vld [vmem:[#allocation2 + $0xbc] sm:$0xff] }
 0x3a3   : > { %3657 = vrot.lane.b32.xlu0 %v3554_v37, %s10309_s13 }
 0x3a4   : > { %v2905_v38 = vpop.permute.xlu1 %2904 }
 0x3a5   : > { %3013 = vst.msk [vmem:[#allocation3 + $0x1e0] sm:$0xff] %vm2997_vm5, %v2905_v38  ;;  %v3891_v3 = vpop.permute.xlu0 %3890 }
 0x3a6   : > { %4145 = vrot.lane.b32.xlu1 %v2813_v4, %s10312_s24  ;;  %4000 = vst.msk [vmem:[#allocation3 + $0x1c0] sm:$0xff] %vm3985_vm9, %v3891_v3  ;;  %v2815_v4 = vld [vmem:[#allocation2 + $0xb9] sm:$0xff] }
 0x3a7   : > { %4147 = vrot.lane.b32.xlu0 %v2814_v44, %s10312_s24  ;;  %v2816_v44 = vld [vmem:[#allocation2 + $0xc1] sm:$0xff] }
 0x3a8   : > { %v3154_v41 = vpop.permute.xlu1 %3153 }
 0x3a9   : > { %v2907_v42 = vpop.permute.xlu0 %2906 }
 0x3aa   : > { %4394 = vrot.lane.b32.xlu1 %v3061_v5, %s10313_s29  ;;  %3014 = vst.msk [vmem:[#allocation3 + $0x200] sm:$0xff] %vm2997_vm5, %v2907_v42  ;;  %v3063_v5 = vld [vmem:[#allocation2 + $0xc2] sm:$0xff] }
 0x3ab   : > { %3261 = vst.msk [vmem:[#allocation3 + $0x200] sm:$0xff] %vm3244_vm6, %v3154_v41  ;;  %4392 = vrot.lane.b32.xlu0 %v3060_v22, %s10313_s29  ;;  %v3062_v22 = vld [vmem:[#allocation2 + $0xba] sm:$0xff]  ;;  %v2817_v42 = vld [vmem:[#allocation2 + $0xc9] sm:$0xff] }
 0x3ac   : > { %v3399_v12 = vpop.permute.xlu1 %3398 }
 0x3ad   : > { %v3152_v29 = vpop.permute.xlu0 %3151 }
 0x3ae   : > { %4721 = vrot.lane.b32.xlu1 %v3554_v37, %s10308_s8  ;;  %3260 = vst.msk [vmem:[#allocation3 + $0x1e0] sm:$0xff] %vm3244_vm6, %v3152_v29 }
 0x3af   : > { %3507 = vst.msk [vmem:[#allocation3 + $0x1e0] sm:$0xff] %vm3491_vm7, %v3399_v12  ;;  %4723 = vrot.lane.b32.xlu0 %v3555_v6, %s10308_s8 }
 0x3b0   : > { %v3648_v7 = vpop.permute.xlu1 %3647 }
 0x3b1   : > { %v3401_v32 = vpop.permute.xlu0 %3400 }
 0x3b2   : > { %2920 = vrot.lane.b32.xlu1 %v2815_v4, %s10308_s8  ;;  %3508 = vst.msk [vmem:[#allocation3 + $0x200] sm:$0xff] %vm3491_vm7, %v3401_v32 }
 0x3b3   : > { %3755 = vst.msk [vmem:[#allocation3 + $0x200] sm:$0xff] %vm3738_vm8, %v3648_v7  ;;  %3906 = vrot.lane.b32.xlu0 %v11728_v24, %s10311_s19  ;;  %v3557_v24 = vld [vmem:[#allocation2 + $0xc4] sm:$0xff]  ;;  %v3065_v7 = vld [vmem:[#allocation2 + $0xd2] sm:$0xff] }
 0x3b4   : > { %v3889_v31 = vpop.permute.xlu1 %3888 }
 0x3b5   : > { %3999 = vst.msk [vmem:[#allocation3 + $0x1a0] sm:$0xff] %vm3985_vm9, %v3889_v31  ;;  %v3646_v18 = vpop.permute.xlu0 %3645  ;;  %v2818_v31 = vld [vmem:[#allocation2 + $0xd1] sm:$0xff] }
 0x3b6   : > { %3169 = vrot.lane.b32.xlu1 %v3063_v5, %s10307_s7  ;;  %3754 = vst.msk [vmem:[#allocation3 + $0x1e0] sm:$0xff] %vm3738_vm8, %v3646_v18 }
 0x3b7   : > { %2922 = vrot.lane.b32.xlu0 %v2816_v44, %s10308_s8 }
 0x3b8   : > { %v4134_v45 = vpop.permute.xlu1 %4133 }
 0x3b9   : > { %4245 = vst.msk [vmem:[#allocation3 + $0x180] sm:$0xff] %vm4232_vm10, %v4134_v45  ;;  %v4136_v60 = vpop.permute.xlu0 %4135 }
 0x3ba   : > { %3414 = vrot.lane.b32.xlu1 %v11751_v48, %s10310_s14  ;;  %4246 = vst.msk [vmem:[#allocation3 + $0x1a0] sm:$0xff] %vm4232_vm10, %v4136_v60 }
 0x3bb   : > { %3167 = vrot.lane.b32.xlu0 %v3062_v22, %s10307_s7 }
 0x3bc   : > { %v4383_v19 = vpop.permute.xlu1 %4382 }
 0x3bd   : > { %4493 = vst.msk [vmem:[#allocation3 + $0x1a0] sm:$0xff] %vm4479_vm11, %v4383_v19  ;;  %v4381_v6 = vpop.permute.xlu0 %4380 }
 0x3be   : > { %3663 = vrot.lane.b32.xlu1 %v3557_v24, %s10309_s13  ;;  %4492 = vst.msk [vmem:[#allocation3 + $0x180] sm:$0xff] %vm4479_vm11, %v4381_v6 }
 0x3bf   : > { %3416 = vrot.lane.b32.xlu0 %v11755_v53, %s10310_s14 }
 0x3c0   : > { %v4710_v17 = vpop.permute.xlu1 %4709 }
 0x3c1   : > { %4820 = vst.msk [vmem:[#allocation3 + $0x188] sm:$0xff] %vm2997_vm5, %v4710_v17  ;;  %v4712_v48 = vpop.permute.xlu0 %4711 }
 0x3c2   : > { %3904 = vrot.lane.b32.xlu1 %v11757_v30, %s10311_s19  ;;  %4821 = vst.msk [vmem:[#allocation3 + $0x1a8] sm:$0xff] %vm2997_vm5, %v4712_v48  ;;  %v3558_v48 = vld [vmem:[#allocation2 + $0xcc] sm:$0xff] }
 0x3c3   : > { %3661 = vrot.lane.b32.xlu0 %v3556_v51, %s10309_s13 }
 0x3c4   : > { %v2909_v55 = vpop.permute.xlu1 %2908 }
 0x3c5   : > { %3015 = vst.msk [vmem:[#allocation3 + $0x220] sm:$0xff] %vm2997_vm5, %v2909_v55  ;;  %v3895_v38 = vpop.permute.xlu0 %3894 }
 0x3c6   : > { %4149 = vrot.lane.b32.xlu1 %v2815_v4, %s10312_s24  ;;  %4002 = vst.msk [vmem:[#allocation3 + $0x200] sm:$0xff] %vm3985_vm9, %v3895_v38 }
 0x3c7   : > { %4151 = vrot.lane.b32.xlu0 %v2816_v44, %s10312_s24  ;;  %v3064_v44 = vld [vmem:[#allocation2 + $0xca] sm:$0xff] }
 0x3c8   : > { %v3158_v37 = vpop.permute.xlu1 %3157 }
 0x3c9   : > { %v2911_v53 = vpop.permute.xlu0 %2910 }
 0x3ca   : > { %4398 = vrot.lane.b32.xlu1 %v3063_v5, %s10313_s29  ;;  %3016 = vst.msk [vmem:[#allocation3 + $0x240] sm:$0xff] %vm2997_vm5, %v2911_v53  ;;  %v15108_v5 = vld [vmem:[#allocation5_spill] sm:$0xff] }
 0x3cb   : > { %3263 = vst.msk [vmem:[#allocation3 + $0x240] sm:$0xff] %vm3244_vm6, %v3158_v37  ;;  %4396 = vrot.lane.b32.xlu0 %v3062_v22, %s10313_s29  ;;  %v15109_v22 = vld [vmem:[#allocation47_spill] sm:$0xff] }
 0x3cc   : > { %v3403_v30 = vpop.permute.xlu1 %3402 }
 0x3cd   : > { %v3156_v3 = vpop.permute.xlu0 %3155 }
 0x3ce   : > { %4725 = vrot.lane.b32.xlu1 %v3556_v51, %s10308_s8  ;;  %3262 = vst.msk [vmem:[#allocation3 + $0x220] sm:$0xff] %vm3244_vm6, %v3156_v3  ;;  %v2819_v3 = vld [vmem:[#allocation2 + $0xd9] sm:$0xff] }
 0x3cf   : > { %3509 = vst.msk [vmem:[#allocation3 + $0x220] sm:$0xff] %vm3491_vm7, %v3403_v30  ;;  %4727 = vrot.lane.b32.xlu0 %v3557_v24, %s10308_s8  ;;  %v15110_v24 = vld [vmem:[#allocation6_spill] sm:$0xff] }
 0x3d0   : > { %v3652_v41 = vpop.permute.xlu1 %3651 }
 0x3d1   : > { %v3405_v12 = vpop.permute.xlu0 %3404 }
 0x3d2   : > { %2924 = vrot.lane.b32.xlu1 %v2817_v42, %s10308_s8  ;;  %3510 = vst.msk [vmem:[#allocation3 + $0x240] sm:$0xff] %vm3491_vm7, %v3405_v12  ;;  %v3067_v12 = vld [vmem:[#allocation2 + $0xe2] sm:$0xff] }
 0x3d3   : > { %3757 = vst.msk [vmem:[#allocation3 + $0x240] sm:$0xff] %vm3738_vm8, %v3652_v41  ;;  %3910 = vrot.lane.b32.xlu0 %v11766_v2, %s10311_s19  ;;  %v3559_v2 = vld [vmem:[#allocation2 + $0xd4] sm:$0xff] }
 0x3d4   : > { %v3893_v29 = vpop.permute.xlu1 %3892 }
 0x3d5   : > { %4001 = vst.msk [vmem:[#allocation3 + $0x1e0] sm:$0xff] %vm3985_vm9, %v3893_v29  ;;  %v3650_v4 = vpop.permute.xlu0 %3649  ;;  %v15111_v29 = vld [vmem:[#allocation48_spill] sm:$0xff] }
 0x3d6   : > { %3173 = vrot.lane.b32.xlu1 %v3065_v7, %s10307_s7  ;;  %3756 = vst.msk [vmem:[#allocation3 + $0x220] sm:$0xff] %vm3738_vm8, %v3650_v4 }
 0x3d7   : > { %2926 = vrot.lane.b32.xlu0 %v2818_v31, %s10308_s8 }
 0x3d8   : > { %v4138_v32 = vpop.permute.xlu1 %4137 }
 0x3d9   : > { %4247 = vst.msk [vmem:[#allocation3 + $0x1c0] sm:$0xff] %vm4232_vm10, %v4138_v32  ;;  %v4140_v18 = vpop.permute.xlu0 %4139  ;;  %v2820_v32 = vld [vmem:[#allocation2 + $0xe1] sm:$0xff] }
 0x3da   : > { %3418 = vrot.lane.b32.xlu1 %v15108_v5, %s10310_s14  ;;  %4248 = vst.msk [vmem:[#allocation3 + $0x1e0] sm:$0xff] %vm4232_vm10, %v4140_v18 }
 0x3db   : > { %3171 = vrot.lane.b32.xlu0 %v3064_v44, %s10307_s7 }
 0x3dc   : > { %v4387_v45 = vpop.permute.xlu1 %4386 }
 0x3dd   : > { %4495 = vst.msk [vmem:[#allocation3 + $0x1e0] sm:$0xff] %vm4479_vm11, %v4387_v45  ;;  %v4385_v60 = vpop.permute.xlu0 %4384  ;;  %v3066_v45 = vld [vmem:[#allocation2 + $0xda] sm:$0xff] }
 0x3de   : > { %3667 = vrot.lane.b32.xlu1 %v3559_v2, %s10309_s13  ;;  %4494 = vst.msk [vmem:[#allocation3 + $0x1c0] sm:$0xff] %vm4479_vm11, %v4385_v60 }
 0x3df   : > { %3420 = vrot.lane.b32.xlu0 %v15109_v22, %s10310_s14  ;;  %v15114_v22 = vld [vmem:[#allocation8_spill] sm:$0xff] }
 0x3e0   : > { %v4714_v19 = vpop.permute.xlu1 %4713 }
 0x3e1   : > { %4822 = vst.msk [vmem:[#allocation3 + $0x1c8] sm:$0xff] %vm2997_vm5, %v4714_v19  ;;  %v4716_v6 = vpop.permute.xlu0 %4715  ;;  %v15113_v19 = vld [vmem:[#allocation49_spill] sm:$0xff] }
 0x3e2   : > { %3908 = vrot.lane.b32.xlu1 %v15110_v24, %s10311_s19  ;;  %4823 = vst.msk [vmem:[#allocation3 + $0x1e8] sm:$0xff] %vm2997_vm5, %v4716_v6 }
 0x3e3   : > { %3665 = vrot.lane.b32.xlu0 %v3558_v48, %s10309_s13 }
 0x3e4   : > { %v2913_v17 = vpop.permute.xlu1 %2912 }
 0x3e5   : > { %3017 = vst.msk [vmem:[#allocation3 + $0x260] sm:$0xff] %vm2997_vm5, %v2913_v17  ;;  %v3899_v55 = vpop.permute.xlu0 %3898  ;;  %v3560_v17 = vld [vmem:[#allocation2 + $0xdc] sm:$0xff] }
 0x3e6   : > { %4153 = vrot.lane.b32.xlu1 %v2817_v42, %s10312_s24  ;;  %4004 = vst.msk [vmem:[#allocation3 + $0x240] sm:$0xff] %vm3985_vm9, %v3899_v55 }
 0x3e7   : > { %4155 = vrot.lane.b32.xlu0 %v2818_v31, %s10312_s24  ;;  %v15112_v31 = vld [vmem:[#allocation7_spill] sm:$0xff] }
 0x3e8   : > { %v3162_v51 = vpop.permute.xlu1 %3161 }
 0x3e9   : > { %v2915_v38 = vpop.permute.xlu0 %2914 }
 0x3ea   : > { %4402 = vrot.lane.b32.xlu1 %v3065_v7, %s10313_s29  ;;  %3018 = vst.msk [vmem:[#allocation3 + $0x280] sm:$0xff] %vm2997_vm5, %v2915_v38 }
 0x3eb   : > { %3265 = vst.msk [vmem:[#allocation3 + $0x280] sm:$0xff] %vm3244_vm6, %v3162_v51  ;;  %4400 = vrot.lane.b32.xlu0 %v3064_v44, %s10313_s29  ;;  %v3561_v44 = vld [vmem:[#allocation2 + $0xe4] sm:$0xff] }
 0x3ec   : > { %v3407_v37 = vpop.permute.xlu1 %3406 }
 0x3ed   : > { %v3160_v53 = vpop.permute.xlu0 %3159 }
 0x3ee   : > { %4729 = vrot.lane.b32.xlu1 %v3558_v48, %s10308_s8  ;;  %3264 = vst.msk [vmem:[#allocation3 + $0x260] sm:$0xff] %vm3244_vm6, %v3160_v53 }
 0x3ef   : > { %3511 = vst.msk [vmem:[#allocation3 + $0x260] sm:$0xff] %vm3491_vm7, %v3407_v37  ;;  %4731 = vrot.lane.b32.xlu0 %v3559_v2, %s10308_s8 }
 0x3f0   : > { %v3656_v30 = vpop.permute.xlu1 %3655 }
 0x3f1   : > { %v3409_v41 = vpop.permute.xlu0 %3408 }
 0x3f2   : > { %2928 = vrot.lane.b32.xlu1 %v2819_v3, %s10308_s8  ;;  %3512 = vst.msk [vmem:[#allocation3 + $0x280] sm:$0xff] %vm3491_vm7, %v3409_v41 }
 0x3f3   : > { %3759 = vst.msk [vmem:[#allocation3 + $0x280] sm:$0xff] %vm3738_vm8, %v3656_v30  ;;  %3914 = vrot.lane.b32.xlu0 %v15111_v29, %s10311_s19  ;;  %v2821_v30 = vld [vmem:[#allocation2 + $0xe9] sm:$0xff] }
 0x3f4   : > { %v3897_v42 = vpop.permute.xlu1 %3896 }
 0x3f5   : > { %4003 = vst.msk [vmem:[#allocation3 + $0x220] sm:$0xff] %vm3985_vm9, %v3897_v42  ;;  %v3654_v7 = vpop.permute.xlu0 %3653  ;;  %v3069_v42 = vld [vmem:[#allocation2 + $0xf2] sm:$0xff] }
 0x3f6   : > { %3177 = vrot.lane.b32.xlu1 %v3067_v12, %s10307_s7  ;;  %3758 = vst.msk [vmem:[#allocation3 + $0x260] sm:$0xff] %vm3738_vm8, %v3654_v7 }
 0x3f7   : > { %2930 = vrot.lane.b32.xlu0 %v2820_v32, %s10308_s8 }
 0x3f8   : > { %v4142_v4 = vpop.permute.xlu1 %4141 }
 0x3f9   : > { %4249 = vst.msk [vmem:[#allocation3 + $0x200] sm:$0xff] %vm4232_vm10, %v4142_v4  ;;  %v4144_v5 = vpop.permute.xlu0 %4143  ;;  %v2822_v4 = vld [vmem:[#allocation2 + $0xf1] sm:$0xff] }
 0x3fa   : > { %3422 = vrot.lane.b32.xlu1 %v15112_v31, %s10310_s14  ;;  %4250 = vst.msk [vmem:[#allocation3 + $0x220] sm:$0xff] %vm4232_vm10, %v4144_v5 }
 0x3fb   : > { %3175 = vrot.lane.b32.xlu0 %v3066_v45, %s10307_s7 }
 0x3fc   : > { %v4391_v18 = vpop.permute.xlu1 %4390 }
 0x3fd   : > { %4497 = vst.msk [vmem:[#allocation3 + $0x220] sm:$0xff] %vm4479_vm11, %v4391_v18  ;;  %v4389_v2 = vpop.permute.xlu0 %4388  ;;  %v3068_v18 = vld [vmem:[#allocation2 + $0xea] sm:$0xff] }
 0x3fe   : > { %3671 = vrot.lane.b32.xlu1 %v3561_v44, %s10309_s13  ;;  %4496 = vst.msk [vmem:[#allocation3 + $0x200] sm:$0xff] %vm4479_vm11, %v4389_v2 }
 0x3ff   : > { %3424 = vrot.lane.b32.xlu0 %v15113_v19, %s10310_s14  ;;  %v15118_v19 = vld [vmem:[#allocation10_spill] sm:$0xff] }
 0x400   : > { %v4718_v60 = vpop.permute.xlu1 %4717 }
 0x401   : > { %4824 = vst.msk [vmem:[#allocation3 + $0x208] sm:$0xff] %vm2997_vm5, %v4718_v60  ;;  %v4720_v24 = vpop.permute.xlu0 %4719  ;;  %v15117_v60 = vld [vmem:[#allocation51_spill] sm:$0xff] }
 0x402   : > { %3912 = vrot.lane.b32.xlu1 %v15114_v22, %s10311_s19  ;;  %4825 = vst.msk [vmem:[#allocation3 + $0x228] sm:$0xff] %vm2997_vm5, %v4720_v24 }
 0x403   : > { %3669 = vrot.lane.b32.xlu0 %v3560_v17, %s10309_s13 }
 0x404   : > { %v2917_v6 = vpop.permute.xlu1 %2916 }
 0x405   : > { %3019 = vst.msk [vmem:[#allocation3 + $0x2a0] sm:$0xff] %vm2997_vm5, %v2917_v6  ;;  %v3903_v48 = vpop.permute.xlu0 %3902  ;;  %v3562_v6 = vld [vmem:[#allocation2 + $0xec] sm:$0xff] }
 0x406   : > { %4157 = vrot.lane.b32.xlu1 %v2819_v3, %s10312_s24  ;;  %4006 = vst.msk [vmem:[#allocation3 + $0x280] sm:$0xff] %vm3985_vm9, %v3903_v48 }
 0x407   : > { %4159 = vrot.lane.b32.xlu0 %v2820_v32, %s10312_s24  ;;  %v15116_v32 = vld [vmem:[#allocation9_spill] sm:$0xff] }
 0x408   : > { %v3166_v55 = vpop.permute.xlu1 %3165 }
 0x409   : > { %v2919_v51 = vpop.permute.xlu0 %2918 }
 0x40a   : > { %4406 = vrot.lane.b32.xlu1 %v3067_v12, %s10313_s29  ;;  %3020 = vst.msk [vmem:[#allocation3 + $0x2c0] sm:$0xff] %vm2997_vm5, %v2919_v51  ;;  %v15115_v12 = vld [vmem:[#allocation50_spill] sm:$0xff] }
 0x40b   : > { %3267 = vst.msk [vmem:[#allocation3 + $0x2c0] sm:$0xff] %vm3244_vm6, %v3166_v55  ;;  %4404 = vrot.lane.b32.xlu0 %v3066_v45, %s10313_s29  ;;  %v3563_v45 = vld [vmem:[#allocation2 + $0xf4] sm:$0xff] }
 0x40c   : > { %v3411_v38 = vpop.permute.xlu1 %3410 }
 0x40d   : > { %v3164_v37 = vpop.permute.xlu0 %3163 }
 0x40e   : > { %4733 = vrot.lane.b32.xlu1 %v3560_v17, %s10308_s8  ;;  %3266 = vst.msk [vmem:[#allocation3 + $0x2a0] sm:$0xff] %vm3244_vm6, %v3164_v37 }
 0x40f   : > { %3513 = vst.msk [vmem:[#allocation3 + $0x2a0] sm:$0xff] %vm3491_vm7, %v3411_v38  ;;  %4735 = vrot.lane.b32.xlu0 %v3561_v44, %s10308_s8 }
 0x410   : > { %v3660_v53 = vpop.permute.xlu1 %3659 }
 0x411   : > { %v3413_v3 = vpop.permute.xlu0 %3412 }
 0x412   : > { %2932 = vrot.lane.b32.xlu1 %v2821_v30, %s10308_s8  ;;  %3514 = vst.msk [vmem:[#allocation3 + $0x2c0] sm:$0xff] %vm3491_vm7, %v3413_v3 }
 0x413   : > { %3761 = vst.msk [vmem:[#allocation3 + $0x2c0] sm:$0xff] %vm3738_vm8, %v3660_v53  ;;  %3918 = vrot.lane.b32.xlu0 %v15115_v12, %s10311_s19  ;;  %v2823_v53 = vld [vmem:[#allocation2 + $0xf9] sm:$0xff] }
 0x414   : > { %v3901_v41 = vpop.permute.xlu1 %3900 }
 0x415   : > { %4005 = vst.msk [vmem:[#allocation3 + $0x260] sm:$0xff] %vm3985_vm9, %v3901_v41  ;;  %v3658_v29 = vpop.permute.xlu0 %3657  ;;  %v3071_v41 = vld [vmem:[#allocation2 + $0x102] sm:$0xff] }
 0x416   : > { %3181 = vrot.lane.b32.xlu1 %v3069_v42, %s10307_s7  ;;  %3760 = vst.msk [vmem:[#allocation3 + $0x2a0] sm:$0xff] %vm3738_vm8, %v3658_v29 }
 0x417   : > { %2934 = vrot.lane.b32.xlu0 %v2822_v4, %s10308_s8 }
 0x418   : > { %v4146_v7 = vpop.permute.xlu1 %4145 }
 0x419   : > { %4251 = vst.msk [vmem:[#allocation3 + $0x240] sm:$0xff] %vm4232_vm10, %v4146_v7  ;;  %v4148_v31 = vpop.permute.xlu0 %4147  ;;  %v2824_v7 = vld [vmem:[#allocation2 + $0x101] sm:$0xff] }
 0x41a   : > { %3426 = vrot.lane.b32.xlu1 %v15116_v32, %s10310_s14  ;;  %4252 = vst.msk [vmem:[#allocation3 + $0x260] sm:$0xff] %vm4232_vm10, %v4148_v31 }
 0x41b   : > { %3179 = vrot.lane.b32.xlu0 %v3068_v18, %s10307_s7 }
 0x41c   : > { %v4395_v5 = vpop.permute.xlu1 %4394 }
 0x41d   : > { %4499 = vst.msk [vmem:[#allocation3 + $0x260] sm:$0xff] %vm4479_vm11, %v4395_v5  ;;  %v4393_v44 = vpop.permute.xlu0 %4392  ;;  %v3070_v5 = vld [vmem:[#allocation2 + $0xfa] sm:$0xff] }
 0x41e   : > { %3675 = vrot.lane.b32.xlu1 %v3563_v45, %s10309_s13  ;;  %4498 = vst.msk [vmem:[#allocation3 + $0x240] sm:$0xff] %vm4479_vm11, %v4393_v44 }
 0x41f   : > { %3428 = vrot.lane.b32.xlu0 %v15117_v60, %s10310_s14  ;;  %v15122_v60 = vld [vmem:[#allocation12_spill] sm:$0xff] }
 0x420   : > { %v4722_v2 = vpop.permute.xlu1 %4721 }
 0x421   : > { %4826 = vst.msk [vmem:[#allocation3 + $0x248] sm:$0xff] %vm2997_vm5, %v4722_v2  ;;  %v4724_v22 = vpop.permute.xlu0 %4723  ;;  %v15121_v2 = vld [vmem:[#allocation53_spill] sm:$0xff] }
 0x422   : > { %3916 = vrot.lane.b32.xlu1 %v15118_v19, %s10311_s19  ;;  %4827 = vst.msk [vmem:[#allocation3 + $0x268] sm:$0xff] %vm2997_vm5, %v4724_v22 }
 0x423   : > { %3673 = vrot.lane.b32.xlu0 %v3562_v6, %s10309_s13 }
 0x424   : > { %v2921_v24 = vpop.permute.xlu1 %2920 }
 0x425   : > { %3021 = vst.msk [vmem:[#allocation3 + $0x2e0] sm:$0xff] %vm2997_vm5, %v2921_v24  ;;  %v3907_v17 = vpop.permute.xlu0 %3906  ;;  %v3564_v24 = vld [vmem:[#allocation2 + $0xfc] sm:$0xff] }
 0x426   : > { %4161 = vrot.lane.b32.xlu1 %v2821_v30, %s10312_s24  ;;  %4008 = vst.msk [vmem:[#allocation3 + $0x2c0] sm:$0xff] %vm3985_vm9, %v3907_v17 }
 0x427   : > { %4163 = vrot.lane.b32.xlu0 %v2822_v4, %s10312_s24  ;;  %v15120_v4 = vld [vmem:[#allocation11_spill] sm:$0xff] }
 0x428   : > { %v3170_v48 = vpop.permute.xlu1 %3169 }
 0x429   : > { %v2923_v55 = vpop.permute.xlu0 %2922 }
 0x42a   : > { %4410 = vrot.lane.b32.xlu1 %v3069_v42, %s10313_s29  ;;  %3022 = vst.msk [vmem:[#allocation3 + $0x300] sm:$0xff] %vm2997_vm5, %v2923_v55  ;;  %v15119_v42 = vld [vmem:[#allocation52_spill] sm:$0xff] }
 0x42b   : > { %3269 = vst.msk [vmem:[#allocation3 + $0x300] sm:$0xff] %vm3244_vm6, %v3170_v48  ;;  %4408 = vrot.lane.b32.xlu0 %v3068_v18, %s10313_s29  ;;  %v3565_v18 = vld [vmem:[#allocation2 + $0x104] sm:$0xff] }
 0x42c   : > { %v3415_v51 = vpop.permute.xlu1 %3414 }
 0x42d   : > { %v3168_v38 = vpop.permute.xlu0 %3167 }
 0x42e   : > { %4737 = vrot.lane.b32.xlu1 %v3562_v6, %s10308_s8  ;;  %3268 = vst.msk [vmem:[#allocation3 + $0x2e0] sm:$0xff] %vm3244_vm6, %v3168_v38 }
 0x42f   : > { %3515 = vst.msk [vmem:[#allocation3 + $0x2e0] sm:$0xff] %vm3491_vm7, %v3415_v51  ;;  %4739 = vrot.lane.b32.xlu0 %v3563_v45, %s10308_s8 }
 0x430   : > { %v3664_v37 = vpop.permute.xlu1 %3663 }
 0x431   : > { %v3417_v30 = vpop.permute.xlu0 %3416 }
 0x432   : > { %2936 = vrot.lane.b32.xlu1 %v2823_v53, %s10308_s8  ;;  %3516 = vst.msk [vmem:[#allocation3 + $0x300] sm:$0xff] %vm3491_vm7, %v3417_v30 }
 0x433   : > { %3763 = vst.msk [vmem:[#allocation3 + $0x300] sm:$0xff] %vm3738_vm8, %v3664_v37  ;;  %3922 = vrot.lane.b32.xlu0 %v15119_v42, %s10311_s19  ;;  %v2825_v37 = vld [vmem:[#allocation2 + $0x109] sm:$0xff] }
 0x434   : > { %v3905_v3 = vpop.permute.xlu1 %3904 }
 0x435   : > { %4007 = vst.msk [vmem:[#allocation3 + $0x2a0] sm:$0xff] %vm3985_vm9, %v3905_v3  ;;  %v3662_v12 = vpop.permute.xlu0 %3661  ;;  %v3073_v3 = vld [vmem:[#allocation2 + $0x112] sm:$0xff] }
 0x436   : > { %3185 = vrot.lane.b32.xlu1 %v3071_v41, %s10307_s7  ;;  %3762 = vst.msk [vmem:[#allocation3 + $0x2e0] sm:$0xff] %vm3738_vm8, %v3662_v12 }
 0x437   : > { %2938 = vrot.lane.b32.xlu0 %v2824_v7, %s10308_s8 }
 0x438   : > { %v4150_v29 = vpop.permute.xlu1 %4149 }
 0x439   : > { %4253 = vst.msk [vmem:[#allocation3 + $0x280] sm:$0xff] %vm4232_vm10, %v4150_v29  ;;  %v4152_v32 = vpop.permute.xlu0 %4151  ;;  %v2826_v29 = vld [vmem:[#allocation2 + $0x111] sm:$0xff] }
 0x43a   : > { %3430 = vrot.lane.b32.xlu1 %v15120_v4, %s10310_s14  ;;  %4254 = vst.msk [vmem:[#allocation3 + $0x2a0] sm:$0xff] %vm4232_vm10, %v4152_v32 }
 0x43b   : > { %3183 = vrot.lane.b32.xlu0 %v3070_v5, %s10307_s7 }
 0x43c   : > { %v4399_v31 = vpop.permute.xlu1 %4398 }
 0x43d   : > { %4501 = vst.msk [vmem:[#allocation3 + $0x2a0] sm:$0xff] %vm4479_vm11, %v4399_v31  ;;  %v4397_v45 = vpop.permute.xlu0 %4396  ;;  %v3072_v31 = vld [vmem:[#allocation2 + $0x10a] sm:$0xff] }
 0x43e   : > { %3679 = vrot.lane.b32.xlu1 %v3565_v18, %s10309_s13  ;;  %4500 = vst.msk [vmem:[#allocation3 + $0x280] sm:$0xff] %vm4479_vm11, %v4397_v45 }
 0x43f   : > { %3432 = vrot.lane.b32.xlu0 %v15121_v2, %s10310_s14  ;;  %v15126_v2 = vld [vmem:[#allocation14_spill] sm:$0xff] }
 0x440   : > { %v4726_v44 = vpop.permute.xlu1 %4725 }
 0x441   : > { %4828 = vst.msk [vmem:[#allocation3 + $0x288] sm:$0xff] %vm2997_vm5, %v4726_v44  ;;  %v4728_v19 = vpop.permute.xlu0 %4727  ;;  %v15125_v44 = vld [vmem:[#allocation55_spill] sm:$0xff] }
 0x442   : > { %3920 = vrot.lane.b32.xlu1 %v15122_v60, %s10311_s19  ;;  %4829 = vst.msk [vmem:[#allocation3 + $0x2a8] sm:$0xff] %vm2997_vm5, %v4728_v19 }
 0x443   : > { %3677 = vrot.lane.b32.xlu0 %v3564_v24, %s10309_s13 }
 0x444   : > { %v2925_v22 = vpop.permute.xlu1 %2924 }
 0x445   : > { %3023 = vst.msk [vmem:[#allocation3 + $0x320] sm:$0xff] %vm2997_vm5, %v2925_v22  ;;  %v3911_v6 = vpop.permute.xlu0 %3910 }
 0x446   : > { %4165 = vrot.lane.b32.xlu1 %v2823_v53, %s10312_s24  ;;  %4010 = vst.msk [vmem:[#allocation3 + $0x300] sm:$0xff] %vm3985_vm9, %v3911_v6 }
 0x447   : > { %4167 = vrot.lane.b32.xlu0 %v2824_v7, %s10312_s24  ;;  %v15124_v7 = vld [vmem:[#allocation13_spill] sm:$0xff] }
 0x448   : > { %v3174_v17 = vpop.permute.xlu1 %3173 }
 0x449   : > { %v2927_v48 = vpop.permute.xlu0 %2926 }
 0x44a   : > { %4414 = vrot.lane.b32.xlu1 %v3071_v41, %s10313_s29  ;;  %3024 = vst.msk [vmem:[#allocation3 + $0x340] sm:$0xff] %vm2997_vm5, %v2927_v48  ;;  %v15123_v41 = vld [vmem:[#allocation54_spill] sm:$0xff] }
 0x44b   : > { %3271 = vst.msk [vmem:[#allocation3 + $0x340] sm:$0xff] %vm3244_vm6, %v3174_v17  ;;  %4412 = vrot.lane.b32.xlu0 %v3070_v5, %s10313_s29  ;;  %v3567_v5 = vld [vmem:[#allocation2 + $0x114] sm:$0xff] }
 0x44c   : > { %v3419_v55 = vpop.permute.xlu1 %3418 }
 0x44d   : > { %v3172_v51 = vpop.permute.xlu0 %3171 }
 0x44e   : > { %4741 = vrot.lane.b32.xlu1 %v3564_v24, %s10308_s8  ;;  %3270 = vst.msk [vmem:[#allocation3 + $0x320] sm:$0xff] %vm3244_vm6, %v3172_v51  ;;  %v3566_v24 = vld [vmem:[#allocation2 + $0x10c] sm:$0xff] }
 0x44f   : > { %3517 = vst.msk [vmem:[#allocation3 + $0x320] sm:$0xff] %vm3491_vm7, %v3419_v55  ;;  %4743 = vrot.lane.b32.xlu0 %v3565_v18, %s10308_s8 }
 0x450   : > { %v3668_v38 = vpop.permute.xlu1 %3667 }
 0x451   : > { %v3421_v53 = vpop.permute.xlu0 %3420 }
 0x452   : > { %2940 = vrot.lane.b32.xlu1 %v2825_v37, %s10308_s8  ;;  %3518 = vst.msk [vmem:[#allocation3 + $0x340] sm:$0xff] %vm3491_vm7, %v3421_v53 }
 0x453   : > { %3765 = vst.msk [vmem:[#allocation3 + $0x340] sm:$0xff] %vm3738_vm8, %v3668_v38  ;;  %3926 = vrot.lane.b32.xlu0 %v15123_v41, %s10311_s19 }
 0x454   : > { %v3909_v30 = vpop.permute.xlu1 %3908 }
 0x455   : > { %4009 = vst.msk [vmem:[#allocation3 + $0x2e0] sm:$0xff] %vm3985_vm9, %v3909_v30  ;;  %v3666_v42 = vpop.permute.xlu0 %3665 }
 0x456   : > { %3189 = vrot.lane.b32.xlu1 %v3073_v3, %s10307_s7  ;;  %3764 = vst.msk [vmem:[#allocation3 + $0x320] sm:$0xff] %vm3738_vm8, %v3666_v42  ;;  %v15127_v42 = vld [vmem:[#allocation56_spill] sm:$0xff] }
 0x457   : > { %2942 = vrot.lane.b32.xlu0 %v2826_v29, %s10308_s8 }
 0x458   : > { %v4154_v12 = vpop.permute.xlu1 %4153 }
 0x459   : > { %4255 = vst.msk [vmem:[#allocation3 + $0x2c0] sm:$0xff] %vm4232_vm10, %v4154_v12  ;;  %v4156_v4 = vpop.permute.xlu0 %4155 }
 0x45a   : > { %3434 = vrot.lane.b32.xlu1 %v15124_v7, %s10310_s14  ;;  %4256 = vst.msk [vmem:[#allocation3 + $0x2e0] sm:$0xff] %vm4232_vm10, %v4156_v4  ;;  %v2828_v7 = vld [vmem:[#allocation2 + $0x121] sm:$0xff] }
 0x45b   : > { %3187 = vrot.lane.b32.xlu0 %v3072_v31, %s10307_s7 }
 0x45c   : > { %v4403_v32 = vpop.permute.xlu1 %4402 }
 0x45d   : > { %4503 = vst.msk [vmem:[#allocation3 + $0x2e0] sm:$0xff] %vm4479_vm11, %v4403_v32  ;;  %v4401_v18 = vpop.permute.xlu0 %4400 }
 0x45e   : > { %3683 = vrot.lane.b32.xlu1 %v3567_v5, %s10309_s13  ;;  %4502 = vst.msk [vmem:[#allocation3 + $0x2c0] sm:$0xff] %vm4479_vm11, %v4401_v18 }
 0x45f   : > { %3436 = vrot.lane.b32.xlu0 %v15125_v44, %s10310_s14  ;;  %v15129_v44 = vld [vmem:[#allocation57_spill] sm:$0xff] }
 0x460   : > { %v4730_v45 = vpop.permute.xlu1 %4729 }
 0x461   : > { %4830 = vst.msk [vmem:[#allocation3 + $0x2c8] sm:$0xff] %vm2997_vm5, %v4730_v45  ;;  %v4732_v19 = vpop.permute.xlu0 %4731 }
 0x462   : > { %3924 = vrot.lane.b32.xlu1 %v15126_v2, %s10311_s19  ;;  %4831 = vst.msk [vmem:[#allocation3 + $0x2e8] sm:$0xff] %vm2997_vm5, %v4732_v19 }
 0x463   : > { %3681 = vrot.lane.b32.xlu0 %v3566_v24, %s10309_s13 }
 0x464   : > { %v2929_v22 = vpop.permute.xlu1 %2928 }
 0x465   : > { %3025 = vst.msk [vmem:[#allocation3 + $0x360] sm:$0xff] %vm2997_vm5, %v2929_v22  ;;  %v3915_v6 = vpop.permute.xlu0 %3914 }
 0x466   : > { %4169 = vrot.lane.b32.xlu1 %v2825_v37, %s10312_s24  ;;  %4012 = vst.msk [vmem:[#allocation3 + $0x340] sm:$0xff] %vm3985_vm9, %v3915_v6  ;;  %v2827_v37 = vld [vmem:[#allocation2 + $0x119] sm:$0xff] }
 0x467   : > { %4171 = vrot.lane.b32.xlu0 %v2826_v29, %s10312_s24 }
 0x468   : > { %v3178_v17 = vpop.permute.xlu1 %3177 }
 0x469   : > { %v2931_v48 = vpop.permute.xlu0 %2930 }
 0x46a   : > { %4418 = vrot.lane.b32.xlu1 %v3073_v3, %s10313_s29  ;;  %3026 = vst.msk [vmem:[#allocation3 + $0x380] sm:$0xff] %vm2997_vm5, %v2931_v48  ;;  %v3075_v3 = vld [vmem:[#allocation2 + $0x122] sm:$0xff] }
 0x46b   : > { %3273 = vst.msk [vmem:[#allocation3 + $0x380] sm:$0xff] %vm3244_vm6, %v3178_v17  ;;  %4416 = vrot.lane.b32.xlu0 %v3072_v31, %s10313_s29  ;;  %v3074_v31 = vld [vmem:[#allocation2 + $0x11a] sm:$0xff] }
 0x46c   : > { %v3423_v55 = vpop.permute.xlu1 %3422 }
 0x46d   : > { %v3176_v51 = vpop.permute.xlu0 %3175 }
 0x46e   : > { %4745 = vrot.lane.b32.xlu1 %v3566_v24, %s10308_s8  ;;  %3272 = vst.msk [vmem:[#allocation3 + $0x360] sm:$0xff] %vm3244_vm6, %v3176_v51  ;;  %v3568_v24 = vld [vmem:[#allocation2 + $0x11c] sm:$0xff] }
 0x46f   : > { %3519 = vst.msk [vmem:[#allocation3 + $0x360] sm:$0xff] %vm3491_vm7, %v3423_v55  ;;  %4747 = vrot.lane.b32.xlu0 %v3567_v5, %s10308_s8  ;;  %v3569_v5 = vld [vmem:[#allocation2 + $0x124] sm:$0xff] }
 0x470   : > { %v3672_v38 = vpop.permute.xlu1 %3671 }
 0x471   : > { %v3425_v53 = vpop.permute.xlu0 %3424 }
 0x472   : > { %2944 = vrot.lane.b32.xlu1 %v2827_v37, %s10308_s8  ;;  %3520 = vst.msk [vmem:[#allocation3 + $0x380] sm:$0xff] %vm3491_vm7, %v3425_v53 }
 0x473   : > { %3767 = vst.msk [vmem:[#allocation3 + $0x380] sm:$0xff] %vm3738_vm8, %v3672_v38  ;;  %3930 = vrot.lane.b32.xlu0 %v15127_v42, %s10311_s19 }
 0x474   : > { %v3913_v30 = vpop.permute.xlu1 %3912 }
 0x475   : > { %4011 = vst.msk [vmem:[#allocation3 + $0x320] sm:$0xff] %vm3985_vm9, %v3913_v30  ;;  %v3670_v12 = vpop.permute.xlu0 %3669 }
 0x476   : > { %3193 = vrot.lane.b32.xlu1 %v3075_v3, %s10307_s7  ;;  %3766 = vst.msk [vmem:[#allocation3 + $0x360] sm:$0xff] %vm3738_vm8, %v3670_v12  ;;  %v15130_v12 = vld [vmem:[#allocation16_spill] sm:$0xff] }
 0x477   : > { %2946 = vrot.lane.b32.xlu0 %v2828_v7, %s10308_s8 }
 0x478   : > { %v4158_v29 = vpop.permute.xlu1 %4157 }
 0x479   : > { %4257 = vst.msk [vmem:[#allocation3 + $0x300] sm:$0xff] %vm4232_vm10, %v4158_v29  ;;  %v4160_v4 = vpop.permute.xlu0 %4159 }
 0x47a   : > { %3438 = vrot.lane.b32.xlu1 %v11993_v21, %s10310_s14  ;;  %4258 = vst.msk [vmem:[#allocation3 + $0x320] sm:$0xff] %vm4232_vm10, %v4160_v4  ;;  %v15128_v21 = vld [vmem:[#allocation15_spill] sm:$0xff]  ;;  %v12949_v4 = vld [vmem:[#allocation2 + $0x131] sm:$0xff] }
 0x47b   : > { %3191 = vrot.lane.b32.xlu0 %v3074_v31, %s10307_s7 }
 0x47c   : > { %v4407_v32 = vpop.permute.xlu1 %4406 }
 0x47d   : > { %4505 = vst.msk [vmem:[#allocation3 + $0x320] sm:$0xff] %vm4479_vm11, %v4407_v32  ;;  %v4405_v18 = vpop.permute.xlu0 %4404 }
 0x47e   : > { %3687 = vrot.lane.b32.xlu1 %v3569_v5, %s10309_s13  ;;  %4504 = vst.msk [vmem:[#allocation3 + $0x300] sm:$0xff] %vm4479_vm11, %v4405_v18  ;;  %v3571_v18 = vld [vmem:[#allocation2 + $0x134] sm:$0xff] }
 0x47f   : > { %3440 = vrot.lane.b32.xlu0 %v15128_v21, %s10310_s14 }
 0x480   : > { %v4734_v45 = vpop.permute.xlu1 %4733 }
 0x481   : > { %4832 = vst.msk [vmem:[#allocation3 + $0x308] sm:$0xff] %vm2997_vm5, %v4734_v45  ;;  %v4736_v19 = vpop.permute.xlu0 %4735 }
 0x482   : > { %3928 = vrot.lane.b32.xlu1 %v15129_v44, %s10311_s19  ;;  %4833 = vst.msk [vmem:[#allocation3 + $0x328] sm:$0xff] %vm2997_vm5, %v4736_v19  ;;  %v15132_v19 = vld [vmem:[#allocation89_spill] sm:$0xff] }
 0x483   : > { %3685 = vrot.lane.b32.xlu0 %v3568_v24, %s10309_s13 }
 0x484   : > { %v2933_v22 = vpop.permute.xlu1 %2932 }
 0x485   : > { %3027 = vst.msk [vmem:[#allocation3 + $0x3a0] sm:$0xff] %vm2997_vm5, %v2933_v22  ;;  %v3919_v6 = vpop.permute.xlu0 %3918 }
 0x486   : > { %4173 = vrot.lane.b32.xlu1 %v2827_v37, %s10312_s24  ;;  %4014 = vst.msk [vmem:[#allocation3 + $0x380] sm:$0xff] %vm3985_vm9, %v3919_v6  ;;  %v2829_v37 = vld [vmem:[#allocation2 + $0x129] sm:$0xff] }
 0x487   : > { %4175 = vrot.lane.b32.xlu0 %v2828_v7, %s10312_s24  ;;  %v3570_v6 = vld [vmem:[#allocation2 + $0x12c] sm:$0xff] }
 0x488   : > { %v3182_v17 = vpop.permute.xlu1 %3181 }
 0x489   : > { %v2935_v48 = vpop.permute.xlu0 %2934 }
 0x48a   : > { %4422 = vrot.lane.b32.xlu1 %v3075_v3, %s10313_s29  ;;  %3028 = vst.msk [vmem:[#allocation3 + $0x3c0] sm:$0xff] %vm2997_vm5, %v2935_v48  ;;  %v3077_v3 = vld [vmem:[#allocation2 + $0x132] sm:$0xff] }
 0x48b   : > { %3275 = vst.msk [vmem:[#allocation3 + $0x3c0] sm:$0xff] %vm3244_vm6, %v3182_v17  ;;  %4420 = vrot.lane.b32.xlu0 %v3074_v31, %s10313_s29 }
 0x48c   : > { %v3427_v55 = vpop.permute.xlu1 %3426 }
 0x48d   : > { %v3180_v51 = vpop.permute.xlu0 %3179 }
 0x48e   : > { %4749 = vrot.lane.b32.xlu1 %v3568_v24, %s10308_s8  ;;  %3274 = vst.msk [vmem:[#allocation3 + $0x3a0] sm:$0xff] %vm3244_vm6, %v3180_v51 }
 0x48f   : > { %3521 = vst.msk [vmem:[#allocation3 + $0x3a0] sm:$0xff] %vm3491_vm7, %v3427_v55  ;;  %4751 = vrot.lane.b32.xlu0 %v3569_v5, %s10308_s8  ;;  %v3076_v5 = vld [vmem:[#allocation2 + $0x12a] sm:$0xff] }
 0x490   : > { %v3676_v38 = vpop.permute.xlu1 %3675 }
 0x491   : > { %v3429_v53 = vpop.permute.xlu0 %3428 }
 0x492   : > { %2948 = vrot.lane.b32.xlu1 %v2829_v37, %s10308_s8  ;;  %3522 = vst.msk [vmem:[#allocation3 + $0x3c0] sm:$0xff] %vm3491_vm7, %v3429_v53  ;;  %v12978_v53 = vld [vmem:[#allocation2 + $0x139] sm:$0xff] }
 0x493   : > { %3769 = vst.msk [vmem:[#allocation3 + $0x3c0] sm:$0xff] %vm3738_vm8, %v3676_v38  ;;  %3934 = vrot.lane.b32.xlu0 %v15130_v12, %s10311_s19 }
 0x494   : > { %v3917_v30 = vpop.permute.xlu1 %3916 }
 0x495   : > { %4013 = vst.msk [vmem:[#allocation3 + $0x360] sm:$0xff] %vm3985_vm9, %v3917_v30  ;;  %v3674_v29 = vpop.permute.xlu0 %3673 }
 0x496   : > { %3197 = vrot.lane.b32.xlu1 %v3077_v3, %s10307_s7  ;;  %3768 = vst.msk [vmem:[#allocation3 + $0x3a0] sm:$0xff] %vm3738_vm8, %v3674_v29  ;;  %v12986_v29 = vld [vmem:[#allocation2 + $0x148] sm:$0xff] }
 0x497   : > { %2950 = vrot.lane.b32.xlu0 %v12949_v4, %s10308_s8 }
 0x498   : > { %v4162_v7 = vpop.permute.xlu1 %4161 }
 0x499   : > { %4259 = vst.msk [vmem:[#allocation3 + $0x340] sm:$0xff] %vm4232_vm10, %v4162_v7  ;;  %v4164_v32 = vpop.permute.xlu0 %4163  ;;  %v3079_v7 = vld [vmem:[#allocation2 + $0x142] sm:$0xff] }
 0x49a   : > { %3442 = vrot.lane.b32.xlu1 %v12030_v39, %s10310_s14  ;;  %4260 = vst.msk [vmem:[#allocation3 + $0x360] sm:$0xff] %vm4232_vm10, %v4164_v32  ;;  %v15131_v39 = vld [vmem:[#allocation58_spill] sm:$0xff] }
 0x49b   : > { %3195 = vrot.lane.b32.xlu0 %v3076_v5, %s10307_s7 }
 0x49c   : > { %v4411_v31 = vpop.permute.xlu1 %4410 }
 0x49d   : > { %4507 = vst.msk [vmem:[#allocation3 + $0x360] sm:$0xff] %vm4479_vm11, %v4411_v31  ;;  %v4409_v45 = vpop.permute.xlu0 %4408 }
 0x49e   : > { %3691 = vrot.lane.b32.xlu1 %v3571_v18, %s10309_s13  ;;  %4506 = vst.msk [vmem:[#allocation3 + $0x340] sm:$0xff] %vm4479_vm11, %v4409_v45 }
 0x49f   : > { %3444 = vrot.lane.b32.xlu0 %v15131_v39, %s10310_s14  ;;  %v3078_v39 = vld [vmem:[#allocation2 + $0x13a] sm:$0xff] }
 0x4a0   : > { %v4738_v21 = vpop.permute.xlu1 %4737 }
 0x4a1   : > { %4834 = vst.msk [vmem:[#allocation3 + $0x348] sm:$0xff] %vm2997_vm5, %v4738_v21  ;;  %v4740_v22 = vpop.permute.xlu0 %4739 }
 0x4a2   : > { %3932 = vrot.lane.b32.xlu1 %v15132_v19, %s10311_s19  ;;  %4835 = vst.msk [vmem:[#allocation3 + $0x368] sm:$0xff] %vm2997_vm5, %v4740_v22  ;;  %v3573_v22 = vld [vmem:[#allocation2 + $0x144] sm:$0xff] }
 0x4a3   : > { %3689 = vrot.lane.b32.xlu0 %v3570_v6, %s10309_s13 }
 0x4a4   : > { %v2937_v24 = vpop.permute.xlu1 %2936 }
 0x4a5   : > { %3029 = vst.msk [vmem:[#allocation3 + $0x3e0] sm:$0xff] %vm2997_vm5, %v2937_v24  ;;  %v3923_v17 = vpop.permute.xlu0 %3922 }
 0x4a6   : > { %4177 = vrot.lane.b32.xlu1 %v2829_v37, %s10312_s24  ;;  %4016 = vst.msk [vmem:[#allocation3 + $0x3c0] sm:$0xff] %vm3985_vm9, %v3923_v17  ;;  %v15134_v17 = vld [vmem:[#allocation59_spill] sm:$0xff] }
 0x4a7   : > { %4179 = vrot.lane.b32.xlu0 %v12949_v4, %s10312_s24 }
 0x4a8   : > { %v3186_v48 = vpop.permute.xlu1 %3185 }
 0x4a9   : > { %v2939_v55 = vpop.permute.xlu0 %2938 }
 0x4aa   : > { %4426 = vrot.lane.b32.xlu1 %v3077_v3, %s10313_s29  ;;  %3030 = vst.msk [vmem:[#allocation3 + $0x400] sm:$0xff] %vm2997_vm5, %v2939_v55 }
 0x4ab   : > { %3277 = vst.msk [vmem:[#allocation3 + $0x400] sm:$0xff] %vm3244_vm6, %v3186_v48  ;;  %4424 = vrot.lane.b32.xlu0 %v3076_v5, %s10313_s29  ;;  %v12994_v5 = vld [vmem:[#allocation2 + $0x141] sm:$0xff] }
 0x4ac   : > { %v3431_v51 = vpop.permute.xlu1 %3430  ;;  %v15135_v48 = vld [vmem:[#allocation18_spill] sm:$0xff] }
 0x4ad   : > { %v3184_v38 = vpop.permute.xlu0 %3183 }
 0x4ae   : > { %4753 = vrot.lane.b32.xlu1 %v3570_v6, %s10308_s8  ;;  %3276 = vst.msk [vmem:[#allocation3 + $0x3e0] sm:$0xff] %vm3244_vm6, %v3184_v38  ;;  %v3572_v38 = vld [vmem:[#allocation2 + $0x13c] sm:$0xff] }
 0x4af   : > { %3523 = vst.msk [vmem:[#allocation3 + $0x3e0] sm:$0xff] %vm3491_vm7, %v3431_v51  ;;  %4755 = vrot.lane.b32.xlu0 %v3571_v18, %s10308_s8  ;;  %v15133_v18 = vld [vmem:[#allocation17_spill] sm:$0xff] }
 0x4b0   : > { %v3680_v37 = vpop.permute.xlu1 %3679 }
 0x4b1   : > { %v3433_v30 = vpop.permute.xlu0 %3432 }
 0x4b2   : > { %2952 = vrot.lane.b32.xlu1 %v12978_v53, %s10308_s8  ;;  %3524 = vst.msk [vmem:[#allocation3 + $0x400] sm:$0xff] %vm3491_vm7, %v3433_v30 }
 0x4b3   : > { %3771 = vst.msk [vmem:[#allocation3 + $0x400] sm:$0xff] %vm3738_vm8, %v3680_v37  ;;  %3938 = vrot.lane.b32.xlu0 %v12986_v29, %s10311_s19 }
 0x4b4   : > { %v3921_v3 = vpop.permute.xlu1 %3920 }
 0x4b5   : > { %4015 = vst.msk [vmem:[#allocation3 + $0x3a0] sm:$0xff] %vm3985_vm9, %v3921_v3  ;;  %v3678_v32 = vpop.permute.xlu0 %3677 }
 0x4b6   : > { %3201 = vrot.lane.b32.xlu1 %v3079_v7, %s10307_s7  ;;  %3770 = vst.msk [vmem:[#allocation3 + $0x3e0] sm:$0xff] %vm3738_vm8, %v3678_v32 }
 0x4b7   : > { %2954 = vrot.lane.b32.xlu0 %v12994_v5, %s10308_s8 }
 0x4b8   : > { %v4166_v31 = vpop.permute.xlu1 %4165 }
 0x4b9   : > { %4261 = vst.msk [vmem:[#allocation3 + $0x380] sm:$0xff] %vm4232_vm10, %v4166_v31  ;;  %v4168_v45 = vpop.permute.xlu0 %4167 }
 0x4ba   : > { %3446 = vrot.lane.b32.xlu1 %v15133_v18, %s10310_s14  ;;  %4262 = vst.msk [vmem:[#allocation3 + $0x3a0] sm:$0xff] %vm4232_vm10, %v4168_v45  ;;  %v13024_v45 = vld [vmem:[#allocation2 + $0x150] sm:$0xff] }
 0x4bb   : > { %3199 = vrot.lane.b32.xlu0 %v3078_v39, %s10307_s7 }
 0x4bc   : > { %v4415_v21 = vpop.permute.xlu1 %4414 }
 0x4bd   : > { %4509 = vst.msk [vmem:[#allocation3 + $0x3a0] sm:$0xff] %vm4479_vm11, %v4415_v21  ;;  %v4413_v24 = vpop.permute.xlu0 %4412 }
 0x4be   : > { %3695 = vrot.lane.b32.xlu1 %v3573_v22, %s10309_s13  ;;  %4508 = vst.msk [vmem:[#allocation3 + $0x380] sm:$0xff] %vm4479_vm11, %v4413_v24  ;;  %v13034_v24 = vld [vmem:[#allocation2 + $0x149] sm:$0xff] }
 0x4bf   : > { %3448 = vrot.lane.b32.xlu0 %v15134_v17, %s10310_s14  ;;  %v13043_v17 = vld [vmem:[#allocation2 + $0x151] sm:$0xff] }
 0x4c0   : > { %v4742_v6 = vpop.permute.xlu1 %4741 }
 0x4c1   : > { %4836 = vst.msk [vmem:[#allocation3 + $0x388] sm:$0xff] %vm2997_vm5, %v4742_v6  ;;  %v4744_v55 = vpop.permute.xlu0 %4743 }
 0x4c2   : > { %3936 = vrot.lane.b32.xlu1 %v15135_v48, %s10311_s19  ;;  %4837 = vst.msk [vmem:[#allocation3 + $0x3a8] sm:$0xff] %vm2997_vm5, %v4744_v55  ;;  %v4313_v55 = vld [vmem:[#allocation2 + $0x152] sm:$0xff] }
 0x4c3   : > { %3693 = vrot.lane.b32.xlu0 %v3572_v38, %s10309_s13 }
 0x4c4   : > { %v2941_v51 = vpop.permute.xlu1 %2940 }
 0x4c5   : > { %3031 = vst.msk [vmem:[#allocation3 + $0x420] sm:$0xff] %vm2997_vm5, %v2941_v51  ;;  %v3927_v37 = vpop.permute.xlu0 %3926 }
 0x4c6   : > { %4181 = vrot.lane.b32.xlu1 %v12978_v53, %s10312_s24  ;;  %4018 = vst.msk [vmem:[#allocation3 + $0x400] sm:$0xff] %vm3985_vm9, %v3927_v37  ;;  %v4312_v37 = vld [vmem:[#allocation2 + $0x14a] sm:$0xff] }
 0x4c7   : > { %4183 = vrot.lane.b32.xlu0 %v12994_v5, %s10312_s24 }
 0x4c8   : > { %v3190_v30 = vpop.permute.xlu1 %3189 }
 0x4c9   : > { %v2943_v3 = vpop.permute.xlu0 %2942 }
 0x4ca   : > { %4430 = vrot.lane.b32.xlu1 %v3079_v7, %s10313_s29  ;;  %3032 = vst.msk [vmem:[#allocation3 + $0x440] sm:$0xff] %vm2997_vm5, %v2943_v3 }
 0x4cb   : > { %3279 = vst.msk [vmem:[#allocation3 + $0x440] sm:$0xff] %vm3244_vm6, %v3190_v30  ;;  %4428 = vrot.lane.b32.xlu0 %v3078_v39, %s10313_s29  ;;  %v13032_v39 = vld [vmem:[#allocation2 + $0x158] sm:$0xff]  ;;  %v4641_v30 = vld [vmem:[#allocation2 + $0x14c] sm:$0xff] }
 0x4cc   : > { %v3435_v32 = vpop.permute.xlu1 %3434 }
 0x4cd   : > { %v3188_v31 = vpop.permute.xlu0 %3187 }
 0x4ce   : > { %4757 = vrot.lane.b32.xlu1 %v3572_v38, %s10308_s8  ;;  %3278 = vst.msk [vmem:[#allocation3 + $0x420] sm:$0xff] %vm3244_vm6, %v3188_v31  ;;  %v4642_v31 = vld [vmem:[#allocation2 + $0x154] sm:$0xff] }
 0x4cf   : > { %3525 = vst.msk [vmem:[#allocation3 + $0x420] sm:$0xff] %vm3491_vm7, %v3435_v32  ;;  %4759 = vrot.lane.b32.xlu0 %v3573_v22, %s10308_s8 }
 0x4d0   : > { %v3684_v18 = vpop.permute.xlu1 %3683 }
 0x4d1   : > { %v3437_v7 = vpop.permute.xlu0 %3436 }
 0x4d2   : > { %3940 = vrot.lane.b32.xlu1 %v13024_v45, %s10311_s19  ;;  %3526 = vst.msk [vmem:[#allocation3 + $0x440] sm:$0xff] %vm3491_vm7, %v3437_v7 }
 0x4d3   : > { %3773 = vst.msk [vmem:[#allocation3 + $0x440] sm:$0xff] %vm3738_vm8, %v3684_v18  ;;  %3942 = vrot.lane.b32.xlu0 %v13032_v39, %s10311_s19  ;;  %v13054_v18 = vld [vmem:[#allocation2 + $0x159] sm:$0xff] }
 0x4d4   : > { %v3925_v21 = vpop.permute.xlu1 %3924 }
 0x4d5   : > { %4017 = vst.msk [vmem:[#allocation3 + $0x3e0] sm:$0xff] %vm3985_vm9, %v3925_v21  ;;  %v3682_v22 = vpop.permute.xlu0 %3681 }
 0x4d6   : > { %4185 = vrot.lane.b32.xlu1 %v13034_v24, %s10312_s24  ;;  %3772 = vst.msk [vmem:[#allocation3 + $0x420] sm:$0xff] %vm3738_vm8, %v3682_v22  ;;  %v13061_v22 = vld [vmem:[#allocation2 + $0x15a] sm:$0xff] }
 0x4d7   : > { %4187 = vrot.lane.b32.xlu0 %v13043_v17, %s10312_s24 }
 0x4d8   : > { %v4170_v6 = vpop.permute.xlu1 %4169 }
 0x4d9   : > { %4263 = vst.msk [vmem:[#allocation3 + $0x3c0] sm:$0xff] %vm4232_vm10, %v4170_v6  ;;  %v4172_v51 = vpop.permute.xlu0 %4171  ;;  %v4643_v6 = vld [vmem:[#allocation2 + $0x15c] sm:$0xff] }
 0x4da   : > { %4434 = vrot.lane.b32.xlu1 %v4313_v55, %s10313_s29  ;;  %4264 = vst.msk [vmem:[#allocation3 + $0x3e0] sm:$0xff] %vm4232_vm10, %v4172_v51 }
 0x4db   : > { %4432 = vrot.lane.b32.xlu0 %v4312_v37, %s10313_s29  ;;  %v4850_v37 = vld [vmem:[#allocation2 + $0x38] sm:$0xff] }
 0x4dc   : > { %v4419_v38 = vpop.permute.xlu1 %4418 }
 0x4dd   : > { %4511 = vst.msk [vmem:[#allocation3 + $0x3e0] sm:$0xff] %vm4479_vm11, %v4419_v38  ;;  %v4417_v3 = vpop.permute.xlu0 %4416  ;;  %v4849_v38 = vld [vmem:[#allocation2 + $0x30] sm:$0xff] }
 0x4de   : > { %4761 = vrot.lane.b32.xlu1 %v4641_v30, %s10308_s8  ;;  %4510 = vst.msk [vmem:[#allocation3 + $0x3c0] sm:$0xff] %vm4479_vm11, %v4417_v3 }
 0x4df   : > { %4763 = vrot.lane.b32.xlu0 %v4642_v31, %s10308_s8  ;;  %v4852_v31 = vld [vmem:[#allocation2 + $0x48] sm:$0xff] }
 0x4e0   : > { %v4746_v32 = vpop.permute.xlu1 %4745 }
 0x4e1   : > { %4838 = vst.msk [vmem:[#allocation3 + $0x3c8] sm:$0xff] %vm2997_vm5, %v4746_v32  ;;  %v4748_v7 = vpop.permute.xlu0 %4747  ;;  %v4851_v32 = vld [vmem:[#allocation2 + $0x40] sm:$0xff] }
 0x4e2   : > { %4189 = vrot.lane.b32.xlu1 %v13054_v18, %s10312_s24  ;;  %4839 = vst.msk [vmem:[#allocation3 + $0x3e8] sm:$0xff] %vm2997_vm5, %v4748_v7 }
 0x4e3   : > { %4436 = vrot.lane.b32.xlu0 %v13061_v22, %s10313_s29 }
 0x4e4   : > { %v2945_v21 = vpop.permute.xlu1 %2944 }
 0x4e5   : > { %3033 = vst.msk [vmem:[#allocation3 + $0x460] sm:$0xff] %vm2997_vm5, %v2945_v21  ;;  %v3931_v55 = vpop.permute.xlu0 %3930 }
 0x4e6   : > { %4765 = vrot.lane.b32.xlu1 %v4643_v6, %s10308_s8  ;;  %4020 = vst.msk [vmem:[#allocation3 + $0x440] sm:$0xff] %vm3985_vm9, %v3931_v55  ;;  %v4853_v6 = vld [vmem:[#allocation2 + $0x50] sm:$0xff]  ;;  %v4854_v55 = vld [vmem:[#allocation2 + $0x58] sm:$0xff] }
 0x4e7   : > { %4931 = vrot.lane.b32.xlu0 %v4849_v38, %s10307_s7 }
 0x4e8   : > { %v3194_v51 = vpop.permute.xlu1 %3193 }
 0x4e9   : > { %v2947_v30 = vpop.permute.xlu0 %2946 }
 0x4ea   : > { %4933 = vrot.lane.b32.xlu1 %v4850_v37, %s10307_s7  ;;  %3034 = vst.msk [vmem:[#allocation3 + $0x480] sm:$0xff] %vm2997_vm5, %v2947_v30  ;;  %v4856_v30 = vld [vmem:[#allocation2 + $0x68] sm:$0xff] }
 0x4eb   : > { %3281 = vst.msk [vmem:[#allocation3 + $0x480] sm:$0xff] %vm3244_vm6, %v3194_v51  ;;  %4935 = vrot.lane.b32.xlu0 %v4851_v32, %s10307_s7  ;;  %v4855_v51 = vld [vmem:[#allocation2 + $0x60] sm:$0xff] }
 0x4ec   : > { %v3439_v3 = vpop.permute.xlu1 %3438 }
 0x4ed   : > { %v3192_v7 = vpop.permute.xlu0 %3191 }
 0x4ee   : > { %4937 = vrot.lane.b32.xlu1 %v4852_v31, %s10307_s7  ;;  %3280 = vst.msk [vmem:[#allocation3 + $0x460] sm:$0xff] %vm3244_vm6, %v3192_v7  ;;  %v4857_v31 = vld [vmem:[#allocation2 + $0x70] sm:$0xff]  ;;  %v4858_v7 = vld [vmem:[#allocation2 + $0x78] sm:$0xff] }
 0x4ef   : > { %3527 = vst.msk [vmem:[#allocation3 + $0x460] sm:$0xff] %vm3491_vm7, %v3439_v3  ;;  %4939 = vrot.lane.b32.xlu0 %v4853_v6, %s10307_s7 }
 0x4f0   : > { %v3688_v21 = vpop.permute.xlu1 %3687 }
 0x4f1   : > { %v3441_v38 = vpop.permute.xlu0 %3440 }
 0x4f2   : > { %4941 = vrot.lane.b32.xlu1 %v4854_v55, %s10307_s7  ;;  %3528 = vst.msk [vmem:[#allocation3 + $0x480] sm:$0xff] %vm3491_vm7, %v3441_v38  ;;  %v4860_v38 = vld [vmem:[#allocation2 + $0x88] sm:$0xff] }
 0x4f3   : > { %3775 = vst.msk [vmem:[#allocation3 + $0x480] sm:$0xff] %vm3738_vm8, %v3688_v21  ;;  %4943 = vrot.lane.b32.xlu0 %v4855_v51, %s10307_s7  ;;  %v4859_v21 = vld [vmem:[#allocation2 + $0x80] sm:$0xff] }
 0x4f4   : > { %v3929_v37 = vpop.permute.xlu1 %3928 }
 0x4f5   : > { %4019 = vst.msk [vmem:[#allocation3 + $0x420] sm:$0xff] %vm3985_vm9, %v3929_v37  ;;  %v3686_v32 = vpop.permute.xlu0 %3685 }
 0x4f6   : > { %4945 = vrot.lane.b32.xlu1 %v4856_v30, %s10307_s7  ;;  %3774 = vst.msk [vmem:[#allocation3 + $0x460] sm:$0xff] %vm3738_vm8, %v3686_v32  ;;  %v4861_v30 = vld [vmem:[#allocation2 + $0x90] sm:$0xff]  ;;  %v4862_v32 = vld [vmem:[#allocation2 + $0x98] sm:$0xff] }
 0x4f7   : > { %4947 = vrot.lane.b32.xlu0 %v4857_v31, %s10307_s7 }
 0x4f8   : > { %v4174_v3 = vpop.permute.xlu1 %4173 }
 0x4f9   : > { %4265 = vst.msk [vmem:[#allocation3 + $0x400] sm:$0xff] %vm4232_vm10, %v4174_v3  ;;  %v4176_v6 = vpop.permute.xlu0 %4175 }
 0x4fa   : > { %4949 = vrot.lane.b32.xlu1 %v4858_v7, %s10307_s7  ;;  %4266 = vst.msk [vmem:[#allocation3 + $0x420] sm:$0xff] %vm4232_vm10, %v4176_v6  ;;  %v4863_v7 = vld [vmem:[#allocation2 + $0xa0] sm:$0xff]  ;;  %v4864_v6 = vld [vmem:[#allocation2 + $0xa8] sm:$0xff] }
 0x4fb   : > { %4951 = vrot.lane.b32.xlu0 %v4859_v21, %s10307_s7 }
 0x4fc   : > { %v4423_v55 = vpop.permute.xlu1 %4422 }
 0x4fd   : > { %4513 = vst.msk [vmem:[#allocation3 + $0x420] sm:$0xff] %vm4479_vm11, %v4423_v55  ;;  %v4421_v37 = vpop.permute.xlu0 %4420 }
 0x4fe   : > { %4953 = vrot.lane.b32.xlu1 %v4860_v38, %s10307_s7  ;;  %4512 = vst.msk [vmem:[#allocation3 + $0x400] sm:$0xff] %vm4479_vm11, %v4421_v37  ;;  %v4865_v38 = vld [vmem:[#allocation2 + $0xb0] sm:$0xff]  ;;  %v4866_v37 = vld [vmem:[#allocation2 + $0xb8] sm:$0xff] }
 0x4ff   : > { %4955 = vrot.lane.b32.xlu0 %v4861_v30, %s10307_s7 }
 0x500   : > { %v4750_v51 = vpop.permute.xlu1 %4749 }
 0x501   : > { %4840 = vst.msk [vmem:[#allocation3 + $0x408] sm:$0xff] %vm2997_vm5, %v4750_v51  ;;  %v4752_v3 = vpop.permute.xlu0 %4751 }
 0x502   : > { %4957 = vrot.lane.b32.xlu1 %v4862_v32, %s10307_s7  ;;  %4841 = vst.msk [vmem:[#allocation3 + $0x428] sm:$0xff] %vm2997_vm5, %v4752_v3  ;;  %v4867_v32 = vld [vmem:[#allocation2 + $0xc0] sm:$0xff]  ;;  %v4868_v3 = vld [vmem:[#allocation2 + $0xc8] sm:$0xff] }
 0x503   : > { %4959 = vrot.lane.b32.xlu0 %v4863_v7, %s10307_s7 }
 0x504   : > { %v2949_v31 = vpop.permute.xlu1 %2948 }
 0x505   : > { %3035 = vst.msk [vmem:[#allocation3 + $0x4a0] sm:$0xff] %vm2997_vm5, %v2949_v31  ;;  %v3935_v55 = vpop.permute.xlu0 %3934 }
 0x506   : > { %4961 = vrot.lane.b32.xlu1 %v4864_v6, %s10307_s7  ;;  %4022 = vst.msk [vmem:[#allocation3 + $0x480] sm:$0xff] %vm3985_vm9, %v3935_v55  ;;  %v4869_v6 = vld [vmem:[#allocation2 + $0xd0] sm:$0xff]  ;;  %v4870_v55 = vld [vmem:[#allocation2 + $0xd8] sm:$0xff] }
 0x507   : > { %4963 = vrot.lane.b32.xlu0 %v4865_v38, %s10307_s7 }
 0x508   : > { %v3198_v21 = vpop.permute.xlu1 %3197 }
 0x509   : > { %v2951_v51 = vpop.permute.xlu0 %2950 }
 0x50a   : > { %4965 = vrot.lane.b32.xlu1 %v4866_v37, %s10307_s7  ;;  %3036 = vst.msk [vmem:[#allocation3 + $0x4c0] sm:$0xff] %vm2997_vm5, %v2951_v51  ;;  %v4872_v51 = vld [vmem:[#allocation2 + $0xe8] sm:$0xff] }
 0x50b   : > { %3283 = vst.msk [vmem:[#allocation3 + $0x4c0] sm:$0xff] %vm3244_vm6, %v3198_v21  ;;  %4967 = vrot.lane.b32.xlu0 %v4867_v32, %s10307_s7  ;;  %v4871_v21 = vld [vmem:[#allocation2 + $0xe0] sm:$0xff] }
 0x50c   : > { %v3443_v30 = vpop.permute.xlu1 %3442 }
 0x50d   : > { %v3196_v31 = vpop.permute.xlu0 %3195 }
 0x50e   : > { %4969 = vrot.lane.b32.xlu1 %v4868_v3, %s10307_s7  ;;  %3282 = vst.msk [vmem:[#allocation3 + $0x4a0] sm:$0xff] %vm3244_vm6, %v3196_v31  ;;  %v4873_v3 = vld [vmem:[#allocation2 + $0xf0] sm:$0xff]  ;;  %v4874_v31 = vld [vmem:[#allocation2 + $0xf8] sm:$0xff] }
 0x50f   : > { %3529 = vst.msk [vmem:[#allocation3 + $0x4a0] sm:$0xff] %vm3491_vm7, %v3443_v30  ;;  %4971 = vrot.lane.b32.xlu0 %v4869_v6, %s10307_s7 }
 0x510   : > { %v3692_v7 = vpop.permute.xlu1 %3691 }
 0x511   : > { %v3445_v38 = vpop.permute.xlu0 %3444 }
 0x512   : > { %4973 = vrot.lane.b32.xlu1 %v4870_v55, %s10307_s7  ;;  %3530 = vst.msk [vmem:[#allocation3 + $0x4c0] sm:$0xff] %vm3491_vm7, %v3445_v38 }
 0x513   : > { %3777 = vst.msk [vmem:[#allocation3 + $0x4c0] sm:$0xff] %vm3738_vm8, %v3692_v7  ;;  %4975 = vrot.lane.b32.xlu0 %v4871_v21, %s10307_s7  ;;  %v4876_v7 = vld [vmem:[#allocation2 + $0x108] sm:$0xff] }
 0x514   : > { %v3933_v37 = vpop.permute.xlu1 %3932 }
 0x515   : > { %4021 = vst.msk [vmem:[#allocation3 + $0x460] sm:$0xff] %vm3985_vm9, %v3933_v37  ;;  %v3690_v32 = vpop.permute.xlu0 %3689 }
 0x516   : > { %4977 = vrot.lane.b32.xlu1 %v4872_v51, %s10307_s7  ;;  %3776 = vst.msk [vmem:[#allocation3 + $0x4a0] sm:$0xff] %vm3738_vm8, %v3690_v32 }
 0x517   : > { %4979 = vrot.lane.b32.xlu0 %v4873_v3, %s10307_s7 }
 0x518   : > { %v4178_v30 = vpop.permute.xlu1 %4177 }
 0x519   : > { %4267 = vst.msk [vmem:[#allocation3 + $0x440] sm:$0xff] %vm4232_vm10, %v4178_v30  ;;  %v4180_v6 = vpop.permute.xlu0 %4179 }
 0x51a   : > { %4981 = vrot.lane.b32.xlu1 %v4874_v31, %s10307_s7  ;;  %4268 = vst.msk [vmem:[#allocation3 + $0x460] sm:$0xff] %vm4232_vm10, %v4180_v6 }
 0x51b   : > { %4983 = vrot.lane.b32.xlu0 %v15122_v60, %s10307_s7 }
 0x51c   : > { %v4427_v55 = vpop.permute.xlu1 %4426 }
 0x51d   : > { %4515 = vst.msk [vmem:[#allocation3 + $0x460] sm:$0xff] %vm4479_vm11, %v4427_v55  ;;  %v4425_v38 = vpop.permute.xlu0 %4424  ;;  %v5097_v55 = vld [vmem:[#allocation2 + $0x41] sm:$0xff] }
 0x51e   : > { %4985 = vrot.lane.b32.xlu1 %v4876_v7, %s10307_s7  ;;  %4514 = vst.msk [vmem:[#allocation3 + $0x440] sm:$0xff] %vm4479_vm11, %v4425_v38  ;;  %v5096_v7 = vld [vmem:[#allocation2 + $0x39] sm:$0xff] }
 0x51f   : > { %4987 = vrot.lane.b32.xlu0 %v15126_v2, %s10307_s7 }
 0x520   : > { %v4754_v37 = vpop.permute.xlu1 %4753 }
 0x521   : > { %4842 = vst.msk [vmem:[#allocation3 + $0x448] sm:$0xff] %vm2997_vm5, %v4754_v37  ;;  %v4756_v21 = vpop.permute.xlu0 %4755 }
 0x522   : > { %4989 = vrot.lane.b32.xlu1 %v15123_v41, %s10307_s7  ;;  %4843 = vst.msk [vmem:[#allocation3 + $0x468] sm:$0xff] %vm2997_vm5, %v4756_v21  ;;  %v5099_v21 = vld [vmem:[#allocation2 + $0x51] sm:$0xff] }
 0x523   : > { %4991 = vrot.lane.b32.xlu0 %v15129_v44, %s10307_s7 }
 0x524   : > { %v2953_v51 = vpop.permute.xlu1 %2952 }
 0x525   : > { %3037 = vst.msk [vmem:[#allocation3 + $0x4e0] sm:$0xff] %vm2997_vm5, %v2953_v51  ;;  %v3939_v60 = vpop.permute.xlu0 %3938  ;;  %v5098_v51 = vld [vmem:[#allocation2 + $0x49] sm:$0xff] }
 0x526   : > { %4993 = vrot.lane.b32.xlu1 %v15127_v42, %s10307_s7  ;;  %4024 = vst.msk [vmem:[#allocation3 + $0x4c0] sm:$0xff] %vm3985_vm9, %v3939_v60 }
 0x527   : > { %4995 = vrot.lane.b32.xlu0 %v15132_v19, %s10307_s7 }
 0x528   : > { %v3202_v32 = vpop.permute.xlu1 %3201 }
 0x529   : > { %v2955_v41 = vpop.permute.xlu0 %2954 }
 0x52a   : > { %4997 = vrot.lane.b32.xlu1 %v15130_v12, %s10307_s7  ;;  %3038 = vst.msk [vmem:[#allocation3 + $0x500] sm:$0xff] %vm2997_vm5, %v2955_v41  ;;  %v5101_v41 = vld [vmem:[#allocation2 + $0x61] sm:$0xff] }
 0x52b   : > { %3285 = vst.msk [vmem:[#allocation3 + $0x500] sm:$0xff] %vm3244_vm6, %v3202_v32  ;;  %4999 = vrot.lane.b32.xlu0 %v15135_v48, %s10307_s7  ;;  %v4887_v48 = vld [vmem:[#allocation2 + $0x160] sm:$0xff] }
 0x52c   : > { %v3447_v2 = vpop.permute.xlu1 %3446 }
 0x52d   : > { %v3200_v42 = vpop.permute.xlu0 %3199 }
 0x52e   : > { %5001 = vrot.lane.b32.xlu1 %v12986_v29, %s10307_s7  ;;  %3284 = vst.msk [vmem:[#allocation3 + $0x4e0] sm:$0xff] %vm3244_vm6, %v3200_v42  ;;  %v4888_v29 = vld [vmem:[#allocation2 + $0x168] sm:$0xff] }
 0x52f   : > { %3531 = vst.msk [vmem:[#allocation3 + $0x4e0] sm:$0xff] %vm3491_vm7, %v3447_v2  ;;  %5003 = vrot.lane.b32.xlu0 %v13024_v45, %s10307_s7  ;;  %v5095_v45 = vld [vmem:[#allocation2 + $0x31] sm:$0xff]  ;;  %v5100_v2 = vld [vmem:[#allocation2 + $0x59] sm:$0xff] }
 0x530   : > { %v3696_v44 = vpop.permute.xlu1 %3695 }
 0x531   : > { %v3449_v12 = vpop.permute.xlu0 %3448 }
 0x532   : > { %5005 = vrot.lane.b32.xlu1 %v13032_v39, %s10307_s7  ;;  %3532 = vst.msk [vmem:[#allocation3 + $0x500] sm:$0xff] %vm3491_vm7, %v3449_v12  ;;  %v4889_v39 = vld [vmem:[#allocation2 + $0x170] sm:$0xff] }
 0x533   : > { %3779 = vst.msk [vmem:[#allocation3 + $0x500] sm:$0xff] %vm3738_vm8, %v3696_v44  ;;  %5007 = vrot.lane.b32.xlu0 %v4887_v48, %s10307_s7  ;;  %v5103_v12 = vld [vmem:[#allocation2 + $0x71] sm:$0xff] }
 0x534   : > { %v3937_v19 = vpop.permute.xlu1 %3936 }
 0x535   : > { %4023 = vst.msk [vmem:[#allocation3 + $0x4a0] sm:$0xff] %vm3985_vm9, %v3937_v19  ;;  %v3694_v30 = vpop.permute.xlu0 %3693  ;;  %v5102_v19 = vld [vmem:[#allocation2 + $0x69] sm:$0xff] }
 0x536   : > { %5009 = vrot.lane.b32.xlu1 %v4888_v29, %s10307_s7  ;;  %3778 = vst.msk [vmem:[#allocation3 + $0x4e0] sm:$0xff] %vm3738_vm8, %v3694_v30  ;;  %v5105_v30 = vld [vmem:[#allocation2 + $0x81] sm:$0xff] }
 0x537   : > { %5011 = vrot.lane.b32.xlu0 %v4889_v39, %s10307_s7 }
 0x538   : > { %v4182_v3 = vpop.permute.xlu1 %4181 }
 0x539   : > { %4269 = vst.msk [vmem:[#allocation3 + $0x480] sm:$0xff] %vm4232_vm10, %v4182_v3  ;;  %v4184_v31 = vpop.permute.xlu0 %4183  ;;  %v5104_v3 = vld [vmem:[#allocation2 + $0x79] sm:$0xff] }
 0x53a   : > { %5177 = vrot.lane.b32.xlu1 %v5095_v45, %s10310_s14  ;;  %4270 = vst.msk [vmem:[#allocation3 + $0x4a0] sm:$0xff] %vm4232_vm10, %v4184_v31  ;;  %v5107_v31 = vld [vmem:[#allocation2 + $0x91] sm:$0xff] }
 0x53b   : > { %5179 = vrot.lane.b32.xlu0 %v5096_v7, %s10310_s14 }
 0x53c   : > { %v4431_v6 = vpop.permute.xlu1 %4430 }
 0x53d   : > { %4517 = vst.msk [vmem:[#allocation3 + $0x4a0] sm:$0xff] %vm4479_vm11, %v4431_v6  ;;  %v4429_v38 = vpop.permute.xlu0 %4428  ;;  %v5106_v6 = vld [vmem:[#allocation2 + $0x89] sm:$0xff] }
 0x53e   : > { %5181 = vrot.lane.b32.xlu1 %v5097_v55, %s10310_s14  ;;  %4516 = vst.msk [vmem:[#allocation3 + $0x480] sm:$0xff] %vm4479_vm11, %v4429_v38  ;;  %v5109_v38 = vld [vmem:[#allocation2 + $0xa1] sm:$0xff] }
 0x53f   : > { %5183 = vrot.lane.b32.xlu0 %v5098_v51, %s10310_s14 }
 0x540   : > { %v4758_v37 = vpop.permute.xlu1 %4757 }
 0x541   : > { %4844 = vst.msk [vmem:[#allocation3 + $0x488] sm:$0xff] %vm2997_vm5, %v4758_v37  ;;  %v4760_v60 = vpop.permute.xlu0 %4759  ;;  %v5108_v37 = vld [vmem:[#allocation2 + $0x99] sm:$0xff] }
 0x542   : > { %5185 = vrot.lane.b32.xlu1 %v5099_v21, %s10310_s14  ;;  %4845 = vst.msk [vmem:[#allocation3 + $0x4a8] sm:$0xff] %vm2997_vm5, %v4760_v60  ;;  %v5111_v60 = vld [vmem:[#allocation2 + $0xb1] sm:$0xff] }
 0x543   : > { %5187 = vrot.lane.b32.xlu0 %v5100_v2, %s10310_s14 }
 0x544   : > { %v3941_v32 = vpop.permute.xlu1 %3940 }
 0x545   : > { %4025 = vst.msk [vmem:[#allocation3 + $0x4e0] sm:$0xff] %vm3985_vm9, %v3941_v32  ;;  %v3943_v42 = vpop.permute.xlu0 %3942  ;;  %v5110_v32 = vld [vmem:[#allocation2 + $0xa9] sm:$0xff] }
 0x546   : > { %5189 = vrot.lane.b32.xlu1 %v5101_v41, %s10310_s14  ;;  %4026 = vst.msk [vmem:[#allocation3 + $0x500] sm:$0xff] %vm3985_vm9, %v3943_v42  ;;  %v5113_v42 = vld [vmem:[#allocation2 + $0xc1] sm:$0xff] }
 0x547   : > { %5191 = vrot.lane.b32.xlu0 %v5102_v19, %s10310_s14 }
 0x548   : > { %v4186_v44 = vpop.permute.xlu1 %4185 }
 0x549   : > { %4271 = vst.msk [vmem:[#allocation3 + $0x4c0] sm:$0xff] %vm4232_vm10, %v4186_v44  ;;  %v4188_v48 = vpop.permute.xlu0 %4187  ;;  %v5112_v44 = vld [vmem:[#allocation2 + $0xb9] sm:$0xff] }
 0x54a   : > { %5193 = vrot.lane.b32.xlu1 %v5103_v12, %s10310_s14  ;;  %4272 = vst.msk [vmem:[#allocation3 + $0x4e0] sm:$0xff] %vm4232_vm10, %v4188_v48  ;;  %v5115_v48 = vld [vmem:[#allocation2 + $0xd1] sm:$0xff] }
 0x54b   : > { %5195 = vrot.lane.b32.xlu0 %v5104_v3, %s10310_s14 }
 0x54c   : > { %v4435_v29 = vpop.permute.xlu1 %4434 }
 0x54d   : > { %4519 = vst.msk [vmem:[#allocation3 + $0x4e0] sm:$0xff] %vm4479_vm11, %v4435_v29  ;;  %v4433_v45 = vpop.permute.xlu0 %4432  ;;  %v5114_v29 = vld [vmem:[#allocation2 + $0xc9] sm:$0xff] }
 0x54e   : > { %5197 = vrot.lane.b32.xlu1 %v5105_v30, %s10310_s14  ;;  %4518 = vst.msk [vmem:[#allocation3 + $0x4c0] sm:$0xff] %vm4479_vm11, %v4433_v45  ;;  %v5117_v45 = vld [vmem:[#allocation2 + $0xe1] sm:$0xff] }
 0x54f   : > { %5199 = vrot.lane.b32.xlu0 %v5106_v6, %s10310_s14 }
 0x550   : > { %v4762_v39 = vpop.permute.xlu1 %4761 }
 0x551   : > { %4846 = vst.msk [vmem:[#allocation3 + $0x4c8] sm:$0xff] %vm2997_vm5, %v4762_v39  ;;  %v4764_v55 = vpop.permute.xlu0 %4763  ;;  %v5116_v39 = vld [vmem:[#allocation2 + $0xd9] sm:$0xff] }
 0x552   : > { %5201 = vrot.lane.b32.xlu1 %v5107_v31, %s10310_s14  ;;  %4847 = vst.msk [vmem:[#allocation3 + $0x4e8] sm:$0xff] %vm2997_vm5, %v4764_v55  ;;  %v5119_v55 = vld [vmem:[#allocation2 + $0xf1] sm:$0xff] }
 0x553   : > { %5203 = vrot.lane.b32.xlu0 %v5108_v37, %s10310_s14 }
 0x554   : > { %v4190_v7 = vpop.permute.xlu1 %4189 }
 0x555   : > { %4273 = vst.msk [vmem:[#allocation3 + $0x500] sm:$0xff] %vm4232_vm10, %v4190_v7  ;;  %v4437_v21 = vpop.permute.xlu0 %4436  ;;  %v5118_v7 = vld [vmem:[#allocation2 + $0xe9] sm:$0xff] }
 0x556   : > { %5205 = vrot.lane.b32.xlu1 %v5109_v38, %s10310_s14  ;;  %4520 = vst.msk [vmem:[#allocation3 + $0x500] sm:$0xff] %vm4479_vm11, %v4437_v21  ;;  %v5121_v21 = vld [vmem:[#allocation2 + $0x101] sm:$0xff] }
 0x557   : > { %5207 = vrot.lane.b32.xlu0 %v5110_v32, %s10310_s14 }
 0x558   : > { %v4766_v51 = vpop.permute.xlu1 %4765 }
 0x559   : > { %4848 = vst.msk [vmem:[#allocation3 + $0x508] sm:$0xff] %vm2997_vm5, %v4766_v51  ;;  %v4932_v41 = vpop.permute.xlu0 %4931  ;;  %v5120_v51 = vld [vmem:[#allocation2 + $0xf9] sm:$0xff] }
 0x55a   : > { %5209 = vrot.lane.b32.xlu1 %v5111_v60, %s10310_s14  ;;  %5054 = vst.msk [vmem:[#allocation3 + $0x8] sm:$0xff] %vm3244_vm6, %v4932_v41  ;;  %v5123_v41 = vld [vmem:[#allocation2 + $0x111] sm:$0xff] }
 0x55b   : > { %5211 = vrot.lane.b32.xlu0 %v5112_v44, %s10310_s14 }
 0x55c   : > { %v4934_v2 = vpop.permute.xlu1 %4933 }
 0x55d   : > { %5055 = vst.msk [vmem:[#allocation3 + $0x28] sm:$0xff] %vm3244_vm6, %v4934_v2  ;;  %v4936_v12 = vpop.permute.xlu0 %4935  ;;  %v5122_v2 = vld [vmem:[#allocation2 + $0x109] sm:$0xff] }
 0x55e   : > { %5213 = vrot.lane.b32.xlu1 %v5113_v42, %s10310_s14  ;;  %5056 = vst.msk [vmem:[#allocation3 + $0x48] sm:$0xff] %vm3244_vm6, %v4936_v12  ;;  %v5125_v12 = vld [vmem:[#allocation2 + $0x121] sm:$0xff] }
 0x55f   : > { %5215 = vrot.lane.b32.xlu0 %v5114_v29, %s10310_s14 }
 0x560   : > { %v4938_v19 = vpop.permute.xlu1 %4937 }
 0x561   : > { %5057 = vst.msk [vmem:[#allocation3 + $0x68] sm:$0xff] %vm3244_vm6, %v4938_v19  ;;  %v4940_v30 = vpop.permute.xlu0 %4939  ;;  %v5124_v19 = vld [vmem:[#allocation2 + $0x119] sm:$0xff] }
 0x562   : > { %5217 = vrot.lane.b32.xlu1 %v5115_v48, %s10310_s14  ;;  %5058 = vst.msk [vmem:[#allocation3 + $0x88] sm:$0xff] %vm3244_vm6, %v4940_v30  ;;  %v5126_v30 = vld [vmem:[#allocation2 + $0x129] sm:$0xff] }
 0x563   : > { %5219 = vrot.lane.b32.xlu0 %v5116_v39, %s10310_s14 }
 0x564   : > { %v4942_v3 = vpop.permute.xlu1 %4941 }
 0x565   : > { %5059 = vst.msk [vmem:[#allocation3 + $0xa8] sm:$0xff] %vm3244_vm6, %v4942_v3  ;;  %v4944_v31 = vpop.permute.xlu0 %4943 }
 0x566   : > { %5221 = vrot.lane.b32.xlu1 %v5117_v45, %s10310_s14  ;;  %5060 = vst.msk [vmem:[#allocation3 + $0xc8] sm:$0xff] %vm3244_vm6, %v4944_v31 }
 0x567   : > { %5223 = vrot.lane.b32.xlu0 %v5118_v7, %s10310_s14 }
 0x568   : > { %v4946_v6 = vpop.permute.xlu1 %4945 }
 0x569   : > { %5061 = vst.msk [vmem:[#allocation3 + $0xe8] sm:$0xff] %vm3244_vm6, %v4946_v6  ;;  %v4948_v38 = vpop.permute.xlu0 %4947 }
 0x56a   : > { %5225 = vrot.lane.b32.xlu1 %v5119_v55, %s10310_s14  ;;  %5062 = vst.msk [vmem:[#allocation3 + $0x108] sm:$0xff] %vm3244_vm6, %v4948_v38 }
 0x56b   : > { %5227 = vrot.lane.b32.xlu0 %v5120_v51, %s10310_s14 }
 0x56c   : > { %v4950_v37 = vpop.permute.xlu1 %4949 }
 0x56d   : > { %5063 = vst.msk [vmem:[#allocation3 + $0x128] sm:$0xff] %vm3244_vm6, %v4950_v37  ;;  %v4952_v60 = vpop.permute.xlu0 %4951  ;;  %v5342_v37 = vld [vmem:[#allocation2 + $0x3a] sm:$0xff] }
 0x56e   : > { %5229 = vrot.lane.b32.xlu1 %v5121_v21, %s10310_s14  ;;  %5064 = vst.msk [vmem:[#allocation3 + $0x148] sm:$0xff] %vm3244_vm6, %v4952_v60  ;;  %v5344_v60 = vld [vmem:[#allocation2 + $0x4a] sm:$0xff] }
 0x56f   : > { %5231 = vrot.lane.b32.xlu0 %v5122_v2, %s10310_s14 }
 0x570   : > { %v4954_v32 = vpop.permute.xlu1 %4953 }
 0x571   : > { %5065 = vst.msk [vmem:[#allocation3 + $0x168] sm:$0xff] %vm3244_vm6, %v4954_v32  ;;  %v4956_v42 = vpop.permute.xlu0 %4955  ;;  %v5343_v32 = vld [vmem:[#allocation2 + $0x42] sm:$0xff] }
 0x572   : > { %5233 = vrot.lane.b32.xlu1 %v5123_v41, %s10310_s14  ;;  %5066 = vst.msk [vmem:[#allocation3 + $0x188] sm:$0xff] %vm3244_vm6, %v4956_v42  ;;  %v5346_v42 = vld [vmem:[#allocation2 + $0x5a] sm:$0xff] }
 0x573   : > { %5235 = vrot.lane.b32.xlu0 %v5124_v19, %s10310_s14 }
 0x574   : > { %v4958_v44 = vpop.permute.xlu1 %4957 }
 0x575   : > { %5067 = vst.msk [vmem:[#allocation3 + $0x1a8] sm:$0xff] %vm3244_vm6, %v4958_v44  ;;  %v4960_v48 = vpop.permute.xlu0 %4959  ;;  %v5345_v44 = vld [vmem:[#allocation2 + $0x52] sm:$0xff] }
 0x576   : > { %5237 = vrot.lane.b32.xlu1 %v5125_v12, %s10310_s14  ;;  %5068 = vst.msk [vmem:[#allocation3 + $0x1c8] sm:$0xff] %vm3244_vm6, %v4960_v48  ;;  %v5348_v48 = vld [vmem:[#allocation2 + $0x6a] sm:$0xff] }
 0x577   : > { %5239 = vrot.lane.b32.xlu0 %v5126_v30, %s10310_s14 }
 0x578   : > { %v4962_v29 = vpop.permute.xlu1 %4961 }
 0x579   : > { %5069 = vst.msk [vmem:[#allocation3 + $0x1e8] sm:$0xff] %vm3244_vm6, %v4962_v29  ;;  %v4964_v3 = vpop.permute.xlu0 %4963  ;;  %v5347_v29 = vld [vmem:[#allocation2 + $0x62] sm:$0xff] }
 0x57a   : > { %5241 = vrot.lane.b32.xlu1 %v12949_v4, %s10310_s14  ;;  %5070 = vst.msk [vmem:[#allocation3 + $0x208] sm:$0xff] %vm3244_vm6, %v4964_v3 }
 0x57b   : > { %5243 = vrot.lane.b32.xlu0 %v12978_v53, %s10310_s14 }
 0x57c   : > { %v4966_v45 = vpop.permute.xlu1 %4965 }
 0x57d   : > { %5071 = vst.msk [vmem:[#allocation3 + $0x228] sm:$0xff] %vm3244_vm6, %v4966_v45  ;;  %v4968_v39 = vpop.permute.xlu0 %4967  ;;  %v5350_v45 = vld [vmem:[#allocation2 + $0x7a] sm:$0xff] }
 0x57e   : > { %5245 = vrot.lane.b32.xlu1 %v12994_v5, %s10310_s14  ;;  %5072 = vst.msk [vmem:[#allocation3 + $0x248] sm:$0xff] %vm3244_vm6, %v4968_v39  ;;  %v5133_v5 = vld [vmem:[#allocation2 + $0x161] sm:$0xff]  ;;  %v5349_v39 = vld [vmem:[#allocation2 + $0x72] sm:$0xff] }
 0x57f   : > { %5247 = vrot.lane.b32.xlu0 %v13034_v24, %s10310_s14  ;;  %v5134_v24 = vld [vmem:[#allocation2 + $0x169] sm:$0xff] }
 0x580   : > { %v4970_v31 = vpop.permute.xlu1 %4969 }
 0x581   : > { %5073 = vst.msk [vmem:[#allocation3 + $0x268] sm:$0xff] %vm3244_vm6, %v4970_v31  ;;  %v4972_v4 = vpop.permute.xlu0 %4971 }
 0x582   : > { %5249 = vrot.lane.b32.xlu1 %v13043_v17, %s10310_s14  ;;  %5074 = vst.msk [vmem:[#allocation3 + $0x288] sm:$0xff] %vm3244_vm6, %v4972_v4  ;;  %v5135_v17 = vld [vmem:[#allocation2 + $0x171] sm:$0xff] }
 0x583   : > { %5251 = vrot.lane.b32.xlu0 %v13054_v18, %s10310_s14  ;;  %v5341_v18 = vld [vmem:[#allocation2 + $0x32] sm:$0xff] }
 0x584   : > { %v4974_v6 = vpop.permute.xlu1 %4973 }
 0x585   : > { %5075 = vst.msk [vmem:[#allocation3 + $0x2a8] sm:$0xff] %vm3244_vm6, %v4974_v6  ;;  %v4976_v53 = vpop.permute.xlu0 %4975  ;;  %v5352_v6 = vld [vmem:[#allocation2 + $0x8a] sm:$0xff] }
 0x586   : > { %5253 = vrot.lane.b32.xlu1 %v5133_v5, %s10310_s14  ;;  %5076 = vst.msk [vmem:[#allocation3 + $0x2c8] sm:$0xff] %vm3244_vm6, %v4976_v53  ;;  %v5351_v5 = vld [vmem:[#allocation2 + $0x82] sm:$0xff] }
 0x587   : > { %5255 = vrot.lane.b32.xlu0 %v5134_v24, %s10310_s14  ;;  %v5353_v24 = vld [vmem:[#allocation2 + $0x92] sm:$0xff] }
 0x588   : > { %v4978_v55 = vpop.permute.xlu1 %4977 }
 0x589   : > { %5077 = vst.msk [vmem:[#allocation3 + $0x2e8] sm:$0xff] %vm3244_vm6, %v4978_v55  ;;  %v4980_v7 = vpop.permute.xlu0 %4979 }
 0x58a   : > { %5257 = vrot.lane.b32.xlu1 %v5135_v17, %s10310_s14  ;;  %5078 = vst.msk [vmem:[#allocation3 + $0x308] sm:$0xff] %vm3244_vm6, %v4980_v7  ;;  %v5354_v17 = vld [vmem:[#allocation2 + $0x9a] sm:$0xff] }
 0x58b   : > { %5423 = vrot.lane.b32.xlu0 %v5341_v18, %s10309_s13  ;;  %v5355_v18 = vld [vmem:[#allocation2 + $0xa2] sm:$0xff] }
 0x58c   : > { %v4982_v38 = vpop.permute.xlu1 %4981 }
 0x58d   : > { %5079 = vst.msk [vmem:[#allocation3 + $0x328] sm:$0xff] %vm3244_vm6, %v4982_v38  ;;  %v4984_v21 = vpop.permute.xlu0 %4983 }
 0x58e   : > { %5425 = vrot.lane.b32.xlu1 %v5342_v37, %s10309_s13  ;;  %5080 = vst.msk [vmem:[#allocation3 + $0x348] sm:$0xff] %vm3244_vm6, %v4984_v21  ;;  %v5356_v37 = vld [vmem:[#allocation2 + $0xaa] sm:$0xff] }
 0x58f   : > { %5427 = vrot.lane.b32.xlu0 %v5343_v32, %s10309_s13  ;;  %v5357_v32 = vld [vmem:[#allocation2 + $0xb2] sm:$0xff] }
 0x590   : > { %v4986_v51 = vpop.permute.xlu1 %4985 }
 0x591   : > { %5081 = vst.msk [vmem:[#allocation3 + $0x368] sm:$0xff] %vm3244_vm6, %v4986_v51  ;;  %v4988_v41 = vpop.permute.xlu0 %4987 }
 0x592   : > { %5429 = vrot.lane.b32.xlu1 %v5344_v60, %s10309_s13  ;;  %5082 = vst.msk [vmem:[#allocation3 + $0x388] sm:$0xff] %vm3244_vm6, %v4988_v41  ;;  %v5358_v60 = vld [vmem:[#allocation2 + $0xba] sm:$0xff] }
 0x593   : > { %5431 = vrot.lane.b32.xlu0 %v5345_v44, %s10309_s13  ;;  %v5359_v44 = vld [vmem:[#allocation2 + $0xc2] sm:$0xff] }
 0x594   : > { %v4990_v2 = vpop.permute.xlu1 %4989 }
 0x595   : > { %5083 = vst.msk [vmem:[#allocation3 + $0x3a8] sm:$0xff] %vm3244_vm6, %v4990_v2  ;;  %v4992_v12 = vpop.permute.xlu0 %4991 }
 0x596   : > { %5433 = vrot.lane.b32.xlu1 %v5346_v42, %s10309_s13  ;;  %5084 = vst.msk [vmem:[#allocation3 + $0x3c8] sm:$0xff] %vm3244_vm6, %v4992_v12  ;;  %v5360_v42 = vld [vmem:[#allocation2 + $0xca] sm:$0xff] }
 0x597   : > { %5435 = vrot.lane.b32.xlu0 %v5347_v29, %s10309_s13  ;;  %v5361_v29 = vld [vmem:[#allocation2 + $0xd2] sm:$0xff] }
 0x598   : > { %v4994_v19 = vpop.permute.xlu1 %4993 }
 0x599   : > { %5085 = vst.msk [vmem:[#allocation3 + $0x3e8] sm:$0xff] %vm3244_vm6, %v4994_v19  ;;  %v4996_v30 = vpop.permute.xlu0 %4995 }
 0x59a   : > { %5437 = vrot.lane.b32.xlu1 %v5348_v48, %s10309_s13  ;;  %5086 = vst.msk [vmem:[#allocation3 + $0x408] sm:$0xff] %vm3244_vm6, %v4996_v30  ;;  %v5362_v48 = vld [vmem:[#allocation2 + $0xda] sm:$0xff] }
 0x59b   : > { %5439 = vrot.lane.b32.xlu0 %v5349_v39, %s10309_s13  ;;  %v5363_v39 = vld [vmem:[#allocation2 + $0xe2] sm:$0xff] }
 0x59c   : > { %v4998_v3 = vpop.permute.xlu1 %4997 }
 0x59d   : > { %5087 = vst.msk [vmem:[#allocation3 + $0x428] sm:$0xff] %vm3244_vm6, %v4998_v3  ;;  %v5000_v31 = vpop.permute.xlu0 %4999 }
 0x59e   : > { %5441 = vrot.lane.b32.xlu1 %v5350_v45, %s10309_s13  ;;  %5088 = vst.msk [vmem:[#allocation3 + $0x448] sm:$0xff] %vm3244_vm6, %v5000_v31  ;;  %v5364_v45 = vld [vmem:[#allocation2 + $0xea] sm:$0xff] }
 0x59f   : > { %5443 = vrot.lane.b32.xlu0 %v5351_v5, %s10309_s13  ;;  %v5365_v5 = vld [vmem:[#allocation2 + $0xf2] sm:$0xff] }
 0x5a0   : > { %v5002_v4 = vpop.permute.xlu1 %5001 }
 0x5a1   : > { %5089 = vst.msk [vmem:[#allocation3 + $0x468] sm:$0xff] %vm3244_vm6, %v5002_v4  ;;  %v5004_v53 = vpop.permute.xlu0 %5003 }
 0x5a2   : > { %5445 = vrot.lane.b32.xlu1 %v5352_v6, %s10309_s13  ;;  %5090 = vst.msk [vmem:[#allocation3 + $0x488] sm:$0xff] %vm3244_vm6, %v5004_v53  ;;  %v5366_v6 = vld [vmem:[#allocation2 + $0xfa] sm:$0xff] }
 0x5a3   : > { %5447 = vrot.lane.b32.xlu0 %v5353_v24, %s10309_s13  ;;  %v5367_v24 = vld [vmem:[#allocation2 + $0x102] sm:$0xff] }
 0x5a4   : > { %v5006_v55 = vpop.permute.xlu1 %5005 }
 0x5a5   : > { %5091 = vst.msk [vmem:[#allocation3 + $0x4a8] sm:$0xff] %vm3244_vm6, %v5006_v55  ;;  %v5008_v7 = vpop.permute.xlu0 %5007 }
 0x5a6   : > { %5449 = vrot.lane.b32.xlu1 %v5354_v17, %s10309_s13  ;;  %5092 = vst.msk [vmem:[#allocation3 + $0x4c8] sm:$0xff] %vm3244_vm6, %v5008_v7  ;;  %v5368_v17 = vld [vmem:[#allocation2 + $0x10a] sm:$0xff] }
 0x5a7   : > { %5451 = vrot.lane.b32.xlu0 %v5355_v18, %s10309_s13  ;;  %v5369_v18 = vld [vmem:[#allocation2 + $0x112] sm:$0xff] }
 0x5a8   : > { %v5010_v38 = vpop.permute.xlu1 %5009 }
 0x5a9   : > { %5093 = vst.msk [vmem:[#allocation3 + $0x4e8] sm:$0xff] %vm3244_vm6, %v5010_v38  ;;  %v5012_v51 = vpop.permute.xlu0 %5011 }
 0x5aa   : > { %5453 = vrot.lane.b32.xlu1 %v5356_v37, %s10309_s13  ;;  %5094 = vst.msk [vmem:[#allocation3 + $0x508] sm:$0xff] %vm3244_vm6, %v5012_v51  ;;  %v5370_v37 = vld [vmem:[#allocation2 + $0x11a] sm:$0xff] }
 0x5ab   : > { %5455 = vrot.lane.b32.xlu0 %v5357_v32, %s10309_s13  ;;  %v5371_v32 = vld [vmem:[#allocation2 + $0x122] sm:$0xff] }
 0x5ac   : > { %v5178_v21 = vpop.permute.xlu1 %5177 }
 0x5ad   : > { %5300 = vst.msk [vmem:[#allocation3 + $0x8] sm:$0xff] %vm3491_vm7, %v5178_v21  ;;  %v5180_v2 = vpop.permute.xlu0 %5179 }
 0x5ae   : > { %5457 = vrot.lane.b32.xlu1 %v5358_v60, %s10309_s13  ;;  %5301 = vst.msk [vmem:[#allocation3 + $0x28] sm:$0xff] %vm3491_vm7, %v5180_v2  ;;  %v5372_v60 = vld [vmem:[#allocation2 + $0x12a] sm:$0xff] }
 0x5af   : > { %5459 = vrot.lane.b32.xlu0 %v5359_v44, %s10309_s13  ;;  %v5373_v44 = vld [vmem:[#allocation2 + $0x132] sm:$0xff] }
 0x5b0   : > { %v5182_v41 = vpop.permute.xlu1 %5181 }
 0x5b1   : > { %5302 = vst.msk [vmem:[#allocation3 + $0x48] sm:$0xff] %vm3491_vm7, %v5182_v41  ;;  %v5184_v19 = vpop.permute.xlu0 %5183 }
 0x5b2   : > { %5461 = vrot.lane.b32.xlu1 %v5360_v42, %s10309_s13  ;;  %5303 = vst.msk [vmem:[#allocation3 + $0x68] sm:$0xff] %vm3491_vm7, %v5184_v19  ;;  %v5374_v42 = vld [vmem:[#allocation2 + $0x13a] sm:$0xff] }
 0x5b3   : > { %5463 = vrot.lane.b32.xlu0 %v5361_v29, %s10309_s13  ;;  %v5375_v29 = vld [vmem:[#allocation2 + $0x142] sm:$0xff] }
 0x5b4   : > { %v5186_v12 = vpop.permute.xlu1 %5185 }
 0x5b5   : > { %5304 = vst.msk [vmem:[#allocation3 + $0x88] sm:$0xff] %vm3491_vm7, %v5186_v12  ;;  %v5188_v3 = vpop.permute.xlu0 %5187 }
 0x5b6   : > { %5465 = vrot.lane.b32.xlu1 %v5362_v48, %s10309_s13  ;;  %5305 = vst.msk [vmem:[#allocation3 + $0xa8] sm:$0xff] %vm3491_vm7, %v5188_v3  ;;  %v5376_v48 = vld [vmem:[#allocation2 + $0x14a] sm:$0xff] }
 0x5b7   : > { %5467 = vrot.lane.b32.xlu0 %v5363_v39, %s10309_s13 }
 0x5b8   : > { %v5190_v30 = vpop.permute.xlu1 %5189 }
 0x5b9   : > { %5306 = vst.msk [vmem:[#allocation3 + $0xc8] sm:$0xff] %vm3491_vm7, %v5190_v30  ;;  %v5192_v4 = vpop.permute.xlu0 %5191 }
 0x5ba   : > { %5469 = vrot.lane.b32.xlu1 %v5364_v45, %s10309_s13  ;;  %5307 = vst.msk [vmem:[#allocation3 + $0xe8] sm:$0xff] %vm3491_vm7, %v5192_v4  ;;  %v5377_v45 = vld [vmem:[#allocation2 + $0x152] sm:$0xff]  ;;  %v5380_v4 = vld [vmem:[#allocation2 + $0x16a] sm:$0xff] }
 0x5bb   : > { %5471 = vrot.lane.b32.xlu0 %v5365_v5, %s10309_s13 }
 0x5bc   : > { %v5194_v31 = vpop.permute.xlu1 %5193 }
 0x5bd   : > { %5308 = vst.msk [vmem:[#allocation3 + $0x108] sm:$0xff] %vm3491_vm7, %v5194_v31  ;;  %v5196_v55 = vpop.permute.xlu0 %5195 }
 0x5be   : > { %5473 = vrot.lane.b32.xlu1 %v5366_v6, %s10309_s13  ;;  %5309 = vst.msk [vmem:[#allocation3 + $0x128] sm:$0xff] %vm3491_vm7, %v5196_v55  ;;  %v5379_v6 = vld [vmem:[#allocation2 + $0x162] sm:$0xff]  ;;  %v5381_v55 = vld [vmem:[#allocation2 + $0x172] sm:$0xff] }
 0x5bf   : > { %5475 = vrot.lane.b32.xlu0 %v5367_v24, %s10309_s13 }
 0x5c0   : > { %v5198_v53 = vpop.permute.xlu1 %5197 }
 0x5c1   : > { %5310 = vst.msk [vmem:[#allocation3 + $0x148] sm:$0xff] %vm3491_vm7, %v5198_v53  ;;  %v5200_v38 = vpop.permute.xlu0 %5199 }
 0x5c2   : > { %5477 = vrot.lane.b32.xlu1 %v5368_v17, %s10309_s13  ;;  %5311 = vst.msk [vmem:[#allocation3 + $0x168] sm:$0xff] %vm3491_vm7, %v5200_v38  ;;  %v5588_v38 = vld [vmem:[#allocation2 + $0x3b] sm:$0xff] }
 0x5c3   : > { %5479 = vrot.lane.b32.xlu0 %v5369_v18, %s10309_s13 }
 0x5c4   : > { %v5202_v7 = vpop.permute.xlu1 %5201 }
 0x5c5   : > { %5312 = vst.msk [vmem:[#allocation3 + $0x188] sm:$0xff] %vm3491_vm7, %v5202_v7  ;;  %v5204_v51 = vpop.permute.xlu0 %5203  ;;  %v5589_v7 = vld [vmem:[#allocation2 + $0x43] sm:$0xff] }
 0x5c6   : > { %5481 = vrot.lane.b32.xlu1 %v5370_v37, %s10309_s13  ;;  %5313 = vst.msk [vmem:[#allocation3 + $0x1a8] sm:$0xff] %vm3491_vm7, %v5204_v51  ;;  %v5590_v51 = vld [vmem:[#allocation2 + $0x4b] sm:$0xff] }
 0x5c7   : > { %5483 = vrot.lane.b32.xlu0 %v5371_v32, %s10309_s13 }
 0x5c8   : > { %v5206_v21 = vpop.permute.xlu1 %5205 }
 0x5c9   : > { %5314 = vst.msk [vmem:[#allocation3 + $0x1c8] sm:$0xff] %vm3491_vm7, %v5206_v21  ;;  %v5208_v2 = vpop.permute.xlu0 %5207  ;;  %v5591_v21 = vld [vmem:[#allocation2 + $0x53] sm:$0xff] }
 0x5ca   : > { %5485 = vrot.lane.b32.xlu1 %v5372_v60, %s10309_s13  ;;  %5315 = vst.msk [vmem:[#allocation3 + $0x1e8] sm:$0xff] %vm3491_vm7, %v5208_v2  ;;  %v5592_v2 = vld [vmem:[#allocation2 + $0x5b] sm:$0xff] }
 0x5cb   : > { %5487 = vrot.lane.b32.xlu0 %v5373_v44, %s10309_s13 }
 0x5cc   : > { %v5210_v41 = vpop.permute.xlu1 %5209 }
 0x5cd   : > { %5316 = vst.msk [vmem:[#allocation3 + $0x208] sm:$0xff] %vm3491_vm7, %v5210_v41  ;;  %v5212_v19 = vpop.permute.xlu0 %5211  ;;  %v5593_v41 = vld [vmem:[#allocation2 + $0x63] sm:$0xff] }
 0x5ce   : > { %5489 = vrot.lane.b32.xlu1 %v5374_v42, %s10309_s13  ;;  %5317 = vst.msk [vmem:[#allocation3 + $0x228] sm:$0xff] %vm3491_vm7, %v5212_v19  ;;  %v5594_v19 = vld [vmem:[#allocation2 + $0x6b] sm:$0xff] }
 0x5cf   : > { %5491 = vrot.lane.b32.xlu0 %v5375_v29, %s10309_s13 }
 0x5d0   : > { %v5214_v12 = vpop.permute.xlu1 %5213 }
 0x5d1   : > { %5318 = vst.msk [vmem:[#allocation3 + $0x248] sm:$0xff] %vm3491_vm7, %v5214_v12  ;;  %v5216_v3 = vpop.permute.xlu0 %5215  ;;  %v5595_v12 = vld [vmem:[#allocation2 + $0x73] sm:$0xff] }
 0x5d2   : > { %5493 = vrot.lane.b32.xlu1 %v5376_v48, %s10309_s13  ;;  %5319 = vst.msk [vmem:[#allocation3 + $0x268] sm:$0xff] %vm3491_vm7, %v5216_v3  ;;  %v5596_v3 = vld [vmem:[#allocation2 + $0x7b] sm:$0xff] }
 0x5d3   : > { %5495 = vrot.lane.b32.xlu0 %v5377_v45, %s10309_s13 }
 0x5d4   : > { %v5218_v30 = vpop.permute.xlu1 %5217 }
 0x5d5   : > { %5320 = vst.msk [vmem:[#allocation3 + $0x288] sm:$0xff] %vm3491_vm7, %v5218_v30  ;;  %v5220_v31 = vpop.permute.xlu0 %5219  ;;  %v5597_v30 = vld [vmem:[#allocation2 + $0x83] sm:$0xff] }
 0x5d6   : > { %5497 = vrot.lane.b32.xlu1 %v13061_v22, %s10309_s13  ;;  %5321 = vst.msk [vmem:[#allocation3 + $0x2a8] sm:$0xff] %vm3491_vm7, %v5220_v31  ;;  %v5587_v22 = vld [vmem:[#allocation2 + $0x33] sm:$0xff] }
 0x5d7   : > { %5499 = vrot.lane.b32.xlu0 %v5379_v6, %s10309_s13  ;;  %v5599_v31 = vld [vmem:[#allocation2 + $0x93] sm:$0xff] }
 0x5d8   : > { %v5222_v39 = vpop.permute.xlu1 %5221 }
 0x5d9   : > { %5322 = vst.msk [vmem:[#allocation3 + $0x2c8] sm:$0xff] %vm3491_vm7, %v5222_v39  ;;  %v5224_v53 = vpop.permute.xlu0 %5223 }
 0x5da   : > { %5501 = vrot.lane.b32.xlu1 %v5380_v4, %s10309_s13  ;;  %5323 = vst.msk [vmem:[#allocation3 + $0x2e8] sm:$0xff] %vm3491_vm7, %v5224_v53  ;;  %v5598_v4 = vld [vmem:[#allocation2 + $0x8b] sm:$0xff]  ;;  %v5601_v53 = vld [vmem:[#allocation2 + $0xa3] sm:$0xff] }
 0x5db   : > { %5503 = vrot.lane.b32.xlu0 %v5381_v55, %s10309_s13 }
 0x5dc   : > { %v5226_v5 = vpop.permute.xlu1 %5225 }
 0x5dd   : > { %5324 = vst.msk [vmem:[#allocation3 + $0x308] sm:$0xff] %vm3491_vm7, %v5226_v5  ;;  %v5228_v24 = vpop.permute.xlu0 %5227 }
 0x5de   : > { %5669 = vrot.lane.b32.xlu1 %v5587_v22, %s10311_s19  ;;  %5325 = vst.msk [vmem:[#allocation3 + $0x328] sm:$0xff] %vm3491_vm7, %v5228_v24  ;;  %v5600_v22 = vld [vmem:[#allocation2 + $0x9b] sm:$0xff]  ;;  %v5603_v24 = vld [vmem:[#allocation2 + $0xb3] sm:$0xff] }
 0x5df   : > { %5671 = vrot.lane.b32.xlu0 %v5588_v38, %s10311_s19 }
 0x5e0   : > { %v5230_v17 = vpop.permute.xlu1 %5229 }
 0x5e1   : > { %5326 = vst.msk [vmem:[#allocation3 + $0x348] sm:$0xff] %vm3491_vm7, %v5230_v17  ;;  %v5232_v18 = vpop.permute.xlu0 %5231 }
 0x5e2   : > { %5673 = vrot.lane.b32.xlu1 %v5589_v7, %s10311_s19  ;;  %5327 = vst.msk [vmem:[#allocation3 + $0x368] sm:$0xff] %vm3491_vm7, %v5232_v18  ;;  %v5602_v7 = vld [vmem:[#allocation2 + $0xab] sm:$0xff]  ;;  %v5605_v18 = vld [vmem:[#allocation2 + $0xc3] sm:$0xff] }
 0x5e3   : > { %5675 = vrot.lane.b32.xlu0 %v5590_v51, %s10311_s19 }
 0x5e4   : > { %v5234_v37 = vpop.permute.xlu1 %5233 }
 0x5e5   : > { %5328 = vst.msk [vmem:[#allocation3 + $0x388] sm:$0xff] %vm3491_vm7, %v5234_v37  ;;  %v5236_v32 = vpop.permute.xlu0 %5235 }
 0x5e6   : > { %5677 = vrot.lane.b32.xlu1 %v5591_v21, %s10311_s19  ;;  %5329 = vst.msk [vmem:[#allocation3 + $0x3a8] sm:$0xff] %vm3491_vm7, %v5236_v32  ;;  %v5604_v21 = vld [vmem:[#allocation2 + $0xbb] sm:$0xff]  ;;  %v5607_v32 = vld [vmem:[#allocation2 + $0xd3] sm:$0xff] }
 0x5e7   : > { %5679 = vrot.lane.b32.xlu0 %v5592_v2, %s10311_s19 }
 0x5e8   : > { %v5238_v60 = vpop.permute.xlu1 %5237 }
 0x5e9   : > { %5330 = vst.msk [vmem:[#allocation3 + $0x3c8] sm:$0xff] %vm3491_vm7, %v5238_v60  ;;  %v5240_v44 = vpop.permute.xlu0 %5239 }
 0x5ea   : > { %5681 = vrot.lane.b32.xlu1 %v5593_v41, %s10311_s19  ;;  %5331 = vst.msk [vmem:[#allocation3 + $0x3e8] sm:$0xff] %vm3491_vm7, %v5240_v44  ;;  %v5606_v41 = vld [vmem:[#allocation2 + $0xcb] sm:$0xff]  ;;  %v5609_v44 = vld [vmem:[#allocation2 + $0xe3] sm:$0xff] }
 0x5eb   : > { %5683 = vrot.lane.b32.xlu0 %v5594_v19, %s10311_s19 }
 0x5ec   : > { %v5242_v42 = vpop.permute.xlu1 %5241 }
 0x5ed   : > { %5332 = vst.msk [vmem:[#allocation3 + $0x408] sm:$0xff] %vm3491_vm7, %v5242_v42  ;;  %v5244_v29 = vpop.permute.xlu0 %5243 }
 0x5ee   : > { %5685 = vrot.lane.b32.xlu1 %v5595_v12, %s10311_s19  ;;  %5333 = vst.msk [vmem:[#allocation3 + $0x428] sm:$0xff] %vm3491_vm7, %v5244_v29  ;;  %v5608_v12 = vld [vmem:[#allocation2 + $0xdb] sm:$0xff]  ;;  %v5611_v29 = vld [vmem:[#allocation2 + $0xf3] sm:$0xff] }
 0x5ef   : > { %5687 = vrot.lane.b32.xlu0 %v5596_v3, %s10311_s19 }
 0x5f0   : > { %v5246_v48 = vpop.permute.xlu1 %5245 }
 0x5f1   : > { %5334 = vst.msk [vmem:[#allocation3 + $0x448] sm:$0xff] %vm3491_vm7, %v5246_v48  ;;  %v5248_v39 = vpop.permute.xlu0 %5247 }
 0x5f2   : > { %5689 = vrot.lane.b32.xlu1 %v5597_v30, %s10311_s19  ;;  %5335 = vst.msk [vmem:[#allocation3 + $0x468] sm:$0xff] %vm3491_vm7, %v5248_v39  ;;  %v5610_v30 = vld [vmem:[#allocation2 + $0xeb] sm:$0xff]  ;;  %v5613_v39 = vld [vmem:[#allocation2 + $0x103] sm:$0xff] }
 0x5f3   : > { %5691 = vrot.lane.b32.xlu0 %v5598_v4, %s10311_s19 }
 0x5f4   : > { %v5250_v45 = vpop.permute.xlu1 %5249 }
 0x5f5   : > { %5336 = vst.msk [vmem:[#allocation3 + $0x488] sm:$0xff] %vm3491_vm7, %v5250_v45  ;;  %v5252_v5 = vpop.permute.xlu0 %5251 }
 0x5f6   : > { %5693 = vrot.lane.b32.xlu1 %v5599_v31, %s10311_s19  ;;  %5337 = vst.msk [vmem:[#allocation3 + $0x4a8] sm:$0xff] %vm3491_vm7, %v5252_v5  ;;  %v5612_v31 = vld [vmem:[#allocation2 + $0xfb] sm:$0xff]  ;;  %v5615_v5 = vld [vmem:[#allocation2 + $0x113] sm:$0xff] }
 0x5f7   : > { %5695 = vrot.lane.b32.xlu0 %v5600_v22, %s10311_s19 }
 0x5f8   : > { %v5254_v6 = vpop.permute.xlu1 %5253 }
 0x5f9   : > { %5338 = vst.msk [vmem:[#allocation3 + $0x4c8] sm:$0xff] %vm3491_vm7, %v5254_v6  ;;  %v5256_v17 = vpop.permute.xlu0 %5255 }
 0x5fa   : > { %5697 = vrot.lane.b32.xlu1 %v5601_v53, %s10311_s19  ;;  %5339 = vst.msk [vmem:[#allocation3 + $0x4e8] sm:$0xff] %vm3491_vm7, %v5256_v17  ;;  %v5614_v53 = vld [vmem:[#allocation2 + $0x10b] sm:$0xff]  ;;  %v5617_v17 = vld [vmem:[#allocation2 + $0x123] sm:$0xff] }
 0x5fb   : > { %5699 = vrot.lane.b32.xlu0 %v5602_v7, %s10311_s19 }
 0x5fc   : > { %v5258_v55 = vpop.permute.xlu1 %5257 }
 0x5fd   : > { %5340 = vst.msk [vmem:[#allocation3 + $0x508] sm:$0xff] %vm3491_vm7, %v5258_v55  ;;  %v5424_v37 = vpop.permute.xlu0 %5423 }
 0x5fe   : > { %5701 = vrot.lane.b32.xlu1 %v5603_v24, %s10311_s19  ;;  %5546 = vst.msk [vmem:[#allocation3 + $0x8] sm:$0xff] %vm3738_vm8, %v5424_v37  ;;  %v5616_v24 = vld [vmem:[#allocation2 + $0x11b] sm:$0xff]  ;;  %v5619_v37 = vld [vmem:[#allocation2 + $0x133] sm:$0xff] }
 0x5ff   : > { %5703 = vrot.lane.b32.xlu0 %v5604_v21, %s10311_s19 }
 0x600   : > { %v5426_v38 = vpop.permute.xlu1 %5425 }
 0x601   : > { %5547 = vst.msk [vmem:[#allocation3 + $0x28] sm:$0xff] %vm3738_vm8, %v5426_v38  ;;  %v5428_v60 = vpop.permute.xlu0 %5427 }
 0x602   : > { %5705 = vrot.lane.b32.xlu1 %v5605_v18, %s10311_s19  ;;  %5548 = vst.msk [vmem:[#allocation3 + $0x48] sm:$0xff] %vm3738_vm8, %v5428_v60  ;;  %v5618_v18 = vld [vmem:[#allocation2 + $0x12b] sm:$0xff]  ;;  %v5621_v60 = vld [vmem:[#allocation2 + $0x143] sm:$0xff] }
 0x603   : > { %5707 = vrot.lane.b32.xlu0 %v5606_v41, %s10311_s19 }
 0x604   : > { %v5430_v51 = vpop.permute.xlu1 %5429 }
 0x605   : > { %5549 = vst.msk [vmem:[#allocation3 + $0x68] sm:$0xff] %vm3738_vm8, %v5430_v51  ;;  %v5432_v42 = vpop.permute.xlu0 %5431 }
 0x606   : > { %5709 = vrot.lane.b32.xlu1 %v5607_v32, %s10311_s19  ;;  %5550 = vst.msk [vmem:[#allocation3 + $0x88] sm:$0xff] %vm3738_vm8, %v5432_v42  ;;  %v5620_v32 = vld [vmem:[#allocation2 + $0x13b] sm:$0xff] }
 0x607   : > { %5711 = vrot.lane.b32.xlu0 %v5608_v12, %s10311_s19  ;;  %v5625_v12 = vld [vmem:[#allocation2 + $0x163] sm:$0xff] }
 0x608   : > { %v5434_v2 = vpop.permute.xlu1 %5433 }
 0x609   : > { %5551 = vst.msk [vmem:[#allocation3 + $0xa8] sm:$0xff] %vm3738_vm8, %v5434_v2  ;;  %v5436_v48 = vpop.permute.xlu0 %5435 }
 0x60a   : > { %5713 = vrot.lane.b32.xlu1 %v5609_v44, %s10311_s19  ;;  %5552 = vst.msk [vmem:[#allocation3 + $0xc8] sm:$0xff] %vm3738_vm8, %v5436_v48 }
 0x60b   : > { %5715 = vrot.lane.b32.xlu0 %v5610_v30, %s10311_s19 }
 0x60c   : > { %v5438_v19 = vpop.permute.xlu1 %5437 }
 0x60d   : > { %5553 = vst.msk [vmem:[#allocation3 + $0xe8] sm:$0xff] %vm3738_vm8, %v5438_v19  ;;  %v5440_v45 = vpop.permute.xlu0 %5439 }
 0x60e   : > { %5717 = vrot.lane.b32.xlu1 %v5611_v29, %s10311_s19  ;;  %5554 = vst.msk [vmem:[#allocation3 + $0x108] sm:$0xff] %vm3738_vm8, %v5440_v45 }
 0x60f   : > { %5719 = vrot.lane.b32.xlu0 %v5612_v31, %s10311_s19  ;;  %v5836_v31 = vld [vmem:[#allocation2 + $0x4c] sm:$0xff] }
 0x610   : > { %v5442_v3 = vpop.permute.xlu1 %5441 }
 0x611   : > { %5555 = vst.msk [vmem:[#allocation3 + $0x128] sm:$0xff] %vm3738_vm8, %v5442_v3  ;;  %v5444_v6 = vpop.permute.xlu0 %5443  ;;  %v5834_v3 = vld [vmem:[#allocation2 + $0x3c] sm:$0xff] }
 0x612   : > { %5721 = vrot.lane.b32.xlu1 %v5613_v39, %s10311_s19  ;;  %5556 = vst.msk [vmem:[#allocation3 + $0x148] sm:$0xff] %vm3738_vm8, %v5444_v6 }
 0x613   : > { %5723 = vrot.lane.b32.xlu0 %v5614_v53, %s10311_s19  ;;  %v5838_v53 = vld [vmem:[#allocation2 + $0x5c] sm:$0xff] }
 0x614   : > { %v5446_v4 = vpop.permute.xlu1 %5445 }
 0x615   : > { %5557 = vst.msk [vmem:[#allocation3 + $0x168] sm:$0xff] %vm3738_vm8, %v5446_v4  ;;  %v5448_v55 = vpop.permute.xlu0 %5447  ;;  %v5835_v4 = vld [vmem:[#allocation2 + $0x44] sm:$0xff] }
 0x616   : > { %5725 = vrot.lane.b32.xlu1 %v5615_v5, %s10311_s19  ;;  %5558 = vst.msk [vmem:[#allocation3 + $0x188] sm:$0xff] %vm3738_vm8, %v5448_v55 }
 0x617   : > { %5727 = vrot.lane.b32.xlu0 %v5616_v24, %s10311_s19  ;;  %v5840_v24 = vld [vmem:[#allocation2 + $0x6c] sm:$0xff] }
 0x618   : > { %v5450_v22 = vpop.permute.xlu1 %5449 }
 0x619   : > { %5559 = vst.msk [vmem:[#allocation3 + $0x1a8] sm:$0xff] %vm3738_vm8, %v5450_v22  ;;  %v5452_v38 = vpop.permute.xlu0 %5451  ;;  %v5837_v22 = vld [vmem:[#allocation2 + $0x54] sm:$0xff] }
 0x61a   : > { %5729 = vrot.lane.b32.xlu1 %v5617_v17, %s10311_s19  ;;  %5560 = vst.msk [vmem:[#allocation3 + $0x1c8] sm:$0xff] %vm3738_vm8, %v5452_v38  ;;  %v8375_v38 = vld [vmem:[%s14624_s4] sm:$0xff] }
 0x61b   : > { %5731 = vrot.lane.b32.xlu0 %v5618_v18, %s10311_s19  ;;  %v10314_v18 = vmov 0.0|0.0  }
 0x61c   : > { %v5454_v7 = vpop.permute.xlu1 %5453  ;;  %10121 = vmatprep.subr.bf16.mxu1 %v10314_v18 }
 0x61d   : > { %5561 = vst.msk [vmem:[#allocation3 + $0x1e8] sm:$0xff] %vm3738_vm8, %v5454_v7  ;;  %v5456_v51 = vpop.permute.xlu0 %5455  ;;  %v5839_v7 = vld [vmem:[#allocation2 + $0x64] sm:$0xff] }
 0x61e   : > { %5733 = vrot.lane.b32.xlu1 %v5619_v37, %s10311_s19  ;;  %5562 = vst.msk [vmem:[#allocation3 + $0x208] sm:$0xff] %vm3738_vm8, %v5456_v51  ;;  %v8376_v37 = vld [vmem:[%s14624_s4 + $0x8] sm:$0xff] }
 0x61f   : > { %5735 = vrot.lane.b32.xlu0 %v5620_v32, %s10311_s19  ;;  %v5842_v32 = vld [vmem:[#allocation2 + $0x7c] sm:$0xff] }
 0x620   : > { %v5458_v21 = vpop.permute.xlu1 %5457 }
 0x621   : > { %5563 = vst.msk [vmem:[#allocation3 + $0x228] sm:$0xff] %vm3738_vm8, %v5458_v21  ;;  %v5460_v2 = vpop.permute.xlu0 %5459  ;;  %v10122_v21 = vpack.c.bf16 %v8376_v37, %v8375_v38 }
 0x622   : > { %5737 = vrot.lane.b32.xlu1 %v5621_v60, %s10311_s19  ;;  %5564 = vst.msk [vmem:[#allocation3 + $0x248] sm:$0xff] %vm3738_vm8, %v5460_v2  ;;  %v8377_v2 = vld [vmem:[%s14624_s4 + $0x10] sm:$0xff] }
 0x623   : > { %5739 = vrot.lane.b32.xlu0 %v12099_v13, %s10311_s19  ;;  %v5626_v13 = vld [vmem:[#allocation2 + $0x16b] sm:$0xff]  ;;  %10123 = vmatpush1.bf16.msra.mxu1 %v10122_v21  ;;  %v5850_v21 = vld [vmem:[#allocation2 + $0xbc] sm:$0xff] }
 0x624   : > { %v5462_v41 = vpop.permute.xlu1 %5461  ;;  %10124 = vmatprep.subr.bf16.mxu1 %v10314_v18 }
 0x625   : > { %5565 = vst.msk [vmem:[#allocation3 + $0x268] sm:$0xff] %vm3738_vm8, %v5462_v41  ;;  %v5464_v44 = vpop.permute.xlu0 %5463  ;;  %v5841_v41 = vld [vmem:[#allocation2 + $0x74] sm:$0xff] }
 0x626   : > { %5741 = vrot.lane.b32.xlu1 %v12122_v43, %s10311_s19  ;;  %5566 = vst.msk [vmem:[#allocation3 + $0x288] sm:$0xff] %vm3738_vm8, %v5464_v44  ;;  %v5627_v43 = vld [vmem:[#allocation2 + $0x173] sm:$0xff] }
 0x627   : > { %5743 = vrot.lane.b32.xlu0 %v12127_v8, %s10311_s19  ;;  %v5833_v8 = vld [vmem:[#allocation2 + $0x34] sm:$0xff] }
 0x628   : > { %v5466_v42 = vpop.permute.xlu1 %5465 }
 0x629   : > { %5567 = vst.msk [vmem:[#allocation3 + $0x2a8] sm:$0xff] %vm3738_vm8, %v5466_v42  ;;  %v5468_v48 = vpop.permute.xlu0 %5467  ;;  %v8378_v42 = vld [vmem:[%s14624_s4 + $0x18] sm:$0xff] }
 0x62a   : > { %5745 = vrot.lane.b32.xlu1 %v5625_v12, %s10311_s19  ;;  %5568 = vst.msk [vmem:[#allocation3 + $0x2c8] sm:$0xff] %vm3738_vm8, %v5468_v48  ;;  %v10125_v44 = vpack.c.bf16 %v8378_v42, %v8377_v2  ;;  %v5844_v48 = vld [vmem:[#allocation2 + $0x8c] sm:$0xff] }
 0x62b   : > { %5747 = vrot.lane.b32.xlu0 %v5626_v13, %s10311_s19  ;;  %v8379_v13 = vld [vmem:[%s14624_s4 + $0x20] sm:$0xff] }
 0x62c   : > { %v5470_v19 = vpop.permute.xlu1 %5469  ;;  %10126 = vmatpush1.bf16.msra.mxu1 %v10125_v44  ;;  %v5852_v44 = vld [vmem:[#allocation2 + $0xcc] sm:$0xff] }
 0x62d   : > { %5569 = vst.msk [vmem:[#allocation3 + $0x2e8] sm:$0xff] %vm3738_vm8, %v5470_v19  ;;  %v5472_v30 = vpop.permute.xlu0 %5471  ;;  %10127 = vmatprep.subr.bf16.mxu1 %v10314_v18 }
 0x62e   : > { %5749 = vrot.lane.b32.xlu1 %v5627_v43, %s10311_s19  ;;  %5570 = vst.msk [vmem:[#allocation3 + $0x308] sm:$0xff] %vm3738_vm8, %v5472_v30  ;;  %v5843_v43 = vld [vmem:[#allocation2 + $0x84] sm:$0xff] }
 0x62f   : > { %5915 = vrot.lane.b32.xlu0 %v5833_v8, %s10312_s24 }
 0x630   : > { %v5474_v29 = vpop.permute.xlu1 %5473 }
 0x631   : > { %5571 = vst.msk [vmem:[#allocation3 + $0x328] sm:$0xff] %vm3738_vm8, %v5474_v29  ;;  %v5476_v39 = vpop.permute.xlu0 %5475  ;;  %v8380_v29 = vld [vmem:[%s14624_s4 + $0x28] sm:$0xff] }
 0x632   : > { %5917 = vrot.lane.b32.xlu1 %v5834_v3, %s10312_s24  ;;  %5572 = vst.msk [vmem:[#allocation3 + $0x348] sm:$0xff] %vm3738_vm8, %v5476_v39  ;;  %v10128_v30 = vpack.c.bf16 %v8380_v29, %v8379_v13  ;;  %v5845_v39 = vld [vmem:[#allocation2 + $0x94] sm:$0xff] }
 0x633   : > { %5919 = vrot.lane.b32.xlu0 %v5835_v4, %s10312_s24  ;;  %v8382_v4 = vld [vmem:[%s14624_s4 + $0x38] sm:$0xff] }
 0x634   : > { %v5478_v45 = vpop.permute.xlu1 %5477  ;;  %10129 = vmatpush1.bf16.msra.mxu1 %v10128_v30  ;;  %v5854_v30 = vld [vmem:[#allocation2 + $0xdc] sm:$0xff] }
 0x635   : > { %5573 = vst.msk [vmem:[#allocation3 + $0x368] sm:$0xff] %vm3738_vm8, %v5478_v45  ;;  %v5480_v5 = vpop.permute.xlu0 %5479  ;;  %v5846_v45 = vld [vmem:[#allocation2 + $0x9c] sm:$0xff]  ;;  %10130 = vmatprep.subr.bf16.mxu1 %v10314_v18 }
 0x636   : > { %5921 = vrot.lane.b32.xlu1 %v5836_v31, %s10312_s24  ;;  %5574 = vst.msk [vmem:[#allocation3 + $0x388] sm:$0xff] %vm3738_vm8, %v5480_v5  ;;  %v8381_v31 = vld [vmem:[%s14624_s4 + $0x30] sm:$0xff] }
 0x637   : > { %5923 = vrot.lane.b32.xlu0 %v5837_v22, %s10312_s24  ;;  %v5848_v22 = vld [vmem:[#allocation2 + $0xac] sm:$0xff] }
 0x638   : > { %v5482_v6 = vpop.permute.xlu1 %5481 }
 0x639   : > { %5575 = vst.msk [vmem:[#allocation3 + $0x3a8] sm:$0xff] %vm3738_vm8, %v5482_v6  ;;  %v5484_v17 = vpop.permute.xlu0 %5483  ;;  %v10131_v6 = vpack.c.bf16 %v8382_v4, %v8381_v31 }
 0x63a   : > { %5925 = vrot.lane.b32.xlu1 %v5838_v53, %s10312_s24  ;;  %5576 = vst.msk [vmem:[#allocation3 + $0x3c8] sm:$0xff] %vm3738_vm8, %v5484_v17  ;;  %v8383_v17 = vld [vmem:[%s14624_s4 + $0x40] sm:$0xff] }
 0x63b   : > { %5927 = vrot.lane.b32.xlu0 %v5839_v7, %s10312_s24  ;;  %10132 = vmatpush1.bf16.msra.mxu1 %v10131_v6  ;;  %v5856_v6 = vld [vmem:[#allocation2 + $0xec] sm:$0xff] }
 0x63c   : > { %v5486_v55 = vpop.permute.xlu1 %5485  ;;  %10133 = vmatprep.subr.bf16.mxu1 %v10314_v18 }
 0x63d   : > { %5577 = vst.msk [vmem:[#allocation3 + $0x3e8] sm:$0xff] %vm3738_vm8, %v5486_v55  ;;  %v5488_v60 = vpop.permute.xlu0 %5487  ;;  %v5847_v55 = vld [vmem:[#allocation2 + $0xa4] sm:$0xff] }
 0x63e   : > { %5929 = vrot.lane.b32.xlu1 %v5840_v24, %s10312_s24  ;;  %5578 = vst.msk [vmem:[#allocation3 + $0x408] sm:$0xff] %vm3738_vm8, %v5488_v60  ;;  %v8384_v24 = vld [vmem:[%s14624_s4 + $0x48] sm:$0xff]  ;;  %v8385_v60 = vld [vmem:[%s14624_s4 + $0x50] sm:$0xff] }
 0x63f   : > { %5931 = vrot.lane.b32.xlu0 %v5841_v41, %s10312_s24  ;;  %v10134_v7 = vpack.c.bf16 %v8384_v24, %v8383_v17 }
 0x640   : > { %v5490_v51 = vpop.permute.xlu1 %5489 }
 0x641   : > { %5579 = vst.msk [vmem:[#allocation3 + $0x428] sm:$0xff] %vm3738_vm8, %v5490_v51  ;;  %v5492_v19 = vpop.permute.xlu0 %5491  ;;  %v5849_v51 = vld [vmem:[#allocation2 + $0xb4] sm:$0xff]  ;;  %10135 = vmatpush1.bf16.msra.mxu1 %v10134_v7  ;;  %v5858_v7 = vld [vmem:[#allocation2 + $0xfc] sm:$0xff] }
 0x642   : > { %5933 = vrot.lane.b32.xlu1 %v5842_v32, %s10312_s24  ;;  %5580 = vst.msk [vmem:[#allocation3 + $0x448] sm:$0xff] %vm3738_vm8, %v5492_v19  ;;  %v8386_v32 = vld [vmem:[%s14624_s4 + $0x58] sm:$0xff]  ;;  %10136 = vmatprep.subr.bf16.mxu1 %v10314_v18  ;;  %v8387_v19 = vld [vmem:[%s14624_s4 + $0x60] sm:$0xff] }
 0x643   : > { %5935 = vrot.lane.b32.xlu0 %v5843_v43, %s10312_s24  ;;  %v10137_v41 = vpack.c.bf16 %v8386_v32, %v8385_v60 }
 0x644   : > { %v5494_v12 = vpop.permute.xlu1 %5493 }
 0x645   : > { %5581 = vst.msk [vmem:[#allocation3 + $0x468] sm:$0xff] %vm3738_vm8, %v5494_v12  ;;  %v5496_v8 = vpop.permute.xlu0 %5495  ;;  %v5851_v12 = vld [vmem:[#allocation2 + $0xc4] sm:$0xff]  ;;  %10138 = vmatpush1.bf16.msra.mxu1 %v10137_v41  ;;  %v5860_v41 = vld [vmem:[#allocation2 + $0x10c] sm:$0xff] }
 0x646   : > { %5937 = vrot.lane.b32.xlu1 %v5844_v48, %s10312_s24  ;;  %5582 = vst.msk [vmem:[#allocation3 + $0x488] sm:$0xff] %vm3738_vm8, %v5496_v8  ;;  %v8388_v48 = vld [vmem:[%s14624_s4 + $0x68] sm:$0xff]  ;;  %10139 = vmatprep.subr.bf16.mxu1 %v10314_v18  ;;  %v8389_v8 = vld [vmem:[%s14624_s4 + $0x70] sm:$0xff] }
 0x647   : > { %5939 = vrot.lane.b32.xlu0 %v5845_v39, %s10312_s24  ;;  %v10140_v43 = vpack.c.bf16 %v8388_v48, %v8387_v19 }
 0x648   : > { %v5498_v3 = vpop.permute.xlu1 %5497 }
 0x649   : > { %5583 = vst.msk [vmem:[#allocation3 + $0x4a8] sm:$0xff] %vm3738_vm8, %v5498_v3  ;;  %v5500_v53 = vpop.permute.xlu0 %5499  ;;  %v5853_v3 = vld [vmem:[#allocation2 + $0xd4] sm:$0xff]  ;;  %10141 = vmatpush1.bf16.msra.mxu1 %v10140_v43  ;;  %v5862_v43 = vld [vmem:[#allocation2 + $0x11c] sm:$0xff] }
 0x64a   : > { %5941 = vrot.lane.b32.xlu1 %v5846_v45, %s10312_s24  ;;  %5584 = vst.msk [vmem:[#allocation3 + $0x4c8] sm:$0xff] %vm3738_vm8, %v5500_v53  ;;  %v8390_v45 = vld [vmem:[%s14624_s4 + $0x78] sm:$0xff]  ;;  %10142 = vmatprep.subr.bf16.mxu1 %v10314_v18  ;;  %v8391_v53 = vld [vmem:[%s14624_s4 + $0x80] sm:$0xff] }
 0x64b   : > { %5943 = vrot.lane.b32.xlu0 %v5847_v55, %s10312_s24  ;;  %v10143_v39 = vpack.c.bf16 %v8390_v45, %v8389_v8 }
 0x64c   : > { %v5502_v5 = vpop.permute.xlu1 %5501 }
 0x64d   : > { %5585 = vst.msk [vmem:[#allocation3 + $0x4e8] sm:$0xff] %vm3738_vm8, %v5502_v5  ;;  %v5504_v37 = vpop.permute.xlu0 %5503  ;;  %v5855_v5 = vld [vmem:[#allocation2 + $0xe4] sm:$0xff]  ;;  %10144 = vmatpush1.bf16.msra.mxu1 %v10143_v39  ;;  %v5864_v39 = vld [vmem:[#allocation2 + $0x12c] sm:$0xff] }
 0x64e   : > { %5945 = vrot.lane.b32.xlu1 %v5848_v22, %s10312_s24  ;;  %5586 = vst.msk [vmem:[#allocation3 + $0x508] sm:$0xff] %vm3738_vm8, %v5504_v37  ;;  %v8392_v22 = vld [vmem:[%s14624_s4 + $0x88] sm:$0xff]  ;;  %10145 = vmatprep.subr.bf16.mxu1 %v10314_v18  ;;  %v8393_v37 = vld [vmem:[%s14624_s4 + $0x90] sm:$0xff] }
 0x64f   : > { %5947 = vrot.lane.b32.xlu0 %v5849_v51, %s10312_s24  ;;  %v10146_v55 = vpack.c.bf16 %v8392_v22, %v8391_v53 }
 0x650   : > { %v5670_v38 = vpop.permute.xlu1 %5669 }
 0x651   : > { %5792 = vst.msk [vmem:[#allocation3 + $0x8] sm:$0xff] %vm3985_vm9, %v5670_v38  ;;  %v5672_v42 = vpop.permute.xlu0 %5671  ;;  %v5857_v38 = vld [vmem:[#allocation2 + $0xf4] sm:$0xff]  ;;  %10147 = vmatpush1.bf16.msra.mxu1 %v10146_v55  ;;  %v5866_v55 = vld [vmem:[#allocation2 + $0x13c] sm:$0xff] }
 0x652   : > { %5949 = vrot.lane.b32.xlu1 %v5850_v21, %s10312_s24  ;;  %5793 = vst.msk [vmem:[#allocation3 + $0x28] sm:$0xff] %vm3985_vm9, %v5672_v42  ;;  %v8394_v21 = vld [vmem:[%s14624_s4 + $0x98] sm:$0xff]  ;;  %10148 = vmatprep.subr.bf16.mxu1 %v10314_v18  ;;  %v8395_v42 = vld [vmem:[%s14624_s4 + $0xa0] sm:$0xff] }
 0x653   : > { %5951 = vrot.lane.b32.xlu0 %v5851_v12, %s10312_s24  ;;  %v10149_v51 = vpack.c.bf16 %v8394_v21, %v8393_v37 }
 0x654   : > { %v5674_v2 = vpop.permute.xlu1 %5673 }
 0x655   : > { %5794 = vst.msk [vmem:[#allocation3 + $0x48] sm:$0xff] %vm3985_vm9, %v5674_v2  ;;  %v5676_v29 = vpop.permute.xlu0 %5675  ;;  %v5859_v2 = vld [vmem:[#allocation2 + $0x104] sm:$0xff]  ;;  %10150 = vmatpush1.bf16.msra.mxu1 %v10149_v51  ;;  %v5868_v51 = vld [vmem:[#allocation2 + $0x14c] sm:$0xff] }
 0x656   : > { %5953 = vrot.lane.b32.xlu1 %v5852_v44, %s10312_s24  ;;  %5795 = vst.msk [vmem:[#allocation3 + $0x68] sm:$0xff] %vm3985_vm9, %v5676_v29  ;;  %v8396_v44 = vld [vmem:[%s14624_s4 + $0xa8] sm:$0xff]  ;;  %10151 = vmatprep.subr.bf16.mxu1 %v10314_v18  ;;  %v8397_v29 = vld [vmem:[%s14624_s4 + $0xb0] sm:$0xff] }
 0x657   : > { %5955 = vrot.lane.b32.xlu0 %v5853_v3, %s10312_s24  ;;  %v10152_v12 = vpack.c.bf16 %v8396_v44, %v8395_v42 }
 0x658   : > { %v5678_v13 = vpop.permute.xlu1 %5677 }
 0x659   : > { %5796 = vst.msk [vmem:[#allocation3 + $0x88] sm:$0xff] %vm3985_vm9, %v5678_v13  ;;  %v5680_v4 = vpop.permute.xlu0 %5679  ;;  %v5861_v13 = vld [vmem:[#allocation2 + $0x114] sm:$0xff]  ;;  %10153 = vmatpush1.bf16.msra.mxu1 %v10152_v12  ;;  %v5870_v12 = vld [vmem:[#allocation2 + $0x15c] sm:$0xff] }
 0x65a   : > { %5957 = vrot.lane.b32.xlu1 %v5854_v30, %s10312_s24  ;;  %5797 = vst.msk [vmem:[#allocation3 + $0xa8] sm:$0xff] %vm3985_vm9, %v5680_v4  ;;  %v8398_v30 = vld [vmem:[%s14624_s4 + $0xb8] sm:$0xff]  ;;  %10154 = vmatprep.subr.bf16.mxu1 %v10314_v18  ;;  %v8399_v4 = vld [vmem:[%s14624_s4 + $0xc0] sm:$0xff] }
 0x65b   : > { %5959 = vrot.lane.b32.xlu0 %v5855_v5, %s10312_s24  ;;  %v10155_v3 = vpack.c.bf16 %v8398_v30, %v8397_v29 }
 0x65c   : > { %v5682_v31 = vpop.permute.xlu1 %5681 }
 0x65d   : > { %5798 = vst.msk [vmem:[#allocation3 + $0xc8] sm:$0xff] %vm3985_vm9, %v5682_v31  ;;  %v5684_v24 = vpop.permute.xlu0 %5683  ;;  %v5863_v31 = vld [vmem:[#allocation2 + $0x124] sm:$0xff]  ;;  %10156 = vmatpush1.bf16.msra.mxu1 %v10155_v3  ;;  %v5872_v3 = vld [vmem:[#allocation2 + $0x16c] sm:$0xff] }
 0x65e   : > { %5961 = vrot.lane.b32.xlu1 %v5856_v6, %s10312_s24  ;;  %5799 = vst.msk [vmem:[#allocation3 + $0xe8] sm:$0xff] %vm3985_vm9, %v5684_v24  ;;  %v8400_v6 = vld [vmem:[%s14624_s4 + $0xc8] sm:$0xff]  ;;  %10157 = vmatprep.subr.bf16.mxu1 %v10314_v18  ;;  %v8401_v24 = vld [vmem:[%s14624_s4 + $0xd0] sm:$0xff] }
 0x65f   : > { %5963 = vrot.lane.b32.xlu0 %v5857_v38, %s10312_s24  ;;  %v10158_v5 = vpack.c.bf16 %v8400_v6, %v8399_v4  ;;  %v5873_v4 = vld [vmem:[#allocation2 + $0x174] sm:$0xff] }
 0x660   : > { %v5686_v17 = vpop.permute.xlu1 %5685 }
 0x661   : > { %5800 = vst.msk [vmem:[#allocation3 + $0x108] sm:$0xff] %vm3985_vm9, %v5686_v17  ;;  %v5688_v32 = vpop.permute.xlu0 %5687  ;;  %v5865_v17 = vld [vmem:[#allocation2 + $0x134] sm:$0xff]  ;;  %10159 = vmatpush1.bf16.msra.mxu1 %v10158_v5 }
 0x662   : > { %5965 = vrot.lane.b32.xlu1 %v5858_v7, %s10312_s24  ;;  %5801 = vst.msk [vmem:[#allocation3 + $0x128] sm:$0xff] %vm3985_vm9, %v5688_v32  ;;  %v8402_v7 = vld [vmem:[%s14624_s4 + $0xd8] sm:$0xff]  ;;  %10160 = vmatprep.subr.bf16.mxu1 %v10314_v18  ;;  %v8403_v32 = vld [vmem:[%s14624_s4 + $0xe0] sm:$0xff] }
 0x663   : > { %5967 = vrot.lane.b32.xlu0 %v5859_v2, %s10312_s24  ;;  %v10161_v38 = vpack.c.bf16 %v8402_v7, %v8401_v24  ;;  %v6083_v24 = vld [vmem:[#allocation2 + $0x68] sm:$0xff]  ;;  %v6082_v7 = vld [vmem:[#allocation2 + $0x60] sm:$0xff] }
 0x664   : > { %v5690_v60 = vpop.permute.xlu1 %5689 }
 0x665   : > { %5802 = vst.msk [vmem:[#allocation3 + $0x148] sm:$0xff] %vm3985_vm9, %v5690_v60  ;;  %v5692_v48 = vpop.permute.xlu0 %5691  ;;  %v5867_v60 = vld [vmem:[#allocation2 + $0x144] sm:$0xff]  ;;  %10162 = vmatpush1.bf16.msra.mxu1 %v10161_v38 }
 0x666   : > { %5969 = vrot.lane.b32.xlu1 %v5860_v41, %s10312_s24  ;;  %5803 = vst.msk [vmem:[#allocation3 + $0x168] sm:$0xff] %vm3985_vm9, %v5692_v48  ;;  %v8404_v41 = vld [vmem:[%s14624_s4 + $0xe8] sm:$0xff]  ;;  %10163 = vmatprep.subr.bf16.mxu1 %v10314_v18  ;;  %v8405_v48 = vld [vmem:[%s14624_s4 + $0xf0] sm:$0xff] }
 0x667   : > { %5971 = vrot.lane.b32.xlu0 %v5861_v13, %s10312_s24  ;;  %v10164_v2 = vpack.c.bf16 %v8404_v41, %v8403_v32  ;;  %v6087_v41 = vld [vmem:[#allocation2 + $0x88] sm:$0xff] }
 0x668   : > { %v5694_v19 = vpop.permute.xlu1 %5693 }
 0x669   : > { %5804 = vst.msk [vmem:[#allocation3 + $0x188] sm:$0xff] %vm3985_vm9, %v5694_v19  ;;  %v5696_v45 = vpop.permute.xlu0 %5695  ;;  %v5869_v19 = vld [vmem:[#allocation2 + $0x154] sm:$0xff]  ;;  %10165 = vmatpush1.bf16.msra.mxu1 %v10164_v2  ;;  %v6086_v2 = vld [vmem:[#allocation2 + $0x80] sm:$0xff] }
 0x66a   : > { %5973 = vrot.lane.b32.xlu1 %v5862_v43, %s10312_s24  ;;  %5805 = vst.msk [vmem:[#allocation3 + $0x1a8] sm:$0xff] %vm3985_vm9, %v5696_v45  ;;  %v8406_v43 = vld [vmem:[%s14624_s4 + $0xf8] sm:$0xff]  ;;  %10166 = vmatprep.subr.bf16.mxu1 %v10314_v18 }
 0x66b   : > { %5975 = vrot.lane.b32.xlu0 %v5863_v31, %s10312_s24  ;;  %v10167_v13 = vpack.c.bf16 %v8406_v43, %v8405_v48  ;;  %v6079_v31 = vld [vmem:[#allocation2 + $0x48] sm:$0xff] }
 0x66c   : > { %v5698_v8 = vpop.permute.xlu1 %5697 }
 0x66d   : > { %5806 = vst.msk [vmem:[#allocation3 + $0x1c8] sm:$0xff] %vm3985_vm9, %v5698_v8  ;;  %v5700_v22 = vpop.permute.xlu0 %5699  ;;  %v5871_v8 = vld [vmem:[#allocation2 + $0x164] sm:$0xff]  ;;  %10168 = vmatpush1.bf16.msra.mxu1 %v10167_v13 }
 0x66e   : > { %5977 = vrot.lane.b32.xlu1 %v5864_v39, %s10312_s24  ;;  %5807 = vst.msk [vmem:[#allocation3 + $0x1e8] sm:$0xff] %vm3985_vm9, %v5700_v22  ;;  %10169 = vmatprep.subr.bf16.mxu1 %v10314_v18  ;;  %v6080_v22 = vld [vmem:[#allocation2 + $0x50] sm:$0xff]  ;;  %v6091_v13 = vld [vmem:[#allocation2 + $0xa8] sm:$0xff] }
 0x66f   : > { %5979 = vrot.lane.b32.xlu0 %v5865_v17, %s10312_s24 }
 0x670   : > { %v5702_v53 = vpop.permute.xlu1 %5701 }
 0x671   : > { %5808 = vst.msk [vmem:[#allocation3 + $0x208] sm:$0xff] %vm3985_vm9, %v5702_v53  ;;  %v5704_v21 = vpop.permute.xlu0 %5703  ;;  %v6081_v53 = vld [vmem:[#allocation2 + $0x58] sm:$0xff] }
 0x672   : > { %5981 = vrot.lane.b32.xlu1 %v5866_v55, %s10312_s24  ;;  %5809 = vst.msk [vmem:[#allocation3 + $0x228] sm:$0xff] %vm3985_vm9, %v5704_v21  ;;  %v6085_v21 = vld [vmem:[#allocation2 + $0x78] sm:$0xff] }
 0x673   : > { %5983 = vrot.lane.b32.xlu0 %v5867_v60, %s10312_s24 }
 0x674   : > { %v5706_v37 = vpop.permute.xlu1 %5705 }
 0x675   : > { %5810 = vst.msk [vmem:[#allocation3 + $0x248] sm:$0xff] %vm3985_vm9, %v5706_v37  ;;  %v5708_v44 = vpop.permute.xlu0 %5707 }
 0x676   : > { %5985 = vrot.lane.b32.xlu1 %v5868_v51, %s10312_s24  ;;  %5811 = vst.msk [vmem:[#allocation3 + $0x268] sm:$0xff] %vm3985_vm9, %v5708_v44  ;;  %v6084_v51 = vld [vmem:[#allocation2 + $0x70] sm:$0xff] }
 0x677   : > { %5987 = vrot.lane.b32.xlu0 %v5869_v19, %s10312_s24  ;;  %v6088_v19 = vld [vmem:[#allocation2 + $0x90] sm:$0xff] }
 0x678   : > { %v5710_v42 = vpop.permute.xlu1 %5709 }
 0x679   : > { %5812 = vst.msk [vmem:[#allocation3 + $0x288] sm:$0xff] %vm3985_vm9, %v5710_v42  ;;  %v5712_v30 = vpop.permute.xlu0 %5711 }
 0x67a   : > { %5989 = vrot.lane.b32.xlu1 %v5870_v12, %s10312_s24  ;;  %5813 = vst.msk [vmem:[#allocation3 + $0x2a8] sm:$0xff] %vm3985_vm9, %v5712_v30  ;;  %v6089_v12 = vld [vmem:[#allocation2 + $0x98] sm:$0xff] }
 0x67b   : > { %5991 = vrot.lane.b32.xlu0 %v5871_v8, %s10312_s24  ;;  %v6093_v8 = vld [vmem:[#allocation2 + $0xb8] sm:$0xff] }
 0x67c   : > { %v5714_v29 = vpop.permute.xlu1 %5713 }
 0x67d   : > { %5814 = vst.msk [vmem:[#allocation3 + $0x2c8] sm:$0xff] %vm3985_vm9, %v5714_v29  ;;  %v5716_v39 = vpop.permute.xlu0 %5715  ;;  %v6090_v29 = vld [vmem:[#allocation2 + $0xa0] sm:$0xff] }
 0x67e   : > { %5993 = vrot.lane.b32.xlu1 %v5872_v3, %s10312_s24  ;;  %5815 = vst.msk [vmem:[#allocation3 + $0x2e8] sm:$0xff] %vm3985_vm9, %v5716_v39 }
 0x67f   : > { %5995 = vrot.lane.b32.xlu0 %v5873_v4, %s10312_s24  ;;  %v6095_v4 = vld [vmem:[#allocation2 + $0xc8] sm:$0xff] }
 0x680   : > { %v5718_v45 = vpop.permute.xlu1 %5717 }
 0x681   : > { %5816 = vst.msk [vmem:[#allocation3 + $0x308] sm:$0xff] %vm3985_vm9, %v5718_v45  ;;  %v5720_v5 = vpop.permute.xlu0 %5719  ;;  %v6092_v45 = vld [vmem:[#allocation2 + $0xb0] sm:$0xff] }
 0x682   : > { %6161 = vrot.lane.b32.xlu1 %v6079_v31, %s10313_s29  ;;  %5817 = vst.msk [vmem:[#allocation3 + $0x328] sm:$0xff] %vm3985_vm9, %v5720_v5 }
 0x683   : > { %6163 = vrot.lane.b32.xlu0 %v6080_v22, %s10313_s29  ;;  %v6097_v22 = vld [vmem:[#allocation2 + $0xd8] sm:$0xff] }
 0x684   : > { %v5722_v6 = vpop.permute.xlu1 %5721 }
 0x685   : > { %5818 = vst.msk [vmem:[#allocation3 + $0x348] sm:$0xff] %vm3985_vm9, %v5722_v6  ;;  %v5724_v17 = vpop.permute.xlu0 %5723  ;;  %v6094_v6 = vld [vmem:[#allocation2 + $0xc0] sm:$0xff] }
 0x686   : > { %6165 = vrot.lane.b32.xlu1 %v6081_v53, %s10313_s29  ;;  %5819 = vst.msk [vmem:[#allocation3 + $0x368] sm:$0xff] %vm3985_vm9, %v5724_v17 }
 0x687   : > { %6167 = vrot.lane.b32.xlu0 %v6082_v7, %s10313_s29  ;;  %v6099_v7 = vld [vmem:[#allocation2 + $0xe8] sm:$0xff] }
 0x688   : > { %v5726_v55 = vpop.permute.xlu1 %5725 }
 0x689   : > { %5820 = vst.msk [vmem:[#allocation3 + $0x388] sm:$0xff] %vm3985_vm9, %v5726_v55  ;;  %v5728_v37 = vpop.permute.xlu0 %5727  ;;  %v6096_v55 = vld [vmem:[#allocation2 + $0xd0] sm:$0xff] }
 0x68a   : > { %6169 = vrot.lane.b32.xlu1 %v6083_v24, %s10313_s29  ;;  %5821 = vst.msk [vmem:[#allocation3 + $0x3a8] sm:$0xff] %vm3985_vm9, %v5728_v37 }
 0x68b   : > { %6171 = vrot.lane.b32.xlu0 %v6084_v51, %s10313_s29  ;;  %v6101_v51 = vld [vmem:[#allocation2 + $0xf8] sm:$0xff] }
 0x68c   : > { %v5730_v38 = vpop.permute.xlu1 %5729 }
 0x68d   : > { %5822 = vst.msk [vmem:[#allocation3 + $0x3c8] sm:$0xff] %vm3985_vm9, %v5730_v38  ;;  %v5732_v32 = vpop.permute.xlu0 %5731  ;;  %v6098_v38 = vld [vmem:[#allocation2 + $0xe0] sm:$0xff] }
 0x68e   : > { %6173 = vrot.lane.b32.xlu1 %v6085_v21, %s10313_s29  ;;  %5823 = vst.msk [vmem:[#allocation3 + $0x3e8] sm:$0xff] %vm3985_vm9, %v5732_v32 }
 0x68f   : > { %6175 = vrot.lane.b32.xlu0 %v6086_v2, %s10313_s29  ;;  %v6103_v2 = vld [vmem:[#allocation2 + $0x108] sm:$0xff] }
 0x690   : > { %v5734_v60 = vpop.permute.xlu1 %5733 }
 0x691   : > { %5824 = vst.msk [vmem:[#allocation3 + $0x408] sm:$0xff] %vm3985_vm9, %v5734_v60  ;;  %v5736_v44 = vpop.permute.xlu0 %5735  ;;  %v6100_v60 = vld [vmem:[#allocation2 + $0xf0] sm:$0xff] }
 0x692   : > { %6177 = vrot.lane.b32.xlu1 %v6087_v41, %s10313_s29  ;;  %5825 = vst.msk [vmem:[#allocation3 + $0x428] sm:$0xff] %vm3985_vm9, %v5736_v44 }
 0x693   : > { %6179 = vrot.lane.b32.xlu0 %v6088_v19, %s10313_s29  ;;  %v6105_v19 = vld [vmem:[#allocation2 + $0x118] sm:$0xff] }
 0x694   : > { %v5738_v42 = vpop.permute.xlu1 %5737 }
 0x695   : > { %5826 = vst.msk [vmem:[#allocation3 + $0x448] sm:$0xff] %vm3985_vm9, %v5738_v42  ;;  %v5740_v43 = vpop.permute.xlu0 %5739  ;;  %v6102_v42 = vld [vmem:[#allocation2 + $0x100] sm:$0xff] }
 0x696   : > { %6181 = vrot.lane.b32.xlu1 %v6089_v12, %s10313_s29  ;;  %5827 = vst.msk [vmem:[#allocation3 + $0x468] sm:$0xff] %vm3985_vm9, %v5740_v43 }
 0x697   : > { %6183 = vrot.lane.b32.xlu0 %v6090_v29, %s10313_s29  ;;  %v6107_v29 = vld [vmem:[#allocation2 + $0x128] sm:$0xff] }
 0x698   : > { %v5742_v48 = vpop.permute.xlu1 %5741 }
 0x699   : > { %5828 = vst.msk [vmem:[#allocation3 + $0x488] sm:$0xff] %vm3985_vm9, %v5742_v48  ;;  %v5744_v3 = vpop.permute.xlu0 %5743  ;;  %v6104_v48 = vld [vmem:[#allocation2 + $0x110] sm:$0xff] }
 0x69a   : > { %6185 = vrot.lane.b32.xlu1 %v6091_v13, %s10313_s29  ;;  %5829 = vst.msk [vmem:[#allocation3 + $0x4a8] sm:$0xff] %vm3985_vm9, %v5744_v3 }
 0x69b   : > { %6187 = vrot.lane.b32.xlu0 %v6092_v45, %s10313_s29  ;;  %v6109_v45 = vld [vmem:[#allocation2 + $0x138] sm:$0xff] }
 0x69c   : > { %v5746_v30 = vpop.permute.xlu1 %5745 }
 0x69d   : > { %5830 = vst.msk [vmem:[#allocation3 + $0x4c8] sm:$0xff] %vm3985_vm9, %v5746_v30  ;;  %v5748_v31 = vpop.permute.xlu0 %5747  ;;  %v6106_v30 = vld [vmem:[#allocation2 + $0x120] sm:$0xff] }
 0x69e   : > { %6189 = vrot.lane.b32.xlu1 %v6093_v8, %s10313_s29  ;;  %5831 = vst.msk [vmem:[#allocation3 + $0x4e8] sm:$0xff] %vm3985_vm9, %v5748_v31 }
 0x69f   : > { %6191 = vrot.lane.b32.xlu0 %v6094_v6, %s10313_s29  ;;  %v6111_v6 = vld [vmem:[#allocation2 + $0x148] sm:$0xff] }
 0x6a0   : > { %v5750_v39 = vpop.permute.xlu1 %5749 }
 0x6a1   : > { %5832 = vst.msk [vmem:[#allocation3 + $0x508] sm:$0xff] %vm3985_vm9, %v5750_v39  ;;  %v5916_v53 = vpop.permute.xlu0 %5915  ;;  %v6108_v39 = vld [vmem:[#allocation2 + $0x130] sm:$0xff] }
 0x6a2   : > { %6193 = vrot.lane.b32.xlu1 %v6095_v4, %s10313_s29  ;;  %6038 = vst.msk [vmem:[#allocation3 + $0x8] sm:$0xff] %vm4232_vm10, %v5916_v53 }
 0x6a3   : > { %6195 = vrot.lane.b32.xlu0 %v6096_v55, %s10313_s29  ;;  %v6113_v55 = vld [vmem:[#allocation2 + $0x158] sm:$0xff] }
 0x6a4   : > { %v5918_v5 = vpop.permute.xlu1 %5917 }
 0x6a5   : > { %6039 = vst.msk [vmem:[#allocation3 + $0x28] sm:$0xff] %vm4232_vm10, %v5918_v5  ;;  %v5920_v24 = vpop.permute.xlu0 %5919  ;;  %v6110_v5 = vld [vmem:[#allocation2 + $0x140] sm:$0xff] }
 0x6a6   : > { %6197 = vrot.lane.b32.xlu1 %v6097_v22, %s10313_s29  ;;  %6040 = vst.msk [vmem:[#allocation3 + $0x48] sm:$0xff] %vm4232_vm10, %v5920_v24 }
 0x6a7   : > { %6199 = vrot.lane.b32.xlu0 %v6098_v38, %s10313_s29  ;;  %v6115_v38 = vld [vmem:[#allocation2 + $0x168] sm:$0xff] }
 0x6a8   : > { %v5922_v17 = vpop.permute.xlu1 %5921 }
 0x6a9   : > { %6041 = vst.msk [vmem:[#allocation3 + $0x68] sm:$0xff] %vm4232_vm10, %v5922_v17  ;;  %v5924_v21 = vpop.permute.xlu0 %5923  ;;  %v6112_v17 = vld [vmem:[#allocation2 + $0x150] sm:$0xff] }
 0x6aa   : > { %6201 = vrot.lane.b32.xlu1 %v6099_v7, %s10313_s29  ;;  %6042 = vst.msk [vmem:[#allocation3 + $0x88] sm:$0xff] %vm4232_vm10, %v5924_v21 }
 0x6ab   : > { %6203 = vrot.lane.b32.xlu0 %v6100_v60, %s10313_s29  ;;  %v6117_v60 = vld [vmem:[#allocation2 + $0x178] sm:$0xff] }
 0x6ac   : > { %v5926_v37 = vpop.permute.xlu1 %5925 }
 0x6ad   : > { %6043 = vst.msk [vmem:[#allocation3 + $0xa8] sm:$0xff] %vm4232_vm10, %v5926_v37  ;;  %v5928_v41 = vpop.permute.xlu0 %5927  ;;  %v6114_v37 = vld [vmem:[#allocation2 + $0x160] sm:$0xff] }
 0x6ae   : > { %6205 = vrot.lane.b32.xlu1 %v6101_v51, %s10313_s29  ;;  %6044 = vst.msk [vmem:[#allocation3 + $0xc8] sm:$0xff] %vm4232_vm10, %v5928_v41 }
 0x6af   : > { %6207 = vrot.lane.b32.xlu0 %v6102_v42, %s10313_s29  ;;  %v6119_v42 = vld [vmem:[#allocation2 + $0x188] sm:$0xff] }
 0x6b0   : > { %v5930_v32 = vpop.permute.xlu1 %5929 }
 0x6b1   : > { %6045 = vst.msk [vmem:[#allocation3 + $0xe8] sm:$0xff] %vm4232_vm10, %v5930_v32  ;;  %v5932_v12 = vpop.permute.xlu0 %5931  ;;  %v6116_v32 = vld [vmem:[#allocation2 + $0x170] sm:$0xff] }
 0x6b2   : > { %6209 = vrot.lane.b32.xlu1 %v6103_v2, %s10313_s29  ;;  %6046 = vst.msk [vmem:[#allocation3 + $0x108] sm:$0xff] %vm4232_vm10, %v5932_v12 }
 0x6b3   : > { %6211 = vrot.lane.b32.xlu0 %v6104_v48, %s10313_s29  ;;  %v6408_v48 = vld [vmem:[#allocation2 + $0x52] sm:$0xff] }
 0x6b4   : > { %v5934_v44 = vpop.permute.xlu1 %5933 }
 0x6b5   : > { %6047 = vst.msk [vmem:[#allocation3 + $0x128] sm:$0xff] %vm4232_vm10, %v5934_v44  ;;  %v5936_v13 = vpop.permute.xlu0 %5935  ;;  %v6118_v44 = vld [vmem:[#allocation2 + $0x180] sm:$0xff] }
 0x6b6   : > { %6213 = vrot.lane.b32.xlu1 %v6105_v19, %s10313_s29  ;;  %6048 = vst.msk [vmem:[#allocation3 + $0x148] sm:$0xff] %vm4232_vm10, %v5936_v13 }
 0x6b7   : > { %6215 = vrot.lane.b32.xlu0 %v6106_v30, %s10313_s29  ;;  %v13698_v30 = vld [vmem:[#allocation2 + $0x62] sm:$0xff] }
 0x6b8   : > { %v5938_v43 = vpop.permute.xlu1 %5937 }
 0x6b9   : > { %6049 = vst.msk [vmem:[#allocation3 + $0x168] sm:$0xff] %vm4232_vm10, %v5938_v43  ;;  %v5940_v8 = vpop.permute.xlu0 %5939  ;;  %v6407_v43 = vld [vmem:[#allocation2 + $0x4a] sm:$0xff] }
 0x6ba   : > { %6217 = vrot.lane.b32.xlu1 %v6107_v29, %s10313_s29  ;;  %6050 = vst.msk [vmem:[#allocation3 + $0x188] sm:$0xff] %vm4232_vm10, %v5940_v8 }
 0x6bb   : > { %6219 = vrot.lane.b32.xlu0 %v6108_v39, %s10313_s29  ;;  %v13705_v39 = vld [vmem:[#allocation2 + $0x72] sm:$0xff] }
 0x6bc   : > { %v5942_v3 = vpop.permute.xlu1 %5941 }
 0x6bd   : > { %6051 = vst.msk [vmem:[#allocation3 + $0x1a8] sm:$0xff] %vm4232_vm10, %v5942_v3  ;;  %v5944_v4 = vpop.permute.xlu0 %5943  ;;  %v6409_v3 = vld [vmem:[#allocation2 + $0x5a] sm:$0xff] }
 0x6be   : > { %6221 = vrot.lane.b32.xlu1 %v6109_v45, %s10313_s29  ;;  %6052 = vst.msk [vmem:[#allocation3 + $0x1c8] sm:$0xff] %vm4232_vm10, %v5944_v4 }
 0x6bf   : > { %6223 = vrot.lane.b32.xlu0 %v6110_v5, %s10313_s29  ;;  %v13715_v5 = vld [vmem:[#allocation2 + $0x82] sm:$0xff] }
 0x6c0   : > { %v5946_v31 = vpop.permute.xlu1 %5945 }
 0x6c1   : > { %6053 = vst.msk [vmem:[#allocation3 + $0x1e8] sm:$0xff] %vm4232_vm10, %v5946_v31  ;;  %v5948_v22 = vpop.permute.xlu0 %5947  ;;  %v13707_v31 = vld [vmem:[#allocation2 + $0x6a] sm:$0xff] }
 0x6c2   : > { %6225 = vrot.lane.b32.xlu1 %v6111_v6, %s10313_s29  ;;  %6054 = vst.msk [vmem:[#allocation3 + $0x208] sm:$0xff] %vm4232_vm10, %v5948_v22 }
 0x6c3   : > { %6227 = vrot.lane.b32.xlu0 %v6112_v17, %s10313_s29  ;;  %v6416_v17 = vld [vmem:[#allocation2 + $0x92] sm:$0xff] }
 0x6c4   : > { %v5950_v53 = vpop.permute.xlu1 %5949 }
 0x6c5   : > { %6055 = vst.msk [vmem:[#allocation3 + $0x228] sm:$0xff] %vm4232_vm10, %v5950_v53  ;;  %v5952_v7 = vpop.permute.xlu0 %5951  ;;  %v13717_v53 = vld [vmem:[#allocation2 + $0x7a] sm:$0xff] }
 0x6c6   : > { %6229 = vrot.lane.b32.xlu1 %v6113_v55, %s10313_s29  ;;  %6056 = vst.msk [vmem:[#allocation3 + $0x248] sm:$0xff] %vm4232_vm10, %v5952_v7 }
 0x6c7   : > { %6231 = vrot.lane.b32.xlu0 %v6114_v37, %s10313_s29  ;;  %v6418_v37 = vld [vmem:[#allocation2 + $0xa2] sm:$0xff] }
 0x6c8   : > { %v5954_v24 = vpop.permute.xlu1 %5953 }
 0x6c9   : > { %6057 = vst.msk [vmem:[#allocation3 + $0x268] sm:$0xff] %vm4232_vm10, %v5954_v24  ;;  %v5956_v51 = vpop.permute.xlu0 %5955  ;;  %v6415_v24 = vld [vmem:[#allocation2 + $0x8a] sm:$0xff] }
 0x6ca   : > { %6233 = vrot.lane.b32.xlu1 %v6115_v38, %s10313_s29  ;;  %6058 = vst.msk [vmem:[#allocation3 + $0x288] sm:$0xff] %vm4232_vm10, %v5956_v51 }
 0x6cb   : > { %6235 = vrot.lane.b32.xlu0 %v6116_v32, %s10313_s29  ;;  %v6420_v32 = vld [vmem:[#allocation2 + $0xb2] sm:$0xff] }
 0x6cc   : > { %v5958_v21 = vpop.permute.xlu1 %5957 }
 0x6cd   : > { %6059 = vst.msk [vmem:[#allocation3 + $0x2a8] sm:$0xff] %vm4232_vm10, %v5958_v21  ;;  %v5960_v2 = vpop.permute.xlu0 %5959  ;;  %v6417_v21 = vld [vmem:[#allocation2 + $0x9a] sm:$0xff] }
 0x6ce   : > { %6237 = vrot.lane.b32.xlu1 %v6117_v60, %s10313_s29  ;;  %6060 = vst.msk [vmem:[#allocation3 + $0x2c8] sm:$0xff] %vm4232_vm10, %v5960_v2 }
 0x6cf   : > { %6239 = vrot.lane.b32.xlu0 %v6118_v44, %s10313_s29  ;;  %v6422_v44 = vld [vmem:[#allocation2 + $0xc2] sm:$0xff] }
 0x6d0   : > { %v5962_v41 = vpop.permute.xlu1 %5961 }
 0x6d1   : > { %6061 = vst.msk [vmem:[#allocation3 + $0x2e8] sm:$0xff] %vm4232_vm10, %v5962_v41  ;;  %v5964_v19 = vpop.permute.xlu0 %5963  ;;  %v6419_v41 = vld [vmem:[#allocation2 + $0xaa] sm:$0xff] }
 0x6d2   : > { %6241 = vrot.lane.b32.xlu1 %v6119_v42, %s10313_s29  ;;  %6062 = vst.msk [vmem:[#allocation3 + $0x308] sm:$0xff] %vm4232_vm10, %v5964_v19 }
 0x6d3   : > { %6489 = vrot.lane.b32.xlu0 %v6407_v43, %s10308_s8  ;;  %v6424_v43 = vld [vmem:[#allocation2 + $0xd2] sm:$0xff] }
 0x6d4   : > { %v5966_v12 = vpop.permute.xlu1 %5965 }
 0x6d5   : > { %6063 = vst.msk [vmem:[#allocation3 + $0x328] sm:$0xff] %vm4232_vm10, %v5966_v12  ;;  %v5968_v29 = vpop.permute.xlu0 %5967  ;;  %v6421_v12 = vld [vmem:[#allocation2 + $0xba] sm:$0xff] }
 0x6d6   : > { %6491 = vrot.lane.b32.xlu1 %v6408_v48, %s10308_s8  ;;  %6064 = vst.msk [vmem:[#allocation3 + $0x348] sm:$0xff] %vm4232_vm10, %v5968_v29 }
 0x6d7   : > { %6493 = vrot.lane.b32.xlu0 %v6409_v3, %s10308_s8 }
 0x6d8   : > { %v5970_v13 = vpop.permute.xlu1 %5969 }
 0x6d9   : > { %6065 = vst.msk [vmem:[#allocation3 + $0x368] sm:$0xff] %vm4232_vm10, %v5970_v13  ;;  %v5972_v45 = vpop.permute.xlu0 %5971  ;;  %v6423_v13 = vld [vmem:[#allocation2 + $0xca] sm:$0xff] }
 0x6da   : > { %6495 = vrot.lane.b32.xlu1 %v13698_v30, %s10308_s8  ;;  %6066 = vst.msk [vmem:[#allocation3 + $0x388] sm:$0xff] %vm4232_vm10, %v5972_v45  ;;  %v6425_v45 = vld [vmem:[#allocation2 + $0xda] sm:$0xff] }
 0x6db   : > { %6497 = vrot.lane.b32.xlu0 %v13707_v31, %s10308_s8 }
 0x6dc   : > { %v5974_v8 = vpop.permute.xlu1 %5973 }
 0x6dd   : > { %6067 = vst.msk [vmem:[#allocation3 + $0x3a8] sm:$0xff] %vm4232_vm10, %v5974_v8  ;;  %v5976_v6 = vpop.permute.xlu0 %5975  ;;  %v6426_v8 = vld [vmem:[#allocation2 + $0xe2] sm:$0xff] }
 0x6de   : > { %6499 = vrot.lane.b32.xlu1 %v13705_v39, %s10308_s8  ;;  %6068 = vst.msk [vmem:[#allocation3 + $0x3c8] sm:$0xff] %vm4232_vm10, %v5976_v6 }
 0x6df   : > { %6501 = vrot.lane.b32.xlu0 %v13717_v53, %s10308_s8 }
 0x6e0   : > { %v5978_v4 = vpop.permute.xlu1 %5977 }
 0x6e1   : > { %6069 = vst.msk [vmem:[#allocation3 + $0x3e8] sm:$0xff] %vm4232_vm10, %v5978_v4  ;;  %v5980_v55 = vpop.permute.xlu0 %5979 }
 0x6e2   : > { %6503 = vrot.lane.b32.xlu1 %v13715_v5, %s10308_s8  ;;  %6070 = vst.msk [vmem:[#allocation3 + $0x408] sm:$0xff] %vm4232_vm10, %v5980_v55  ;;  %v8211_v55 = vld [vmem:[#allocation3] sm:$0xff] }
 0x6e3   : > { %6505 = vrot.lane.b32.xlu0 %v6415_v24, %s10308_s8  ;;  %v6427_v24 = vld [vmem:[#allocation2 + $0xea] sm:$0xff] }
 0x6e4   : > { %v5982_v22 = vpop.permute.xlu1 %5981 }
 0x6e5   : > { %6071 = vst.msk [vmem:[#allocation3 + $0x428] sm:$0xff] %vm4232_vm10, %v5982_v22  ;;  %v5984_v38 = vpop.permute.xlu0 %5983 }
 0x6e6   : > { %6507 = vrot.lane.b32.xlu1 %v6416_v17, %s10308_s8  ;;  %6072 = vst.msk [vmem:[#allocation3 + $0x448] sm:$0xff] %vm4232_vm10, %v5984_v38  ;;  %v6428_v17 = vld [vmem:[#allocation2 + $0xf2] sm:$0xff] }
 0x6e7   : > { %6509 = vrot.lane.b32.xlu0 %v6417_v21, %s10308_s8  ;;  %v8215_v21 = vld [vmem:[#allocation3 + $0x20] sm:$0xff] }
 0x6e8   : > { %v5986_v7 = vpop.permute.xlu1 %5985 }
 0x6e9   : > { %6073 = vst.msk [vmem:[#allocation3 + $0x468] sm:$0xff] %vm4232_vm10, %v5986_v7  ;;  %v5988_v60 = vpop.permute.xlu0 %5987 }
 0x6ea   : > { %6511 = vrot.lane.b32.xlu1 %v6418_v37, %s10308_s8  ;;  %6074 = vst.msk [vmem:[#allocation3 + $0x488] sm:$0xff] %vm4232_vm10, %v5988_v60  ;;  %v6429_v60 = vld [vmem:[#allocation2 + $0xfa] sm:$0xff] }
 0x6eb   : > { %6513 = vrot.lane.b32.xlu0 %v6419_v41, %s10308_s8 }
 0x6ec   : > { %v5990_v51 = vpop.permute.xlu1 %5989 }
 0x6ed   : > { %6075 = vst.msk [vmem:[#allocation3 + $0x4a8] sm:$0xff] %vm4232_vm10, %v5990_v51  ;;  %v5992_v42 = vpop.permute.xlu0 %5991  ;;  %v6430_v51 = vld [vmem:[#allocation2 + $0x102] sm:$0xff] }
 0x6ee   : > { %6515 = vrot.lane.b32.xlu1 %v6420_v32, %s10308_s8  ;;  %6076 = vst.msk [vmem:[#allocation3 + $0x4c8] sm:$0xff] %vm4232_vm10, %v5992_v42  ;;  %v8219_v42 = vld [vmem:[#allocation3 + $0x40] sm:$0xff] }
 0x6ef   : > { %6517 = vrot.lane.b32.xlu0 %v6421_v12, %s10308_s8  ;;  %v6431_v12 = vld [vmem:[#allocation2 + $0x10a] sm:$0xff] }
 0x6f0   : > { %v5994_v2 = vpop.permute.xlu1 %5993 }
 0x6f1   : > { %6077 = vst.msk [vmem:[#allocation3 + $0x4e8] sm:$0xff] %vm4232_vm10, %v5994_v2  ;;  %v5996_v48 = vpop.permute.xlu0 %5995 }
 0x6f2   : > { %6519 = vrot.lane.b32.xlu1 %v6422_v44, %s10308_s8  ;;  %6078 = vst.msk [vmem:[#allocation3 + $0x508] sm:$0xff] %vm4232_vm10, %v5996_v48  ;;  %v6432_v44 = vld [vmem:[#allocation2 + $0x112] sm:$0xff] }
 0x6f3   : > { %6521 = vrot.lane.b32.xlu0 %v6423_v13, %s10308_s8  ;;  %v8223_v13 = vld [vmem:[#allocation3 + $0x60] sm:$0xff] }
 0x6f4   : > { %v6162_v19 = vpop.permute.xlu1 %6161 }
 0x6f5   : > { %6284 = vst.msk [vmem:[#allocation3 + $0x8] sm:$0xff] %vm4479_vm11, %v6162_v19  ;;  %v6164_v3 = vpop.permute.xlu0 %6163 }
 0x6f6   : > { %6523 = vrot.lane.b32.xlu1 %v6424_v43, %s10308_s8  ;;  %6285 = vst.msk [vmem:[#allocation3 + $0x28] sm:$0xff] %vm4479_vm11, %v6164_v3  ;;  %v6433_v3 = vld [vmem:[#allocation2 + $0x11a] sm:$0xff] }
 0x6f7   : > { %6525 = vrot.lane.b32.xlu0 %v6425_v45, %s10308_s8 }
 0x6f8   : > { %v6166_v29 = vpop.permute.xlu1 %6165 }
 0x6f9   : > { %6286 = vst.msk [vmem:[#allocation3 + $0x48] sm:$0xff] %vm4479_vm11, %v6166_v29  ;;  %v6168_v6 = vpop.permute.xlu0 %6167  ;;  %v6434_v29 = vld [vmem:[#allocation2 + $0x122] sm:$0xff] }
 0x6fa   : > { %6527 = vrot.lane.b32.xlu1 %v6426_v8, %s10308_s8  ;;  %6287 = vst.msk [vmem:[#allocation3 + $0x68] sm:$0xff] %vm4479_vm11, %v6168_v6  ;;  %v8227_v6 = vld [vmem:[#allocation3 + $0x80] sm:$0xff] }
 0x6fb   : > { %6529 = vrot.lane.b32.xlu0 %v6427_v24, %s10308_s8 }
 0x6fc   : > { %v6170_v4 = vpop.permute.xlu1 %6169  ;;  %v8212_v22 = vld [vmem:[#allocation3 + $0x8] sm:$0xff] }
 0x6fd   : > { %6288 = vst.msk [vmem:[#allocation3 + $0x88] sm:$0xff] %vm4479_vm11, %v6170_v4  ;;  %8612 = vmatprep.mubr.f32.mxu1 %v8212_v22  ;;  %v6172_v38 = vpop.permute.xlu0 %6171  ;;  %v8216_v37 = vld [vmem:[#allocation3 + $0x28] sm:$0xff] }
 0x6fe   : > { %8613 = vmatmul.mubr.f32.vlgmr.msra.gmra.mrb[0].mxu1 %v8211_v55  ;;  %6531 = vrot.lane.b32.xlu1 %v6428_v17, %s10308_s8  ;;  %6289 = vst.msk [vmem:[#allocation3 + $0xa8] sm:$0xff] %vm4479_vm11, %v6172_v38  ;;  %v6436_v22 = vld [vmem:[#allocation2 + $0x132] sm:$0xff]  ;;  %v6435_v55 = vld [vmem:[#allocation2 + $0x12a] sm:$0xff] }
 0x6ff   : > { %8617 = vmatprep.mubr.f32.mxu1 %v8216_v37  ;;  %6533 = vrot.lane.b32.xlu0 %v6429_v60, %s10308_s8  ;;  %v8231_v38 = vld [vmem:[#allocation3 + $0xa0] sm:$0xff]  ;;  %v6438_v37 = vld [vmem:[#allocation2 + $0x142] sm:$0xff] }
 0x700   : > { %v6174_v7 = vpop.permute.xlu1 %6173  ;;  %v8220_v32 = vld [vmem:[#allocation3 + $0x48] sm:$0xff] }
 0x701   : > { %6290 = vst.msk [vmem:[#allocation3 + $0xc8] sm:$0xff] %vm4479_vm11, %v6174_v7  ;;  %v6176_v2 = vpop.permute.xlu0 %6175  ;;  %v8224_v19 = vld [vmem:[#allocation3 + $0x68] sm:$0xff] }
 0x702   : > { %8618 = vmatmul.mubr.f32.gmra.mrb[2].mxu1 %v8215_v21  ;;  %6535 = vrot.lane.b32.xlu1 %v6430_v51, %s10308_s8  ;;  %6291 = vst.msk [vmem:[#allocation3 + $0xe8] sm:$0xff] %vm4479_vm11, %v6176_v2  ;;  %v6437_v21 = vld [vmem:[#allocation2 + $0x13a] sm:$0xff]  ;;  %v6440_v2 = vld [vmem:[#allocation2 + $0x152] sm:$0xff] }
 0x703   : > { %8622 = vmatprep.mubr.f32.mxu1 %v8220_v32  ;;  %6537 = vrot.lane.b32.xlu0 %v6431_v12, %s10308_s8 }
 0x704   : > { %v6178_v41 = vpop.permute.xlu1 %6177  ;;  %v8228_v8 = vld [vmem:[#allocation3 + $0x88] sm:$0xff] }
 0x705   : > { %6292 = vst.msk [vmem:[#allocation3 + $0x108] sm:$0xff] %vm4479_vm11, %v6178_v41  ;;  %v6180_v43 = vpop.permute.xlu0 %6179  ;;  %v8232_v17 = vld [vmem:[#allocation3 + $0xa8] sm:$0xff]  ;;  %v8235_v41 = vld [vmem:[#allocation3 + $0xc0] sm:$0xff] }
 0x706   : > { %8623 = vmatmul.mubr.f32.gmra.mrb[4].mxu1 %v8219_v42  ;;  %6539 = vrot.lane.b32.xlu1 %v6432_v44, %s10308_s8  ;;  %6293 = vst.msk [vmem:[#allocation3 + $0x128] sm:$0xff] %vm4479_vm11, %v6180_v43  ;;  %v6439_v42 = vld [vmem:[#allocation2 + $0x14a] sm:$0xff]  ;;  %v6442_v43 = vld [vmem:[#allocation2 + $0x162] sm:$0xff] }
 0x707   : > { %8627 = vmatprep.mubr.f32.mxu1 %v8224_v19  ;;  %6541 = vrot.lane.b32.xlu0 %v6433_v3, %s10308_s8 }
 0x708   : > { %v6182_v48 = vpop.permute.xlu1 %6181  ;;  %v8236_v51 = vld [vmem:[#allocation3 + $0xc8] sm:$0xff] }
 0x709   : > { %6294 = vst.msk [vmem:[#allocation3 + $0x148] sm:$0xff] %vm4479_vm11, %v6182_v48  ;;  %v6184_v4 = vpop.permute.xlu0 %6183  ;;  %v8240_v44 = vld [vmem:[#allocation3 + $0xe8] sm:$0xff]  ;;  %v8239_v48 = vld [vmem:[#allocation3 + $0xe0] sm:$0xff] }
 0x70a   : > { %8628 = vmatmul.mubr.f32.gmra.mrb[6].mxu1 %v8223_v13  ;;  %6543 = vrot.lane.b32.xlu1 %v6434_v29, %s10308_s8  ;;  %6295 = vst.msk [vmem:[#allocation3 + $0x168] sm:$0xff] %vm4479_vm11, %v6184_v4  ;;  %v6441_v13 = vld [vmem:[#allocation2 + $0x15a] sm:$0xff]  ;;  %v6444_v4 = vld [vmem:[#allocation2 + $0x172] sm:$0xff] }
 0x70b   : > { %8632 = vmatprep.mubr.f32.mxu1 %v8228_v8  ;;  %6545 = vrot.lane.b32.xlu0 %v6435_v55, %s10308_s8 }
 0x70c   : > { %v6186_v45 = vpop.permute.xlu1 %6185  ;;  %v8244_v29 = vld [vmem:[#allocation3 + $0x108] sm:$0xff] }
 0x70d   : > { %6296 = vst.msk [vmem:[#allocation3 + $0x188] sm:$0xff] %vm4479_vm11, %v6186_v45  ;;  %v6188_v7 = vpop.permute.xlu0 %6187  ;;  %v8243_v45 = vld [vmem:[#allocation3 + $0x100] sm:$0xff] }
 0x70e   : > { %8633 = vmatmul.mubr.f32.gmra.mrb[8].mxu1 %v8227_v6  ;;  %6547 = vrot.lane.b32.xlu1 %v6436_v22, %s10308_s8  ;;  %6297 = vst.msk [vmem:[#allocation3 + $0x1a8] sm:$0xff] %vm4479_vm11, %v6188_v7  ;;  %v6443_v6 = vld [vmem:[#allocation2 + $0x16a] sm:$0xff]  ;;  %v8248_v22 = vld [vmem:[#allocation3 + $0x128] sm:$0xff]  ;;  %v6446_v7 = vld [vmem:[#allocation2 + $0x182] sm:$0xff] }
 0x70f   : > { %8637 = vmatprep.mubr.f32.mxu1 %v8232_v17  ;;  %6549 = vrot.lane.b32.xlu0 %v6437_v21, %s10308_s8 }
 0x710   : > { %v6190_v24 = vpop.permute.xlu1 %6189 }
 0x711   : > { %6298 = vst.msk [vmem:[#allocation3 + $0x1c8] sm:$0xff] %vm4479_vm11, %v6190_v24  ;;  %v6192_v32 = vpop.permute.xlu0 %6191  ;;  %v8247_v24 = vld [vmem:[#allocation3 + $0x120] sm:$0xff] }
 0x712   : > { %8638 = vmatmul.mubr.f32.gmra.mrb[10].mxu1 %v8231_v38  ;;  %6551 = vrot.lane.b32.xlu1 %v6438_v37, %s10308_s8  ;;  %6299 = vst.msk [vmem:[#allocation3 + $0x1e8] sm:$0xff] %vm4479_vm11, %v6192_v32  ;;  %v6445_v38 = vld [vmem:[#allocation2 + $0x17a] sm:$0xff]  ;;  %v6653_v32 = vld [vmem:[#allocation2 + $0x4b] sm:$0xff] }
 0x713   : > { %8642 = vmatprep.mubr.f32.mxu1 %v8236_v51  ;;  %6553 = vrot.lane.b32.xlu0 %v6439_v42, %s10308_s8  ;;  %v8252_v37 = vld [vmem:[#allocation3 + $0x148] sm:$0xff] }
 0x714   : > { %v6194_v60 = vpop.permute.xlu1 %6193 }
 0x715   : > { %6300 = vst.msk [vmem:[#allocation3 + $0x208] sm:$0xff] %vm4479_vm11, %v6194_v60  ;;  %v6196_v19 = vpop.permute.xlu0 %6195  ;;  %v8251_v60 = vld [vmem:[#allocation3 + $0x140] sm:$0xff] }
 0x716   : > { %8643 = vmatmul.mubr.f32.gmra.mrb[12].mxu1 %v8235_v41  ;;  %6555 = vrot.lane.b32.xlu1 %v6440_v2, %s10308_s8  ;;  %6301 = vst.msk [vmem:[#allocation3 + $0x228] sm:$0xff] %vm4479_vm11, %v6196_v19  ;;  %v6447_v41 = vld [vmem:[#allocation2 + $0x18a] sm:$0xff]  ;;  %v8256_v2 = vld [vmem:[#allocation3 + $0x168] sm:$0xff] }
 0x717   : > { %8647 = vmatprep.mubr.f32.mxu1 %v8240_v44  ;;  %6557 = vrot.lane.b32.xlu0 %v6441_v13, %s10308_s8  ;;  %v6655_v19 = vld [vmem:[#allocation2 + $0x5b] sm:$0xff] }
 0x718   : > { %v6198_v12 = vpop.permute.xlu1 %6197  ;;  %v8407_v13 = vld [vmem:[%s14624_s4 + $0x100] sm:$0xff] }
 0x719   : > { %6302 = vst.msk [vmem:[#allocation3 + $0x248] sm:$0xff] %vm4479_vm11, %v6198_v12  ;;  %v6200_v8 = vpop.permute.xlu0 %6199  ;;  %v8255_v12 = vld [vmem:[#allocation3 + $0x160] sm:$0xff] }
 0x71a   : > { %8648 = vmatmul.mubr.f32.gmra.mrb[14].mxu1 %v8239_v48  ;;  %6559 = vrot.lane.b32.xlu1 %v6442_v43, %s10308_s8  ;;  %6303 = vst.msk [vmem:[#allocation3 + $0x268] sm:$0xff] %vm4479_vm11, %v6200_v8  ;;  %v6654_v48 = vld [vmem:[#allocation2 + $0x53] sm:$0xff] }
 0x71b   : > { %8652 = vmatprep.mubr.f32.mxu1 %v8244_v29  ;;  %6561 = vrot.lane.b32.xlu0 %v6443_v6, %s10308_s8  ;;  %v8260_v43 = vld [vmem:[#allocation3 + $0x188] sm:$0xff]  ;;  %v8408_v29 = vld [vmem:[%s14624_s4 + $0x108] sm:$0xff] }
 0x71c   : > { %v6202_v3 = vpop.permute.xlu1 %6201  ;;  %v13803_v6 = vld [vmem:[#allocation2 + $0x6b] sm:$0xff] }
 0x71d   : > { %6304 = vst.msk [vmem:[#allocation3 + $0x288] sm:$0xff] %vm4479_vm11, %v6202_v3  ;;  %v6204_v17 = vpop.permute.xlu0 %6203  ;;  %v10170_v3 = vpack.c.bf16 %v8408_v29, %v8407_v13  ;;  %v8272_v13 = vld [vmem:[#allocation3 + $0x1e8] sm:$0xff]  ;;  %v8413_v29 = vld [vmem:[%s14624_s4 + $0x130] sm:$0xff] }
 0x71e   : > { %8653 = vmatmul.mubr.f32.gmra.mrb[16].mxu1 %v8243_v45  ;;  %6563 = vrot.lane.b32.xlu1 %v6444_v4, %s10308_s8  ;;  %6305 = vst.msk [vmem:[#allocation3 + $0x2a8] sm:$0xff] %vm4479_vm11, %v6204_v17  ;;  %v8259_v4 = vld [vmem:[#allocation3 + $0x180] sm:$0xff] }
 0x71f   : > { %8657 = vmatprep.mubr.f32.mxu1 %v8248_v22  ;;  %6565 = vrot.lane.b32.xlu0 %v6445_v38, %s10308_s8  ;;  %v13805_v22 = vld [vmem:[#allocation2 + $0x63] sm:$0xff]  ;;  %v8409_v17 = vld [vmem:[%s14624_s4 + $0x110] sm:$0xff] }
 0x720   : > { %v6206_v55 = vpop.permute.xlu1 %6205  ;;  %10171 = vmatpush1.bf16.msra.mxu1 %v10170_v3  ;;  %v8414_v3 = vld [vmem:[%s14624_s4 + $0x138] sm:$0xff] }
 0x721   : > { %6306 = vst.msk [vmem:[#allocation3 + $0x2c8] sm:$0xff] %vm4479_vm11, %v6206_v55  ;;  %v6208_v51 = vpop.permute.xlu0 %6207  ;;  %v8264_v55 = vld [vmem:[#allocation3 + $0x1a8] sm:$0xff]  ;;  %10172 = vmatprep.subr.bf16.mxu1 %v10314_v18 }
 0x722   : > { %8658 = vmatmul.mubr.f32.gmra.mrb[18].mxu1 %v8247_v24  ;;  %6567 = vrot.lane.b32.xlu1 %v6446_v7, %s10308_s8  ;;  %6307 = vst.msk [vmem:[#allocation3 + $0x2e8] sm:$0xff] %vm4479_vm11, %v6208_v51  ;;  %v8410_v24 = vld [vmem:[%s14624_s4 + $0x118] sm:$0xff] }
 0x723   : > { %8662 = vmatprep.mubr.f32.mxu1 %v8252_v37  ;;  %6569 = vrot.lane.b32.xlu0 %v6447_v41, %s10308_s8  ;;  %v10173_v7 = vpack.c.bf16 %v8410_v24, %v8409_v17  ;;  %v13820_v51 = vld [vmem:[#allocation2 + $0x7b] sm:$0xff]  ;;  %v13856_v24 = vld [vmem:[#allocation2 + $0x93] sm:$0xff] }
 0x724   : > { %v6210_v21 = vpop.permute.xlu1 %6209  ;;  %v8411_v41 = vld [vmem:[%s14624_s4 + $0x120] sm:$0xff] }
 0x725   : > { %6308 = vst.msk [vmem:[#allocation3 + $0x308] sm:$0xff] %vm4479_vm11, %v6210_v21  ;;  %v6212_v44 = vpop.permute.xlu0 %6211  ;;  %v8263_v21 = vld [vmem:[#allocation3 + $0x1a0] sm:$0xff]  ;;  %10174 = vmatpush1.bf16.msra.mxu1 %v10173_v7  ;;  %v13854_v17 = vld [vmem:[#allocation2 + $0x9b] sm:$0xff] }
 0x726   : > { %8663 = vmatmul.mubr.f32.gmra.mrb[20].mxu1 %v8251_v60  ;;  %6735 = vrot.lane.b32.xlu1 %v6653_v32, %s10307_s7  ;;  %6309 = vst.msk [vmem:[#allocation3 + $0x328] sm:$0xff] %vm4479_vm11, %v6212_v44  ;;  %v13822_v60 = vld [vmem:[#allocation2 + $0x73] sm:$0xff] }
 0x727   : > { %8667 = vmatprep.mubr.f32.mxu1 %v8256_v2  ;;  %6737 = vrot.lane.b32.xlu0 %v6654_v48, %s10307_s7  ;;  %v8268_v32 = vld [vmem:[#allocation3 + $0x1c8] sm:$0xff]  ;;  %v8412_v2 = vld [vmem:[%s14624_s4 + $0x128] sm:$0xff] }
 0x728   : > { %v6214_v42 = vpop.permute.xlu1 %6213  ;;  %10175 = vmatprep.subr.bf16.mxu1 %v10314_v18  ;;  %v13837_v48 = vld [vmem:[#allocation2 + $0x8b] sm:$0xff]  ;;  %v8276_v7 = vld [vmem:[#allocation3 + $0x208] sm:$0xff] }
 0x729   : > { %6310 = vst.msk [vmem:[#allocation3 + $0x348] sm:$0xff] %vm4479_vm11, %v6214_v42  ;;  %v6216_v45 = vpop.permute.xlu0 %6215  ;;  %v10176_v42 = vpack.c.bf16 %v8412_v2, %v8411_v41  ;;  %v8275_v2 = vld [vmem:[#allocation3 + $0x200] sm:$0xff] }
 0x72a   : > { %8668 = vmatmul.mubr.f32.gmra.mrb[22].mxu1 %v8255_v12  ;;  %6739 = vrot.lane.b32.xlu1 %v6655_v19, %s10307_s7  ;;  %6311 = vst.msk [vmem:[#allocation3 + $0x368] sm:$0xff] %vm4479_vm11, %v6216_v45  ;;  %v8267_v19 = vld [vmem:[#allocation3 + $0x1c0] sm:$0xff] }
 0x72b   : > { %8672 = vmatprep.mubr.f32.mxu1 %v8260_v43  ;;  %6741 = vrot.lane.b32.xlu0 %v13805_v22, %s10307_s7  ;;  %v13839_v43 = vld [vmem:[#allocation2 + $0x83] sm:$0xff] }
 0x72c   : > { %v6218_v8 = vpop.permute.xlu1 %6217  ;;  %10177 = vmatpush1.bf16.msra.mxu1 %v10176_v42  ;;  %v13871_v42 = vld [vmem:[#allocation2 + $0xab] sm:$0xff] }
 0x72d   : > { %6312 = vst.msk [vmem:[#allocation3 + $0x388] sm:$0xff] %vm4479_vm11, %v6218_v8  ;;  %v6220_v37 = vpop.permute.xlu0 %6219  ;;  %v10179_v8 = vpack.c.bf16 %v8414_v3, %v8413_v29  ;;  %10178 = vmatprep.subr.bf16.mxu1 %v10314_v18 }
 0x72e   : > { %8673 = vmatmul.mubr.f32.gmra.mrb[24].mxu1 %v8259_v4  ;;  %6743 = vrot.lane.b32.xlu1 %v13803_v6, %s10307_s7  ;;  %6313 = vst.msk [vmem:[#allocation3 + $0x3a8] sm:$0xff] %vm4479_vm11, %v6220_v37  ;;  %v8416_v37 = vld [vmem:[%s14624_s4 + $0x148] sm:$0xff] }
 0x72f   : > { %8677 = vmatprep.mubr.f32.mxu1 %v8264_v55  ;;  %6745 = vrot.lane.b32.xlu0 %v13822_v60, %s10307_s7  ;;  %v8271_v55 = vld [vmem:[#allocation3 + $0x1e0] sm:$0xff] }
 0x730   : > { %v6222_v38 = vpop.permute.xlu1 %6221  ;;  %10180 = vmatpush1.bf16.msra.mxu1 %v10179_v8 }
 0x731   : > { %6314 = vst.msk [vmem:[#allocation3 + $0x3c8] sm:$0xff] %vm4479_vm11, %v6222_v38  ;;  %v6224_v12 = vpop.permute.xlu0 %6223  ;;  %v8415_v38 = vld [vmem:[%s14624_s4 + $0x140] sm:$0xff]  ;;  %10181 = vmatprep.subr.bf16.mxu1 %v10314_v18 }
 0x732   : > { %8678 = vmatmul.mubr.f32.gmra.mrb[26].mxu1 %v8263_v21  ;;  %6747 = vrot.lane.b32.xlu1 %v13820_v51, %s10307_s7  ;;  %6315 = vst.msk [vmem:[#allocation3 + $0x3e8] sm:$0xff] %vm4479_vm11, %v6224_v12  ;;  %v10182_v21 = vpack.c.bf16 %v8416_v37, %v8415_v38  ;;  %v8280_v12 = vld [vmem:[#allocation3 + $0x228] sm:$0xff]  ;;  %v8419_v38 = vld [vmem:[%s14624_s4 + $0x160] sm:$0xff]  ;;  %v8420_v37 = vld [vmem:[%s14624_s4 + $0x168] sm:$0xff] }
 0x733   : > { %8682 = vmatprep.mubr.f32.mxu1 %v8268_v32  ;;  %6749 = vrot.lane.b32.xlu0 %v13839_v43, %s10307_s7 }
 0x734   : > { %v6226_v44 = vpop.permute.xlu1 %6225  ;;  %10183 = vmatpush1.bf16.msra.mxu1 %v10182_v21 }
 0x735   : > { %6316 = vst.msk [vmem:[#allocation3 + $0x408] sm:$0xff] %vm4479_vm11, %v6226_v44  ;;  %v6228_v4 = vpop.permute.xlu0 %6227  ;;  %v13875_v44 = vld [vmem:[#allocation2 + $0xa3] sm:$0xff]  ;;  %10184 = vmatprep.subr.bf16.mxu1 %v10314_v18 }
 0x736   : > { %8683 = vmatmul.mubr.f32.gmra.mrb[28].mxu1 %v8267_v19  ;;  %6751 = vrot.lane.b32.xlu1 %v13837_v48, %s10307_s7  ;;  %6317 = vst.msk [vmem:[#allocation3 + $0x428] sm:$0xff] %vm4479_vm11, %v6228_v4  ;;  %v8417_v19 = vld [vmem:[%s14624_s4 + $0x150] sm:$0xff]  ;;  %v13888_v4 = vld [vmem:[#allocation2 + $0xbb] sm:$0xff] }
 0x737   : > { %8687 = vmatprep.mubr.f32.mxu1 %v8272_v13  ;;  %6753 = vrot.lane.b32.xlu0 %v13856_v24, %s10307_s7  ;;  %v8418_v13 = vld [vmem:[%s14624_s4 + $0x158] sm:$0xff] }
 0x738   : > { %v6230_v45 = vpop.permute.xlu1 %6229  ;;  %v10185_v8 = vpack.c.bf16 %v8418_v13, %v8417_v19  ;;  %v13904_v19 = vld [vmem:[#allocation2 + $0xc3] sm:$0xff]  ;;  %v8288_v13 = vld [vmem:[#allocation3 + $0x268] sm:$0xff] }
 0x739   : > { %6318 = vst.msk [vmem:[#allocation3 + $0x448] sm:$0xff] %vm4479_vm11, %v6230_v45  ;;  %v6232_v41 = vpop.permute.xlu0 %6231  ;;  %v8279_v45 = vld [vmem:[#allocation3 + $0x220] sm:$0xff] }
 0x73a   : > { %8688 = vmatmul.mubr.f32.gmra.mrb[30].mxu1 %v8271_v55  ;;  %6755 = vrot.lane.b32.xlu1 %v13854_v17, %s10307_s7  ;;  %6319 = vst.msk [vmem:[#allocation3 + $0x468] sm:$0xff] %vm4479_vm11, %v6232_v41  ;;  %v13892_v55 = vld [vmem:[#allocation2 + $0xb3] sm:$0xff]  ;;  %v10188_v41 = vpack.c.bf16 %v8420_v37, %v8419_v38  ;;  %v7145_v37 = vld [vmem:[#allocation2 + $0x60] sm:$0xff] }
 0x73b   : > { %8692 = vmatprep.mubr.f32.mxu1 %v8276_v7  ;;  %6757 = vrot.lane.b32.xlu0 %v13875_v44, %s10307_s7  ;;  %v8284_v7 = vld [vmem:[#allocation3 + $0x248] sm:$0xff]  ;;  %v8287_v38 = vld [vmem:[#allocation3 + $0x260] sm:$0xff] }
 0x73c   : > { %v6234_v32 = vpop.permute.xlu1 %6233  ;;  %10186 = vmatpush1.bf16.msra.mxu1 %v10185_v8 }
 0x73d   : > { %6320 = vst.msk [vmem:[#allocation3 + $0x488] sm:$0xff] %vm4479_vm11, %v6234_v32  ;;  %v6236_v3 = vpop.permute.xlu0 %6235  ;;  %10187 = vmatprep.subr.bf16.mxu1 %v10314_v18 }
 0x73e   : > { %8693 = vmatmul.mubr.f32.gmra.mrb[32].mxu1 %v8275_v2  ;;  %6759 = vrot.lane.b32.xlu1 %v13871_v42, %s10307_s7  ;;  %6321 = vst.msk [vmem:[#allocation3 + $0x4a8] sm:$0xff] %vm4479_vm11, %v6236_v3  ;;  %v8283_v2 = vld [vmem:[#allocation3 + $0x240] sm:$0xff]  ;;  %v8422_v3 = vld [vmem:[%s14624_s4 + $0x178] sm:$0xff] }
 0x73f   : > { %8697 = vmatprep.mubr.f32.mxu1 %v8280_v12  ;;  %6761 = vrot.lane.b32.xlu0 %v13892_v55, %s10307_s7  ;;  %v6669_v12 = vld [vmem:[#allocation2 + $0xcb] sm:$0xff] }
 0x740   : > { %v6238_v29 = vpop.permute.xlu1 %6237  ;;  %10189 = vmatpush1.bf16.msra.mxu1 %v10188_v41  ;;  %v8423_v41 = vld [vmem:[%s14624_s4 + $0x180] sm:$0xff] }
 0x741   : > { %6322 = vst.msk [vmem:[#allocation3 + $0x4c8] sm:$0xff] %vm4479_vm11, %v6238_v29  ;;  %v6240_v32 = vpop.permute.xlu0 %6239  ;;  %v8421_v29 = vld [vmem:[%s14624_s4 + $0x170] sm:$0xff]  ;;  %10190 = vmatprep.subr.bf16.mxu1 %v10314_v18 }
 0x742   : > { %8698 = vmatmul.mubr.f32.gmra.mrb[34].mxu1 %v8279_v45  ;;  %6763 = vrot.lane.b32.xlu1 %v13888_v4, %s10307_s7  ;;  %6323 = vst.msk [vmem:[#allocation3 + $0x4e8] sm:$0xff] %vm4479_vm11, %v6240_v32  ;;  %v8292_v32 = vld [vmem:[#allocation3 + $0x288] sm:$0xff] }
 0x743   : > { %8702 = vmatprep.mubr.f32.mxu1 %v8284_v7  ;;  %6765 = vrot.lane.b32.xlu0 %v13904_v19, %s10307_s7  ;;  %v10191_v7 = vpack.c.bf16 %v8422_v3, %v8421_v29  ;;  %v8291_v3 = vld [vmem:[#allocation3 + $0x280] sm:$0xff] }
 0x744   : > { %v6242_v21 = vpop.permute.xlu1 %6241 }
 0x745   : > { %6324 = vst.msk [vmem:[#allocation3 + $0x508] sm:$0xff] %vm4479_vm11, %v6242_v21  ;;  %v6490_v45 = vpop.permute.xlu0 %6489  ;;  %v6899_v21 = vld [vmem:[#allocation2 + $0x4c] sm:$0xff]  ;;  %10192 = vmatpush1.bf16.msra.mxu1 %v10191_v7 }
 0x746   : > { %8703 = vmatmul.mubr.f32.gmra.mrb[36].mxu1 %v8283_v2  ;;  %6767 = vrot.lane.b32.xlu1 %v6669_v12, %s10307_s7  ;;  %6612 = vst.msk [vmem:[#allocation3 + $0x10] sm:$0xff] %vm2997_vm5, %v6490_v45  ;;  %v8424_v2 = vld [vmem:[%s14624_s4 + $0x188] sm:$0xff]  ;;  %v8295_v7 = vld [vmem:[#allocation3 + $0x2a0] sm:$0xff] }
 0x747   : > { %8707 = vmatprep.mubr.f32.mxu1 %v8288_v13  ;;  %6981 = vrot.lane.b32.xlu0 %v6899_v21, %s10310_s14  ;;  %v10194_v29 = vpack.c.bf16 %v8424_v2, %v8423_v41  ;;  %v8299_v21 = vld [vmem:[#allocation3 + $0x2c0] sm:$0xff]  ;;  %v8304_v41 = vld [vmem:[#allocation3 + $0x2e8] sm:$0xff] }
 0x748   : > { %v6492_v8 = vpop.permute.xlu1 %6491  ;;  %10193 = vmatprep.subr.bf16.mxu1 %v10314_v18  ;;  %v6900_v18 = vld [vmem:[#allocation2 + $0x54] sm:$0xff] }
 0x749   : > { %6613 = vst.msk [vmem:[#allocation3 + $0x30] sm:$0xff] %vm2997_vm5, %v6492_v8  ;;  %v6494_v13 = vpop.permute.xlu0 %6493  ;;  %v8296_v8 = vld [vmem:[#allocation3 + $0x2a8] sm:$0xff]  ;;  %10195 = vmatpush1.bf16.msra.mxu1 %v10194_v29 }
 0x74a   : > { %8708 = vmatmul.mubr.f32.gmra.mrb[38].mxu1 %v8287_v38  ;;  %7227 = vrot.lane.b32.xlu1 %v7145_v37, %s10309_s13  ;;  %6614 = vst.msk [vmem:[#allocation3 + $0x50] sm:$0xff] %vm2997_vm5, %v6494_v13  ;;  %v8300_v37 = vld [vmem:[#allocation3 + $0x2c8] sm:$0xff] }
 0x74b   : > { %8712 = vmatprep.mubr.f32.mxu1 %v8292_v32  ;;  %7473 = vrot.lane.b32.xlu0 %v12230_v62, %s10311_s19  ;;  %v7146_v32 = vld [vmem:[#allocation2 + $0x68] sm:$0xff]  ;;  %v6901_v13 = vld [vmem:[#allocation2 + $0x5c] sm:$0xff] }
 0x74c   : > { %v6496_v12 = vpop.permute.xlu1 %6495  ;;  %v8308_v29 = vld [vmem:[#allocation3 + $0x308] sm:$0xff] }
 0x74d   : > { %6615 = vst.msk [vmem:[#allocation3 + $0x70] sm:$0xff] %vm2997_vm5, %v6496_v12  ;;  %v6498_v38 = vpop.permute.xlu0 %6497  ;;  %v8303_v12 = vld [vmem:[#allocation3 + $0x2e0] sm:$0xff] }
 0x74e   : > { %8713 = vmatmul.mubr.f32.gmra.mrb[40].mxu1 %v8291_v3  ;;  %7719 = vrot.lane.b32.xlu1 %v13698_v30, %s10312_s24  ;;  %6616 = vst.msk [vmem:[#allocation3 + $0x90] sm:$0xff] %vm2997_vm5, %v6498_v38  ;;  %v8312_v38 = vld [vmem:[#allocation3 + $0x328] sm:$0xff] }
 0x74f   : > { %8717 = vmatprep.mubr.f32.mxu1 %v8296_v8  ;;  %6983 = vrot.lane.b32.xlu0 %v6900_v18, %s10310_s14  ;;  %v8307_v8 = vld [vmem:[#allocation3 + $0x300] sm:$0xff] }
 0x750   : > { %v6500_v45 = vpop.permute.xlu1 %6499 }
 0x751   : > { %6617 = vst.msk [vmem:[#allocation3 + $0xb0] sm:$0xff] %vm2997_vm5, %v6500_v45  ;;  %v6502_v62 = vpop.permute.xlu0 %6501  ;;  %v7147_v45 = vld [vmem:[#allocation2 + $0x70] sm:$0xff] }
 0x752   : > { %8718 = vmatmul.mubr.f32.gmra.mrb[42].mxu1 %v8295_v7  ;;  %7965 = vrot.lane.b32.xlu1 %v13805_v22, %s10313_s29  ;;  %6618 = vst.msk [vmem:[#allocation3 + $0xd0] sm:$0xff] %vm2997_vm5, %v6502_v62 }
 0x753   : > { %8722 = vmatprep.mubr.f32.mxu1 %v8300_v37  ;;  %7229 = vrot.lane.b32.xlu0 %v7146_v32, %s10309_s13  ;;  %v8316_v37 = vld [vmem:[#allocation3 + $0x348] sm:$0xff] }
 0x754   : > { %v6504_v30 = vpop.permute.xlu1 %6503 }
 0x755   : > { %6619 = vst.msk [vmem:[#allocation3 + $0xf0] sm:$0xff] %vm2997_vm5, %v6504_v30  ;;  %v6506_v2 = vpop.permute.xlu0 %6505 }
 0x756   : > { %8723 = vmatmul.mubr.f32.gmra.mrb[44].mxu1 %v8299_v21  ;;  %7475 = vrot.lane.b32.xlu1 %v12238_v54, %s10311_s19  ;;  %6620 = vst.msk [vmem:[#allocation3 + $0x110] sm:$0xff] %vm2997_vm5, %v6506_v2  ;;  %v8320_v21 = vld [vmem:[#allocation3 + $0x368] sm:$0xff] }
 0x757   : > { %8727 = vmatprep.mubr.f32.mxu1 %v8304_v41  ;;  %7721 = vrot.lane.b32.xlu0 %v13707_v31, %s10312_s24  ;;  %v8311_v31 = vld [vmem:[#allocation3 + $0x320] sm:$0xff]  ;;  %v7148_v41 = vld [vmem:[#allocation2 + $0x78] sm:$0xff] }
 0x758   : > { %v6508_v22 = vpop.permute.xlu1 %6507 }
 0x759   : > { %6621 = vst.msk [vmem:[#allocation3 + $0x130] sm:$0xff] %vm2997_vm5, %v6508_v22  ;;  %v6510_v3 = vpop.permute.xlu0 %6509  ;;  %v8324_v22 = vld [vmem:[#allocation3 + $0x388] sm:$0xff] }
 0x75a   : > { %8728 = vmatmul.mubr.f32.gmra.mrb[46].mxu1 %v8303_v12  ;;  %6985 = vrot.lane.b32.xlu1 %v6901_v13, %s10310_s14  ;;  %6622 = vst.msk [vmem:[#allocation3 + $0x150] sm:$0xff] %vm2997_vm5, %v6510_v3  ;;  %v8328_v12 = vld [vmem:[#allocation3 + $0x3a8] sm:$0xff] }
 0x75b   : > { %8732 = vmatprep.mubr.f32.mxu1 %v8308_v29  ;;  %7967 = vrot.lane.b32.xlu0 %v13803_v6, %s10313_s29  ;;  %v8315_v6 = vld [vmem:[#allocation3 + $0x340] sm:$0xff]  ;;  %v8332_v3 = vld [vmem:[#allocation3 + $0x3c8] sm:$0xff] }
 0x75c   : > { %v6512_v54 = vpop.permute.xlu1 %6511  ;;  %v8327_v29 = vld [vmem:[#allocation3 + $0x3a0] sm:$0xff] }
 0x75d   : > { %6623 = vst.msk [vmem:[#allocation3 + $0x170] sm:$0xff] %vm2997_vm5, %v6512_v54  ;;  %v6514_v18 = vpop.permute.xlu0 %6513  ;;  %v7149_v54 = vld [vmem:[#allocation2 + $0x80] sm:$0xff] }
 0x75e   : > { %8733 = vmatmul.mubr.f32.gmra.mrb[48].mxu1 %v8307_v8  ;;  %7231 = vrot.lane.b32.xlu1 %v7147_v45, %s10309_s13  ;;  %6624 = vst.msk [vmem:[#allocation3 + $0x190] sm:$0xff] %vm2997_vm5, %v6514_v18  ;;  %v8331_v8 = vld [vmem:[#allocation3 + $0x3c0] sm:$0xff]  ;;  %v8336_v45 = vld [vmem:[#allocation3 + $0x3e8] sm:$0xff] }
 0x75f   : > { %8737 = vmatprep.mubr.f32.mxu1 %v8312_v38  ;;  %7477 = vrot.lane.b32.xlu0 %v12236_v58, %s10311_s19  ;;  %v8319_v58 = vld [vmem:[#allocation3 + $0x360] sm:$0xff]  ;;  %v8340_v18 = vld [vmem:[#allocation3 + $0x408] sm:$0xff] }
 0x760   : > { %v6516_v7 = vpop.permute.xlu1 %6515 }
 0x761   : > { %6625 = vst.msk [vmem:[#allocation3 + $0x1b0] sm:$0xff] %vm2997_vm5, %v6516_v7  ;;  %v6518_v62 = vpop.permute.xlu0 %6517  ;;  %v8335_v7 = vld [vmem:[#allocation3 + $0x3e0] sm:$0xff] }
 0x762   : > { %8738 = vmatmul.mubr.f32.gmra.mrb[50].mxu1 %v8311_v31  ;;  %7723 = vrot.lane.b32.xlu1 %v13705_v39, %s10312_s24  ;;  %6626 = vst.msk [vmem:[#allocation3 + $0x1d0] sm:$0xff] %vm2997_vm5, %v6518_v62  ;;  %v8339_v31 = vld [vmem:[#allocation3 + $0x400] sm:$0xff] }
 0x763   : > { %8742 = vmatprep.mubr.f32.mxu1 %v8316_v37  ;;  %6987 = vrot.lane.b32.xlu0 %v12290_v52, %s10310_s14  ;;  %v8323_v52 = vld [vmem:[#allocation3 + $0x380] sm:$0xff]  ;;  %v7150_v37 = vld [vmem:[#allocation2 + $0x88] sm:$0xff] }
 0x764   : > { %v6520_v30 = vpop.permute.xlu1 %6519  ;;  %v8343_v62 = vld [vmem:[#allocation3 + $0x420] sm:$0xff] }
 0x765   : > { %6627 = vst.msk [vmem:[#allocation3 + $0x1f0] sm:$0xff] %vm2997_vm5, %v6520_v30  ;;  %v6522_v32 = vpop.permute.xlu0 %6521  ;;  %v8344_v30 = vld [vmem:[#allocation3 + $0x428] sm:$0xff] }
 0x766   : > { %8743 = vmatmul.mubr.f32.gmra.mrb[52].mxu1 %v8315_v6  ;;  %7969 = vrot.lane.b32.xlu1 %v13822_v60, %s10313_s29  ;;  %6628 = vst.msk [vmem:[#allocation3 + $0x210] sm:$0xff] %vm2997_vm5, %v6522_v32  ;;  %v7642_v6 = vld [vmem:[#allocation2 + $0x8a] sm:$0xff] }
 0x767   : > { %8747 = vmatprep.mubr.f32.mxu1 %v8320_v21  ;;  %7233 = vrot.lane.b32.xlu0 %v7148_v41, %s10309_s13  ;;  %v8348_v21 = vld [vmem:[#allocation3 + $0x448] sm:$0xff]  ;;  %v8347_v32 = vld [vmem:[#allocation3 + $0x440] sm:$0xff] }
 0x768   : > { %v6524_v39 = vpop.permute.xlu1 %6523  ;;  %v8352_v41 = vld [vmem:[#allocation3 + $0x468] sm:$0xff] }
 0x769   : > { %6629 = vst.msk [vmem:[#allocation3 + $0x230] sm:$0xff] %vm2997_vm5, %v6524_v39  ;;  %v6526_v2 = vpop.permute.xlu0 %6525 }
 0x76a   : > { %8748 = vmatmul.mubr.f32.gmra.mrb[54].mxu1 %v8319_v58  ;;  %7479 = vrot.lane.b32.xlu1 %v12249_v63, %s10311_s19  ;;  %6630 = vst.msk [vmem:[#allocation3 + $0x250] sm:$0xff] %vm2997_vm5, %v6526_v2  ;;  %v7151_v58 = vld [vmem:[#allocation2 + $0x90] sm:$0xff] }
 0x76b   : > { %8752 = vmatprep.mubr.f32.mxu1 %v8324_v22  ;;  %7725 = vrot.lane.b32.xlu0 %v13717_v53, %s10312_s24  ;;  %v7643_v2 = vld [vmem:[#allocation2 + $0x92] sm:$0xff] }
 0x76c   : > { %v6528_v60 = vpop.permute.xlu1 %6527 }
 0x76d   : > { %6631 = vst.msk [vmem:[#allocation3 + $0x270] sm:$0xff] %vm2997_vm5, %v6528_v60  ;;  %v6530_v13 = vpop.permute.xlu0 %6529  ;;  %v8351_v60 = vld [vmem:[#allocation3 + $0x460] sm:$0xff] }
 0x76e   : > { %8753 = vmatmul.mubr.f32.gmra.mrb[56].mxu1 %v8323_v52  ;;  %6989 = vrot.lane.b32.xlu1 %v12309_v33, %s10310_s14  ;;  %6632 = vst.msk [vmem:[#allocation3 + $0x290] sm:$0xff] %vm2997_vm5, %v6530_v13  ;;  %v8356_v52 = vld [vmem:[#allocation3 + $0x488] sm:$0xff] }
 0x76f   : > { %8757 = vmatprep.mubr.f32.mxu1 %v8328_v12  ;;  %7971 = vrot.lane.b32.xlu0 %v13820_v51, %s10313_s29  ;;  %v8360_v13 = vld [vmem:[#allocation3 + $0x4a8] sm:$0xff] }
 0x770   : > { %v6532_v63 = vpop.permute.xlu1 %6531 }
 0x771   : > { %6633 = vst.msk [vmem:[#allocation3 + $0x2b0] sm:$0xff] %vm2997_vm5, %v6532_v63  ;;  %v6534_v53 = vpop.permute.xlu0 %6533  ;;  %v8355_v63 = vld [vmem:[#allocation3 + $0x480] sm:$0xff] }
 0x772   : > { %8758 = vmatmul.mubr.f32.gmra.mrb[58].mxu1 %v8327_v29  ;;  %7235 = vrot.lane.b32.xlu1 %v7149_v54, %s10309_s13  ;;  %6634 = vst.msk [vmem:[#allocation3 + $0x2d0] sm:$0xff] %vm2997_vm5, %v6534_v53  ;;  %v8359_v54 = vld [vmem:[#allocation3 + $0x4a0] sm:$0xff] }
 0x773   : > { %8762 = vmatprep.mubr.f32.mxu1 %v8332_v3  ;;  %7481 = vrot.lane.b32.xlu0 %v12247_v50, %s10311_s19  ;;  %v7152_v3 = vld [vmem:[#allocation2 + $0x98] sm:$0xff]  ;;  %v8363_v53 = vld [vmem:[#allocation3 + $0x4c0] sm:$0xff] }
 0x774   : > { %v6536_v33 = vpop.permute.xlu1 %6535 }
 0x775   : > { %6635 = vst.msk [vmem:[#allocation3 + $0x2f0] sm:$0xff] %vm2997_vm5, %v6536_v33  ;;  %v6538_v51 = vpop.permute.xlu0 %6537  ;;  %v8364_v33 = vld [vmem:[#allocation3 + $0x4c8] sm:$0xff] }
 0x776   : > { %8763 = vmatmul.mubr.f32.gmra.mrb[60].mxu1 %v8331_v8  ;;  %7727 = vrot.lane.b32.xlu1 %v13715_v5, %s10312_s24  ;;  %6636 = vst.msk [vmem:[#allocation3 + $0x310] sm:$0xff] %vm2997_vm5, %v6538_v51  ;;  %v7644_v8 = vld [vmem:[#allocation2 + $0x9a] sm:$0xff] }
 0x777   : > { %8767 = vmatprep.mubr.f32.mxu1 %v8336_v45  ;;  %6991 = vrot.lane.b32.xlu0 %v12334_v16, %s10310_s14  ;;  %v8368_v45 = vld [vmem:[#allocation3 + $0x4e8] sm:$0xff]  ;;  %v7153_v51 = vld [vmem:[#allocation2 + $0xa0] sm:$0xff] }
 0x778   : > { %v6540_v38 = vpop.permute.xlu1 %6539 }
 0x779   : > { %6637 = vst.msk [vmem:[#allocation3 + $0x330] sm:$0xff] %vm2997_vm5, %v6540_v38  ;;  %v6542_v50 = vpop.permute.xlu0 %6541 }
 0x77a   : > { %8768 = vmatmul.mubr.f32.gmra.mrb[62].mxu1 %v8335_v7  ;;  %7973 = vrot.lane.b32.xlu1 %v13839_v43, %s10313_s29  ;;  %6638 = vst.msk [vmem:[#allocation3 + $0x350] sm:$0xff] %vm2997_vm5, %v6542_v50  ;;  %v8367_v7 = vld [vmem:[#allocation3 + $0x4e0] sm:$0xff]  ;;  %v7645_v50 = vld [vmem:[#allocation2 + $0xa2] sm:$0xff] }
 0x77b   : > { %8772 = vmatprep.mubr.f32.mxu1 %v8340_v18  ;;  %7237 = vrot.lane.b32.xlu0 %v7150_v37, %s10309_s13  ;;  %v8372_v18 = vld [vmem:[#allocation3 + $0x508] sm:$0xff]  ;;  %v8214_v37 = vld [vmem:[#allocation3 + $0x18] sm:$0xff] }
 0x77c   : > { %v6544_v5 = vpop.permute.xlu1 %6543 }
 0x77d   : > { %6639 = vst.msk [vmem:[#allocation3 + $0x370] sm:$0xff] %vm2997_vm5, %v6544_v5  ;;  %v6546_v16 = vpop.permute.xlu0 %6545 }
 0x77e   : > { %8773 = vmatmul.mubr.f32.gmra.mrb[64].mxu1 %v8339_v31  ;;  %7483 = vrot.lane.b32.xlu1 %v12257_v15, %s10311_s19  ;;  %6640 = vst.msk [vmem:[#allocation3 + $0x390] sm:$0xff] %vm2997_vm5, %v6546_v16  ;;  %v8371_v31 = vld [vmem:[#allocation3 + $0x500] sm:$0xff] }
 0x77f   : > { %8777 = vmatprep.mubr.f32.mxu1 %v8344_v30  ;;  %7729 = vrot.lane.b32.xlu0 %v7642_v6, %s10312_s24 }
 0x780   : > { %v6548_v43 = vpop.permute.xlu1 %6547 }
 0x781   : > { %6641 = vst.msk [vmem:[#allocation3 + $0x3b0] sm:$0xff] %vm2997_vm5, %v6548_v43  ;;  %v6550_v39 = vpop.permute.xlu0 %6549 }
 0x782   : > { %8778 = vmatmul.mubr.f32.gmra.mrb[66].mxu1 %v8343_v62  ;;  %6993 = vrot.lane.b32.xlu1 %v12350_v27, %s10310_s14  ;;  %6642 = vst.msk [vmem:[#allocation3 + $0x3d0] sm:$0xff] %vm2997_vm5, %v6550_v39 }
 0x783   : > { %8782 = vmatprep.mubr.f32.mxu1 %v8348_v21  ;;  %7975 = vrot.lane.b32.xlu0 %v13837_v48, %s10313_s29 }
 0x784   : > { %v6552_v15 = vpop.permute.xlu1 %6551 }
 0x785   : > { %6643 = vst.msk [vmem:[#allocation3 + $0x3f0] sm:$0xff] %vm2997_vm5, %v6552_v15  ;;  %v6554_v22 = vpop.permute.xlu0 %6553 }
 0x786   : > { %8783 = vmatmul.mubr.f32.gmra.mrb[68].mxu1 %v8347_v32  ;;  %7239 = vrot.lane.b32.xlu1 %v7151_v58, %s10309_s13  ;;  %6644 = vst.msk [vmem:[#allocation3 + $0x410] sm:$0xff] %vm2997_vm5, %v6554_v22 }
 0x787   : > { %8787 = vmatprep.mubr.f32.mxu1 %v8352_v41  ;;  %7485 = vrot.lane.b32.xlu0 %v12255_v26, %s10311_s19 }
 0x788   : > { %v6556_v27 = vpop.permute.xlu1 %6555 }
 0x789   : > { %6645 = vst.msk [vmem:[#allocation3 + $0x430] sm:$0xff] %vm2997_vm5, %v6556_v27  ;;  %v6558_v48 = vpop.permute.xlu0 %6557 }
 0x78a   : > { %8788 = vmatmul.mubr.f32.gmra.mrb[70].mxu1 %v8351_v60  ;;  %7731 = vrot.lane.b32.xlu1 %v7643_v2, %s10312_s24  ;;  %6646 = vst.msk [vmem:[#allocation3 + $0x450] sm:$0xff] %vm2997_vm5, %v6558_v48  ;;  %v7157_v2 = vld [vmem:[#allocation2 + $0xc0] sm:$0xff] }
 0x78b   : > { %8792 = vmatprep.mubr.f32.mxu1 %v8356_v52  ;;  %6995 = vrot.lane.b32.xlu0 %v12363_v61, %s10310_s14  ;;  %v7649_v52 = vld [vmem:[#allocation2 + $0xc2] sm:$0xff] }
 0x78c   : > { %v6560_v12 = vpop.permute.xlu1 %6559 }
 0x78d   : > { %6647 = vst.msk [vmem:[#allocation3 + $0x470] sm:$0xff] %vm2997_vm5, %v6560_v12  ;;  %v6562_v26 = vpop.permute.xlu0 %6561 }
 0x78e   : > { %8793 = vmatmul.mubr.f32.gmra.mrb[72].mxu1 %v8355_v63  ;;  %7977 = vrot.lane.b32.xlu1 %v13856_v24, %s10313_s29  ;;  %6648 = vst.msk [vmem:[#allocation3 + $0x490] sm:$0xff] %vm2997_vm5, %v6562_v26  ;;  %v15136_v26 = vld [vmem:[#allocation62_spill] sm:$0xff] }
 0x78f   : > { %8797 = vmatprep.mubr.f32.mxu1 %v8360_v13  ;;  %7241 = vrot.lane.b32.xlu0 %v7152_v3, %s10309_s13 }
 0x790   : > { %v6564_v29 = vpop.permute.xlu1 %6563 }
 0x791   : > { %6649 = vst.msk [vmem:[#allocation3 + $0x4b0] sm:$0xff] %vm2997_vm5, %v6564_v29  ;;  %v6566_v61 = vpop.permute.xlu0 %6565  ;;  %v8218_v29 = vld [vmem:[#allocation3 + $0x38] sm:$0xff] }
 0x792   : > { %8798 = vmatmul.mubr.f32.gmra.mrb[74].mxu1 %v8359_v54  ;;  %7487 = vrot.lane.b32.xlu1 %v12268_v35, %s10311_s19  ;;  %6650 = vst.msk [vmem:[#allocation3 + $0x4d0] sm:$0xff] %vm2997_vm5, %v6566_v61  ;;  %v7650_v54 = vld [vmem:[#allocation2 + $0xca] sm:$0xff] }
 0x793   : > { %8802 = vmatprep.mubr.f32.mxu1 %v8364_v33  ;;  %7733 = vrot.lane.b32.xlu0 %v7644_v8, %s10312_s24 }
 0x794   : > { %v6568_v24 = vpop.permute.xlu1 %6567 }
 0x795   : > { %6651 = vst.msk [vmem:[#allocation3 + $0x4f0] sm:$0xff] %vm2997_vm5, %v6568_v24  ;;  %v6570_v38 = vpop.permute.xlu0 %6569  ;;  %v7896_v24 = vld [vmem:[#allocation2 + $0xcb] sm:$0xff] }
 0x796   : > { %8803 = vmatmul.mubr.f32.gmra.mrb[76].mxu1 %v8363_v53  ;;  %6997 = vrot.lane.b32.xlu1 %v12376_v1, %s10310_s14  ;;  %6652 = vst.msk [vmem:[#allocation3 + $0x510] sm:$0xff] %vm2997_vm5, %v6570_v38  ;;  %v15137_v38 = vld [vmem:[#allocation60_spill] sm:$0xff] }
 0x797   : > { %8807 = vmatprep.mubr.f32.mxu1 %v8368_v45  ;;  %7979 = vrot.lane.b32.xlu0 %v13854_v17, %s10313_s29  ;;  %v7651_v45 = vld [vmem:[#allocation2 + $0xd2] sm:$0xff] }
 0x798   : > { %v6736_v35 = vpop.permute.xlu1 %6735 }
 0x799   : > { %6858 = vst.msk [vmem:[#allocation3 + $0x10] sm:$0xff] %vm3244_vm6, %v6736_v35  ;;  %v6738_v5 = vpop.permute.xlu0 %6737  ;;  %v8222_v35 = vld [vmem:[#allocation3 + $0x58] sm:$0xff] }
 0x79a   : > { %7243 = vrot.lane.b32.xlu1 %v7153_v51, %s10309_s13  ;;  %8808 = vmatmul.mubr.f32.gmra.mrb[78].mxu1 %v8367_v7  ;;  %6859 = vst.msk [vmem:[#allocation3 + $0x30] sm:$0xff] %vm3244_vm6, %v6738_v5 }
 0x79b   : > { %8812 = vmatprep.mubr.f32.mxu1 %v8372_v18  ;;  %7489 = vrot.lane.b32.xlu0 %v12263_v46, %s10311_s19  ;;  %v7154_v46 = vld [vmem:[#allocation2 + $0xa8] sm:$0xff]  ;;  %v7897_v18 = vld [vmem:[#allocation2 + $0xd3] sm:$0xff] }
 0x79c   : > { %v6740_v1 = vpop.permute.xlu1 %6739 }
 0x79d   : > { %6860 = vst.msk [vmem:[#allocation3 + $0x50] sm:$0xff] %vm3244_vm6, %v6740_v1  ;;  %v6742_v17 = vpop.permute.xlu0 %6741  ;;  %v15138_v1 = vld [vmem:[#allocation92_spill] sm:$0xff] }
 0x79e   : > { %7735 = vrot.lane.b32.xlu1 %v7645_v50, %s10312_s24  ;;  %8813 = vmatmul.mubr.f32.gmra.mrb[80].mxu1 %v8371_v31  ;;  %6861 = vst.msk [vmem:[#allocation3 + $0x70] sm:$0xff] %vm3244_vm6, %v6742_v17  ;;  %v7160_v17 = vld [vmem:[#allocation2 + $0xd8] sm:$0xff] }
 0x79f   : > { %9515 = vmatprep.mubr.msk.f32.mxu1 %vm2655_vm4, %v8214_v37  ;;  %6999 = vrot.lane.b32.xlu0 %v12384_v23, %s10310_s14  ;;  %v7646_v23 = vld [vmem:[#allocation2 + $0xaa] sm:$0xff] }
 0x7a0   : > { %v6744_v30 = vpop.permute.xlu1 %6743  ;;  %v8226_v37 = vld [vmem:[#allocation3 + $0x78] sm:$0xff] }
 0x7a1   : > { %6862 = vst.msk [vmem:[#allocation3 + $0x90] sm:$0xff] %vm3244_vm6, %v6744_v30  ;;  %v6746_v16 = vpop.permute.xlu0 %6745  ;;  %v15139_v30 = vld [vmem:[#allocation91_spill] sm:$0xff] }
 0x7a2   : > { %7981 = vrot.lane.b32.xlu1 %v13875_v44, %s10313_s29  ;;  %6863 = vst.msk [vmem:[#allocation3 + $0xb0] sm:$0xff] %vm3244_vm6, %v6746_v16 }
 0x7a3   : > { %7245 = vrot.lane.b32.xlu0 %v7154_v46, %s10309_s13  ;;  %v7652_v46 = vld [vmem:[#allocation2 + $0xda] sm:$0xff] }
 0x7a4   : > { %v6748_v43 = vpop.permute.xlu1 %6747 }
 0x7a5   : > { %6864 = vst.msk [vmem:[#allocation3 + $0xd0] sm:$0xff] %vm3244_vm6, %v6748_v43  ;;  %v6750_v6 = vpop.permute.xlu0 %6749 }
 0x7a6   : > { %7491 = vrot.lane.b32.xlu1 %v12278_v28, %s10311_s19  ;;  %6865 = vst.msk [vmem:[#allocation3 + $0xf0] sm:$0xff] %vm3244_vm6, %v6750_v6  ;;  %v7155_v28 = vld [vmem:[#allocation2 + $0xb0] sm:$0xff] }
 0x7a7   : > { %7737 = vrot.lane.b32.xlu0 %v7646_v23, %s10312_s24  ;;  %v7161_v23 = vld [vmem:[#allocation2 + $0xe0] sm:$0xff] }
 0x7a8   : > { %v6752_v62 = vpop.permute.xlu1 %6751 }
 0x7a9   : > { %6866 = vst.msk [vmem:[#allocation3 + $0x110] sm:$0xff] %vm3244_vm6, %v6752_v62  ;;  %v6754_v21 = vpop.permute.xlu0 %6753 }
 0x7aa   : > { %7001 = vrot.lane.b32.xlu1 %v12389_v47, %s10310_s14  ;;  %6867 = vst.msk [vmem:[#allocation3 + $0x130] sm:$0xff] %vm3244_vm6, %v6754_v21  ;;  %v7647_v47 = vld [vmem:[#allocation2 + $0xb2] sm:$0xff] }
 0x7ab   : > { %7983 = vrot.lane.b32.xlu0 %v13871_v42, %s10313_s29 }
 0x7ac   : > { %v6756_v44 = vpop.permute.xlu1 %6755 }
 0x7ad   : > { %6868 = vst.msk [vmem:[#allocation3 + $0x150] sm:$0xff] %vm3244_vm6, %v6756_v44  ;;  %v6758_v39 = vpop.permute.xlu0 %6757  ;;  %v7898_v44 = vld [vmem:[#allocation2 + $0xdb] sm:$0xff] }
 0x7ae   : > { %7247 = vrot.lane.b32.xlu1 %v7155_v28, %s10309_s13  ;;  %6869 = vst.msk [vmem:[#allocation3 + $0x170] sm:$0xff] %vm3244_vm6, %v6758_v39  ;;  %v15140_v39 = vld [vmem:[#allocation90_spill] sm:$0xff] }
 0x7af   : > { %7493 = vrot.lane.b32.xlu0 %v12270_v14, %s10311_s19  ;;  %v7156_v14 = vld [vmem:[#allocation2 + $0xb8] sm:$0xff] }
 0x7b0   : > { %v6760_v15 = vpop.permute.xlu1 %6759 }
 0x7b1   : > { %6870 = vst.msk [vmem:[#allocation3 + $0x190] sm:$0xff] %vm3244_vm6, %v6760_v15  ;;  %v6762_v58 = vpop.permute.xlu0 %6761  ;;  %v8230_v15 = vld [vmem:[#allocation3 + $0x98] sm:$0xff] }
 0x7b2   : > { %7739 = vrot.lane.b32.xlu1 %v7647_v47, %s10312_s24  ;;  %6871 = vst.msk [vmem:[#allocation3 + $0x1b0] sm:$0xff] %vm3244_vm6, %v6762_v58  ;;  %v15141_v58 = vld [vmem:[#allocation93_spill] sm:$0xff] }
 0x7b3   : > { %7003 = vrot.lane.b32.xlu0 %v12393_v59, %s10310_s14  ;;  %v7648_v59 = vld [vmem:[#allocation2 + $0xba] sm:$0xff] }
 0x7b4   : > { %v6764_v32 = vpop.permute.xlu1 %6763 }
 0x7b5   : > { %6872 = vst.msk [vmem:[#allocation3 + $0x1d0] sm:$0xff] %vm3244_vm6, %v6764_v32  ;;  %v6766_v41 = vpop.permute.xlu0 %6765 }
 0x7b6   : > { %7985 = vrot.lane.b32.xlu1 %v13892_v55, %s10313_s29  ;;  %6873 = vst.msk [vmem:[#allocation3 + $0x1f0] sm:$0xff] %vm3244_vm6, %v6766_v41 }
 0x7b7   : > { %7249 = vrot.lane.b32.xlu0 %v7156_v14, %s10309_s13 }
 0x7b8   : > { %v6768_v42 = vpop.permute.xlu1 %6767 }
 0x7b9   : > { %6874 = vst.msk [vmem:[#allocation3 + $0x210] sm:$0xff] %vm3244_vm6, %v6768_v42  ;;  %v6982_v22 = vpop.permute.xlu0 %6981  ;;  %v7653_v42 = vld [vmem:[#allocation2 + $0xe2] sm:$0xff] }
 0x7ba   : > { %7495 = vrot.lane.b32.xlu1 %v12282_v36, %s10311_s19  ;;  %7104 = vst.msk [vmem:[#allocation3 + $0x10] sm:$0xff] %vm3491_vm7, %v6982_v22  ;;  %v7162_v22 = vld [vmem:[#allocation2 + $0xe8] sm:$0xff] }
 0x7bb   : > { %7741 = vrot.lane.b32.xlu0 %v7648_v59, %s10312_s24  ;;  %v8234_v59 = vld [vmem:[#allocation3 + $0xb8] sm:$0xff] }
 0x7bc   : > { %v7228_v27 = vpop.permute.xlu1 %7227 }
 0x7bd   : > { %7350 = vst.msk [vmem:[#allocation3 + $0x10] sm:$0xff] %vm3738_vm8, %v7228_v27  ;;  %v7474_v60 = vpop.permute.xlu0 %7473 }
 0x7be   : > { %7005 = vrot.lane.b32.xlu1 %v12397_v57, %s10310_s14  ;;  %7596 = vst.msk [vmem:[#allocation3 + $0x10] sm:$0xff] %vm3985_vm9, %v7474_v60 }
 0x7bf   : > { %7987 = vrot.lane.b32.xlu0 %v13888_v4, %s10313_s29 }
 0x7c0   : > { %v7720_v55 = vpop.permute.xlu1 %7719 }
 0x7c1   : > { %7842 = vst.msk [vmem:[#allocation3 + $0x10] sm:$0xff] %vm4232_vm10, %v7720_v55  ;;  %v6984_v57 = vpop.permute.xlu0 %6983  ;;  %v7899_v55 = vld [vmem:[#allocation2 + $0xe3] sm:$0xff] }
 0x7c2   : > { %7251 = vrot.lane.b32.xlu1 %v7157_v2, %s10309_s13  ;;  %7105 = vst.msk [vmem:[#allocation3 + $0x30] sm:$0xff] %vm3491_vm7, %v6984_v57 }
 0x7c3   : > { %7497 = vrot.lane.b32.xlu0 %v12280_v49, %s10311_s19  ;;  %v7158_v49 = vld [vmem:[#allocation2 + $0xc8] sm:$0xff] }
 0x7c4   : > { %v7966_v36 = vpop.permute.xlu1 %7965 }
 0x7c5   : > { %8088 = vst.msk [vmem:[#allocation3 + $0x10] sm:$0xff] %vm4479_vm11, %v7966_v36  ;;  %v7230_v48 = vpop.permute.xlu0 %7229  ;;  %v15142_v36 = vld [vmem:[#allocation61_spill] sm:$0xff] }
 0x7c6   : > { %7743 = vrot.lane.b32.xlu1 %v7649_v52, %s10312_s24  ;;  %7351 = vst.msk [vmem:[#allocation3 + $0x30] sm:$0xff] %vm3738_vm8, %v7230_v48  ;;  %v7654_v48 = vld [vmem:[#allocation2 + $0xea] sm:$0xff] }
 0x7c7   : > { %7007 = vrot.lane.b32.xlu0 %v12402_v56, %s10310_s14 }
 0x7c8   : > { %v7476_v12 = vpop.permute.xlu1 %7475 }
 0x7c9   : > { %7597 = vst.msk [vmem:[#allocation3 + $0x30] sm:$0xff] %vm3985_vm9, %v7476_v12  ;;  %v7722_v13 = vpop.permute.xlu0 %7721  ;;  %v15143_v12 = vld [vmem:[#allocation21_spill] sm:$0xff] }
 0x7ca   : > { %7989 = vrot.lane.b32.xlu1 %v13904_v19, %s10313_s29  ;;  %7843 = vst.msk [vmem:[#allocation3 + $0x30] sm:$0xff] %vm4232_vm10, %v7722_v13 }
 0x7cb   : > { %7253 = vrot.lane.b32.xlu0 %v7158_v49, %s10309_s13  ;;  %v7900_v49 = vld [vmem:[#allocation2 + $0xeb] sm:$0xff] }
 0x7cc   : > { %v6986_v4 = vpop.permute.xlu1 %6985  ;;  %v8213_v63 = vld [vmem:[#allocation3 + $0x10] sm:$0xff] }
 0x7cd   : > { %7106 = vst.msk [vmem:[#allocation3 + $0x50] sm:$0xff] %vm3491_vm7, %v6986_v4  ;;  %8883 = vmatmul.mubr.f32.vlgmr.msra.gmra.mrb[0].mxu1 %v8213_v63  ;;  %v7968_v56 = vpop.permute.xlu0 %7967 }
 0x7ce   : > { %7499 = vrot.lane.b32.xlu1 %v12296_v11, %s10311_s19  ;;  %9516 = vmatprep.mubr.msk.f32.mxu1 %vm2655_vm4, %v8218_v29  ;;  %8089 = vst.msk [vmem:[#allocation3 + $0x30] sm:$0xff] %vm4479_vm11, %v7968_v56  ;;  %v7159_v11 = vld [vmem:[#allocation2 + $0xd0] sm:$0xff] }
 0x7cf   : > { %7745 = vrot.lane.b32.xlu0 %v7650_v54, %s10312_s24  ;;  %v7163_v29 = vld [vmem:[#allocation2 + $0xf0] sm:$0xff]  ;;  %v15144_v54 = vld [vmem:[#allocation19_spill] sm:$0xff] }
 0x7d0   : > { %v7232_v19 = vpop.permute.xlu1 %7231 }
 0x7d1   : > { %7352 = vst.msk [vmem:[#allocation3 + $0x50] sm:$0xff] %vm3738_vm8, %v7232_v19  ;;  %v7478_v33 = vpop.permute.xlu0 %7477  ;;  %v8238_v19 = vld [vmem:[#allocation3 + $0xd8] sm:$0xff] }
 0x7d2   : > { %7009 = vrot.lane.b32.xlu1 %v15136_v26, %s10310_s14  ;;  %7598 = vst.msk [vmem:[#allocation3 + $0x50] sm:$0xff] %vm3985_vm9, %v7478_v33 }
 0x7d3   : > { %7991 = vrot.lane.b32.xlu0 %v7896_v24, %s10313_s29  ;;  %v8242_v24 = vld [vmem:[#allocation3 + $0xf8] sm:$0xff] }
 0x7d4   : > { %v7724_v3 = vpop.permute.xlu1 %7723 }
 0x7d5   : > { %7844 = vst.msk [vmem:[#allocation3 + $0x50] sm:$0xff] %vm4232_vm10, %v7724_v3  ;;  %v6988_v53 = vpop.permute.xlu0 %6987  ;;  %v8217_v8 = vld [vmem:[#allocation3 + $0x30] sm:$0xff] }
 0x7d6   : > { %7255 = vrot.lane.b32.xlu1 %v7159_v11, %s10309_s13  ;;  %7107 = vst.msk [vmem:[#allocation3 + $0x70] sm:$0xff] %vm3491_vm7, %v6988_v53  ;;  %8888 = vmatmul.mubr.f32.gmra.mrb[2].mxu1 %v8217_v8  ;;  %v7655_v53 = vld [vmem:[#allocation2 + $0xf2] sm:$0xff] }
 0x7d7   : > { %7501 = vrot.lane.b32.xlu0 %v15137_v38, %s10311_s19  ;;  %9517 = vmatprep.mubr.msk.f32.mxu1 %vm2655_vm4, %v8222_v35  ;;  %v7164_v35 = vld [vmem:[#allocation2 + $0xf8] sm:$0xff] }
 0x7d8   : > { %v7970_v61 = vpop.permute.xlu1 %7969  ;;  %v7901_v38 = vld [vmem:[#allocation2 + $0xf3] sm:$0xff] }
 0x7d9   : > { %8090 = vst.msk [vmem:[#allocation3 + $0x50] sm:$0xff] %vm4479_vm11, %v7970_v61  ;;  %v7234_v7 = vpop.permute.xlu0 %7233  ;;  %v15145_v61 = vld [vmem:[#allocation63_spill] sm:$0xff] }
 0x7da   : > { %7747 = vrot.lane.b32.xlu1 %v7651_v45, %s10312_s24  ;;  %7353 = vst.msk [vmem:[#allocation3 + $0x70] sm:$0xff] %vm3738_vm8, %v7234_v7 }
 0x7db   : > { %7011 = vrot.lane.b32.xlu0 %v15138_v1, %s10310_s14 }
 0x7dc   : > { %v7480_v51 = vpop.permute.xlu1 %7479 }
 0x7dd   : > { %7599 = vst.msk [vmem:[#allocation3 + $0x70] sm:$0xff] %vm3985_vm9, %v7480_v51  ;;  %v7726_v31 = vpop.permute.xlu0 %7725 }
 0x7de   : > { %7993 = vrot.lane.b32.xlu1 %v7897_v18, %s10313_s29  ;;  %7845 = vst.msk [vmem:[#allocation3 + $0x70] sm:$0xff] %vm4232_vm10, %v7726_v31  ;;  %v7656_v31 = vld [vmem:[#allocation2 + $0xfa] sm:$0xff] }
 0x7df   : > { %7257 = vrot.lane.b32.xlu0 %v7160_v17, %s10309_s13 }
 0x7e0   : > { %v6990_v5 = vpop.permute.xlu1 %6989  ;;  %v8221_v50 = vld [vmem:[#allocation3 + $0x50] sm:$0xff] }
 0x7e1   : > { %7108 = vst.msk [vmem:[#allocation3 + $0x90] sm:$0xff] %vm3491_vm7, %v6990_v5  ;;  %8893 = vmatmul.mubr.f32.gmra.mrb[4].mxu1 %v8221_v50  ;;  %v7972_v16 = vpop.permute.xlu0 %7971 }
 0x7e2   : > { %7503 = vrot.lane.b32.xlu1 %v15139_v30, %s10311_s19  ;;  %9518 = vmatprep.mubr.msk.f32.mxu1 %vm2655_vm4, %v8226_v37  ;;  %8091 = vst.msk [vmem:[#allocation3 + $0x70] sm:$0xff] %vm4479_vm11, %v7972_v16  ;;  %v8246_v37 = vld [vmem:[#allocation3 + $0x118] sm:$0xff]  ;;  %v7902_v16 = vld [vmem:[#allocation2 + $0xfb] sm:$0xff] }
 0x7e3   : > { %7749 = vrot.lane.b32.xlu0 %v7652_v46, %s10312_s24 }
 0x7e4   : > { %v7236_v43 = vpop.permute.xlu1 %7235 }
 0x7e5   : > { %7354 = vst.msk [vmem:[#allocation3 + $0x90] sm:$0xff] %vm3738_vm8, %v7236_v43  ;;  %v7482_v6 = vpop.permute.xlu0 %7481  ;;  %v7165_v43 = vld [vmem:[#allocation2 + $0x100] sm:$0xff] }
 0x7e6   : > { %7013 = vrot.lane.b32.xlu1 %v12419_v40, %s10310_s14  ;;  %7600 = vst.msk [vmem:[#allocation3 + $0x90] sm:$0xff] %vm3985_vm9, %v7482_v6  ;;  %v8250_v6 = vld [vmem:[#allocation3 + $0x138] sm:$0xff] }
 0x7e7   : > { %7995 = vrot.lane.b32.xlu0 %v7898_v44, %s10313_s29 }
 0x7e8   : > { %v7728_v62 = vpop.permute.xlu1 %7727 }
 0x7e9   : > { %7846 = vst.msk [vmem:[#allocation3 + $0x90] sm:$0xff] %vm4232_vm10, %v7728_v62  ;;  %v6992_v28 = vpop.permute.xlu0 %6991  ;;  %v8225_v40 = vld [vmem:[#allocation3 + $0x70] sm:$0xff] }
 0x7ea   : > { %7259 = vrot.lane.b32.xlu1 %v7161_v23, %s10309_s13  ;;  %7109 = vst.msk [vmem:[#allocation3 + $0xb0] sm:$0xff] %vm3491_vm7, %v6992_v28  ;;  %8898 = vmatmul.mubr.f32.gmra.mrb[6].mxu1 %v8225_v40  ;;  %v7411_v23 = vld [vmem:[#allocation2 + $0x101] sm:$0xff] }
 0x7eb   : > { %7505 = vrot.lane.b32.xlu0 %v15140_v39, %s10311_s19  ;;  %9519 = vmatprep.mubr.msk.f32.mxu1 %vm2655_vm4, %v8230_v15  ;;  %v15147_v28 = vld [vmem:[#allocation22_spill] sm:$0xff] }
 0x7ec   : > { %v7974_v21 = vpop.permute.xlu1 %7973  ;;  %v7657_v40 = vld [vmem:[#allocation2 + $0x102] sm:$0xff] }
 0x7ed   : > { %8092 = vst.msk [vmem:[#allocation3 + $0x90] sm:$0xff] %vm4479_vm11, %v7974_v21  ;;  %v7238_v32 = vpop.permute.xlu0 %7237 }
 0x7ee   : > { %6769 = vrot.lane.b32.xlu1 %v7897_v18, %s10307_s7  ;;  %7355 = vst.msk [vmem:[#allocation3 + $0xb0] sm:$0xff] %vm3738_vm8, %v7238_v32  ;;  %v15146_v18 = vld [vmem:[#allocation20_spill] sm:$0xff]  ;;  %v7903_v32 = vld [vmem:[#allocation2 + $0x103] sm:$0xff] }
 0x7ef   : > { %7751 = vrot.lane.b32.xlu0 %v7653_v42, %s10312_s24 }
 0x7f0   : > { %v7484_v47 = vpop.permute.xlu1 %7483 }
 0x7f1   : > { %7601 = vst.msk [vmem:[#allocation3 + $0xb0] sm:$0xff] %vm3985_vm9, %v7484_v47  ;;  %v7730_v27 = vpop.permute.xlu0 %7729  ;;  %v7166_v47 = vld [vmem:[#allocation2 + $0x108] sm:$0xff] }
 0x7f2   : > { %7015 = vrot.lane.b32.xlu1 %v15141_v58, %s10310_s14  ;;  %7847 = vst.msk [vmem:[#allocation3 + $0xb0] sm:$0xff] %vm4232_vm10, %v7730_v27  ;;  %v8254_v27 = vld [vmem:[#allocation3 + $0x158] sm:$0xff] }
 0x7f3   : > { %7997 = vrot.lane.b32.xlu0 %v7899_v55, %s10313_s29 }
 0x7f4   : > { %v6994_v41 = vpop.permute.xlu1 %6993  ;;  %v8229_v14 = vld [vmem:[#allocation3 + $0x90] sm:$0xff] }
 0x7f5   : > { %7110 = vst.msk [vmem:[#allocation3 + $0xd0] sm:$0xff] %vm3491_vm7, %v6994_v41  ;;  %8903 = vmatmul.mubr.f32.gmra.mrb[8].mxu1 %v8229_v14  ;;  %v7976_v2 = vpop.permute.xlu0 %7975  ;;  %v7412_v14 = vld [vmem:[#allocation2 + $0x109] sm:$0xff] }
 0x7f6   : > { %7261 = vrot.lane.b32.xlu1 %v7162_v22, %s10309_s13  ;;  %9520 = vmatprep.mubr.msk.f32.mxu1 %vm2655_vm4, %v8234_v59  ;;  %8093 = vst.msk [vmem:[#allocation3 + $0xb0] sm:$0xff] %vm4479_vm11, %v7976_v2 }
 0x7f7   : > { %7507 = vrot.lane.b32.xlu0 %v15142_v36, %s10311_s19 }
 0x7f8   : > { %v7240_v60 = vpop.permute.xlu1 %7239 }
 0x7f9   : > { %7356 = vst.msk [vmem:[#allocation3 + $0xd0] sm:$0xff] %vm3738_vm8, %v7240_v60  ;;  %v7486_v52 = vpop.permute.xlu0 %7485 }
 0x7fa   : > { %6771 = vrot.lane.b32.xlu1 %v7898_v44, %s10307_s7  ;;  %7602 = vst.msk [vmem:[#allocation3 + $0xd0] sm:$0xff] %vm3985_vm9, %v7486_v52  ;;  %v8258_v52 = vld [vmem:[#allocation3 + $0x178] sm:$0xff] }
 0x7fb   : > { %7753 = vrot.lane.b32.xlu0 %v7654_v48, %s10312_s24 }
 0x7fc   : > { %v7732_v57 = vpop.permute.xlu1 %7731 }
 0x7fd   : > { %7848 = vst.msk [vmem:[#allocation3 + $0xd0] sm:$0xff] %vm4232_vm10, %v7732_v57  ;;  %v6996_v63 = vpop.permute.xlu0 %6995  ;;  %v8233_v13 = vld [vmem:[#allocation3 + $0xb0] sm:$0xff]  ;;  %v7167_v57 = vld [vmem:[#allocation2 + $0x110] sm:$0xff] }
 0x7fe   : > { %7017 = vrot.lane.b32.xlu1 %v15143_v12, %s10310_s14  ;;  %7111 = vst.msk [vmem:[#allocation3 + $0xf0] sm:$0xff] %vm3491_vm7, %v6996_v63  ;;  %8908 = vmatmul.mubr.f32.gmra.mrb[10].mxu1 %v8233_v13  ;;  %v7904_v12 = vld [vmem:[#allocation2 + $0x10b] sm:$0xff] }
 0x7ff   : > { %7999 = vrot.lane.b32.xlu0 %v7900_v49, %s10313_s29  ;;  %9521 = vmatprep.mubr.msk.f32.mxu1 %vm2655_vm4, %v8238_v19 }
 0x800   : > { %v7978_v4 = vpop.permute.xlu1 %7977 }
 0x801   : > { %8094 = vst.msk [vmem:[#allocation3 + $0xd0] sm:$0xff] %vm4479_vm11, %v7978_v4  ;;  %v7242_v26 = vpop.permute.xlu0 %7241  ;;  %v7413_v4 = vld [vmem:[#allocation2 + $0x111] sm:$0xff] }
 0x802   : > { %7263 = vrot.lane.b32.xlu1 %v7163_v29, %s10309_s13  ;;  %7357 = vst.msk [vmem:[#allocation3 + $0xf0] sm:$0xff] %vm3738_vm8, %v7242_v26  ;;  %v15148_v29 = vld [vmem:[#allocation64_spill] sm:$0xff] }
 0x803   : > { %7509 = vrot.lane.b32.xlu0 %v15144_v54, %s10311_s19  ;;  %v7168_v54 = vld [vmem:[#allocation2 + $0x118] sm:$0xff] }
 0x804   : > { %v7488_v56 = vpop.permute.xlu1 %7487 }
 0x805   : > { %7603 = vst.msk [vmem:[#allocation3 + $0xf0] sm:$0xff] %vm3985_vm9, %v7488_v56  ;;  %v7734_v11 = vpop.permute.xlu0 %7733 }
 0x806   : > { %6773 = vrot.lane.b32.xlu1 %v7899_v55, %s10307_s7  ;;  %7849 = vst.msk [vmem:[#allocation3 + $0xf0] sm:$0xff] %vm4232_vm10, %v7734_v11  ;;  %v7658_v55 = vld [vmem:[#allocation2 + $0x10a] sm:$0xff] }
 0x807   : > { %7755 = vrot.lane.b32.xlu0 %v7655_v53, %s10312_s24 }
 0x808   : > { %v6998_v3 = vpop.permute.xlu1 %6997  ;;  %v8237_v33 = vld [vmem:[#allocation3 + $0xd0] sm:$0xff] }
 0x809   : > { %7112 = vst.msk [vmem:[#allocation3 + $0x110] sm:$0xff] %vm3491_vm7, %v6998_v3  ;;  %8913 = vmatmul.mubr.f32.gmra.mrb[12].mxu1 %v8237_v33  ;;  %v7980_v45 = vpop.permute.xlu0 %7979  ;;  %v7905_v3 = vld [vmem:[#allocation2 + $0x113] sm:$0xff]  ;;  %v8262_v33 = vld [vmem:[#allocation3 + $0x198] sm:$0xff] }
 0x80a   : > { %7019 = vrot.lane.b32.xlu1 %v15145_v61, %s10310_s14  ;;  %9522 = vmatprep.mubr.msk.f32.mxu1 %vm2655_vm4, %v8242_v24  ;;  %8095 = vst.msk [vmem:[#allocation3 + $0xf0] sm:$0xff] %vm4479_vm11, %v7980_v45  ;;  %v7414_v61 = vld [vmem:[#allocation2 + $0x119] sm:$0xff] }
 0x80b   : > { %8001 = vrot.lane.b32.xlu0 %v7901_v38, %s10313_s29 }
 0x80c   : > { %v7244_v8 = vpop.permute.xlu1 %7243 }
 0x80d   : > { %7358 = vst.msk [vmem:[#allocation3 + $0x110] sm:$0xff] %vm3738_vm8, %v7244_v8  ;;  %v7490_v7 = vpop.permute.xlu0 %7489 }
 0x80e   : > { %7265 = vrot.lane.b32.xlu1 %v7164_v35, %s10309_s13  ;;  %7604 = vst.msk [vmem:[#allocation3 + $0x110] sm:$0xff] %vm3985_vm9, %v7490_v7  ;;  %v8266_v35 = vld [vmem:[#allocation3 + $0x1b8] sm:$0xff] }
 0x80f   : > { %7511 = vrot.lane.b32.xlu0 %v15146_v18, %s10311_s19 }
 0x810   : > { %v7736_v51 = vpop.permute.xlu1 %7735 }
 0x811   : > { %7850 = vst.msk [vmem:[#allocation3 + $0x110] sm:$0xff] %vm4232_vm10, %v7736_v51  ;;  %v7000_v5 = vpop.permute.xlu0 %6999  ;;  %v8241_v50 = vld [vmem:[#allocation3 + $0xf0] sm:$0xff] }
 0x812   : > { %6775 = vrot.lane.b32.xlu1 %v7900_v49, %s10307_s7  ;;  %7113 = vst.msk [vmem:[#allocation3 + $0x130] sm:$0xff] %vm3491_vm7, %v7000_v5  ;;  %8918 = vmatmul.mubr.f32.gmra.mrb[14].mxu1 %v8241_v50  ;;  %v7659_v49 = vld [vmem:[#allocation2 + $0x112] sm:$0xff]  ;;  %v7660_v51 = vld [vmem:[#allocation2 + $0x11a] sm:$0xff] }
 0x813   : > { %7757 = vrot.lane.b32.xlu0 %v7656_v31, %s10312_s24  ;;  %9523 = vmatprep.mubr.msk.f32.mxu1 %vm2655_vm4, %v8246_v37  ;;  %v7906_v5 = vld [vmem:[#allocation2 + $0x11b] sm:$0xff] }
 0x814   : > { %v7982_v1 = vpop.permute.xlu1 %7981  ;;  %v7415_v37 = vld [vmem:[#allocation2 + $0x121] sm:$0xff] }
 0x815   : > { %8096 = vst.msk [vmem:[#allocation3 + $0x110] sm:$0xff] %vm4479_vm11, %v7982_v1  ;;  %v7246_v17 = vpop.permute.xlu0 %7245  ;;  %v7169_v1 = vld [vmem:[#allocation2 + $0x120] sm:$0xff] }
 0x816   : > { %7021 = vrot.lane.b32.xlu1 %v12446_v0, %s10310_s14  ;;  %7359 = vst.msk [vmem:[#allocation3 + $0x130] sm:$0xff] %vm3738_vm8, %v7246_v17 }
 0x817   : > { %8003 = vrot.lane.b32.xlu0 %v7902_v16, %s10313_s29 }
 0x818   : > { %v7492_v30 = vpop.permute.xlu1 %7491 }
 0x819   : > { %7605 = vst.msk [vmem:[#allocation3 + $0x130] sm:$0xff] %vm3985_vm9, %v7492_v30  ;;  %v7738_v62 = vpop.permute.xlu0 %7737 }
 0x81a   : > { %7267 = vrot.lane.b32.xlu1 %v7165_v43, %s10309_s13  ;;  %7851 = vst.msk [vmem:[#allocation3 + $0x130] sm:$0xff] %vm4232_vm10, %v7738_v62 }
 0x81b   : > { %7513 = vrot.lane.b32.xlu0 %v7411_v23, %s10311_s19  ;;  %v7170_v23 = vld [vmem:[#allocation2 + $0x128] sm:$0xff] }
 0x81c   : > { %v7002_v46 = vpop.permute.xlu1 %7001  ;;  %v8245_v0 = vld [vmem:[#allocation3 + $0x110] sm:$0xff] }
 0x81d   : > { %7114 = vst.msk [vmem:[#allocation3 + $0x150] sm:$0xff] %vm3491_vm7, %v7002_v46  ;;  %8923 = vmatmul.mubr.f32.gmra.mrb[16].mxu1 %v8245_v0  ;;  %v7984_v21 = vpop.permute.xlu0 %7983  ;;  %v7661_v46 = vld [vmem:[#allocation2 + $0x122] sm:$0xff] }
 0x81e   : > { %6777 = vrot.lane.b32.xlu1 %v7901_v38, %s10307_s7  ;;  %9524 = vmatprep.mubr.msk.f32.mxu1 %vm2655_vm4, %v8250_v6  ;;  %8097 = vst.msk [vmem:[#allocation3 + $0x130] sm:$0xff] %vm4479_vm11, %v7984_v21  ;;  %v15149_v38 = vld [vmem:[#allocation94_spill] sm:$0xff]  ;;  %v8270_v0 = vld [vmem:[#allocation3 + $0x1d8] sm:$0xff] }
 0x81f   : > { %7759 = vrot.lane.b32.xlu0 %v7657_v40, %s10312_s24 }
 0x820   : > { %v7248_v44 = vpop.permute.xlu1 %7247 }
 0x821   : > { %7360 = vst.msk [vmem:[#allocation3 + $0x150] sm:$0xff] %vm3738_vm8, %v7248_v44  ;;  %v7494_v39 = vpop.permute.xlu0 %7493  ;;  %v7907_v44 = vld [vmem:[#allocation2 + $0x123] sm:$0xff] }
 0x822   : > { %7023 = vrot.lane.b32.xlu1 %v15147_v28, %s10310_s14  ;;  %7606 = vst.msk [vmem:[#allocation3 + $0x150] sm:$0xff] %vm3985_vm9, %v7494_v39  ;;  %v7416_v39 = vld [vmem:[#allocation2 + $0x129] sm:$0xff] }
 0x823   : > { %8005 = vrot.lane.b32.xlu0 %v7903_v32, %s10313_s29 }
 0x824   : > { %v7740_v15 = vpop.permute.xlu1 %7739 }
 0x825   : > { %7852 = vst.msk [vmem:[#allocation3 + $0x150] sm:$0xff] %vm4232_vm10, %v7740_v15  ;;  %v7004_v42 = vpop.permute.xlu0 %7003  ;;  %v8249_v41 = vld [vmem:[#allocation3 + $0x130] sm:$0xff]  ;;  %v8274_v15 = vld [vmem:[#allocation3 + $0x1f8] sm:$0xff] }
 0x826   : > { %7269 = vrot.lane.b32.xlu1 %v7166_v47, %s10309_s13  ;;  %7115 = vst.msk [vmem:[#allocation3 + $0x170] sm:$0xff] %vm3491_vm7, %v7004_v42  ;;  %8928 = vmatmul.mubr.f32.gmra.mrb[18].mxu1 %v8249_v41  ;;  %v7662_v42 = vld [vmem:[#allocation2 + $0x12a] sm:$0xff] }
 0x827   : > { %7515 = vrot.lane.b32.xlu0 %v7412_v14, %s10311_s19  ;;  %9525 = vmatprep.mubr.msk.f32.mxu1 %vm2655_vm4, %v8254_v27  ;;  %v7171_v27 = vld [vmem:[#allocation2 + $0x130] sm:$0xff] }
 0x828   : > { %v7986_v58 = vpop.permute.xlu1 %7985 }
 0x829   : > { %8098 = vst.msk [vmem:[#allocation3 + $0x150] sm:$0xff] %vm4479_vm11, %v7986_v58  ;;  %v7250_v59 = vpop.permute.xlu0 %7249  ;;  %v15151_v58 = vld [vmem:[#allocation23_spill] sm:$0xff] }
 0x82a   : > { %6779 = vrot.lane.b32.xlu1 %v7902_v16, %s10307_s7  ;;  %7361 = vst.msk [vmem:[#allocation3 + $0x170] sm:$0xff] %vm3738_vm8, %v7250_v59  ;;  %v15150_v16 = vld [vmem:[#allocation95_spill] sm:$0xff] }
 0x82b   : > { %7761 = vrot.lane.b32.xlu0 %v7658_v55, %s10312_s24 }
 0x82c   : > { %v7496_v22 = vpop.permute.xlu1 %7495 }
 0x82d   : > { %7607 = vst.msk [vmem:[#allocation3 + $0x170] sm:$0xff] %vm3985_vm9, %v7496_v22  ;;  %v7742_v36 = vpop.permute.xlu0 %7741  ;;  %v7908_v22 = vld [vmem:[#allocation2 + $0x12b] sm:$0xff] }
 0x82e   : > { %7025 = vrot.lane.b32.xlu1 %v12459_v20, %s10310_s14  ;;  %7853 = vst.msk [vmem:[#allocation3 + $0x170] sm:$0xff] %vm4232_vm10, %v7742_v36  ;;  %v8278_v36 = vld [vmem:[#allocation3 + $0x218] sm:$0xff] }
 0x82f   : > { %8007 = vrot.lane.b32.xlu0 %v7904_v12, %s10313_s29 }
 0x830   : > { %v7006_v60 = vpop.permute.xlu1 %7005  ;;  %v8253_v2 = vld [vmem:[#allocation3 + $0x150] sm:$0xff] }
 0x831   : > { %7116 = vst.msk [vmem:[#allocation3 + $0x190] sm:$0xff] %vm3491_vm7, %v7006_v60  ;;  %8933 = vmatmul.mubr.f32.gmra.mrb[20].mxu1 %v8253_v2  ;;  %v7988_v48 = vpop.permute.xlu0 %7987  ;;  %v7417_v2 = vld [vmem:[#allocation2 + $0x131] sm:$0xff] }
 0x832   : > { %7271 = vrot.lane.b32.xlu1 %v7167_v57, %s10309_s13  ;;  %9526 = vmatprep.mubr.msk.f32.mxu1 %vm2655_vm4, %v8258_v52  ;;  %8099 = vst.msk [vmem:[#allocation3 + $0x170] sm:$0xff] %vm4479_vm11, %v7988_v48 }
 0x833   : > { %7517 = vrot.lane.b32.xlu0 %v7413_v4, %s10311_s19 }
 0x834   : > { %v7252_v20 = vpop.permute.xlu1 %7251 }
 0x835   : > { %7362 = vst.msk [vmem:[#allocation3 + $0x190] sm:$0xff] %vm3738_vm8, %v7252_v20  ;;  %v7498_v13 = vpop.permute.xlu0 %7497  ;;  %v7663_v20 = vld [vmem:[#allocation2 + $0x132] sm:$0xff] }
 0x836   : > { %6781 = vrot.lane.b32.xlu1 %v7903_v32, %s10307_s7  ;;  %7608 = vst.msk [vmem:[#allocation3 + $0x190] sm:$0xff] %vm3985_vm9, %v7498_v13  ;;  %v7909_v13 = vld [vmem:[#allocation2 + $0x133] sm:$0xff] }
 0x837   : > { %7763 = vrot.lane.b32.xlu0 %v7659_v49, %s10312_s24 }
 0x838   : > { %v7744_v63 = vpop.permute.xlu1 %7743 }
 0x839   : > { %7854 = vst.msk [vmem:[#allocation3 + $0x190] sm:$0xff] %vm4232_vm10, %v7744_v63  ;;  %v7008_v56 = vpop.permute.xlu0 %7007  ;;  %v8257_v26 = vld [vmem:[#allocation3 + $0x170] sm:$0xff]  ;;  %v7172_v63 = vld [vmem:[#allocation2 + $0x138] sm:$0xff] }
 0x83a   : > { %7027 = vrot.lane.b32.xlu1 %v15148_v29, %s10310_s14  ;;  %7117 = vst.msk [vmem:[#allocation3 + $0x1b0] sm:$0xff] %vm3491_vm7, %v7008_v56  ;;  %8938 = vmatmul.mubr.f32.gmra.mrb[22].mxu1 %v8257_v26  ;;  %v7418_v56 = vld [vmem:[#allocation2 + $0x139] sm:$0xff]  ;;  %v8282_v26 = vld [vmem:[#allocation3 + $0x238] sm:$0xff] }
 0x83b   : > { %8009 = vrot.lane.b32.xlu0 %v7905_v3, %s10313_s29  ;;  %9527 = vmatprep.mubr.msk.f32.mxu1 %vm2655_vm4, %v8262_v33  ;;  %v15153_v33 = vld [vmem:[#allocation24_spill] sm:$0xff] }
 0x83c   : > { %v7990_v19 = vpop.permute.xlu1 %7989 }
 0x83d   : > { %8100 = vst.msk [vmem:[#allocation3 + $0x190] sm:$0xff] %vm4479_vm11, %v7990_v19  ;;  %v7254_v24 = vpop.permute.xlu0 %7253 }
 0x83e   : > { %7273 = vrot.lane.b32.xlu1 %v7168_v54, %s10309_s13  ;;  %7363 = vst.msk [vmem:[#allocation3 + $0x1b0] sm:$0xff] %vm3738_vm8, %v7254_v24 }
 0x83f   : > { %7519 = vrot.lane.b32.xlu0 %v7414_v61, %s10311_s19 }
 0x840   : > { %v7500_v11 = vpop.permute.xlu1 %7499 }
 0x841   : > { %7609 = vst.msk [vmem:[#allocation3 + $0x1b0] sm:$0xff] %vm3985_vm9, %v7500_v11  ;;  %v7746_v45 = vpop.permute.xlu0 %7745  ;;  %v7664_v11 = vld [vmem:[#allocation2 + $0x13a] sm:$0xff] }
 0x842   : > { %6783 = vrot.lane.b32.xlu1 %v7904_v12, %s10307_s7  ;;  %7855 = vst.msk [vmem:[#allocation3 + $0x1b0] sm:$0xff] %vm4232_vm10, %v7746_v45  ;;  %v15152_v12 = vld [vmem:[#allocation65_spill] sm:$0xff] }
 0x843   : > { %7765 = vrot.lane.b32.xlu0 %v7660_v51, %s10312_s24  ;;  %v7419_v51 = vld [vmem:[#allocation2 + $0x141] sm:$0xff] }
 0x844   : > { %v7010_v53 = vpop.permute.xlu1 %7009  ;;  %v8261_v8 = vld [vmem:[#allocation3 + $0x190] sm:$0xff] }
 0x845   : > { %7118 = vst.msk [vmem:[#allocation3 + $0x1d0] sm:$0xff] %vm3491_vm7, %v7010_v53  ;;  %8943 = vmatmul.mubr.f32.gmra.mrb[24].mxu1 %v8261_v8  ;;  %v7992_v18 = vpop.permute.xlu0 %7991  ;;  %v7173_v53 = vld [vmem:[#allocation2 + $0x140] sm:$0xff] }
 0x846   : > { %7029 = vrot.lane.b32.xlu1 %v15149_v38, %s10310_s14  ;;  %9528 = vmatprep.mubr.msk.f32.mxu1 %vm2655_vm4, %v8266_v35  ;;  %8101 = vst.msk [vmem:[#allocation3 + $0x1b0] sm:$0xff] %vm4479_vm11, %v7992_v18  ;;  %v7910_v8 = vld [vmem:[#allocation2 + $0x13b] sm:$0xff] }
 0x847   : > { %8011 = vrot.lane.b32.xlu0 %v7906_v5, %s10313_s29 }
 0x848   : > { %v7256_v7 = vpop.permute.xlu1 %7255 }
 0x849   : > { %7364 = vst.msk [vmem:[#allocation3 + $0x1d0] sm:$0xff] %vm3738_vm8, %v7256_v7  ;;  %v7502_v31 = vpop.permute.xlu0 %7501  ;;  %v8286_v7 = vld [vmem:[#allocation3 + $0x258] sm:$0xff] }
 0x84a   : > { %7275 = vrot.lane.b32.xlu1 %v7169_v1, %s10309_s13  ;;  %7610 = vst.msk [vmem:[#allocation3 + $0x1d0] sm:$0xff] %vm3985_vm9, %v7502_v31 }
 0x84b   : > { %7521 = vrot.lane.b32.xlu0 %v7415_v37, %s10311_s19 }
 0x84c   : > { %v7748_v50 = vpop.permute.xlu1 %7747 }
 0x84d   : > { %7856 = vst.msk [vmem:[#allocation3 + $0x1d0] sm:$0xff] %vm4232_vm10, %v7748_v50  ;;  %v7012_v17 = vpop.permute.xlu0 %7011  ;;  %v8265_v43 = vld [vmem:[#allocation3 + $0x1b0] sm:$0xff] }
 0x84e   : > { %6785 = vrot.lane.b32.xlu1 %v7905_v3, %s10307_s7  ;;  %7119 = vst.msk [vmem:[#allocation3 + $0x1f0] sm:$0xff] %vm3491_vm7, %v7012_v17  ;;  %8948 = vmatmul.mubr.f32.gmra.mrb[26].mxu1 %v8265_v43  ;;  %v7665_v50 = vld [vmem:[#allocation2 + $0x142] sm:$0xff] }
 0x84f   : > { %7767 = vrot.lane.b32.xlu0 %v7661_v46, %s10312_s24  ;;  %9529 = vmatprep.mubr.msk.f32.mxu1 %vm2655_vm4, %v8270_v0  ;;  %v7911_v17 = vld [vmem:[#allocation2 + $0x143] sm:$0xff] }
 0x850   : > { %v7994_v30 = vpop.permute.xlu1 %7993  ;;  %v7420_v0 = vld [vmem:[#allocation2 + $0x149] sm:$0xff] }
 0x851   : > { %8102 = vst.msk [vmem:[#allocation3 + $0x1d0] sm:$0xff] %vm4479_vm11, %v7994_v30  ;;  %v7258_v6 = vpop.permute.xlu0 %7257  ;;  %v7174_v30 = vld [vmem:[#allocation2 + $0x148] sm:$0xff] }
 0x852   : > { %7031 = vrot.lane.b32.xlu1 %v15150_v16, %s10310_s14  ;;  %7365 = vst.msk [vmem:[#allocation3 + $0x1f0] sm:$0xff] %vm3738_vm8, %v7258_v6 }
 0x853   : > { %8013 = vrot.lane.b32.xlu0 %v7907_v44, %s10313_s29 }
 0x854   : > { %v7504_v62 = vpop.permute.xlu1 %7503 }
 0x855   : > { %7611 = vst.msk [vmem:[#allocation3 + $0x1f0] sm:$0xff] %vm3985_vm9, %v7504_v62  ;;  %v7750_v40 = vpop.permute.xlu0 %7749  ;;  %v8290_v62 = vld [vmem:[#allocation3 + $0x278] sm:$0xff] }
 0x856   : > { %7277 = vrot.lane.b32.xlu1 %v7170_v23, %s10309_s13  ;;  %7857 = vst.msk [vmem:[#allocation3 + $0x1f0] sm:$0xff] %vm4232_vm10, %v7750_v40 }
 0x857   : > { %7523 = vrot.lane.b32.xlu0 %v7416_v39, %s10311_s19  ;;  %v7912_v39 = vld [vmem:[#allocation2 + $0x14b] sm:$0xff] }
 0x858   : > { %v7014_v21 = vpop.permute.xlu1 %7013  ;;  %v8269_v28 = vld [vmem:[#allocation3 + $0x1d0] sm:$0xff] }
 0x859   : > { %7120 = vst.msk [vmem:[#allocation3 + $0x210] sm:$0xff] %vm3491_vm7, %v7014_v21  ;;  %8953 = vmatmul.mubr.f32.gmra.mrb[28].mxu1 %v8269_v28  ;;  %v7996_v32 = vpop.permute.xlu0 %7995  ;;  %v7666_v21 = vld [vmem:[#allocation2 + $0x14a] sm:$0xff] }
 0x85a   : > { %6787 = vrot.lane.b32.xlu1 %v7906_v5, %s10307_s7  ;;  %9530 = vmatprep.mubr.msk.f32.mxu1 %vm2655_vm4, %v8274_v15  ;;  %8103 = vst.msk [vmem:[#allocation3 + $0x1f0] sm:$0xff] %vm4479_vm11, %v7996_v32  ;;  %v15154_v5 = vld [vmem:[#allocation66_spill] sm:$0xff]  ;;  %v7175_v15 = vld [vmem:[#allocation2 + $0x150] sm:$0xff] }
 0x85b   : > { %7769 = vrot.lane.b32.xlu0 %v7662_v42, %s10312_s24  ;;  %v7421_v42 = vld [vmem:[#allocation2 + $0x151] sm:$0xff] }
 0x85c   : > { %v7260_v47 = vpop.permute.xlu1 %7259 }
 0x85d   : > { %7366 = vst.msk [vmem:[#allocation3 + $0x210] sm:$0xff] %vm3738_vm8, %v7260_v47  ;;  %v7506_v14 = vpop.permute.xlu0 %7505 }
 0x85e   : > { %7033 = vrot.lane.b32.xlu1 %v15151_v58, %s10310_s14  ;;  %7612 = vst.msk [vmem:[#allocation3 + $0x210] sm:$0xff] %vm3985_vm9, %v7506_v14 }
 0x85f   : > { %8015 = vrot.lane.b32.xlu0 %v7908_v22, %s10313_s29 }
 0x860   : > { %v6770_v41 = vpop.permute.xlu1 %6769 }
 0x861   : > { %6875 = vst.msk [vmem:[#allocation3 + $0x230] sm:$0xff] %vm3244_vm6, %v6770_v41  ;;  %v7752_v55 = vpop.permute.xlu0 %7751  ;;  %v8273_v60 = vld [vmem:[#allocation3 + $0x1f0] sm:$0xff]  ;;  %v8294_v41 = vld [vmem:[#allocation3 + $0x298] sm:$0xff] }
 0x862   : > { %7279 = vrot.lane.b32.xlu1 %v7171_v27, %s10309_s13  ;;  %7858 = vst.msk [vmem:[#allocation3 + $0x210] sm:$0xff] %vm4232_vm10, %v7752_v55  ;;  %8958 = vmatmul.mubr.f32.gmra.mrb[30].mxu1 %v8273_v60  ;;  %v7176_v60 = vld [vmem:[#allocation2 + $0x158] sm:$0xff] }
 0x863   : > { %7525 = vrot.lane.b32.xlu0 %v7417_v2, %s10311_s19  ;;  %9531 = vmatprep.mubr.msk.f32.mxu1 %vm2655_vm4, %v8278_v36  ;;  %v7913_v2 = vld [vmem:[#allocation2 + $0x153] sm:$0xff] }
 0x864   : > { %v7016_v59 = vpop.permute.xlu1 %7015 }
 0x865   : > { %7121 = vst.msk [vmem:[#allocation3 + $0x230] sm:$0xff] %vm3491_vm7, %v7016_v59  ;;  %v7998_v52 = vpop.permute.xlu0 %7997 }
 0x866   : > { %6789 = vrot.lane.b32.xlu1 %v7907_v44, %s10307_s7  ;;  %8104 = vst.msk [vmem:[#allocation3 + $0x210] sm:$0xff] %vm4479_vm11, %v7998_v52  ;;  %v15155_v44 = vld [vmem:[#allocation96_spill] sm:$0xff] }
 0x867   : > { %7771 = vrot.lane.b32.xlu0 %v7663_v20, %s10312_s24  ;;  %v7422_v20 = vld [vmem:[#allocation2 + $0x159] sm:$0xff] }
 0x868   : > { %v7262_v57 = vpop.permute.xlu1 %7261 }
 0x869   : > { %7367 = vst.msk [vmem:[#allocation3 + $0x230] sm:$0xff] %vm3738_vm8, %v7262_v57  ;;  %v7508_v4 = vpop.permute.xlu0 %7507 }
 0x86a   : > { %7035 = vrot.lane.b32.xlu1 %v15152_v12, %s10310_s14  ;;  %7613 = vst.msk [vmem:[#allocation3 + $0x230] sm:$0xff] %vm3985_vm9, %v7508_v4 }
 0x86b   : > { %8017 = vrot.lane.b32.xlu0 %v7909_v13, %s10313_s29 }
 0x86c   : > { %v6772_v48 = vpop.permute.xlu1 %6771 }
 0x86d   : > { %6876 = vst.msk [vmem:[#allocation3 + $0x250] sm:$0xff] %vm3244_vm6, %v6772_v48  ;;  %v7754_v49 = vpop.permute.xlu0 %7753  ;;  %v8277_v19 = vld [vmem:[#allocation3 + $0x210] sm:$0xff]  ;;  %v8298_v48 = vld [vmem:[#allocation3 + $0x2b8] sm:$0xff] }
 0x86e   : > { %7281 = vrot.lane.b32.xlu1 %v7172_v63, %s10309_s13  ;;  %7859 = vst.msk [vmem:[#allocation3 + $0x230] sm:$0xff] %vm4232_vm10, %v7754_v49  ;;  %8963 = vmatmul.mubr.f32.gmra.mrb[32].mxu1 %v8277_v19 }
 0x86f   : > { %7527 = vrot.lane.b32.xlu0 %v7418_v56, %s10311_s19  ;;  %9532 = vmatprep.mubr.msk.f32.mxu1 %vm2655_vm4, %v8282_v26  ;;  %v7177_v56 = vld [vmem:[#allocation2 + $0x160] sm:$0xff] }
 0x870   : > { %v7018_v29 = vpop.permute.xlu1 %7017  ;;  %v7914_v26 = vld [vmem:[#allocation2 + $0x15b] sm:$0xff] }
 0x871   : > { %7122 = vst.msk [vmem:[#allocation3 + $0x250] sm:$0xff] %vm3491_vm7, %v7018_v29  ;;  %v8000_v3 = vpop.permute.xlu0 %7999  ;;  %v7668_v29 = vld [vmem:[#allocation2 + $0x15a] sm:$0xff] }
 0x872   : > { %6791 = vrot.lane.b32.xlu1 %v7908_v22, %s10307_s7  ;;  %8105 = vst.msk [vmem:[#allocation3 + $0x230] sm:$0xff] %vm4479_vm11, %v8000_v3  ;;  %v7667_v22 = vld [vmem:[#allocation2 + $0x152] sm:$0xff] }
 0x873   : > { %7773 = vrot.lane.b32.xlu0 %v7664_v11, %s10312_s24 }
 0x874   : > { %v7264_v54 = vpop.permute.xlu1 %7263 }
 0x875   : > { %7368 = vst.msk [vmem:[#allocation3 + $0x250] sm:$0xff] %vm3738_vm8, %v7264_v54  ;;  %v7510_v61 = vpop.permute.xlu0 %7509 }
 0x876   : > { %7037 = vrot.lane.b32.xlu1 %v15153_v33, %s10310_s14  ;;  %7614 = vst.msk [vmem:[#allocation3 + $0x250] sm:$0xff] %vm3985_vm9, %v7510_v61  ;;  %v7423_v61 = vld [vmem:[#allocation2 + $0x161] sm:$0xff] }
 0x877   : > { %8019 = vrot.lane.b32.xlu0 %v7910_v8, %s10313_s29 }
 0x878   : > { %v6774_v24 = vpop.permute.xlu1 %6773 }
 0x879   : > { %6877 = vst.msk [vmem:[#allocation3 + $0x270] sm:$0xff] %vm3244_vm6, %v6774_v24  ;;  %v7756_v35 = vpop.permute.xlu0 %7755  ;;  %v8281_v38 = vld [vmem:[#allocation3 + $0x230] sm:$0xff] }
 0x87a   : > { %7283 = vrot.lane.b32.xlu1 %v7173_v53, %s10309_s13  ;;  %7860 = vst.msk [vmem:[#allocation3 + $0x250] sm:$0xff] %vm4232_vm10, %v7756_v35  ;;  %8968 = vmatmul.mubr.f32.gmra.mrb[34].mxu1 %v8281_v38  ;;  %v8302_v53 = vld [vmem:[#allocation3 + $0x2d8] sm:$0xff] }
 0x87b   : > { %7529 = vrot.lane.b32.xlu0 %v7419_v51, %s10311_s19  ;;  %9533 = vmatprep.mubr.msk.f32.mxu1 %vm2655_vm4, %v8286_v7  ;;  %v7669_v35 = vld [vmem:[#allocation2 + $0x162] sm:$0xff] }
 0x87c   : > { %v7020_v45 = vpop.permute.xlu1 %7019 }
 0x87d   : > { %7123 = vst.msk [vmem:[#allocation3 + $0x270] sm:$0xff] %vm3491_vm7, %v7020_v45  ;;  %v8002_v1 = vpop.permute.xlu0 %8001 }
 0x87e   : > { %6793 = vrot.lane.b32.xlu1 %v7909_v13, %s10307_s7  ;;  %8106 = vst.msk [vmem:[#allocation3 + $0x250] sm:$0xff] %vm4479_vm11, %v8002_v1  ;;  %v15156_v13 = vld [vmem:[#allocation97_spill] sm:$0xff] }
 0x87f   : > { %7775 = vrot.lane.b32.xlu0 %v7665_v50, %s10312_s24 }
 0x880   : > { %v7266_v18 = vpop.permute.xlu1 %7265 }
 0x881   : > { %7369 = vst.msk [vmem:[#allocation3 + $0x270] sm:$0xff] %vm3738_vm8, %v7266_v18  ;;  %v7512_v37 = vpop.permute.xlu0 %7511  ;;  %v7178_v18 = vld [vmem:[#allocation2 + $0x168] sm:$0xff] }
 0x882   : > { %7039 = vrot.lane.b32.xlu1 %v15154_v5, %s10310_s14  ;;  %7615 = vst.msk [vmem:[#allocation3 + $0x270] sm:$0xff] %vm3985_vm9, %v7512_v37  ;;  %v7915_v5 = vld [vmem:[#allocation2 + $0x163] sm:$0xff] }
 0x883   : > { %8021 = vrot.lane.b32.xlu0 %v7911_v17, %s10313_s29  ;;  %v7424_v37 = vld [vmem:[#allocation2 + $0x169] sm:$0xff] }
 0x884   : > { %v6776_v31 = vpop.permute.xlu1 %6775 }
 0x885   : > { %6878 = vst.msk [vmem:[#allocation3 + $0x290] sm:$0xff] %vm3244_vm6, %v6776_v31  ;;  %v7758_v16 = vpop.permute.xlu0 %7757  ;;  %v8285_v46 = vld [vmem:[#allocation3 + $0x250] sm:$0xff] }
 0x886   : > { %7285 = vrot.lane.b32.xlu1 %v7174_v30, %s10309_s13  ;;  %7861 = vst.msk [vmem:[#allocation3 + $0x270] sm:$0xff] %vm4232_vm10, %v7758_v16  ;;  %8973 = vmatmul.mubr.f32.gmra.mrb[36].mxu1 %v8285_v46  ;;  %v8306_v30 = vld [vmem:[#allocation3 + $0x2f8] sm:$0xff]  ;;  %v15157_v16 = vld [vmem:[#allocation25_spill] sm:$0xff] }
 0x887   : > { %7531 = vrot.lane.b32.xlu0 %v7420_v0, %s10311_s19  ;;  %9534 = vmatprep.mubr.msk.f32.mxu1 %vm2655_vm4, %v8290_v62  ;;  %v7670_v46 = vld [vmem:[#allocation2 + $0x16a] sm:$0xff] }
 0x888   : > { %v7022_v43 = vpop.permute.xlu1 %7021 }
 0x889   : > { %7124 = vst.msk [vmem:[#allocation3 + $0x290] sm:$0xff] %vm3491_vm7, %v7022_v43  ;;  %v8004_v23 = vpop.permute.xlu0 %8003 }
 0x88a   : > { %6795 = vrot.lane.b32.xlu1 %v7910_v8, %s10307_s7  ;;  %8107 = vst.msk [vmem:[#allocation3 + $0x270] sm:$0xff] %vm4479_vm11, %v8004_v23  ;;  %v7179_v23 = vld [vmem:[#allocation2 + $0x170] sm:$0xff] }
 0x88b   : > { %7777 = vrot.lane.b32.xlu0 %v7666_v21, %s10312_s24  ;;  %v7916_v21 = vld [vmem:[#allocation2 + $0x16b] sm:$0xff] }
 0x88c   : > { %v7268_v6 = vpop.permute.xlu1 %7267 }
 0x88d   : > { %7370 = vst.msk [vmem:[#allocation3 + $0x290] sm:$0xff] %vm3738_vm8, %v7268_v6  ;;  %v7514_v40 = vpop.permute.xlu0 %7513 }
 0x88e   : > { %7041 = vrot.lane.b32.xlu1 %v15155_v44, %s10310_s14  ;;  %7616 = vst.msk [vmem:[#allocation3 + $0x290] sm:$0xff] %vm3985_vm9, %v7514_v40 }
 0x88f   : > { %8023 = vrot.lane.b32.xlu0 %v7912_v39, %s10313_s29 }
 0x890   : > { %v6778_v28 = vpop.permute.xlu1 %6777 }
 0x891   : > { %6879 = vst.msk [vmem:[#allocation3 + $0x2b0] sm:$0xff] %vm3244_vm6, %v6778_v28  ;;  %v7760_v32 = vpop.permute.xlu0 %7759  ;;  %v8289_v58 = vld [vmem:[#allocation3 + $0x270] sm:$0xff] }
 0x892   : > { %7287 = vrot.lane.b32.xlu1 %v7175_v15, %s10309_s13  ;;  %7862 = vst.msk [vmem:[#allocation3 + $0x290] sm:$0xff] %vm4232_vm10, %v7760_v32  ;;  %8978 = vmatmul.mubr.f32.gmra.mrb[38].mxu1 %v8289_v58 }
 0x893   : > { %7533 = vrot.lane.b32.xlu0 %v7421_v42, %s10311_s19  ;;  %9535 = vmatprep.mubr.msk.f32.mxu1 %vm2655_vm4, %v8294_v41 }
 0x894   : > { %v7024_v47 = vpop.permute.xlu1 %7023 }
 0x895   : > { %7125 = vst.msk [vmem:[#allocation3 + $0x2b0] sm:$0xff] %vm3491_vm7, %v7024_v47  ;;  %v8006_v27 = vpop.permute.xlu0 %8005  ;;  %v8310_v47 = vld [vmem:[#allocation3 + $0x318] sm:$0xff] }
 0x896   : > { %6797 = vrot.lane.b32.xlu1 %v7911_v17, %s10307_s7  ;;  %8108 = vst.msk [vmem:[#allocation3 + $0x290] sm:$0xff] %vm4479_vm11, %v8006_v27 }
 0x897   : > { %7779 = vrot.lane.b32.xlu0 %v7667_v22, %s10312_s24 }
 0x898   : > { %v7270_v14 = vpop.permute.xlu1 %7269 }
 0x899   : > { %7371 = vst.msk [vmem:[#allocation3 + $0x2b0] sm:$0xff] %vm3738_vm8, %v7270_v14  ;;  %v7516_v55 = vpop.permute.xlu0 %7515  ;;  %v7671_v14 = vld [vmem:[#allocation2 + $0x172] sm:$0xff] }
 0x89a   : > { %7043 = vrot.lane.b32.xlu1 %v12517_v34, %s10310_s14  ;;  %7617 = vst.msk [vmem:[#allocation3 + $0x2b0] sm:$0xff] %vm3985_vm9, %v7516_v55  ;;  %v7917_v55 = vld [vmem:[#allocation2 + $0x173] sm:$0xff] }
 0x89b   : > { %8025 = vrot.lane.b32.xlu0 %v7913_v2, %s10313_s29 }
 0x89c   : > { %v6780_v59 = vpop.permute.xlu1 %6779 }
 0x89d   : > { %6880 = vst.msk [vmem:[#allocation3 + $0x2d0] sm:$0xff] %vm3244_vm6, %v6780_v59  ;;  %v7762_v34 = vpop.permute.xlu0 %7761  ;;  %v8293_v12 = vld [vmem:[#allocation3 + $0x290] sm:$0xff]  ;;  %v7180_v59 = vld [vmem:[#allocation2 + $0x178] sm:$0xff] }
 0x89e   : > { %7289 = vrot.lane.b32.xlu1 %v7176_v60, %s10309_s13  ;;  %7863 = vst.msk [vmem:[#allocation3 + $0x2b0] sm:$0xff] %vm4232_vm10, %v7762_v34  ;;  %8983 = vmatmul.mubr.f32.gmra.mrb[40].mxu1 %v8293_v12 }
 0x89f   : > { %7535 = vrot.lane.b32.xlu0 %v7422_v20, %s10311_s19  ;;  %9536 = vmatprep.mubr.msk.f32.mxu1 %vm2655_vm4, %v8298_v48  ;;  %v14421_v48 = vld [vmem:[%s14625_s5] ss:$0 sm:$0xff] }
 0x8a0   : > { %v7026_v36 = vpop.permute.xlu1 %7025  ;;  %v8884_v57 = vpop.f32.mrb[0].mxu1 }
 0x8a1   : > { %7126 = vst.msk [vmem:[#allocation3 + $0x2d0] sm:$0xff] %vm3491_vm7, %v7026_v36  ;;  %v8886_v52 = vpop.f32.mrb[1].mxu1  ;;  %v8008_v63 = vpop.permute.xlu0 %8007 }
 0x8a2   : > { %9089 = vst.msk [vmem:[#allocation4] sm:$0xff] %vm9088_vm12, %v8884_v57  ;;  %6799 = vrot.lane.b32.xlu1 %v7912_v39, %s10307_s7  ;;  %v7425_v39 = vld [vmem:[#allocation2 + $0x171] sm:$0xff] }
 0x8a3   : > { %8109 = vst.msk [vmem:[#allocation3 + $0x2b0] sm:$0xff] %vm4479_vm11, %v8008_v63  ;;  %7781 = vrot.lane.b32.xlu0 %v7668_v29, %s10312_s24  ;;  %v8314_v63 = vld [vmem:[#allocation3 + $0x338] sm:$0xff] }
 0x8a4   : > { %v7272_v4 = vpop.permute.xlu1 %7271 }
 0x8a5   : > { %7372 = vst.msk [vmem:[#allocation3 + $0x2d0] sm:$0xff] %vm3738_vm8, %v7272_v4  ;;  %v7518_v19 = vpop.permute.xlu0 %7517  ;;  %v7426_v4 = vld [vmem:[#allocation2 + $0x179] sm:$0xff] }
 0x8a6   : > { %7045 = vrot.lane.b32.xlu1 %v15156_v13, %s10310_s14  ;;  %7618 = vst.msk [vmem:[#allocation3 + $0x2d0] sm:$0xff] %vm3985_vm9, %v7518_v19 }
 0x8a7   : > { %8027 = vrot.lane.b32.xlu0 %v7914_v26, %s10313_s29 }
 0x8a8   : > { %v6782_v49 = vpop.permute.xlu1 %6781 }
 0x8a9   : > { %6881 = vst.msk [vmem:[#allocation3 + $0x2f0] sm:$0xff] %vm3244_vm6, %v6782_v49  ;;  %v8889_v3 = vpop.f32.mrb[2].mxu1  ;;  %v7764_v33 = vpop.permute.xlu0 %7763 }
 0x8aa   : > { %7291 = vrot.lane.b32.xlu1 %v7177_v56, %s10309_s13  ;;  %v8297_v11 = vld [vmem:[#allocation3 + $0x2b0] sm:$0xff]  ;;  %9090 = vst.msk [vmem:[#allocation4 + $0x8] sm:$0xff] %vm9088_vm12, %v8889_v3  ;;  %v8891_v24 = vpop.f32.mrb[3].mxu1 }
 0x8ab   : > { %7864 = vst.msk [vmem:[#allocation3 + $0x2d0] sm:$0xff] %vm4232_vm10, %v7764_v33  ;;  %8988 = vmatmul.mubr.f32.gmra.mrb[42].mxu1 %v8297_v11  ;;  %7537 = vrot.lane.b32.xlu0 %v7423_v61, %s10311_s19  ;;  %v7672_v3 = vld [vmem:[#allocation2 + $0x17a] sm:$0xff] }
 0x8ac   : > { %v7028_v54 = vpop.permute.xlu1 %7027  ;;  %9537 = vmatprep.mubr.msk.f32.mxu1 %vm2655_vm4, %v8302_v53  ;;  %v7181_v61 = vld [vmem:[#allocation2 + $0x180] sm:$0xff] }
 0x8ad   : > { %7127 = vst.msk [vmem:[#allocation3 + $0x2f0] sm:$0xff] %vm3491_vm7, %v7028_v54  ;;  %v8010_v45 = vpop.permute.xlu0 %8009  ;;  %v15158_v54 = vld [vmem:[#allocation67_spill] sm:$0xff]  ;;  %v7918_v53 = vld [vmem:[#allocation2 + $0x17b] sm:$0xff] }
 0x8ae   : > { %6801 = vrot.lane.b32.xlu1 %v7913_v2, %s10307_s7  ;;  %8110 = vst.msk [vmem:[#allocation3 + $0x2d0] sm:$0xff] %vm4479_vm11, %v8010_v45 }
 0x8af   : > { %7783 = vrot.lane.b32.xlu0 %v7669_v35, %s10312_s24 }
 0x8b0   : > { %v7274_v8 = vpop.permute.xlu1 %7273 }
 0x8b1   : > { %7373 = vst.msk [vmem:[#allocation3 + $0x2f0] sm:$0xff] %vm3738_vm8, %v7274_v8  ;;  %v7520_v7 = vpop.permute.xlu0 %7519  ;;  %v9131_v60 = vld [vmem:[#allocation4] ss:$2 sm:$0x7f] }
 0x8b2   : > { %7047 = vrot.lane.b32.xlu1 %v12531_v10, %s10310_s14  ;;  %7619 = vst.msk [vmem:[#allocation3 + $0x2f0] sm:$0xff] %vm3985_vm9, %v7520_v7  ;;  %v9133_v2 = vld [vmem:[#allocation4 + $0x1] ss:$2 sm:$0x7f]  ;;  %v7427_v7 = vld [vmem:[#allocation2 + $0x181] sm:$0xff] }
 0x8b3   : > { %8029 = vrot.lane.b32.xlu0 %v7915_v5, %s10313_s29  ;;  %v9138_v34 = vmax.f32 %v9131_v60, %v9133_v2  ;;  %v7675_v60 = vld [vmem:[#allocation2 + $0x192] sm:$0xff] }
 0x8b4   : > { %v6784_v38 = vpop.permute.xlu1 %6783  ;;  %v8894_v51 = vpop.f32.mrb[4].mxu1 }
 0x8b5   : > { %6882 = vst.msk [vmem:[#allocation3 + $0x310] sm:$0xff] %vm3244_vm6, %v6784_v38  ;;  %v8896_v1 = vpop.f32.mrb[5].mxu1  ;;  %v7766_v10 = vpop.permute.xlu0 %7765  ;;  %v8301_v31 = vld [vmem:[#allocation3 + $0x2d0] sm:$0xff] }
 0x8b6   : > { %7293 = vrot.lane.b32.xlu1 %v7178_v18, %s10309_s13  ;;  %7865 = vst.msk [vmem:[#allocation3 + $0x2f0] sm:$0xff] %vm4232_vm10, %v7766_v10  ;;  %8993 = vmatmul.mubr.f32.gmra.mrb[44].mxu1 %v8301_v31  ;;  %v8318_v18 = vld [vmem:[#allocation3 + $0x358] sm:$0xff] }
 0x8b7   : > { %7539 = vrot.lane.b32.xlu0 %v7424_v37, %s10311_s19  ;;  %9538 = vmatprep.mubr.msk.f32.mxu1 %vm2655_vm4, %v8306_v30  ;;  %v7182_v37 = vld [vmem:[#allocation2 + $0x188] sm:$0xff] }
 0x8b8   : > { %v7030_v50 = vpop.permute.xlu1 %7029  ;;  %v7919_v30 = vld [vmem:[#allocation2 + $0x183] sm:$0xff] }
 0x8b9   : > { %7128 = vst.msk [vmem:[#allocation3 + $0x310] sm:$0xff] %vm3491_vm7, %v7030_v50  ;;  %v8012_v43 = vpop.permute.xlu0 %8011  ;;  %v7673_v50 = vld [vmem:[#allocation2 + $0x182] sm:$0xff] }
 0x8ba   : > { %6803 = vrot.lane.b32.xlu1 %v7914_v26, %s10307_s7  ;;  %8111 = vst.msk [vmem:[#allocation3 + $0x2f0] sm:$0xff] %vm4479_vm11, %v8012_v43 }
 0x8bb   : > { %7785 = vrot.lane.b32.xlu0 %v7670_v46, %s10312_s24 }
 0x8bc   : > { %v7276_v17 = vpop.permute.xlu1 %7275 }
 0x8bd   : > { %7374 = vst.msk [vmem:[#allocation3 + $0x310] sm:$0xff] %vm3738_vm8, %v7276_v17  ;;  %v8899_v62 = vpop.f32.mrb[6].mxu1  ;;  %v7522_v6 = vpop.permute.xlu0 %7521 }
 0x8be   : > { %7049 = vrot.lane.b32.xlu1 %v15157_v16, %s10310_s14  ;;  %9092 = vst.msk [vmem:[#allocation4 + $0x18] sm:$0xff] %vm9088_vm12, %v8899_v62  ;;  %v8901_v44 = vpop.f32.mrb[7].mxu1  ;;  %v8322_v62 = vld [vmem:[#allocation3 + $0x378] sm:$0xff] }
 0x8bf   : > { %7620 = vst.msk [vmem:[#allocation3 + $0x310] sm:$0xff] %vm3985_vm9, %v7522_v6  ;;  %8031 = vrot.lane.b32.xlu0 %v7916_v21, %s10313_s29  ;;  %v15159_v44 = vld [vmem:[#allocation26_spill] sm:$0xff] }
 0x8c0   : > { %v6786_v0 = vpop.permute.xlu1 %6785 }
 0x8c1   : > { %6883 = vst.msk [vmem:[#allocation3 + $0x330] sm:$0xff] %vm3244_vm6, %v6786_v0  ;;  %v7768_v40 = vpop.permute.xlu0 %7767  ;;  %v8305_v15 = vld [vmem:[#allocation3 + $0x2f0] sm:$0xff]  ;;  %v7428_v0 = vld [vmem:[#allocation2 + $0x189] sm:$0xff] }
 0x8c2   : > { %7295 = vrot.lane.b32.xlu1 %v7179_v23, %s10309_s13  ;;  %7866 = vst.msk [vmem:[#allocation3 + $0x310] sm:$0xff] %vm4232_vm10, %v7768_v40  ;;  %8998 = vmatmul.mubr.f32.gmra.mrb[46].mxu1 %v8305_v15 }
 0x8c3   : > { %7541 = vrot.lane.b32.xlu0 %v7425_v39, %s10311_s19  ;;  %9539 = vmatprep.mubr.msk.f32.mxu1 %vm2655_vm4, %v8310_v47  ;;  %v7183_v39 = vld [vmem:[#allocation2 + $0x190] sm:$0xff] }
 0x8c4   : > { %v7032_v28 = vpop.permute.xlu1 %7031 }
 0x8c5   : > { %7129 = vst.msk [vmem:[#allocation3 + $0x330] sm:$0xff] %vm3491_vm7, %v7032_v28  ;;  %v8014_v42 = vpop.permute.xlu0 %8013 }
 0x8c6   : > { %6805 = vrot.lane.b32.xlu1 %v7915_v5, %s10307_s7  ;;  %8112 = vst.msk [vmem:[#allocation3 + $0x310] sm:$0xff] %vm4479_vm11, %v8014_v42 }
 0x8c7   : > { %7787 = vrot.lane.b32.xlu0 %v7671_v14, %s10312_s24  ;;  %v7429_v14 = vld [vmem:[#allocation2 + $0x191] sm:$0xff] }
 0x8c8   : > { %v7278_v32 = vpop.permute.xlu1 %7277  ;;  %v8904_v58 = vpop.f32.mrb[8].mxu1 }
 0x8c9   : > { %7375 = vst.msk [vmem:[#allocation3 + $0x330] sm:$0xff] %vm3738_vm8, %v7278_v32  ;;  %v8906_v41 = vpop.f32.mrb[9].mxu1  ;;  %v7524_v22 = vpop.permute.xlu0 %7523  ;;  %v7920_v32 = vld [vmem:[#allocation2 + $0x18b] sm:$0xff] }
 0x8ca   : > { %9093 = vst.msk [vmem:[#allocation4 + $0x20] sm:$0xff] %vm9088_vm12, %v8904_v58  ;;  %7051 = vrot.lane.b32.xlu1 %v12543_v9, %s10310_s14 }
 0x8cb   : > { %7621 = vst.msk [vmem:[#allocation3 + $0x330] sm:$0xff] %vm3985_vm9, %v7524_v22  ;;  %8033 = vrot.lane.b32.xlu0 %v7917_v55, %s10313_s29 }
 0x8cc   : > { %v6788_v27 = vpop.permute.xlu1 %6787 }
 0x8cd   : > { %6884 = vst.msk [vmem:[#allocation3 + $0x350] sm:$0xff] %vm3244_vm6, %v6788_v27  ;;  %v7770_v12 = vpop.permute.xlu0 %7769  ;;  %v8309_v20 = vld [vmem:[#allocation3 + $0x310] sm:$0xff]  ;;  %v8326_v27 = vld [vmem:[#allocation3 + $0x398] sm:$0xff] }
 0x8ce   : > { %7297 = vrot.lane.b32.xlu1 %v7180_v59, %s10309_s13  ;;  %7867 = vst.msk [vmem:[#allocation3 + $0x330] sm:$0xff] %vm4232_vm10, %v7770_v12  ;;  %9003 = vmatmul.mubr.f32.gmra.mrb[48].mxu1 %v8309_v20 }
 0x8cf   : > { %7543 = vrot.lane.b32.xlu0 %v7426_v4, %s10311_s19  ;;  %9540 = vmatprep.mubr.msk.f32.mxu1 %vm2655_vm4, %v8314_v63  ;;  %v8330_v63 = vld [vmem:[#allocation3 + $0x3b8] sm:$0xff] }
 0x8d0   : > { %v7034_v57 = vpop.permute.xlu1 %7033 }
 0x8d1   : > { %v9135_v36 = vld [vmem:[#allocation4 + $0x18] ss:$2 sm:$0x7f]  ;;  %v9137_v9 = vld [vmem:[#allocation4 + $0x19] ss:$2 sm:$0x7f]  ;;  %v8016_v56 = vpop.permute.xlu0 %8015 }
 0x8d2   : > { %v9139_v52 = vmax.f32 %v9135_v36, %v9137_v9  ;;  %7130 = vst.msk [vmem:[#allocation3 + $0x350] sm:$0xff] %vm3491_vm7, %v7034_v57  ;;  %6807 = vrot.lane.b32.xlu1 %v7916_v21, %s10307_s7  ;;  %v8909_v19 = vpop.f32.mrb[10].mxu1  ;;  %v7674_v21 = vld [vmem:[#allocation2 + $0x18a] sm:$0xff]  ;;  %v7184_v57 = vld [vmem:[#allocation2 + $0x198] sm:$0xff] }
 0x8d3   : > { %8113 = vst.msk [vmem:[#allocation3 + $0x330] sm:$0xff] %vm4479_vm11, %v8016_v56  ;;  %v8911_v26 = vpop.f32.mrb[11].mxu1  ;;  %7789 = vrot.lane.b32.xlu0 %v7672_v3, %s10312_s24 }
 0x8d4   : > { %v9140_v13 = vmax.f32 %v9138_v34, %v9139_v52  ;;  %v7280_v29 = vpop.permute.xlu1 %7279  ;;  %v7921_v52 = vld [vmem:[#allocation2 + $0x193] sm:$0xff]  ;;  %v15161_v26 = vld [vmem:[#allocation98_spill] sm:$0xff] }
 0x8d5   : > { %7376 = vst.msk [vmem:[#allocation3 + $0x350] sm:$0xff] %vm3738_vm8, %v7280_v29  ;;  %v7526_v24 = vpop.permute.xlu0 %7525 }
 0x8d6   : > { %v9147_v49 = vadd.f32 %v14421_v48, %v9140_v13  ;;  %7053 = vrot.lane.b32.xlu1 %v15158_v54, %s10310_s14  ;;  %7622 = vst.msk [vmem:[#allocation3 + $0x350] sm:$0xff] %vm3985_vm9, %v7526_v24  ;;  %v7430_v13 = vld [vmem:[#allocation2 + $0x199] sm:$0xff] }
 0x8d7   : > { %8035 = vrot.lane.b32.xlu0 %v7918_v53, %s10313_s29  ;;  %v7676_v54 = vld [vmem:[#allocation2 + $0x19a] sm:$0xff] }
 0x8d8   : > { %v9148_v33 = vmax.f32 %v9147_v49, 0.0  ;;  %v6790_v11 = vpop.permute.xlu1 %6789  ;;  %v7185_v24 = vld [vmem:[#allocation2 + $0x1a0] sm:$0xff] }
 0x8d9   : > { %6885 = vst.msk [vmem:[#allocation3 + $0x370] sm:$0xff] %vm3244_vm6, %v6790_v11  ;;  %v7772_v35 = vpop.permute.xlu0 %7771  ;;  %v7922_v11 = vld [vmem:[#allocation2 + $0x19b] sm:$0xff] }
 0x8da   : > { %9150 = vst.msk [vmem:[%s14432_s26] sm:$0x7f] %vm9149_vm13, %v9148_v33  ;;  %7299 = vrot.lane.b32.xlu1 %v7181_v61, %s10309_s13  ;;  %v8313_v51 = vld [vmem:[#allocation3 + $0x330] sm:$0xff] }
 0x8db   : > { %7868 = vst.msk [vmem:[#allocation3 + $0x350] sm:$0xff] %vm4232_vm10, %v7772_v35  ;;  %9008 = vmatmul.mubr.f32.gmra.mrb[50].mxu1 %v8313_v51  ;;  %7545 = vrot.lane.b32.xlu0 %v7427_v7, %s10311_s19 }
 0x8dc   : > { %v7036_v8 = vpop.permute.xlu1 %7035  ;;  %v8914_v45 = vpop.f32.mrb[12].mxu1  ;;  %9541 = vmatprep.mubr.msk.f32.mxu1 %vm2655_vm4, %v8318_v18 }
 0x8dd   : > { %7131 = vst.msk [vmem:[#allocation3 + $0x370] sm:$0xff] %vm3491_vm7, %v7036_v8  ;;  %v8916_v38 = vpop.f32.mrb[13].mxu1  ;;  %v8018_v5 = vpop.permute.xlu0 %8017 }
 0x8de   : > { %9095 = vst.msk [vmem:[#allocation4 + $0x30] sm:$0xff] %vm9088_vm12, %v8914_v45  ;;  %6809 = vrot.lane.b32.xlu1 %v7917_v55, %s10307_s7  ;;  %v15160_v55 = vld [vmem:[#allocation68_spill] sm:$0xff] }
 0x8df   : > { %8114 = vst.msk [vmem:[#allocation3 + $0x350] sm:$0xff] %vm4479_vm11, %v8018_v5  ;;  %7791 = vrot.lane.b32.xlu0 %v7673_v50, %s10312_s24  ;;  %v8334_v5 = vld [vmem:[#allocation3 + $0x3d8] sm:$0xff] }
 0x8e0   : > { %v7282_v1 = vpop.permute.xlu1 %7281  ;;  %v7431_v50 = vld [vmem:[#allocation2 + $0x1a1] sm:$0xff] }
 0x8e1   : > { %7377 = vst.msk [vmem:[#allocation3 + $0x370] sm:$0xff] %vm3738_vm8, %v7282_v1  ;;  %v7528_v31 = vpop.permute.xlu0 %7527  ;;  %v7677_v1 = vld [vmem:[#allocation2 + $0x1a2] sm:$0xff] }
 0x8e2   : > { %7055 = vrot.lane.b32.xlu1 %v12554_v25, %s10310_s14  ;;  %7623 = vst.msk [vmem:[#allocation3 + $0x370] sm:$0xff] %vm3985_vm9, %v7528_v31 }
 0x8e3   : > { %8037 = vrot.lane.b32.xlu0 %v7919_v30, %s10313_s29 }
 0x8e4   : > { %v6792_v10 = vpop.permute.xlu1 %6791 }
 0x8e5   : > { %6886 = vst.msk [vmem:[#allocation3 + $0x390] sm:$0xff] %vm3244_vm6, %v6792_v10  ;;  %v8919_v43 = vpop.f32.mrb[14].mxu1  ;;  %v7774_v25 = vpop.permute.xlu0 %7773 }
 0x8e6   : > { %7301 = vrot.lane.b32.xlu1 %v7182_v37, %s10309_s13  ;;  %v8317_v16 = vld [vmem:[#allocation3 + $0x350] sm:$0xff]  ;;  %9096 = vst.msk [vmem:[#allocation4 + $0x38] sm:$0xff] %vm9088_vm12, %v8919_v43  ;;  %v8921_v46 = vpop.f32.mrb[15].mxu1 }
 0x8e7   : > { %7869 = vst.msk [vmem:[#allocation3 + $0x370] sm:$0xff] %vm4232_vm10, %v7774_v25  ;;  %9013 = vmatmul.mubr.f32.gmra.mrb[52].mxu1 %v8317_v16  ;;  %7547 = vrot.lane.b32.xlu0 %v7428_v0, %s10311_s19  ;;  %v7923_v25 = vld [vmem:[#allocation2 + $0x1a3] sm:$0xff] }
 0x8e8   : > { %v7038_v17 = vpop.permute.xlu1 %7037  ;;  %9542 = vmatprep.mubr.msk.f32.mxu1 %vm2655_vm4, %v8322_v62 }
 0x8e9   : > { %7132 = vst.msk [vmem:[#allocation3 + $0x390] sm:$0xff] %vm3491_vm7, %v7038_v17  ;;  %v8020_v23 = vpop.permute.xlu0 %8019 }
 0x8ea   : > { %6811 = vrot.lane.b32.xlu1 %v7918_v53, %s10307_s7  ;;  %8115 = vst.msk [vmem:[#allocation3 + $0x370] sm:$0xff] %vm4479_vm11, %v8020_v23 }
 0x8eb   : > { %7793 = vrot.lane.b32.xlu0 %v7674_v21, %s10312_s24 }
 0x8ec   : > { %v7284_v6 = vpop.permute.xlu1 %7283 }
 0x8ed   : > { %7378 = vst.msk [vmem:[#allocation3 + $0x390] sm:$0xff] %vm3738_vm8, %v7284_v6  ;;  %v7530_v15 = vpop.permute.xlu0 %7529  ;;  %v9152_v61 = vld [vmem:[#allocation4 + $0x30] ss:$2 sm:$0x7f] }
 0x8ee   : > { %7057 = vrot.lane.b32.xlu1 %v15159_v44, %s10310_s14  ;;  %7624 = vst.msk [vmem:[#allocation3 + $0x390] sm:$0xff] %vm3985_vm9, %v7530_v15  ;;  %v9154_v53 = vld [vmem:[#allocation4 + $0x31] ss:$2 sm:$0x7f] }
 0x8ef   : > { %8039 = vrot.lane.b32.xlu0 %v7920_v32, %s10313_s29  ;;  %v9159_v38 = vmax.f32 %v9152_v61, %v9154_v53 }
 0x8f0   : > { %v6794_v28 = vpop.permute.xlu1 %6793  ;;  %v8924_v40 = vpop.f32.mrb[16].mxu1 }
 0x8f1   : > { %6887 = vst.msk [vmem:[#allocation3 + $0x3b0] sm:$0xff] %vm3244_vm6, %v6794_v28  ;;  %v8926_v47 = vpop.f32.mrb[17].mxu1  ;;  %v7776_v42 = vpop.permute.xlu0 %7775  ;;  %v8321_v41 = vld [vmem:[#allocation3 + $0x370] sm:$0xff]  ;;  %v8338_v28 = vld [vmem:[#allocation3 + $0x3f8] sm:$0xff] }
 0x8f2   : > { %7303 = vrot.lane.b32.xlu1 %v7183_v39, %s10309_s13  ;;  %7870 = vst.msk [vmem:[#allocation3 + $0x390] sm:$0xff] %vm4232_vm10, %v7776_v42  ;;  %9018 = vmatmul.mubr.f32.gmra.mrb[54].mxu1 %v8321_v41 }
 0x8f3   : > { %7549 = vrot.lane.b32.xlu0 %v7429_v14, %s10311_s19  ;;  %9543 = vmatprep.mubr.msk.f32.mxu1 %vm2655_vm4, %v8326_v27  ;;  %v8342_v27 = vld [vmem:[#allocation3 + $0x418] sm:$0xff] }
 0x8f4   : > { %v7040_v58 = vpop.permute.xlu1 %7039 }
 0x8f5   : > { %7133 = vst.msk [vmem:[#allocation3 + $0x3b0] sm:$0xff] %vm3491_vm7, %v7040_v58  ;;  %v8022_v59 = vpop.permute.xlu0 %8021 }
 0x8f6   : > { %6813 = vrot.lane.b32.xlu1 %v7919_v30, %s10307_s7  ;;  %8116 = vst.msk [vmem:[#allocation3 + $0x390] sm:$0xff] %vm4479_vm11, %v8022_v59 }
 0x8f7   : > { %7795 = vrot.lane.b32.xlu0 %v7675_v60, %s10312_s24 }
 0x8f8   : > { %v7286_v22 = vpop.permute.xlu1 %7285 }
 0x8f9   : > { %7379 = vst.msk [vmem:[#allocation3 + $0x3b0] sm:$0xff] %vm3738_vm8, %v7286_v22  ;;  %v8929_v36 = vpop.f32.mrb[18].mxu1  ;;  %v7532_v9 = vpop.permute.xlu0 %7531 }
 0x8fa   : > { %7059 = vrot.lane.b32.xlu1 %v15160_v55, %s10310_s14  ;;  %9098 = vst.msk [vmem:[#allocation4 + $0x48] sm:$0xff] %vm9088_vm12, %v8929_v36  ;;  %v8931_v34 = vpop.f32.mrb[19].mxu1 }
 0x8fb   : > { %7625 = vst.msk [vmem:[#allocation3 + $0x3b0] sm:$0xff] %vm3985_vm9, %v7532_v9  ;;  %8041 = vrot.lane.b32.xlu0 %v7921_v52, %s10313_s29  ;;  %v8346_v52 = vld [vmem:[#allocation3 + $0x438] sm:$0xff] }
 0x8fc   : > { %v6796_v2 = vpop.permute.xlu1 %6795 }
 0x8fd   : > { %6888 = vst.msk [vmem:[#allocation3 + $0x3d0] sm:$0xff] %vm3244_vm6, %v6796_v2  ;;  %v7778_v20 = vpop.permute.xlu0 %7777  ;;  %v8325_v4 = vld [vmem:[#allocation3 + $0x390] sm:$0xff] }
 0x8fe   : > { %7305 = vrot.lane.b32.xlu1 %v7184_v57, %s10309_s13  ;;  %7871 = vst.msk [vmem:[#allocation3 + $0x3b0] sm:$0xff] %vm4232_vm10, %v7778_v20  ;;  %9023 = vmatmul.mubr.f32.gmra.mrb[56].mxu1 %v8325_v4 }
 0x8ff   : > { %9544 = vmatprep.mubr.msk.f32.mxu1 %vm2655_vm4, %v8330_v63  ;;  %7551 = vrot.lane.b32.xlu0 %v7430_v13, %s10311_s19 }
 0x900   : > { %v7042_v12 = vpop.permute.xlu1 %7041 }
 0x901   : > { %7134 = vst.msk [vmem:[#allocation3 + $0x3d0] sm:$0xff] %vm3491_vm7, %v7042_v12  ;;  %v8024_v19 = vpop.permute.xlu0 %8023 }
 0x902   : > { %6815 = vrot.lane.b32.xlu1 %v7920_v32, %s10307_s7  ;;  %8117 = vst.msk [vmem:[#allocation3 + $0x3b0] sm:$0xff] %vm4479_vm11, %v8024_v19 }
 0x903   : > { %7797 = vrot.lane.b32.xlu0 %v7676_v54, %s10312_s24 }
 0x904   : > { %v7288_v29 = vpop.permute.xlu1 %7287  ;;  %v8934_v49 = vpop.f32.mrb[20].mxu1 }
 0x905   : > { %7380 = vst.msk [vmem:[#allocation3 + $0x3d0] sm:$0xff] %vm3738_vm8, %v7288_v29  ;;  %v8936_v56 = vpop.f32.mrb[21].mxu1  ;;  %v7534_v33 = vpop.permute.xlu0 %7533 }
 0x906   : > { %9099 = vst.msk [vmem:[#allocation4 + $0x50] sm:$0xff] %vm9088_vm12, %v8934_v49  ;;  %7061 = vrot.lane.b32.xlu1 %v15161_v26, %s10310_s14  ;;  %v8350_v26 = vld [vmem:[#allocation3 + $0x458] sm:$0xff] }
 0x907   : > { %7626 = vst.msk [vmem:[#allocation3 + $0x3d0] sm:$0xff] %vm3985_vm9, %v7534_v33  ;;  %8043 = vrot.lane.b32.xlu0 %v7922_v11, %s10313_s29 }
 0x908   : > { %v6798_v3 = vpop.permute.xlu1 %6797 }
 0x909   : > { %6889 = vst.msk [vmem:[#allocation3 + $0x3f0] sm:$0xff] %vm3244_vm6, %v6798_v3  ;;  %v7780_v7 = vpop.permute.xlu0 %7779  ;;  %v8329_v18 = vld [vmem:[#allocation3 + $0x3b0] sm:$0xff] }
 0x90a   : > { %7307 = vrot.lane.b32.xlu1 %v7185_v24, %s10309_s13  ;;  %7872 = vst.msk [vmem:[#allocation3 + $0x3d0] sm:$0xff] %vm4232_vm10, %v7780_v7  ;;  %9028 = vmatmul.mubr.f32.gmra.mrb[58].mxu1 %v8329_v18 }
 0x90b   : > { %9545 = vmatprep.mubr.msk.f32.mxu1 %vm2655_vm4, %v8334_v5  ;;  %7553 = vrot.lane.b32.xlu0 %v7431_v50, %s10311_s19 }
 0x90c   : > { %v7044_v35 = vpop.permute.xlu1 %7043 }
 0x90d   : > { %v9156_v8 = vld [vmem:[#allocation4 + $0x48] ss:$2 sm:$0x7f]  ;;  %v9158_v45 = vld [vmem:[#allocation4 + $0x49] ss:$2 sm:$0x7f]  ;;  %v8026_v17 = vpop.permute.xlu0 %8025 }
 0x90e   : > { %v9160_v51 = vmax.f32 %v9156_v8, %v9158_v45  ;;  %7135 = vst.msk [vmem:[#allocation3 + $0x3f0] sm:$0xff] %vm3491_vm7, %v7044_v35  ;;  %7799 = vrot.lane.b32.xlu1 %v7677_v1, %s10312_s24  ;;  %v8939_v30 = vpop.f32.mrb[22].mxu1  ;;  %v8354_v35 = vld [vmem:[#allocation3 + $0x478] sm:$0xff] }
 0x90f   : > { %8118 = vst.msk [vmem:[#allocation3 + $0x3d0] sm:$0xff] %vm4479_vm11, %v8026_v17  ;;  %v8941_v43 = vpop.f32.mrb[23].mxu1  ;;  %8045 = vrot.lane.b32.xlu0 %v7923_v25, %s10313_s29 }
 0x910   : > { %v9161_v10 = vmax.f32 %v9159_v38, %v9160_v51  ;;  %v7290_v31 = vpop.permute.xlu1 %7289 }
 0x911   : > { %7381 = vst.msk [vmem:[#allocation3 + $0x3f0] sm:$0xff] %vm3738_vm8, %v7290_v31  ;;  %v7536_v0 = vpop.permute.xlu0 %7535 }
 0x912   : > { %v9162_v37 = vadd.f32 %v14421_v48, %v9161_v10  ;;  %7627 = vst.msk [vmem:[#allocation3 + $0x3f0] sm:$0xff] %vm3985_vm9, %v7536_v0 }
 0x914   : > { %v9163_v16 = vmax.f32 %v9162_v37, 0.0  ;;  %v6800_v46 = vpop.permute.xlu1 %6799 }
 0x915   : > { %6890 = vst.msk [vmem:[#allocation3 + $0x410] sm:$0xff] %vm3244_vm6, %v6800_v46  ;;  %v7782_v23 = vpop.permute.xlu0 %7781 }
 0x916   : > { %9164 = vst.msk [vmem:[%s14432_s26 + $0x7] sm:$0x7f] %vm9149_vm13, %v9163_v16  ;;  %v8333_v21 = vld [vmem:[#allocation3 + $0x3d0] sm:$0xff] }
 0x917   : > { %7873 = vst.msk [vmem:[#allocation3 + $0x3f0] sm:$0xff] %vm4232_vm10, %v7782_v23  ;;  %9033 = vmatmul.mubr.f32.gmra.mrb[60].mxu1 %v8333_v21 }
 0x918   : > { %v7046_v62 = vpop.permute.xlu1 %7045  ;;  %v8944_v6 = vpop.f32.mrb[24].mxu1  ;;  %9546 = vmatprep.mubr.msk.f32.mxu1 %vm2655_vm4, %v8338_v28 }
 0x919   : > { %7136 = vst.msk [vmem:[#allocation3 + $0x410] sm:$0xff] %vm3491_vm7, %v7046_v62  ;;  %v8946_v44 = vpop.f32.mrb[25].mxu1  ;;  %v8028_v15 = vpop.permute.xlu0 %8027 }
 0x91a   : > { %9101 = vst.msk [vmem:[#allocation4 + $0x60] sm:$0xff] %vm9088_vm12, %v8944_v6  ;;  %v8358_v6 = vld [vmem:[#allocation3 + $0x498] sm:$0xff] }
 0x91b   : > { %8119 = vst.msk [vmem:[#allocation3 + $0x3f0] sm:$0xff] %vm4479_vm11, %v8028_v15 }
 0x91c   : > { %v7292_v40 = vpop.permute.xlu1 %7291 }
 0x91d   : > { %7382 = vst.msk [vmem:[#allocation3 + $0x410] sm:$0xff] %vm3738_vm8, %v7292_v40  ;;  %v7538_v47 = vpop.permute.xlu0 %7537 }
 0x91e   : > { %7628 = vst.msk [vmem:[#allocation3 + $0x410] sm:$0xff] %vm3985_vm9, %v7538_v47 }
 0x920   : > { %v6802_v39 = vpop.permute.xlu1 %6801 }
 0x921   : > { %6891 = vst.msk [vmem:[#allocation3 + $0x430] sm:$0xff] %vm3244_vm6, %v6802_v39  ;;  %v8949_v58 = vpop.f32.mrb[26].mxu1  ;;  %v7784_v42 = vpop.permute.xlu0 %7783 }
 0x922   : > { %v8337_v41 = vld [vmem:[#allocation3 + $0x3f0] sm:$0xff]  ;;  %9102 = vst.msk [vmem:[#allocation4 + $0x68] sm:$0xff] %vm9088_vm12, %v8949_v58  ;;  %v8951_v14 = vpop.f32.mrb[27].mxu1  ;;  %v8362_v58 = vld [vmem:[#allocation3 + $0x4b8] sm:$0xff] }
 0x923   : > { %7874 = vst.msk [vmem:[#allocation3 + $0x410] sm:$0xff] %vm4232_vm10, %v7784_v42  ;;  %9038 = vmatmul.mubr.f32.gmra.mrb[62].mxu1 %v8337_v41 }
 0x924   : > { %v7048_v32 = vpop.permute.xlu1 %7047  ;;  %9547 = vmatprep.mubr.msk.f32.mxu1 %vm2655_vm4, %v8342_v27 }
 0x925   : > { %7137 = vst.msk [vmem:[#allocation3 + $0x430] sm:$0xff] %vm3491_vm7, %v7048_v32  ;;  %v8030_v59 = vpop.permute.xlu0 %8029 }
 0x926   : > { %8120 = vst.msk [vmem:[#allocation3 + $0x410] sm:$0xff] %vm4479_vm11, %v8030_v59 }
 0x928   : > { %v7294_v22 = vpop.permute.xlu1 %7293 }
 0x929   : > { %7383 = vst.msk [vmem:[#allocation3 + $0x430] sm:$0xff] %vm3738_vm8, %v7294_v22  ;;  %v7540_v2 = vpop.permute.xlu0 %7539  ;;  %v9166_v38 = vld [vmem:[#allocation4 + $0x60] ss:$2 sm:$0x7f] }
 0x92a   : > { %7629 = vst.msk [vmem:[#allocation3 + $0x430] sm:$0xff] %vm3985_vm9, %v7540_v2  ;;  %v9168_v51 = vld [vmem:[#allocation4 + $0x61] ss:$2 sm:$0x7f] }
 0x92b   : > { %v9173_v50 = vmax.f32 %v9166_v38, %v9168_v51 }
 0x92c   : > { %v6804_v55 = vpop.permute.xlu1 %6803  ;;  %v8954_v60 = vpop.f32.mrb[28].mxu1 }
 0x92d   : > { %6892 = vst.msk [vmem:[#allocation3 + $0x450] sm:$0xff] %vm3244_vm6, %v6804_v55  ;;  %v8956_v36 = vpop.f32.mrb[29].mxu1  ;;  %v7786_v57 = vpop.permute.xlu0 %7785  ;;  %v8341_v34 = vld [vmem:[#allocation3 + $0x410] sm:$0xff] }
 0x92e   : > { %7875 = vst.msk [vmem:[#allocation3 + $0x430] sm:$0xff] %vm4232_vm10, %v7786_v57  ;;  %9043 = vmatmul.mubr.f32.gmra.mrb[64].mxu1 %v8341_v34  ;;  %v8366_v36 = vld [vmem:[#allocation3 + $0x4d8] sm:$0xff] }
 0x92f   : > { %9548 = vmatprep.mubr.msk.f32.mxu1 %vm2655_vm4, %v8346_v52 }
 0x930   : > { %v7050_v9 = vpop.permute.xlu1 %7049 }
 0x931   : > { %7138 = vst.msk [vmem:[#allocation3 + $0x450] sm:$0xff] %vm3491_vm7, %v7050_v9  ;;  %v8032_v20 = vpop.permute.xlu0 %8031 }
 0x932   : > { %8121 = vst.msk [vmem:[#allocation3 + $0x430] sm:$0xff] %vm4479_vm11, %v8032_v20 }
 0x934   : > { %v7296_v12 = vpop.permute.xlu1 %7295 }
 0x935   : > { %7384 = vst.msk [vmem:[#allocation3 + $0x450] sm:$0xff] %vm3738_vm8, %v7296_v12  ;;  %v8959_v63 = vpop.f32.mrb[30].mxu1  ;;  %v7542_v13 = vpop.permute.xlu0 %7541 }
 0x936   : > { %9104 = vst.msk [vmem:[#allocation4 + $0x78] sm:$0xff] %vm9088_vm12, %v8959_v63  ;;  %v8961_v29 = vpop.f32.mrb[31].mxu1 }
 0x937   : > { %7630 = vst.msk [vmem:[#allocation3 + $0x450] sm:$0xff] %vm3985_vm9, %v7542_v13  ;;  %v8370_v29 = vld [vmem:[#allocation3 + $0x4f8] sm:$0xff] }
 0x938   : > { %v6806_v4 = vpop.permute.xlu1 %6805 }
 0x939   : > { %6893 = vst.msk [vmem:[#allocation3 + $0x470] sm:$0xff] %vm3244_vm6, %v6806_v4  ;;  %v7788_v19 = vpop.permute.xlu0 %7787  ;;  %v8345_v56 = vld [vmem:[#allocation3 + $0x430] sm:$0xff] }
 0x93a   : > { %7876 = vst.msk [vmem:[#allocation3 + $0x450] sm:$0xff] %vm4232_vm10, %v7788_v19  ;;  %9048 = vmatmul.mubr.f32.gmra.mrb[66].mxu1 %v8345_v56 }
 0x93b   : > { %9549 = vmatprep.mubr.msk.f32.mxu1 %vm2655_vm4, %v8350_v26 }
 0x93c   : > { %v7052_v49 = vpop.permute.xlu1 %7051 }
 0x93d   : > { %7139 = vst.msk [vmem:[#allocation3 + $0x470] sm:$0xff] %vm3491_vm7, %v7052_v49  ;;  %v8034_v3 = vpop.permute.xlu0 %8033 }
 0x93e   : > { %8122 = vst.msk [vmem:[#allocation3 + $0x450] sm:$0xff] %vm4479_vm11, %v8034_v3 }
 0x940   : > { %v7298_v54 = vpop.permute.xlu1 %7297 }
 0x941   : > { %7385 = vst.msk [vmem:[#allocation3 + $0x470] sm:$0xff] %vm3738_vm8, %v7298_v54  ;;  %v8964_v11 = vpop.f32.mrb[32].mxu1  ;;  %v7544_v24 = vpop.permute.xlu0 %7543 }
 0x942   : > { %9105 = vst.msk [vmem:[#allocation4 + $0x80] sm:$0xff] %vm9088_vm12, %v8964_v11  ;;  %v8966_v61 = vpop.f32.mrb[33].mxu1 }
 0x943   : > { %7631 = vst.msk [vmem:[#allocation3 + $0x470] sm:$0xff] %vm3985_vm9, %v7544_v24  ;;  %v8374_v24 = vld [vmem:[#allocation3 + $0x518] sm:$0xff] }
 0x944   : > { %v6808_v33 = vpop.permute.xlu1 %6807 }
 0x945   : > { %6894 = vst.msk [vmem:[#allocation3 + $0x490] sm:$0xff] %vm3244_vm6, %v6808_v33  ;;  %v7790_v8 = vpop.permute.xlu0 %7789  ;;  %v8349_v45 = vld [vmem:[#allocation3 + $0x450] sm:$0xff] }
 0x946   : > { %7877 = vst.msk [vmem:[#allocation3 + $0x470] sm:$0xff] %vm4232_vm10, %v7790_v8  ;;  %9053 = vmatmul.mubr.f32.gmra.mrb[68].mxu1 %v8349_v45 }
 0x947   : > { %9550 = vmatprep.mubr.msk.f32.mxu1 %vm2655_vm4, %v8354_v35 }
 0x948   : > { %v7054_v53 = vpop.permute.xlu1 %7053 }
 0x949   : > { %7140 = vst.msk [vmem:[#allocation3 + $0x490] sm:$0xff] %vm3491_vm7, %v7054_v53  ;;  %v9170_v18 = vld [vmem:[#allocation4 + $0x78] ss:$2 sm:$0x7f]  ;;  %v8036_v5 = vpop.permute.xlu0 %8035 }
 0x94a   : > { %v9172_v1 = vld [vmem:[#allocation4 + $0x79] ss:$2 sm:$0x7f]  ;;  %8123 = vst.msk [vmem:[#allocation3 + $0x470] sm:$0xff] %vm4479_vm11, %v8036_v5 }
 0x94b   : > { %v9174_v10 = vmax.f32 %v9170_v18, %v9172_v1 }
 0x94c   : > { %v7300_v7 = vpop.permute.xlu1 %7299 }
 0x94d   : > { %7386 = vst.msk [vmem:[#allocation3 + $0x490] sm:$0xff] %vm3738_vm8, %v7300_v7  ;;  %v9175_v31 = vmax.f32 %v9173_v50, %v9174_v10  ;;  %v8969_v30 = vpop.f32.mrb[34].mxu1  ;;  %v7546_v17 = vpop.permute.xlu0 %7545 }
 0x94e   : > { %7632 = vst.msk [vmem:[#allocation3 + $0x490] sm:$0xff] %vm3985_vm9, %v7546_v17  ;;  %v8971_v25 = vpop.f32.mrb[35].mxu1 }
 0x94f   : > { %v9176_v43 = vadd.f32 %v14421_v48, %v9175_v31 }
 0x950   : > { %v6810_v37 = vpop.permute.xlu1 %6809 }
 0x951   : > { %6895 = vst.msk [vmem:[#allocation3 + $0x4b0] sm:$0xff] %vm3244_vm6, %v6810_v37  ;;  %v9177_v16 = vmax.f32 %v9176_v43, 0.0  ;;  %v7792_v0 = vpop.permute.xlu0 %7791  ;;  %v8353_v62 = vld [vmem:[#allocation3 + $0x470] sm:$0xff] }
 0x952   : > { %7878 = vst.msk [vmem:[#allocation3 + $0x490] sm:$0xff] %vm4232_vm10, %v7792_v0  ;;  %9058 = vmatmul.mubr.f32.gmra.mrb[70].mxu1 %v8353_v62 }
 0x953   : > { %9178 = vst.msk [vmem:[%s14432_s26 + $0xe] sm:$0x7f] %vm9149_vm13, %v9177_v16  ;;  %9551 = vmatprep.mubr.msk.f32.mxu1 %vm2655_vm4, %v8358_v6 }
 0x954   : > { %v7056_v46 = vpop.permute.xlu1 %7055 }
 0x955   : > { %7141 = vst.msk [vmem:[#allocation3 + $0x4b0] sm:$0xff] %vm3491_vm7, %v7056_v46  ;;  %v8038_v44 = vpop.permute.xlu0 %8037 }
 0x956   : > { %8124 = vst.msk [vmem:[#allocation3 + $0x490] sm:$0xff] %vm4479_vm11, %v8038_v44 }
 0x958   : > { %v7302_v23 = vpop.permute.xlu1 %7301 }
 0x959   : > { %7387 = vst.msk [vmem:[#allocation3 + $0x4b0] sm:$0xff] %vm3738_vm8, %v7302_v23  ;;  %v8974_v28 = vpop.f32.mrb[36].mxu1  ;;  %v7548_v40 = vpop.permute.xlu0 %7547 }
 0x95a   : > { %9107 = vst.msk [vmem:[#allocation4 + $0x90] sm:$0xff] %vm9088_vm12, %v8974_v28  ;;  %v8976_v15 = vpop.f32.mrb[37].mxu1 }
 0x95b   : > { %7633 = vst.msk [vmem:[#allocation3 + $0x4b0] sm:$0xff] %vm3985_vm9, %v7548_v40 }
 0x95c   : > { %v6812_v21 = vpop.permute.xlu1 %6811 }
 0x95d   : > { %6896 = vst.msk [vmem:[#allocation3 + $0x4d0] sm:$0xff] %vm3244_vm6, %v6812_v21  ;;  %v7794_v47 = vpop.permute.xlu0 %7793  ;;  %v8357_v32 = vld [vmem:[#allocation3 + $0x490] sm:$0xff] }
 0x95e   : > { %7879 = vst.msk [vmem:[#allocation3 + $0x4b0] sm:$0xff] %vm4232_vm10, %v7794_v47  ;;  %9063 = vmatmul.mubr.f32.gmra.mrb[72].mxu1 %v8357_v32 }
 0x95f   : > { %9552 = vmatprep.mubr.msk.f32.mxu1 %vm2655_vm4, %v8362_v58 }
 0x960   : > { %v7058_v39 = vpop.permute.xlu1 %7057 }
 0x961   : > { %7142 = vst.msk [vmem:[#allocation3 + $0x4d0] sm:$0xff] %vm3491_vm7, %v7058_v39  ;;  %v8040_v41 = vpop.permute.xlu0 %8039 }
 0x962   : > { %8125 = vst.msk [vmem:[#allocation3 + $0x4b0] sm:$0xff] %vm4479_vm11, %v8040_v41 }
 0x964   : > { %v7304_v42 = vpop.permute.xlu1 %7303 }
 0x965   : > { %7388 = vst.msk [vmem:[#allocation3 + $0x4d0] sm:$0xff] %vm3738_vm8, %v7304_v42  ;;  %v8979_v27 = vpop.f32.mrb[38].mxu1  ;;  %v7550_v22 = vpop.permute.xlu0 %7549 }
 0x966   : > { %9108 = vst.msk [vmem:[#allocation4 + $0x98] sm:$0xff] %vm9088_vm12, %v8979_v27  ;;  %v8981_v59 = vpop.f32.mrb[39].mxu1 }
 0x967   : > { %7634 = vst.msk [vmem:[#allocation3 + $0x4d0] sm:$0xff] %vm3985_vm9, %v7550_v22 }
 0x968   : > { %v6814_v14 = vpop.permute.xlu1 %6813 }
 0x969   : > { %6897 = vst.msk [vmem:[#allocation3 + $0x4f0] sm:$0xff] %vm3244_vm6, %v6814_v14  ;;  %v7796_v60 = vpop.permute.xlu0 %7795  ;;  %v8361_v2 = vld [vmem:[#allocation3 + $0x4b0] sm:$0xff] }
 0x96a   : > { %7880 = vst.msk [vmem:[#allocation3 + $0x4d0] sm:$0xff] %vm4232_vm10, %v7796_v60  ;;  %9068 = vmatmul.mubr.f32.gmra.mrb[74].mxu1 %v8361_v2 }
 0x96b   : > { %9553 = vmatprep.mubr.msk.f32.mxu1 %vm2655_vm4, %v8366_v36 }
 0x96c   : > { %v7060_v55 = vpop.permute.xlu1 %7059 }
 0x96d   : > { %7143 = vst.msk [vmem:[#allocation3 + $0x4f0] sm:$0xff] %vm3491_vm7, %v7060_v55  ;;  %v8042_v57 = vpop.permute.xlu0 %8041  ;;  %v9180_v45 = vld [vmem:[#allocation4 + $0x90] ss:$2 sm:$0x7f] }
 0x96e   : > { %8126 = vst.msk [vmem:[#allocation3 + $0x4d0] sm:$0xff] %vm4479_vm11, %v8042_v57  ;;  %v9182_v35 = vld [vmem:[#allocation4 + $0x91] ss:$2 sm:$0x7f] }
 0x96f   : > { %v9187_v7 = vmax.f32 %v9180_v45, %v9182_v35 }
 0x970   : > { %v7306_v9 = vpop.permute.xlu1 %7305 }
 0x971   : > { %7389 = vst.msk [vmem:[#allocation3 + $0x4f0] sm:$0xff] %vm3738_vm8, %v7306_v9  ;;  %v8984_v52 = vpop.f32.mrb[40].mxu1  ;;  %v7552_v12 = vpop.permute.xlu0 %7551 }
 0x972   : > { %7635 = vst.msk [vmem:[#allocation3 + $0x4f0] sm:$0xff] %vm3985_vm9, %v7552_v12  ;;  %v8986_v20 = vpop.f32.mrb[41].mxu1 }
 0x974   : > { %v6816_v34 = vpop.permute.xlu1 %6815 }
 0x975   : > { %6898 = vst.msk [vmem:[#allocation3 + $0x510] sm:$0xff] %vm3244_vm6, %v6816_v34  ;;  %v7798_v63 = vpop.permute.xlu0 %7797  ;;  %v8365_v13 = vld [vmem:[#allocation3 + $0x4d0] sm:$0xff] }
 0x976   : > { %7881 = vst.msk [vmem:[#allocation3 + $0x4f0] sm:$0xff] %vm4232_vm10, %v7798_v63  ;;  %9073 = vmatmul.mubr.f32.gmra.mrb[76].mxu1 %v8365_v13 }
 0x977   : > { %9554 = vmatprep.mubr.msk.f32.mxu1 %vm2655_vm4, %v8370_v29 }
 0x978   : > { %v7062_v4 = vpop.permute.xlu1 %7061 }
 0x979   : > { %7144 = vst.msk [vmem:[#allocation3 + $0x510] sm:$0xff] %vm3491_vm7, %v7062_v4  ;;  %v8044_v19 = vpop.permute.xlu0 %8043 }
 0x97a   : > { %8127 = vst.msk [vmem:[#allocation3 + $0x4f0] sm:$0xff] %vm4479_vm11, %v8044_v19 }
 0x97c   : > { %v7308_v49 = vpop.permute.xlu1 %7307 }
 0x97d   : > { %7390 = vst.msk [vmem:[#allocation3 + $0x510] sm:$0xff] %vm3738_vm8, %v7308_v49  ;;  %v7554_v54 = vpop.permute.xlu0 %7553 }
 0x97e   : > { %v8989_v26 = vpop.f32.mrb[42].mxu1  ;;  %7636 = vst.msk [vmem:[#allocation3 + $0x510] sm:$0xff] %vm3985_vm9, %v7554_v54 }
 0x97f   : > { %9110 = vst.msk [vmem:[#allocation4 + $0xa8] sm:$0xff] %vm9088_vm12, %v8989_v26  ;;  %v8991_v3 = vpop.f32.mrb[43].mxu1 }
 0x980   : > { %v7800_v56 = vpop.permute.xlu1 %7799 }
 0x981   : > { %7882 = vst.msk [vmem:[#allocation3 + $0x510] sm:$0xff] %vm4232_vm10, %v7800_v56  ;;  %v8046_v33 = vpop.permute.xlu0 %8045  ;;  %v8369_v11 = vld [vmem:[#allocation3 + $0x4f0] sm:$0xff] }
 0x982   : > { %8128 = vst.msk [vmem:[#allocation3 + $0x510] sm:$0xff] %vm4479_vm11, %v8046_v33  ;;  %9078 = vmatmul.mubr.f32.gmra.mrb[78].mxu1 %v8369_v11 }
 0x983   : > { %9555 = vmatprep.mubr.msk.f32.mxu1 %vm2655_vm4, %v8374_v24 }
 0x989   : > { %v8994_v61 = vpop.f32.mrb[44].mxu1  ;;  %v8373_v53 = vld [vmem:[#allocation3 + $0x510] sm:$0xff] }
 0x98a   : > { %9111 = vst.msk [vmem:[#allocation4 + $0xb0] sm:$0xff] %vm9088_vm12, %v8994_v61  ;;  %v8996_v8 = vpop.f32.mrb[45].mxu1  ;;  %9083 = vmatmul.mubr.f32.gmra.mrb[80].mxu1 %v8373_v53 }
 0x991   : > { %v9184_v38 = vld [vmem:[#allocation4 + $0xa8] ss:$2 sm:$0x7f]  ;;  %v9186_v51 = vld [vmem:[#allocation4 + $0xa9] ss:$2 sm:$0x7f] }
 0x992   : > { %v9188_v18 = vmax.f32 %v9184_v38, %v9186_v51 }
 0x994   : > { %v9189_v1 = vmax.f32 %v9187_v7, %v9188_v18 }
 0x995   : > { %v8999_v5 = vpop.f32.mrb[46].mxu1 }
 0x996   : > { %v9190_v50 = vadd.f32 %v14421_v48, %v9189_v1  ;;  %v9001_v10 = vpop.f32.mrb[47].mxu1 }
 0x998   : > { %v9191_v31 = vmax.f32 %v9190_v50, 0.0 }
 0x99a   : > { %9192 = vst.msk [vmem:[%s14432_s26 + $0x15] sm:$0x7f] %vm9149_vm13, %v9191_v31 }
 0x9a1   : > { %v9004_v37 = vpop.f32.mrb[48].mxu1 }
 0x9a2   : > { %9113 = vst.msk [vmem:[#allocation4 + $0xc0] sm:$0xff] %vm9088_vm12, %v9004_v37  ;;  %v9006_v30 = vpop.f32.mrb[49].mxu1 }
 0x9ae   : > { %v9009_v17 = vpop.f32.mrb[50].mxu1 }
 0x9af   : > { %9114 = vst.msk [vmem:[#allocation4 + $0xc8] sm:$0xff] %vm9088_vm12, %v9009_v17  ;;  %v9011_v43 = vpop.f32.mrb[51].mxu1 }
 0x9b6   : > { %v9194_v23 = vld [vmem:[#allocation4 + $0xc0] ss:$2 sm:$0x7f]  ;;  %v9196_v44 = vld [vmem:[#allocation4 + $0xc1] ss:$2 sm:$0x7f] }
 0x9b7   : > { %v9201_v40 = vmax.f32 %v9194_v23, %v9196_v44 }
 0x9ba   : > { %v9014_v25 = vpop.f32.mrb[52].mxu1 }
 0x9bb   : > { %v9016_v16 = vpop.f32.mrb[53].mxu1 }
 0x9c5   : > { %v9019_v46 = vpop.f32.mrb[54].mxu1 }
 0x9c6   : > { %9116 = vst.msk [vmem:[#allocation4 + $0xd8] sm:$0xff] %vm9088_vm12, %v9019_v46  ;;  %v9021_v0 = vpop.f32.mrb[55].mxu1 }
 0x9d1   : > { %v9024_v62 = vpop.f32.mrb[56].mxu1 }
 0x9d2   : > { %9117 = vst.msk [vmem:[#allocation4 + $0xe0] sm:$0xff] %vm9088_vm12, %v9024_v62  ;;  %v9026_v6 = vpop.f32.mrb[57].mxu1 }
 0x9d9   : > { %v9198_v21 = vld [vmem:[#allocation4 + $0xd8] ss:$2 sm:$0x7f]  ;;  %v9200_v28 = vld [vmem:[#allocation4 + $0xd9] ss:$2 sm:$0x7f] }
 0x9da   : > { %v9202_v15 = vmax.f32 %v9198_v21, %v9200_v28 }
 0x9dc   : > { %v9203_v39 = vmax.f32 %v9201_v40, %v9202_v15 }
 0x9dd   : > { %v9029_v47 = vpop.f32.mrb[58].mxu1 }
 0x9de   : > { %v9204_v32 = vadd.f32 %v14421_v48, %v9203_v39  ;;  %v9031_v58 = vpop.f32.mrb[59].mxu1 }
 0x9e0   : > { %v9205_v42 = vmax.f32 %v9204_v32, 0.0 }
 0x9e2   : > { %9206 = vst.msk [vmem:[%s14432_s26 + $0x1c] sm:$0x7f] %vm9149_vm13, %v9205_v42 }
 0x9ea   : > { %v9034_v41 = vpop.f32.mrb[60].mxu1 }
 0x9eb   : > { %9119 = vst.msk [vmem:[#allocation4 + $0xf0] sm:$0xff] %vm9088_vm12, %v9034_v41  ;;  %v9036_v14 = vpop.f32.mrb[61].mxu1 }
 0x9f6   : > { %v9039_v27 = vpop.f32.mrb[62].mxu1 }
 0x9f7   : > { %9120 = vst.msk [vmem:[#allocation4 + $0xf8] sm:$0xff] %vm9088_vm12, %v9039_v27  ;;  %v9041_v22 = vpop.f32.mrb[63].mxu1 }
 0x9fe   : > { %v9208_v57 = vld [vmem:[#allocation4 + $0xf0] ss:$2 sm:$0x7f]  ;;  %v9210_v34 = vld [vmem:[#allocation4 + $0xf1] ss:$2 sm:$0x7f] }
 0x9ff   : > { %v9215_v20 = vmax.f32 %v9208_v57, %v9210_v34 }
 0xa01   : > { %v9044_v59 = vpop.f32.mrb[64].mxu1 }
 0xa02   : > { %v9046_v55 = vpop.f32.mrb[65].mxu1 }
 0xa0d   : > { %v9049_v60 = vpop.f32.mrb[66].mxu1 }
 0xa0e   : > { %9122 = vst.msk [vmem:[#allocation4 + $0x108] sm:$0xff] %vm9088_vm12, %v9049_v60  ;;  %v9051_v2 = vpop.f32.mrb[67].mxu1 }
 0xa19   : > { %v9054_v36 = vpop.f32.mrb[68].mxu1 }
 0xa1a   : > { %9123 = vst.msk [vmem:[#allocation4 + $0x110] sm:$0xff] %vm9088_vm12, %v9054_v36  ;;  %v9056_v9 = vpop.f32.mrb[69].mxu1 }
 0xa21   : > { %v9212_v52 = vld [vmem:[#allocation4 + $0x108] ss:$2 sm:$0x7f]  ;;  %v9214_v12 = vld [vmem:[#allocation4 + $0x109] ss:$2 sm:$0x7f] }
 0xa22   : > { %v9216_v4 = vmax.f32 %v9212_v52, %v9214_v12 }
 0xa24   : > { %v9217_v63 = vmax.f32 %v9215_v20, %v9216_v4 }
 0xa25   : > { %v9059_v13 = vpop.f32.mrb[70].mxu1 }
 0xa26   : > { %v9218_v29 = vadd.f32 %v14421_v48, %v9217_v63  ;;  %v9061_v49 = vpop.f32.mrb[71].mxu1 }
 0xa28   : > { %v9219_v19 = vmax.f32 %v9218_v29, 0.0 }
 0xa2a   : > { %9220 = vst.msk [vmem:[%s14432_s26 + $0x23] sm:$0x7f] %vm9149_vm13, %v9219_v19 }
 0xa31   : > { %v9064_v56 = vpop.f32.mrb[72].mxu1 }
 0xa32   : > { %9125 = vst.msk [vmem:[#allocation4 + $0x120] sm:$0xff] %vm9088_vm12, %v9064_v56  ;;  %v9066_v26 = vpop.f32.mrb[73].mxu1 }
 0xa3d   : > { %v9069_v54 = vpop.f32.mrb[74].mxu1 }
 0xa3e   : > { %9126 = vst.msk [vmem:[#allocation4 + $0x128] sm:$0xff] %vm9088_vm12, %v9069_v54  ;;  %v9071_v3 = vpop.f32.mrb[75].mxu1 }
 0xa45   : > { %v9222_v45 = vld [vmem:[#allocation4 + $0x120] ss:$2 sm:$0x7f]  ;;  %v9224_v35 = vld [vmem:[#allocation4 + $0x121] ss:$2 sm:$0x7f] }
 0xa46   : > { %v9229_v7 = vmax.f32 %v9222_v45, %v9224_v35 }
 0xa49   : > { %v9074_v33 = vpop.f32.mrb[76].mxu1 }
 0xa4a   : > { %v9076_v11 = vpop.f32.mrb[77].mxu1 }
 0xa55   : > { %v9079_v24 = vpop.f32.mrb[78].mxu1 }
 0xa56   : > { %9128 = vst.msk [vmem:[#allocation4 + $0x138] sm:$0xff] %vm9088_vm12, %v9079_v24  ;;  %v9081_v61 = vpop.f32.mrb[79].mxu1 }
 0xa5d   : > { %v9084_v53 = vpop.f32.mrb[80].mxu1 }
 0xa5e   : > { %9129 = vst.msk [vmem:[#allocation4 + $0x140] sm:$0xff] %vm9088_vm12, %v9084_v53  ;;  %v9086_v8 = vpop.f32.mrb[81].mxu1 }
 0xa65   : > { %v9226_v38 = vld [vmem:[#allocation4 + $0x138] ss:$2 sm:$0x7f]  ;;  %v9228_v51 = vld [vmem:[#allocation4 + $0x139] ss:$2 sm:$0x7f] }
 0xa66   : > { %v9230_v18 = vmax.f32 %v9226_v38, %v9228_v51 }
 0xa68   : > { %v9231_v1 = vmax.f32 %v9229_v7, %v9230_v18 }
 0xa6a   : > { %v9232_v5 = vadd.f32 %v14421_v48, %v9231_v1 }
 0xa6c   : > { %v9233_v50 = vmax.f32 %v9232_v5, 0.0 }
 0xa6e   : > { %9234 = vst.msk [vmem:[%s14432_s26 + $0x2a] sm:$0x7f] %vm9149_vm13, %v9233_v50 }
 0xa6f PF: > { %s16_s21 = sadd.s32 1, %s10304_s21  }
 0xa70   : > { %p13_p4 = scmp.ge.s32.totalorder %s16_s21, 4  }
 0xa72   :  { %15 = sbr.rel (!%p13_p4) target bundleno = 1 (0x1), region = 101 }

</bundles_post_ra>
